<compile_context>
chip_gen: v7x
topology: tpu7x:2x2x1
jax: 0.10.0
libtpu: 0.0.40
codegen_flags: <defaults>
</compile_context>

<pallas_src>
import functools
import math

import jax
import jax.numpy as jnp
import numpy as np
from jax.experimental import pallas as pl
from jax.experimental.pallas import tpu as pltpu

TWO_PI = 2.0 * math.pi
TABLE_STEPS = 2048          # size of the module's registered cos lookup table
LN_EPS = 1e-5
CHUNK_SIZE = 64


def _softmax_last(s):
    m = jnp.max(s, axis=-1, keepdims=True)
    e = jnp.exp(s - m)
    # approx reciprocal runs on the EUP slot; ~1e-3 rel error, fine at 5e-2 tol.
    return e * pl.reciprocal(jnp.sum(e, axis=-1, keepdims=True), approx=True)


def _heads_major(m2d, n_heads, head_dim, batch, seq):
    """(n_heads*head_dim, batch*seq) feature-major -> (n_heads*batch, seq, head_dim).

    Only tile-aligned reshapes + a batched minor-two transpose (no 4-D permutes).
    """
    t = m2d.reshape(n_heads, head_dim, batch * seq)
    t = jnp.swapaxes(t, -2, -1)                        # (H, B*L, hd)
    return t.reshape(n_heads * batch, seq, head_dim)   # row-major consistent


def _hybrid_attention_kernel(
    x_ref,                    # (Bt, L, D)     f32
    freq_ref, shift_ref,      # (QH*Bt, 1, 1)  f32, pre-scaled by TABLE_STEPS/2pi
    w_qs_ref,                 # (QH*2hd, D)    bf16 block-diag quantum weight (transposed)
    b_qs_ref,                 # (QH*2hd, 1)    f32
    g_qs_ref, beta_qs_ref,    # (QH*2hd, 1)    f32  LayerNorm affine tiled per head
    grp_ref,                  # (QH*hd, QH*hd) f32  block-ones matrix (per-head LN stats)
    w_qkv_ref,                # (3*T*hd, D)    bf16 fused traditional QKV (transposed)
    w_out_ref,                # (D, D)         bf16
    b_out_ref,                # (1, D)         f32
    out_ref,                  # (Bt, L, D)     f32
    *, num_heads, quantum_heads,
):
    B, L, D = x_ref.shape
    hd = D // num_heads
    QH = quantum_heads
    T = num_heads - QH
    BL = B * L
    inv_sqrt_hd = 1.0 / math.sqrt(hd)

    x3 = x_ref[...]
    x2t = x3.reshape(BL, D).T                   # (D, BL): single 2-D transpose
    x2t_bf = x2t.astype(jnp.bfloat16)
    w_out = w_out_ref[...]                      # bf16 (D, D)

    # accumulate the output projection directly (no merged scratch; every MXU
    # output stays 256 lanes wide).  Bias added once up front.
    y = jnp.zeros((BL, D), jnp.float32) + b_out_ref[...]

    # ------------------------- quantum heads (batched) -------------------------
    if QH > 0:
        # one block-diagonal Linear for ALL quantum heads (K = D = 256).
        zt = jnp.dot(w_qs_ref[...], x2t_bf,
                     preferred_element_type=jnp.float32) + b_qs_ref[...]
        a_pre = zt[:QH * hd, :]                 # (QH*hd, BL)  amplitude pre-LN
        p_pre = zt[QH * hd:, :]                 # (QH*hd, BL)  phase pre-LN
        # per-head LayerNorm stats via block-ones matmul (broadcast back per group)
        inv_feat = 1.0 / (2.0 * hd)
        g = grp_ref[...]
        mean = jnp.dot(g, a_pre + p_pre, preferred_element_type=jnp.float32) * inv_feat
        ex2 = jnp.dot(g, a_pre * a_pre + p_pre * p_pre,
                      preferred_element_type=jnp.float32) * inv_feat
        rstd = jax.lax.rsqrt(ex2 - mean * mean + LN_EPS)
        gam = g_qs_ref[...]
        bet = beta_qs_ref[...]
        # fold the 1/sqrt(hd) score scaling into the amplitudes (hits both sides)
        amp = jnp.tanh((a_pre - mean) * rstd * gam[:QH * hd, :] +
                       bet[:QH * hd, :]) * (hd ** -0.25)
        phs = jnp.tanh((p_pre - mean) * rstd * gam[QH * hd:, :] + bet[QH * hd:, :])

        a_h = _heads_major(amp, QH, hd, B, L)               # (QH*B, L, hd)
        p_h = _heads_major(phs, QH, hd, B, L)
        v_h = _heads_major(x2t[:QH * hd, :], QH, hd, B, L)  # v == per-head x slice

        # quantum interference (requires L == hd): pd[n,i,j] = phase[n,i,j]-phase[n,j,i]
        pd = p_h - jnp.swapaxes(p_h, -2, -1)
        idx = jnp.floor(jnp.mod(pd * freq_ref[...] + shift_ref[...],
                                float(TABLE_STEPS)))
        # TODO(synk): the module's cos_table gather is replaced by recomputing
        # cos at the same quantized angles (table[i] == cos(i*2pi/(TABLE_STEPS-1))).
        inter = jnp.cos(idx * (TWO_PI / float(TABLE_STEPS - 1)))

        ab = a_h.astype(jnp.bfloat16)
        scores = jnp.einsum('nid,njd->nij', ab, ab,
                            preferred_element_type=jnp.float32)
        att = _softmax_last(scores * inter)
        o_q = jnp.einsum('nij,njd->nid', att.astype(jnp.bfloat16),
                         v_h.astype(jnp.bfloat16),
                         preferred_element_type=jnp.float32)   # (QH*B, L, hd)
        o_q = o_q.reshape(QH, BL, hd).astype(jnp.bfloat16)
        w_out_q = w_out[:QH * hd, :].reshape(QH, hd, D)
        y = y + jnp.einsum('hnd,hde->hne', o_q, w_out_q,
                           preferred_element_type=jnp.float32).sum(axis=0)

    # ----------------------- traditional heads (batched) -----------------------
    if T > 0:
        qkvt = jnp.dot(w_qkv_ref[...], x2t_bf,
                       preferred_element_type=jnp.float32)     # (3*T*hd, BL)
        q_h = _heads_major(qkvt[:T * hd, :] * inv_sqrt_hd, T, hd, B, L)
        k_h = _heads_major(qkvt[T * hd:2 * T * hd, :], T, hd, B, L)
        v_h = _heads_major(qkvt[2 * T * hd:, :], T, hd, B, L)
        s = jnp.einsum('nid,njd->nij', q_h.astype(jnp.bfloat16),
                       k_h.astype(jnp.bfloat16),
                       preferred_element_type=jnp.float32)
        att = _softmax_last(s)
        o_t = jnp.einsum('nij,njd->nid', att.astype(jnp.bfloat16),
                         v_h.astype(jnp.bfloat16),
                         preferred_element_type=jnp.float32)   # (T*B, L, hd)
        o_t = o_t.reshape(T, BL, hd).astype(jnp.bfloat16)
        w_out_t = w_out[QH * hd:, :].reshape(T, hd, D)
        y = y + jnp.einsum('hnd,hde->hne', o_t, w_out_t,
                           preferred_element_type=jnp.float32).sum(axis=0)

    out_ref[...] = y.reshape(B, L, D)


def fast_hybrid_quantum_attention(x, params, *, num_heads, quantum_heads,
                                  batch_block=None):
    B, L, D = x.shape
    hd = D // num_heads
    QH = quantum_heads
    T = num_heads - QH
    assert L <= CHUNK_SIZE, "example restricted to a single chunk"
    assert L == hd, ("original module's quantum interference broadcast requires "
                     "the chunk length to equal head_dim")
    assert 0 < QH < num_heads, "example uses both head types"
    bt = B if batch_block is None else batch_block    # v7x: pass B//2 to use both TCs
    assert B % bt == 0

    f32, bf16 = jnp.float32, jnp.bfloat16

    # ------- pack parameters into kernel-friendly layouts (one-time prep) -------
    # block-diagonal, transposed quantum-state weight; output-row layout is
    # [amp_h0 | .. | amp_h{QH-1} | phase_h0 | .. | phase_h{QH-1}]
    w_amp = params["w_qs"][:, :hd].T
    w_phs = params["w_qs"][:, hd:].T
    w_qs_blk = jnp.zeros((QH * 2 * hd, D), f32)
    for h in range(QH):
        cs = slice(h * hd, (h + 1) * hd)
        w_qs_blk = w_qs_blk.at[h * hd:(h + 1) * hd, cs].set(w_amp)
        w_qs_blk = w_qs_blk.at[QH * hd + h * hd:QH * hd + (h + 1) * hd, cs].set(w_phs)
    w_qs_blk = w_qs_blk.astype(bf16)

    def tiled_col(v):                        # (n,) -> per-head tiled (QH*n, 1)
        return jnp.tile(v, QH).reshape(QH * v.shape[0], 1)

    b_qs, gam, bet = params["b_qs"][0], params["ln_gamma"][0], params["ln_beta"][0]
    b_blk = jnp.concatenate([tiled_col(b_qs[:hd]), tiled_col(b_qs[hd:])], axis=0)
    g_blk = jnp.concatenate([tiled_col(gam[:hd]), tiled_col(gam[hd:])], axis=0)
    be_blk = jnp.concatenate([tiled_col(bet[:hd]), tiled_col(bet[hd:])], axis=0)

    gid = np.arange(QH * hd) // hd           # block-ones matrix for per-head LN stats
    grp = jnp.asarray((gid[:, None] == gid[None, :]).astype(np.float32))

    # fused + transposed traditional QKV and output projection (bf16 MXU operands)
    w_qkv_t = jnp.concatenate([params["w_q"], params["w_k"], params["w_v"]],
                              axis=1).T.astype(bf16)
    w_out = params["w_out"].astype(bf16)

    # pre-scale the phase constants by TABLE_STEPS / 2pi (one mad before the mod)
    idx_scale = float(TABLE_STEPS) / TWO_PI
    freq_b = jnp.repeat(params["q_freq"] * idx_scale, bt).reshape(QH * bt, 1, 1)
    shift_b = jnp.repeat(params["q_shift"] * idx_scale, bt).reshape(QH * bt, 1, 1)

    kernel = functools.partial(_hybrid_attention_kernel,
                               num_heads=num_heads, quantum_heads=quantum_heads)

    def rep(shape):                          # whole-array block, constant across grid
        nd = len(shape)
        return pl.BlockSpec(shape, lambda i, _n=nd: (0,) * _n)

    in_specs = [
        pl.BlockSpec((bt, L, D), lambda i: (i, 0, 0)),   # x: batch-tiled
        rep((QH * bt, 1, 1)), rep((QH * bt, 1, 1)),      # freq / shift
        rep((QH * 2 * hd, D)), rep((QH * 2 * hd, 1)),    # quantum-state weight / bias
        rep((QH * 2 * hd, 1)), rep((QH * 2 * hd, 1)),    # LN gamma / beta
        rep((QH * hd, QH * hd)),                         # block-ones group matrix
        rep((3 * T * hd, D)),                            # fused QKV (transposed)
        rep((D, D)), rep((1, D)),                        # output projection
    ]

    return pl.pallas_call(
        kernel,
        grid=(B // bt,),
        in_specs=in_specs,
        out_specs=pl.BlockSpec((bt, L, D), lambda i: (i, 0, 0)),
        out_shape=jax.ShapeDtypeStruct((B, L, D), f32),
        compiler_params=pltpu.CompilerParams(
            dimension_semantics=("parallel",)),
    )(x, freq_b, shift_b, w_qs_blk, b_blk, g_blk, be_blk, grp,
      w_qkv_t, w_out, params["b_out"])


# --------------------- deterministic parameter init ---------------------
def init_params(key, dim, num_heads, quantum_heads):
    head_dim = dim // num_heads
    trad_heads = num_heads - quantum_heads
    keys = jax.random.split(key, 10)

    def lin(k, fan_in, fan_out):
        bound = 1.0 / math.sqrt(fan_in)
        return jax.random.uniform(k, (fan_in, fan_out), jnp.float32,
                                  -bound, bound)

    return {
        "q_freq": jax.random.normal(keys[0], (quantum_heads,),
                                    jnp.float32) * 0.02,
        "q_shift": jax.random.normal(keys[1], (quantum_heads,),
                                     jnp.float32) * 0.02,
        "w_qs": lin(keys[2], head_dim, 2 * head_dim),
        "b_qs": lin(keys[3], 1, 2 * head_dim),
        "ln_gamma": jnp.ones((1, 2 * head_dim), jnp.float32),
        "ln_beta": jnp.zeros((1, 2 * head_dim), jnp.float32),
        "w_q": lin(keys[4], dim, trad_heads * head_dim),
        "w_k": lin(keys[5], dim, trad_heads * head_dim),
        "w_v": lin(keys[6], dim, trad_heads * head_dim),
        "w_out": lin(keys[7], dim, dim),
        "b_out": lin(keys[8], 1, dim),
    }


# --------------------- pure-JAX reference (for checking) ---------------------
def reference_forward(x, params, *, num_heads, quantum_heads):
    B, L, D = x.shape
    head_dim = D // num_heads
    trad_heads = num_heads - quantum_heads

    def to_quantum_state(z_in):
        z = z_in @ params["w_qs"] + params["b_qs"]
        mu = z.mean(-1, keepdims=True)
        var = ((z - mu) ** 2).mean(-1, keepdims=True)
        zn = (z - mu) / jnp.sqrt(var + LN_EPS)
        return jnp.tanh(zn * params["ln_gamma"] + params["ln_beta"])

    outs = []
    for h in range(quantum_heads):
        xh = x[:, :, h * head_dim:(h + 1) * head_dim]
        qs = to_quantum_state(xh.reshape(B * L, head_dim)).reshape(
            B, L, 2 * head_dim)
        amp, phase = qs[..., :head_dim], qs[..., head_dim:]
        pd = (phase - jnp.swapaxes(phase, -2, -1)) * params["q_freq"][h] \
            + params["q_shift"][h]
        idx = jnp.mod(pd / TWO_PI * float(TABLE_STEPS),
                      float(TABLE_STEPS)).astype(jnp.int32)
        inter = jnp.cos(idx.astype(jnp.float32) *
                        (TWO_PI / float(TABLE_STEPS - 1)))
        scores = jnp.einsum("bij,bkj->bik", amp, amp)
        att = jax.nn.softmax(scores * inter / math.sqrt(head_dim), axis=-1)
        outs.append(jnp.einsum("bij,bjd->bid", att, xh))

    def split_heads(t):
        return t.reshape(B, L, trad_heads, head_dim).transpose(0, 2, 1, 3)

    q = split_heads(x @ params["w_q"])
    k = split_heads(x @ params["w_k"])
    v = split_heads(x @ params["w_v"])
    s = jnp.einsum("bhid,bhjd->bhij", q, k) / math.sqrt(head_dim)
    att = jax.nn.softmax(s, axis=-1)
    trad = jnp.einsum("bhij,bhjd->bhid", att, v).transpose(0, 2, 1, 3)
    trad = trad.reshape(B, L, trad_heads * head_dim)

    merged = jnp.concatenate(outs + [trad], axis=-1)
    return merged @ params["w_out"] + params["b_out"]


if __name__ == "__main__":
    DIM = 256                          # module default MODEL_DIM
    NUM_HEADS = 8
    QUANTUM_HEADS = 2
    HEAD_DIM = DIM // NUM_HEADS        # 32
    B, L = 2, HEAD_DIM                 # L == head_dim (see layout note above)

    key = jax.random.PRNGKey(0)
    kx, kp = jax.random.split(key)
    x = jax.random.normal(kx, (B, L, DIM), jnp.float32)
    params = init_params(kp, DIM, NUM_HEADS, QUANTUM_HEADS)

    out = fast_hybrid_quantum_attention(
        x, params, num_heads=NUM_HEADS, quantum_heads=QUANTUM_HEADS)
    out = jax.block_until_ready(out)

    ref = jax.block_until_ready(reference_forward(
        x, params, num_heads=NUM_HEADS, quantum_heads=QUANTUM_HEADS))
    np.testing.assert_allclose(np.asarray(out), np.asarray(ref),
                               rtol=5e-2, atol=5e-2)
    print("KERNEL_OK")
</pallas_src>

<mosaic_0001>
module attributes {stable_mosaic.version = 11 : i64} {
  func.func @_hybrid_attention_kernel(%arg0: i32, %arg1: memref<2x32x256xf32, #tpu.memory_space<vmem>>, %arg2: memref<4x1x1xf32, #tpu.memory_space<vmem>>, %arg3: memref<4x1x1xf32, #tpu.memory_space<vmem>>, %arg4: memref<128x256xbf16, #tpu.memory_space<vmem>>, %arg5: memref<128x1xf32, #tpu.memory_space<vmem>>, %arg6: memref<128x1xf32, #tpu.memory_space<vmem>>, %arg7: memref<128x1xf32, #tpu.memory_space<vmem>>, %arg8: memref<64x64xf32, #tpu.memory_space<vmem>>, %arg9: memref<576x256xbf16, #tpu.memory_space<vmem>>, %arg10: memref<256x256xbf16, #tpu.memory_space<vmem>>, %arg11: memref<1x256xf32, #tpu.memory_space<vmem>>, %arg12: memref<2x32x256xf32, #tpu.memory_space<vmem>>) attributes {dimension_semantics = [#tpu.dimension_semantics<parallel>], iteration_bounds = array<i64: 1>, scalar_prefetch = 0 : i64, scratch_operands = 0 : i64, tpu.core_type = #tpu.core_type<tc>, window_params = [{transform_indices = @transform_0, window_bounds = array<i64: 2, 32, 256>}, {pipeline_mode = #tpu.pipeline_mode<synchronous>, transform_indices = @transform_1, window_bounds = array<i64: 4, 1, 1>}, {pipeline_mode = #tpu.pipeline_mode<synchronous>, transform_indices = @transform_2, window_bounds = array<i64: 4, 1, 1>}, {pipeline_mode = #tpu.pipeline_mode<synchronous>, transform_indices = @transform_3, window_bounds = array<i64: 128, 256>}, {pipeline_mode = #tpu.pipeline_mode<synchronous>, transform_indices = @transform_4, window_bounds = array<i64: 128, 1>}, {pipeline_mode = #tpu.pipeline_mode<synchronous>, transform_indices = @transform_5, window_bounds = array<i64: 128, 1>}, {pipeline_mode = #tpu.pipeline_mode<synchronous>, transform_indices = @transform_6, window_bounds = array<i64: 128, 1>}, {pipeline_mode = #tpu.pipeline_mode<synchronous>, transform_indices = @transform_7, window_bounds = array<i64: 64, 64>}, {pipeline_mode = #tpu.pipeline_mode<synchronous>, transform_indices = @transform_8, window_bounds = array<i64: 576, 256>}, {pipeline_mode = #tpu.pipeline_mode<synchronous>, transform_indices = @transform_9, window_bounds = array<i64: 256, 256>}, {pipeline_mode = #tpu.pipeline_mode<synchronous>, transform_indices = @transform_10, window_bounds = array<i64: 1, 256>}, {transform_indices = @transform_11, window_bounds = array<i64: 2, 32, 256>}]} {
    %c0 = arith.constant 0 : index
    %c0_0 = arith.constant 0 : index
    %c0_1 = arith.constant 0 : index
    %0 = vector.load %arg1[%c0, %c0_0, %c0_1] : memref<2x32x256xf32, #tpu.memory_space<vmem>>, vector<2x32x256xf32>
    %1 = vector.shape_cast %0 : vector<2x32x256xf32> to vector<64x256xf32>
    %2 = tpu.transpose %1, [1, 0] : vector<64x256xf32> -> vector<256x64xf32>
    %3 = arith.truncf %2 : vector<256x64xf32> to vector<256x64xbf16>
    %c0_2 = arith.constant 0 : index
    %c0_3 = arith.constant 0 : index
    %4 = vector.load %arg10[%c0_2, %c0_3] : memref<256x256xbf16, #tpu.memory_space<vmem>>, vector<256x256xbf16>
    %cst = arith.constant 0.000000e+00 : f32
    %5 = vector.broadcast %cst : f32 to vector<64x256xf32>
    %c0_4 = arith.constant 0 : index
    %c0_5 = arith.constant 0 : index
    %6 = vector.load %arg11[%c0_4, %c0_5] : memref<1x256xf32, #tpu.memory_space<vmem>>, vector<1x256xf32>
    %7 = vector.broadcast %6 : vector<1x256xf32> to vector<64x256xf32>
    %8 = arith.addf %5, %7 : vector<64x256xf32>
    %c0_6 = arith.constant 0 : index
    %c0_7 = arith.constant 0 : index
    %9 = vector.load %arg4[%c0_6, %c0_7] : memref<128x256xbf16, #tpu.memory_space<vmem>>, vector<128x256xbf16>
    %cst_8 = arith.constant dense<0.000000e+00> : vector<128x64xf32>
    %10 = tpu.matmul %9, %3, %cst_8 {dimension_numbers = #tpu.dot_dimension_numbers<[1], [0], [0], [1], [0, 0, 1, 1], [], []>} : vector<128x256xbf16>, vector<256x64xbf16>, vector<128x64xf32> -> vector<128x64xf32>
    %c0_9 = arith.constant 0 : index
    %c0_10 = arith.constant 0 : index
    %11 = vector.load %arg5[%c0_9, %c0_10] : memref<128x1xf32, #tpu.memory_space<vmem>>, vector<128x1xf32>
    %12 = vector.broadcast %11 : vector<128x1xf32> to vector<128x64xf32>
    %13 = arith.addf %10, %12 : vector<128x64xf32>
    %14 = vector.extract_strided_slice %13 {offsets = [0, 0], sizes = [64, 64], strides = [1, 1]} : vector<128x64xf32> to vector<64x64xf32>
    %15 = vector.extract_strided_slice %13 {offsets = [64, 0], sizes = [64, 64], strides = [1, 1]} : vector<128x64xf32> to vector<64x64xf32>
    %c0_11 = arith.constant 0 : index
    %c0_12 = arith.constant 0 : index
    %16 = vector.load %arg8[%c0_11, %c0_12] : memref<64x64xf32, #tpu.memory_space<vmem>>, vector<64x64xf32>
    %17 = arith.addf %14, %15 : vector<64x64xf32>
    %cst_13 = arith.constant dense<0.000000e+00> : vector<64x64xf32>
    %18 = tpu.matmul %16, %17, %cst_13 {dimension_numbers = #tpu.dot_dimension_numbers<[1], [0], [0], [1], [0, 0, 1, 1], [], []>} : vector<64x64xf32>, vector<64x64xf32>, vector<64x64xf32> -> vector<64x64xf32>
    %cst_14 = arith.constant 1.562500e-02 : f32
    %19 = vector.broadcast %cst_14 : f32 to vector<64x64xf32>
    %20 = arith.mulf %18, %19 : vector<64x64xf32>
    %21 = arith.mulf %14, %14 : vector<64x64xf32>
    %22 = arith.mulf %15, %15 : vector<64x64xf32>
    %23 = arith.addf %21, %22 : vector<64x64xf32>
    %cst_15 = arith.constant dense<0.000000e+00> : vector<64x64xf32>
    %24 = tpu.matmul %16, %23, %cst_15 {dimension_numbers = #tpu.dot_dimension_numbers<[1], [0], [0], [1], [0, 0, 1, 1], [], []>} : vector<64x64xf32>, vector<64x64xf32>, vector<64x64xf32> -> vector<64x64xf32>
    %cst_16 = arith.constant 1.562500e-02 : f32
    %25 = vector.broadcast %cst_16 : f32 to vector<64x64xf32>
    %26 = arith.mulf %24, %25 : vector<64x64xf32>
    %27 = arith.mulf %20, %20 : vector<64x64xf32>
    %28 = arith.subf %26, %27 : vector<64x64xf32>
    %cst_17 = arith.constant 9.99999974E-6 : f32
    %29 = vector.broadcast %cst_17 : f32 to vector<64x64xf32>
    %30 = arith.addf %28, %29 : vector<64x64xf32>
    %31 = math.rsqrt %30 : vector<64x64xf32>
    %c0_18 = arith.constant 0 : index
    %c0_19 = arith.constant 0 : index
    %32 = vector.load %arg6[%c0_18, %c0_19] : memref<128x1xf32, #tpu.memory_space<vmem>>, vector<128x1xf32>
    %c0_20 = arith.constant 0 : index
    %c0_21 = arith.constant 0 : index
    %33 = vector.load %arg7[%c0_20, %c0_21] : memref<128x1xf32, #tpu.memory_space<vmem>>, vector<128x1xf32>
    %34 = arith.subf %14, %20 : vector<64x64xf32>
    %35 = arith.mulf %34, %31 : vector<64x64xf32>
    %36 = vector.extract_strided_slice %32 {offsets = [0, 0], sizes = [64, 1], strides = [1, 1]} : vector<128x1xf32> to vector<64x1xf32>
    %37 = vector.broadcast %36 : vector<64x1xf32> to vector<64x64xf32>
    %38 = arith.mulf %35, %37 : vector<64x64xf32>
    %39 = vector.extract_strided_slice %33 {offsets = [0, 0], sizes = [64, 1], strides = [1, 1]} : vector<128x1xf32> to vector<64x1xf32>
    %40 = vector.broadcast %39 : vector<64x1xf32> to vector<64x64xf32>
    %41 = arith.addf %38, %40 : vector<64x64xf32>
    %42 = math.tanh %41 : vector<64x64xf32>
    %cst_22 = arith.constant 0.420448214 : f32
    %43 = vector.broadcast %cst_22 : f32 to vector<64x64xf32>
    %44 = arith.mulf %42, %43 : vector<64x64xf32>
    %45 = arith.subf %15, %20 : vector<64x64xf32>
    %46 = arith.mulf %45, %31 : vector<64x64xf32>
    %47 = vector.extract_strided_slice %32 {offsets = [64, 0], sizes = [64, 1], strides = [1, 1]} : vector<128x1xf32> to vector<64x1xf32>
    %48 = vector.broadcast %47 : vector<64x1xf32> to vector<64x64xf32>
    %49 = arith.mulf %46, %48 : vector<64x64xf32>
    %50 = vector.extract_strided_slice %33 {offsets = [64, 0], sizes = [64, 1], strides = [1, 1]} : vector<128x1xf32> to vector<64x1xf32>
    %51 = vector.broadcast %50 : vector<64x1xf32> to vector<64x64xf32>
    %52 = arith.addf %49, %51 : vector<64x64xf32>
    %53 = math.tanh %52 : vector<64x64xf32>
    %54 = vector.shape_cast %44 : vector<64x64xf32> to vector<2x32x64xf32>
    %55 = tpu.transpose %54, [0, 2, 1] : vector<2x32x64xf32> -> vector<2x64x32xf32>
    %56 = vector.shape_cast %55 : vector<2x64x32xf32> to vector<4x32x32xf32>
    %57 = vector.shape_cast %53 : vector<64x64xf32> to vector<2x32x64xf32>
    %58 = tpu.transpose %57, [0, 2, 1] : vector<2x32x64xf32> -> vector<2x64x32xf32>
    %59 = vector.shape_cast %58 : vector<2x64x32xf32> to vector<4x32x32xf32>
    %60 = vector.extract_strided_slice %2 {offsets = [0, 0], sizes = [64, 64], strides = [1, 1]} : vector<256x64xf32> to vector<64x64xf32>
    %61 = vector.shape_cast %60 : vector<64x64xf32> to vector<2x32x64xf32>
    %62 = tpu.transpose %61, [0, 2, 1] : vector<2x32x64xf32> -> vector<2x64x32xf32>
    %63 = vector.shape_cast %62 : vector<2x64x32xf32> to vector<4x32x32xf32>
    %64 = tpu.transpose %59, [0, 2, 1] : vector<4x32x32xf32> -> vector<4x32x32xf32>
    %65 = arith.subf %59, %64 : vector<4x32x32xf32>
    %c0_23 = arith.constant 0 : index
    %c0_24 = arith.constant 0 : index
    %c0_25 = arith.constant 0 : index
    %66 = vector.load %arg2[%c0_23, %c0_24, %c0_25] : memref<4x1x1xf32, #tpu.memory_space<vmem>>, vector<4x1x1xf32>
    %67 = vector.broadcast %66 : vector<4x1x1xf32> to vector<4x32x32xf32>
    %68 = arith.mulf %65, %67 : vector<4x32x32xf32>
    %c0_26 = arith.constant 0 : index
    %c0_27 = arith.constant 0 : index
    %c0_28 = arith.constant 0 : index
    %69 = vector.load %arg3[%c0_26, %c0_27, %c0_28] : memref<4x1x1xf32, #tpu.memory_space<vmem>>, vector<4x1x1xf32>
    %70 = vector.broadcast %69 : vector<4x1x1xf32> to vector<4x32x32xf32>
    %71 = arith.addf %68, %70 : vector<4x32x32xf32>
    %cst_29 = arith.constant 2.048000e+03 : f32
    %72 = vector.broadcast %cst_29 : f32 to vector<4x32x32xf32>
    %73 = arith.remf %71, %72 : vector<4x32x32xf32>
    %cst_30 = arith.constant 0.000000e+00 : f32
    %74 = vector.broadcast %cst_30 : f32 to vector<4x32x32xf32>
    %75 = arith.cmpf one, %73, %74 : vector<4x32x32xf32>
    %cst_31 = arith.constant 0.000000e+00 : f32
    %76 = vector.broadcast %cst_31 : f32 to vector<4x32x32xf32>
    %77 = arith.cmpf olt, %73, %76 : vector<4x32x32xf32>
    %cst_32 = arith.constant 0.000000e+00 : f32
    %78 = arith.cmpf olt, %cst_29, %cst_32 : f32
    %79 = vector.broadcast %78 : i1 to vector<4x32x32xi1>
    %80 = vector.broadcast %79 : vector<4x32x32xi1> to vector<4x32x32xi1>
    %81 = arith.xori %77, %80 : vector<4x32x32xi1>
    %82 = arith.andi %81, %75 : vector<4x32x32xi1>
    %83 = vector.broadcast %cst_29 : f32 to vector<4x32x32xf32>
    %84 = arith.addf %73, %83 : vector<4x32x32xf32>
    %85 = arith.select %82, %84, %73 : vector<4x32x32xi1>, vector<4x32x32xf32>
    %86 = math.floor %85 : vector<4x32x32xf32>
    %cst_33 = arith.constant 0.00306946039 : f32
    %87 = vector.broadcast %cst_33 : f32 to vector<4x32x32xf32>
    %88 = arith.mulf %86, %87 : vector<4x32x32xf32>
    %89 = math.cos %88 : vector<4x32x32xf32>
    %90 = arith.truncf %56 : vector<4x32x32xf32> to vector<4x32x32xbf16>
    "tpu.trace_start"() <{level = 10 : i32, message = "nid,njd->nij"}> : () -> ()
    %cst_34 = arith.constant dense<0.000000e+00> : vector<4x32x32xf32>
    %91 = tpu.matmul %90, %90, %cst_34 {dimension_numbers = #tpu.dot_dimension_numbers<[2], [2], [1], [1], [0, 0, 0, 1, 1, 1], [0], [0]>} : vector<4x32x32xbf16>, vector<4x32x32xbf16>, vector<4x32x32xf32> -> vector<4x32x32xf32>
    "tpu.trace_stop"() : () -> ()
    %92 = arith.mulf %91, %89 : vector<4x32x32xf32>
    %cst_35 = arith.constant dense<0xFF800000> : vector<4x32xf32>
    %93 = vector.multi_reduction <maximumf>, %92, %cst_35 [2] : vector<4x32x32xf32> to vector<4x32xf32>
    %94 = vector.shape_cast %93 : vector<4x32xf32> to vector<4x32x1xf32>
    %95 = vector.broadcast %94 : vector<4x32x1xf32> to vector<4x32x32xf32>
    %96 = arith.subf %92, %95 : vector<4x32x32xf32>
    %97 = math.exp %96 : vector<4x32x32xf32>
    %cst_36 = arith.constant dense<0.000000e+00> : vector<4x32xf32>
    %98 = vector.multi_reduction <add>, %97, %cst_36 [2] : vector<4x32x32xf32> to vector<4x32xf32>
    %99 = vector.shape_cast %98 : vector<4x32xf32> to vector<4x32x1xf32>
    %100 = tpu.reciprocal %99 {approx = true} : vector<4x32x1xf32> -> vector<4x32x1xf32>
    %101 = vector.broadcast %100 : vector<4x32x1xf32> to vector<4x32x32xf32>
    %102 = arith.mulf %97, %101 : vector<4x32x32xf32>
    %103 = arith.truncf %102 : vector<4x32x32xf32> to vector<4x32x32xbf16>
    %104 = arith.truncf %63 : vector<4x32x32xf32> to vector<4x32x32xbf16>
    "tpu.trace_start"() <{level = 10 : i32, message = "nij,njd->nid"}> : () -> ()
    %cst_37 = arith.constant dense<0.000000e+00> : vector<4x32x32xf32>
    %105 = tpu.matmul %103, %104, %cst_37 {dimension_numbers = #tpu.dot_dimension_numbers<[2], [1], [1], [2], [0, 0, 0, 1, 1, 2], [0], [0]>} : vector<4x32x32xbf16>, vector<4x32x32xbf16>, vector<4x32x32xf32> -> vector<4x32x32xf32>
    "tpu.trace_stop"() : () -> ()
    %106 = vector.shape_cast %105 : vector<4x32x32xf32> to vector<2x64x32xf32>
    %107 = arith.truncf %106 : vector<2x64x32xf32> to vector<2x64x32xbf16>
    %108 = vector.extract_strided_slice %4 {offsets = [0, 0], sizes = [64, 256], strides = [1, 1]} : vector<256x256xbf16> to vector<64x256xbf16>
    %109 = vector.shape_cast %108 : vector<64x256xbf16> to vector<2x32x256xbf16>
    "tpu.trace_start"() <{level = 10 : i32, message = "hnd,hde->hne"}> : () -> ()
    %cst_38 = arith.constant dense<0.000000e+00> : vector<2x64x256xf32>
    %110 = tpu.matmul %107, %109, %cst_38 {dimension_numbers = #tpu.dot_dimension_numbers<[2], [1], [1], [2], [0, 0, 0, 1, 1, 2], [0], [0]>} : vector<2x64x32xbf16>, vector<2x32x256xbf16>, vector<2x64x256xf32> -> vector<2x64x256xf32>
    "tpu.trace_stop"() : () -> ()
    %cst_39 = arith.constant dense<0.000000e+00> : vector<64x256xf32>
    %111 = vector.multi_reduction <add>, %110, %cst_39 [0] : vector<2x64x256xf32> to vector<64x256xf32>
    %112 = arith.addf %8, %111 : vector<64x256xf32>
    %c0_40 = arith.constant 0 : index
    %c0_41 = arith.constant 0 : index
    %113 = vector.load %arg9[%c0_40, %c0_41] : memref<576x256xbf16, #tpu.memory_space<vmem>>, vector<576x256xbf16>
    %cst_42 = arith.constant dense<0.000000e+00> : vector<576x64xf32>
    %114 = tpu.matmul %113, %3, %cst_42 {dimension_numbers = #tpu.dot_dimension_numbers<[1], [0], [0], [1], [0, 0, 1, 1], [], []>} : vector<576x256xbf16>, vector<256x64xbf16>, vector<576x64xf32> -> vector<576x64xf32>
    %115 = vector.extract_strided_slice %114 {offsets = [0, 0], sizes = [192, 64], strides = [1, 1]} : vector<576x64xf32> to vector<192x64xf32>
    %cst_43 = arith.constant 0.176776692 : f32
    %116 = vector.broadcast %cst_43 : f32 to vector<192x64xf32>
    %117 = arith.mulf %115, %116 : vector<192x64xf32>
    %118 = vector.shape_cast %117 : vector<192x64xf32> to vector<6x32x64xf32>
    %119 = tpu.transpose %118, [0, 2, 1] : vector<6x32x64xf32> -> vector<6x64x32xf32>
    %120 = vector.shape_cast %119 : vector<6x64x32xf32> to vector<12x32x32xf32>
    %121 = vector.extract_strided_slice %114 {offsets = [192, 0], sizes = [192, 64], strides = [1, 1]} : vector<576x64xf32> to vector<192x64xf32>
    %122 = vector.shape_cast %121 : vector<192x64xf32> to vector<6x32x64xf32>
    %123 = tpu.transpose %122, [0, 2, 1] : vector<6x32x64xf32> -> vector<6x64x32xf32>
    %124 = vector.shape_cast %123 : vector<6x64x32xf32> to vector<12x32x32xf32>
    %125 = vector.extract_strided_slice %114 {offsets = [384, 0], sizes = [192, 64], strides = [1, 1]} : vector<576x64xf32> to vector<192x64xf32>
    %126 = vector.shape_cast %125 : vector<192x64xf32> to vector<6x32x64xf32>
    %127 = tpu.transpose %126, [0, 2, 1] : vector<6x32x64xf32> -> vector<6x64x32xf32>
    %128 = vector.shape_cast %127 : vector<6x64x32xf32> to vector<12x32x32xf32>
    %129 = arith.truncf %120 : vector<12x32x32xf32> to vector<12x32x32xbf16>
    %130 = arith.truncf %124 : vector<12x32x32xf32> to vector<12x32x32xbf16>
    "tpu.trace_start"() <{level = 10 : i32, message = "nid,njd->nij"}> : () -> ()
    %cst_44 = arith.constant dense<0.000000e+00> : vector<12x32x32xf32>
    %131 = tpu.matmul %129, %130, %cst_44 {dimension_numbers = #tpu.dot_dimension_numbers<[2], [2], [1], [1], [0, 0, 0, 1, 1, 1], [0], [0]>} : vector<12x32x32xbf16>, vector<12x32x32xbf16>, vector<12x32x32xf32> -> vector<12x32x32xf32>
    "tpu.trace_stop"() : () -> ()
    %cst_45 = arith.constant dense<0xFF800000> : vector<12x32xf32>
    %132 = vector.multi_reduction <maximumf>, %131, %cst_45 [2] : vector<12x32x32xf32> to vector<12x32xf32>
    %133 = vector.shape_cast %132 : vector<12x32xf32> to vector<12x32x1xf32>
    %134 = vector.broadcast %133 : vector<12x32x1xf32> to vector<12x32x32xf32>
    %135 = arith.subf %131, %134 : vector<12x32x32xf32>
    %136 = math.exp %135 : vector<12x32x32xf32>
    %cst_46 = arith.constant dense<0.000000e+00> : vector<12x32xf32>
    %137 = vector.multi_reduction <add>, %136, %cst_46 [2] : vector<12x32x32xf32> to vector<12x32xf32>
    %138 = vector.shape_cast %137 : vector<12x32xf32> to vector<12x32x1xf32>
    %139 = tpu.reciprocal %138 {approx = true} : vector<12x32x1xf32> -> vector<12x32x1xf32>
    %140 = vector.broadcast %139 : vector<12x32x1xf32> to vector<12x32x32xf32>
    %141 = arith.mulf %136, %140 : vector<12x32x32xf32>
    %142 = arith.truncf %141 : vector<12x32x32xf32> to vector<12x32x32xbf16>
    %143 = arith.truncf %128 : vector<12x32x32xf32> to vector<12x32x32xbf16>
    "tpu.trace_start"() <{level = 10 : i32, message = "nij,njd->nid"}> : () -> ()
    %cst_47 = arith.constant dense<0.000000e+00> : vector<12x32x32xf32>
    %144 = tpu.matmul %142, %143, %cst_47 {dimension_numbers = #tpu.dot_dimension_numbers<[2], [1], [1], [2], [0, 0, 0, 1, 1, 2], [0], [0]>} : vector<12x32x32xbf16>, vector<12x32x32xbf16>, vector<12x32x32xf32> -> vector<12x32x32xf32>
    "tpu.trace_stop"() : () -> ()
    %145 = vector.shape_cast %144 : vector<12x32x32xf32> to vector<6x64x32xf32>
    %146 = arith.truncf %145 : vector<6x64x32xf32> to vector<6x64x32xbf16>
    %147 = vector.extract_strided_slice %4 {offsets = [64, 0], sizes = [192, 256], strides = [1, 1]} : vector<256x256xbf16> to vector<192x256xbf16>
    %148 = vector.shape_cast %147 : vector<192x256xbf16> to vector<6x32x256xbf16>
    "tpu.trace_start"() <{level = 10 : i32, message = "hnd,hde->hne"}> : () -> ()
    %cst_48 = arith.constant dense<0.000000e+00> : vector<6x64x256xf32>
    %149 = tpu.matmul %146, %148, %cst_48 {dimension_numbers = #tpu.dot_dimension_numbers<[2], [1], [1], [2], [0, 0, 0, 1, 1, 2], [0], [0]>} : vector<6x64x32xbf16>, vector<6x32x256xbf16>, vector<6x64x256xf32> -> vector<6x64x256xf32>
    "tpu.trace_stop"() : () -> ()
    %cst_49 = arith.constant dense<0.000000e+00> : vector<64x256xf32>
    %150 = vector.multi_reduction <add>, %149, %cst_49 [0] : vector<6x64x256xf32> to vector<64x256xf32>
    %151 = arith.addf %112, %150 : vector<64x256xf32>
    %152 = vector.shape_cast %151 : vector<64x256xf32> to vector<2x32x256xf32>
    %c0_50 = arith.constant 0 : index
    %c0_51 = arith.constant 0 : index
    %c0_52 = arith.constant 0 : index
    %153 = vector.load %arg12[%c0_50, %c0_51, %c0_52] : memref<2x32x256xf32, #tpu.memory_space<vmem>>, vector<2x32x256xf32>
    tpu.vector_store %arg12[%c0_50, %c0_51, %c0_52], %152 {strides = array<i32>} : memref<2x32x256xf32, #tpu.memory_space<vmem>>, vector<2x32x256xf32>,
    return
  }
  func.func @transform_0(%arg0: i32) -> (i32, i32, i32) {
    %c0_i32 = arith.constant 0 : i32
    %c0_i32_0 = arith.constant 0 : i32
    %c0_i32_1 = arith.constant 0 : i32
    return %arg0, %c0_i32, %c0_i32_0 : i32, i32, i32
  }
  func.func @transform_1(%arg0: i32) -> (i32, i32, i32) {
    %c0_i32 = arith.constant 0 : i32
    %c0_i32_0 = arith.constant 0 : i32
    %c0_i32_1 = arith.constant 0 : i32
    %c0_i32_2 = arith.constant 0 : i32
    return %c0_i32, %c0_i32_0, %c0_i32_1 : i32, i32, i32
  }
  func.func @transform_2(%arg0: i32) -> (i32, i32, i32) {
    %c0_i32 = arith.constant 0 : i32
    %c0_i32_0 = arith.constant 0 : i32
    %c0_i32_1 = arith.constant 0 : i32
    %c0_i32_2 = arith.constant 0 : i32
    return %c0_i32, %c0_i32_0, %c0_i32_1 : i32, i32, i32
  }
  func.func @transform_3(%arg0: i32) -> (i32, i32) {
    %c0_i32 = arith.constant 0 : i32
    %c0_i32_0 = arith.constant 0 : i32
    %c0_i32_1 = arith.constant 0 : i32
    return %c0_i32, %c0_i32_0 : i32, i32
  }
  func.func @transform_4(%arg0: i32) -> (i32, i32) {
    %c0_i32 = arith.constant 0 : i32
    %c0_i32_0 = arith.constant 0 : i32
    %c0_i32_1 = arith.constant 0 : i32
    return %c0_i32, %c0_i32_0 : i32, i32
  }
  func.func @transform_5(%arg0: i32) -> (i32, i32) {
    %c0_i32 = arith.constant 0 : i32
    %c0_i32_0 = arith.constant 0 : i32
    %c0_i32_1 = arith.constant 0 : i32
    return %c0_i32, %c0_i32_0 : i32, i32
  }
  func.func @transform_6(%arg0: i32) -> (i32, i32) {
    %c0_i32 = arith.constant 0 : i32
    %c0_i32_0 = arith.constant 0 : i32
    %c0_i32_1 = arith.constant 0 : i32
    return %c0_i32, %c0_i32_0 : i32, i32
  }
  func.func @transform_7(%arg0: i32) -> (i32, i32) {
    %c0_i32 = arith.constant 0 : i32
    %c0_i32_0 = arith.constant 0 : i32
    %c0_i32_1 = arith.constant 0 : i32
    return %c0_i32, %c0_i32_0 : i32, i32
  }
  func.func @transform_8(%arg0: i32) -> (i32, i32) {
    %c0_i32 = arith.constant 0 : i32
    %c0_i32_0 = arith.constant 0 : i32
    %c0_i32_1 = arith.constant 0 : i32
    return %c0_i32, %c0_i32_0 : i32, i32
  }
  func.func @transform_9(%arg0: i32) -> (i32, i32) {
    %c0_i32 = arith.constant 0 : i32
    %c0_i32_0 = arith.constant 0 : i32
    %c0_i32_1 = arith.constant 0 : i32
    return %c0_i32, %c0_i32_0 : i32, i32
  }
  func.func @transform_10(%arg0: i32) -> (i32, i32) {
    %c0_i32 = arith.constant 0 : i32
    %c0_i32_0 = arith.constant 0 : i32
    %c0_i32_1 = arith.constant 0 : i32
    return %c0_i32, %c0_i32_0 : i32, i32
  }
  func.func @transform_11(%arg0: i32) -> (i32, i32, i32) {
    %c0_i32 = arith.constant 0 : i32
    %c0_i32_0 = arith.constant 0 : i32
    %c0_i32_1 = arith.constant 0 : i32
    return %arg0, %c0_i32, %c0_i32_0 : i32, i32, i32
  }
}

</mosaic_0001>

<bundles_post_ra>
// kernel: tpu_custom_call.1
= control target key start
LH: loop header
LB: loop body
LE: loop exit
PB: predicated region body
PF: predicated region fallthrough
CT: control target
= control target key end

     0   :  { %16 = vsyncpa [#allocation3], 0  ;;  %s14787_s0 = inlined_call_operand.vmem [shape: f32[2,32,256], index: 0, kind: input, shape index: {}]   ;;  %s14788_s1 = inlined_call_operand.vmem [shape: f32[4,1,1], index: 1, kind: input, shape index: {}]   ;;  %s14789_s2 = inlined_call_operand.vmem [shape: f32[4,1,1], index: 2, kind: input, shape index: {}]   ;;  %s14790_s3 = inlined_call_operand.hbm [shape: bf16[128,256], index: 3, kind: input, shape index: {}]   ;;  %s14791_s4 = inlined_call_operand.vmem [shape: f32[128,1], index: 4, kind: input, shape index: {}]   ;;  %s14792_s5 = inlined_call_operand.vmem [shape: f32[128,1], index: 5, kind: input, shape index: {}]   ;;  %s14793_s6 = inlined_call_operand.vmem [shape: f32[128,1], index: 6, kind: input, shape index: {}]   ;;  %s14794_s7 = inlined_call_operand.hbm [shape: f32[64,64], index: 7, kind: input, shape index: {}]   ;;  %s14795_s8 = inlined_call_operand.hbm [shape: bf16[576,256], index: 8, kind: input, shape index: {}]   ;;  %s14796_s9 = inlined_call_operand.vmem [shape: bf16[256,256], index: 9, kind: input, shape index: {}]   ;;  %s14797_s10 = inlined_call_operand.vmem [shape: f32[1,256], index: 10, kind: input, shape index: {}]   ;;  %s14798_s11 = inlined_call_operand.hbm [shape: f32[2,32,256], index: 11, kind: output, shape index: {}]  }
   0x1   :  { %17 = vsyncpa [#allocation6], 0 }
   0x2   :  { %18 = vsyncpa [#allocation4], 0  ;;  %s10795_s17 = smov [#allocation5]   ;;  %s10796_s19 = smov [#allocation2]  }
   0x3   :  { %s48_s18 = sshll.u32 %s10795_s17, 4  ;;  %s30_s20 = sshll.u32 %s10796_s19, 4  ;;  %s49_s18 = int_to_ptr.vmem [resolvable:$true] %s48_s18  ;;  %s10870_s20 = int_to_ptr.vmem [resolvable:$true] %s30_s20 }
   0x4   :  { %s10701_s23 = scalar_lea.hbm %s14794_s7, 1024 }
   0x5   :  { %p10702_p0 = scmp.ne.s32.totalorder %s14794_s7, %s10701_s23  ;;  %p10705_p1 = scmp.lt.u32.totalorder %s10701_s23, %s14794_s7 }
   0x7   :  { %p10707_p2 = pnand %p10705_p1, %p10702_p0 }
   0x9   :  { %10710 = shalt.err (!%p10707_p2)
}
   0xa   :  { %s10711_s28 = scalar_lea.vmem %s49_s18, 1024  ;;  %p10716_p4 = scmp.lt.s32.totalorder %s49_s18, %s49_s18 }
   0xb   :  { %p10712_p3 = scmp.ne.s32.totalorder %s49_s18, %s10711_s28  ;;  %p10717_p5 = scmp.lt.s32.totalorder %s10711_s28, %s10711_s28 }
   0xd   :  { %p10718_p6 = por %p10717_p5, %p10716_p4 }
   0xf   :  { %p10719_p7 = pnand %p10718_p6, %p10712_p3 }
  0x11   :  { %10722 = shalt.err (!%p10719_p7)
}
  0x12   :  { %s10797_s29 = smov 128   ;;  %s10798_s30 = smov 8  }
  0x13   :  { %54 = dma.hbm_to_vmem [thread:$0]  %s14794_s7, 1024, %s49_s18, [#allocation6], %s10797_s29, %s10797_s29, %s10798_s30  }
  0x14   :  { %s10723_s16 = scalar_lea.hbm %s14790_s3, 2048 }
  0x15   :  { %p10724_p8 = scmp.ne.s32.totalorder %s14790_s3, %s10723_s16  ;;  %p10727_p9 = scmp.lt.u32.totalorder %s10723_s16, %s14790_s3 }
  0x17   :  { %p10729_p10 = pnand %p10727_p9, %p10724_p8 }
  0x19   :  { %10732 = shalt.err (!%p10729_p10)
}
  0x1a   :  { %s10733_s23 = scalar_lea.vmem %s10870_s20, 2048  ;;  %p10738_p12 = scmp.lt.s32.totalorder %s10870_s20, %s10870_s20 }
  0x1b   :  { %p10734_p11 = scmp.ne.s32.totalorder %s10870_s20, %s10733_s23  ;;  %p10739_p13 = scmp.lt.s32.totalorder %s10733_s23, %s10733_s23 }
  0x1d   :  { %p10740_p0 = por %p10739_p13, %p10738_p12 }
  0x1f   :  { %p10741_p1 = pnand %p10740_p0, %p10734_p11 }
  0x21   :  { %10744 = shalt.err (!%p10741_p1)
}
  0x22   :  { %36 = dma.hbm_to_vmem [thread:$0]  %s14790_s3, 2048, %s10870_s20, [#allocation3], %s10797_s29, %s10797_s29, %s10798_s30  }
  0x23   :  { %s10799_s24 = smov [#allocation7]   ;;  %s10745_s28 = scalar_lea.hbm %s14795_s8, 9216 }
  0x24   :  { %s60_s25 = sshll.u32 %s10799_s24, 4  ;;  %p10746_p2 = scmp.ne.s32.totalorder %s14795_s8, %s10745_s28  ;;  %s61_s25 = int_to_ptr.vmem [resolvable:$true] %s60_s25 }
  0x25   :  { %p10749_p3 = scmp.lt.u32.totalorder %s10745_s28, %s14795_s8 }
  0x27   :  { %p10751_p4 = pnand %p10749_p3, %p10746_p2 }
  0x29   :  { %10754 = shalt.err (!%p10751_p4)
}
  0x2a   :  { %s10755_s16 = scalar_lea.vmem %s61_s25, 9216  ;;  %p10760_p6 = scmp.lt.s32.totalorder %s61_s25, %s61_s25 }
  0x2b   :  { %p10756_p5 = scmp.ne.s32.totalorder %s61_s25, %s10755_s16  ;;  %p10761_p7 = scmp.lt.s32.totalorder %s10755_s16, %s10755_s16 }
  0x2d   :  { %p10762_p8 = por %p10761_p7, %p10760_p6 }
  0x2f   :  { %p10763_p9 = pnand %p10762_p8, %p10756_p5 }
  0x31   :  { %10766 = shalt.err (!%p10763_p9)
}
  0x32   :  { %66 = dma.hbm_to_vmem [thread:$0]  %s14795_s8, 9216, %s61_s25, [#allocation6], %s10797_s29, %s10797_s29, %s10798_s30  }
  0x33   :  { %10789 = dma.done.wait [#allocation3], 2048  }
  0x34   :  { %10790 = vsyncadd [#allocation3], 4294965248 }
  0x35   :  { %10791 = dma.done.wait [#allocation6], 10240  }
  0x36   :  { %10792 = vsyncadd [#allocation6], 4294957056  ;;  %v81_v0 = vld [vmem:[%s14787_s0] sm:$0xff]  ;;  %v82_v1 = vld [vmem:[%s14787_s0 + $0x8] sm:$0xff]  ;;  %v14799_v24 = vmov 0   ;;  %vm528_vm0 = vcmask 523264  }
  0x37   :  { %v83_v2 = vld [vmem:[%s14787_s0 + $0x10] sm:$0xff]  ;;  %v9671_v3 = vpack.i.bf16 %v81_v0, %v82_v1  ;;  %v84_v4 = vld [vmem:[%s14787_s0 + $0x18] sm:$0xff]  ;;  %v85_v6 = vld [vmem:[%s14787_s0 + $0x20] sm:$0xff]  ;;  %9767 = vset.pattern.permute.xlu1 %v14799_v24  ;;  %vm3507_vm1 = vcmask 261120  }
  0x38   :  { %v9673_v5 = vpack.i.bf16 %v83_v2, %v84_v4  ;;  %v86_v7 = vld [vmem:[%s14787_s0 + $0x28] sm:$0xff]  ;;  %v87_v8 = vld [vmem:[%s14787_s0 + $0x30] sm:$0xff]  ;;  %v88_v9 = vld [vmem:[%s14787_s0 + $0x38] sm:$0xff] }
  0x39   :  { %9672 = vxpose.xlu0.b32.start [1/8] (short) %v9671_v3, 128  ;;  %v9675_v10 = vpack.i.bf16 %v85_v6, %v86_v7  ;;  %v89_v11 = vld [vmem:[%s14787_s0 + $0x40] sm:$0xff]  ;;  %v90_v12 = vld [vmem:[%s14787_s0 + $0x48] sm:$0xff]  ;;  %v9677_v13 = vpack.i.bf16 %v87_v8, %v88_v9  ;;  %v91_v14 = vld [vmem:[%s14787_s0 + $0x50] sm:$0xff] }
  0x3a   :  { %v92_v15 = vld [vmem:[%s14787_s0 + $0x58] sm:$0xff]  ;;  %v9679_v16 = vpack.i.bf16 %v89_v11, %v90_v12  ;;  %v93_v17 = vld [vmem:[%s14787_s0 + $0x60] sm:$0xff]  ;;  %v94_v18 = vld [vmem:[%s14787_s0 + $0x68] sm:$0xff] }
  0x3b   :  { %v9681_v19 = vpack.i.bf16 %v91_v14, %v92_v15  ;;  %v95_v20 = vld [vmem:[%s14787_s0 + $0x70] sm:$0xff]  ;;  %v96_v21 = vld [vmem:[%s14787_s0 + $0x78] sm:$0xff]  ;;  %v9683_v22 = vpack.i.bf16 %v93_v17, %v94_v18  ;;  %v239_v25 = vld [vmem:[%s14791_s4] sm:$0xff] }
  0x3c   :  { %v9685_v23 = vpack.i.bf16 %v95_v20, %v96_v21  ;;  %257 = vperm.xlu1 %9767, %v239_v25   ;;  %v240_v26 = vld [vmem:[%s14791_s4 + $0x8] sm:$0xff]  ;;  %v247_v27 = vld [vmem:[%s14791_s4 + $0x40] sm:$0xff]  ;;  %v241_v29 = vld [vmem:[%s14791_s4 + $0x10] sm:$0xff] }
  0x3d   :  { %9674 = vxpose.xlu0.b32.cont [2/8] (short) %v9673_v5, 128  ;;  %v248_v28 = vld [vmem:[%s14791_s4 + $0x48] sm:$0xff]  ;;  %v242_v30 = vld [vmem:[%s14791_s4 + $0x18] sm:$0xff]  ;;  %v249_v31 = vld [vmem:[%s14791_s4 + $0x50] sm:$0xff] }
  0x3e   :  { %v250_v32 = vld [vmem:[%s14791_s4 + $0x58] sm:$0xff]  ;;  %v244_v33 = vld [vmem:[%s14791_s4 + $0x28] sm:$0xff]  ;;  %v251_v34 = vld [vmem:[%s14791_s4 + $0x60] sm:$0xff] }
  0x3f   :  { %v10155_v35 = vld [vmem:[#allocation2 + $0x4] ss:$8 sps:$4 sm:$0xff]   ;;  %v245_v37 = vld [vmem:[%s14791_s4 + $0x30] sm:$0xff]  ;;  %v246_v38 = vld [vmem:[%s14791_s4 + $0x38] sm:$0xff] }
  0x40   :  { %262 = vperm.xlu1 %9767, %v240_v26   ;;  %447 = vmatprep.mubr.bf16.mxu1 %v10155_v35  ;;  %v252_v36 = vld [vmem:[%s14791_s4 + $0x68] sm:$0xff]  ;;  %v253_v39 = vld [vmem:[%s14791_s4 + $0x70] sm:$0xff]  ;;  %v254_v40 = vld [vmem:[%s14791_s4 + $0x78] sm:$0xff] }
  0x41   :  { %9676 = vxpose.xlu0.b32.cont [3/8] (short) %v9675_v10, 128  ;;  %v835_v41 = vld [vmem:[%s14792_s5] sm:$0xff]  ;;  %v836_v42 = vld [vmem:[%s14792_s5 + $0x8] sm:$0xff]  ;;  %v837_v44 = vld [vmem:[%s14792_s5 + $0x10] sm:$0xff] }
  0x42   :  { %v851_v43 = vld [vmem:[%s14793_s6] sm:$0xff]  ;;  %v852_v45 = vld [vmem:[%s14793_s6 + $0x8] sm:$0xff]  ;;  %v838_v46 = vld [vmem:[%s14792_s5 + $0x18] sm:$0xff] }
  0x43   :  { %v853_v47 = vld [vmem:[%s14793_s6 + $0x10] sm:$0xff]  ;;  %v854_v48 = vld [vmem:[%s14793_s6 + $0x18] sm:$0xff]  ;;  %v843_v49 = vld [vmem:[%s14792_s5 + $0x40] sm:$0xff] }
  0x44   :  { %297 = vperm.xlu1 %9767, %v247_v27   ;;  %v844_v50 = vld [vmem:[%s14792_s5 + $0x48] sm:$0xff]  ;;  %v859_v51 = vld [vmem:[%s14793_s6 + $0x40] sm:$0xff]  ;;  %v845_v55 = vld [vmem:[%s14792_s5 + $0x50] sm:$0xff] }
  0x45   :  { %9678 = vxpose.xlu0.b32.cont [4/8] (short) %v9677_v13, 128  ;;  %v243_v52 = vld [vmem:[%s14791_s4 + $0x20] sm:$0xff]  ;;  %v860_v54 = vld [vmem:[%s14793_s6 + $0x48] sm:$0xff]  ;;  %v861_v61 = vld [vmem:[%s14793_s6 + $0x50] sm:$0xff] }
  0x46   :  { %v846_v0 = vld [vmem:[%s14792_s5 + $0x58] sm:$0xff]  ;;  %v8595_v3 = vld [vmem:[%s14789_s2] ss:$0 sm:$0xff]  ;;  %v840_v15 = vld [vmem:[%s14792_s5 + $0x28] sm:$0xff] }
  0x47   :  { %v862_v2 = vld [vmem:[%s14793_s6 + $0x58] sm:$0xff]  ;;  %v8591_v9 = vld [vmem:[%s14788_s1] ss:$0 sm:$0xff]  ;;  %v856_v21 = vld [vmem:[%s14793_s6 + $0x28] sm:$0xff] }
  0x48   :  { %302 = vperm.xlu1 %9767, %v248_v28   ;;  %v839_v12 = vld [vmem:[%s14792_s5 + $0x20] sm:$0xff]  ;;  %v841_v25 = vld [vmem:[%s14792_s5 + $0x30] sm:$0xff]  ;;  %v842_v28 = vld [vmem:[%s14792_s5 + $0x38] sm:$0xff] }
  0x49   :  { %9680 = vxpose.xlu0.b32.cont [5/8] (short) %v9679_v16, 128  ;;  %v855_v14 = vld [vmem:[%s14793_s6 + $0x20] sm:$0xff]  ;;  %v857_v27 = vld [vmem:[%s14793_s6 + $0x30] sm:$0xff] }
  0x4c   :  { %267 = vperm.xlu1 %9767, %v241_v29  }
  0x4d   :  { %9682 = vxpose.xlu0.b32.cont [6/8] (short) %v9681_v19, 128 }
  0x50   :  { %272 = vperm.xlu1 %9767, %v242_v30  }
  0x51   :  { %9684 = vxpose.xlu0.b32.cont [7/8] (short) %v9683_v22, 128 }
  0x54   :  { %307 = vperm.xlu1 %9767, %v249_v31  }
  0x55   :  { %9686 = vxpose.xlu0.b32.end [8/8] (short) %v9685_v23, 128 }
  0x58   :  { %312 = vperm.xlu1 %9767, %v250_v32  }
  0x5c   :  { %282 = vperm.xlu1 %9767, %v244_v33  }
  0x60   :  { %317 = vperm.xlu1 %9767, %v251_v34  }
  0x64   :  { %322 = vperm.xlu1 %9767, %v252_v36  }
  0x68   :  { %287 = vperm.xlu1 %9767, %v245_v37  }
  0x6c   :  { %292 = vperm.xlu1 %9767, %v246_v38  }
  0x70   :  { %327 = vperm.xlu1 %9767, %v253_v39  }
  0x74   :  { %332 = vperm.xlu1 %9767, %v254_v40  }
  0x78   :  { %885 = vperm.xlu1 %9767, %v835_v41  }
  0x7c   :  { %890 = vperm.xlu1 %9767, %v836_v42  }
  0x7e   :  { %9768 = vset.pattern.permute.xlu0 %v14799_v24 }
  0x80   :  { %933 = vperm.xlu1 %9767, %v851_v43  }
  0x84   :  { %895 = vperm.xlu1 %9767, %v837_v44  }
  0x88   :  { %938 = vperm.xlu1 %9767, %v852_v45  }
  0x8c   :  { %900 = vperm.xlu1 %9767, %v838_v46  }
  0x90   :  { %943 = vperm.xlu1 %9767, %v853_v47  }
  0x94   :  { %948 = vperm.xlu1 %9767, %v854_v48  }
  0x98   :  { %1013 = vperm.xlu1 %9767, %v843_v49  }
  0x9c   :  { %1018 = vperm.xlu1 %9767, %v844_v50  }
  0x9e   :  { %277 = vperm.xlu0 %9768, %v243_v52  }
  0xa0   :  { %1061 = vperm.xlu1 %9767, %v859_v51  }
  0xa2   :  { %1066 = vperm.xlu0 %9768, %v860_v54  }
  0xa4   :  { %1023 = vperm.xlu1 %9767, %v845_v55  }
  0xa6   :  { %1071 = vperm.xlu0 %9768, %v861_v61  }
  0xa8   :  { %1028 = vperm.xlu1 %9767, %v846_v0  }
  0xaa   :  { %1076 = vperm.xlu0 %9768, %v862_v2  }
  0xac   :  { %1532 = vperm.xlu1 %9767, %v8595_v3  }
  0xae   :  { %1476 = vperm.xlu0 %9768, %v8591_v9  }
  0xb0   :  { %905 = vperm.xlu1 %9767, %v839_v12  }
  0xb2   :  { %953 = vperm.xlu0 %9768, %v855_v14  }
  0xb4   :  { %910 = vperm.xlu1 %9767, %v840_v15  }
  0xb6   :  { %958 = vperm.xlu0 %9768, %v856_v21   ;;  %v10156_v21 = vld [vmem:[#allocation2 + $0x14] ss:$8 sps:$4 sm:$0xff]  }
  0xb8   :  { %915 = vperm.xlu1 %9767, %v841_v25   ;;  %v10158_v25 = vld [vmem:[#allocation2 + $0x10] ss:$8 sps:$4 sm:$0xff]  }
  0xb9   :  { %v11053_v53 = vpop.trf.xlu0 }
  0xba   :  { %v9688_v57 = vunpack.i.l.bf16 %v11053_v53  ;;  %v14808_v58 = vunpack.i.h.bf16 %v11053_v53  ;;  %963 = vperm.xlu0 %9768, %v857_v27   ;;  %v10159_v27 = vld [vmem:[#allocation2 + $0x24] ss:$8 sps:$4 sm:$0xff]  }
  0xbc   :  { %920 = vperm.xlu1 %9767, %v842_v28   ;;  %v10161_v28 = vld [vmem:[#allocation2 + $0x20] ss:$8 sps:$4 sm:$0xff]  }
  0xbd   :  { %v11061_v56 = vpop.trf.xlu0 }
  0xbe   :  { %v9693_v59 = vunpack.i.l.bf16 %v11061_v56  ;;  %v14807_v60 = vunpack.i.h.bf16 %v11061_v56 }
  0xc0   :  { %v11070_v62 = vpack.c.bf16 %v9693_v59, %v9688_v57  ;;  %v11076_v63 = vpack.c.bf16 %v14807_v60, %v14808_v58 }
  0xc1   :  { %v11081_v1 = vpop.trf.xlu0 }
  0xc2   :  { %14869 = vst [vmem:[#allocation12_spill] sm:$0xff] %v11070_v62  ;;  %14870 = vst [vmem:[#allocation13_spill] sm:$0xff] %v11076_v63  ;;  %8863 = vmatprep.subr.bf16.mxu1 %v11070_v62  ;;  %v9698_v5 = vunpack.i.l.bf16 %v11081_v1  ;;  %v14806_v6 = vunpack.i.h.bf16 %v11081_v1 }
  0xc3   :  { %8864 = vmatpush3.bf16.msra.mxu1 %v11076_v63 }
  0xc5   :  { %v11091_v4 = vpop.trf.xlu0 }
  0xc6   :  { %v9703_v7 = vunpack.i.l.bf16 %v11091_v4  ;;  %v14805_v8 = vunpack.i.h.bf16 %v11091_v4 }
  0xc8   :  { %v11100_v10 = vpack.c.bf16 %v9703_v7, %v9698_v5  ;;  %v11106_v11 = vpack.c.bf16 %v14805_v8, %v14806_v6 }
  0xc9   :  { %v11111_v13 = vpop.trf.xlu0 }
  0xca   :  { %14871 = vst [vmem:[#allocation14_spill] sm:$0xff] %v11100_v10  ;;  %14872 = vst [vmem:[#allocation15_spill] sm:$0xff] %v11106_v11  ;;  %8865 = vmatprep.subr.bf16.mxu1 %v11100_v10  ;;  %v9708_v17 = vunpack.i.l.bf16 %v11111_v13  ;;  %v14804_v18 = vunpack.i.h.bf16 %v11111_v13 }
  0xcb   :  { %14873 = vst [vmem:[#allocation16_spill] sm:$0xff] %v11111_v13  ;;  %8866 = vmatpush3.bf16.msra.mxu1 %v11106_v11 }
  0xcd   :  { %v11121_v16 = vpop.trf.xlu0 }
  0xce   :  { %14874 = vst [vmem:[#allocation17_spill] sm:$0xff] %v11121_v16  ;;  %v9713_v19 = vunpack.i.l.bf16 %v11121_v16  ;;  %v14803_v20 = vunpack.i.h.bf16 %v11121_v16 }
  0xd0   :  { %v11130_v22 = vpack.c.bf16 %v9713_v19, %v9708_v17  ;;  %v11136_v23 = vpack.c.bf16 %v14803_v20, %v14804_v18  ;;  %v10153_v19 = vld [vmem:[#allocation2] ss:$8 sps:$4 sm:$0xff]  }
  0xd1   :  { %v11141_v26 = vpop.trf.xlu0 }
  0xd2   :  { %14875 = vst [vmem:[#allocation18_spill] sm:$0xff] %v11130_v22  ;;  %14876 = vst [vmem:[#allocation19_spill] sm:$0xff] %v11136_v23  ;;  %8867 = vmatprep.subr.bf16.mxu1 %v11130_v22  ;;  %v9718_v30 = vunpack.i.l.bf16 %v11141_v26  ;;  %v14802_v31 = vunpack.i.h.bf16 %v11141_v26 }
  0xd3   :  { %14877 = vst [vmem:[#allocation20_spill] sm:$0xff] %v11141_v26  ;;  %8868 = vmatpush3.bf16.msra.mxu1 %v11136_v23 }
  0xd5   :  { %v11151_v29 = vpop.trf.xlu0 }
  0xd6   :  { %14878 = vst [vmem:[#allocation21_spill] sm:$0xff] %v11151_v29  ;;  %v9723_v32 = vunpack.i.l.bf16 %v11151_v29  ;;  %v14801_v33 = vunpack.i.h.bf16 %v11151_v29 }
  0xd8   :  { %v11157_v34 = vpack.c.bf16 %v9723_v32, %v9718_v30  ;;  %v11163_v35 = vpack.c.bf16 %v14801_v33, %v14802_v31  ;;  %v10162_v30 = vld [vmem:[#allocation2 + $0x34] ss:$8 sps:$4 sm:$0xff]   ;;  %v10164_v32 = vld [vmem:[#allocation2 + $0x30] ss:$8 sps:$4 sm:$0xff]  }
  0xd9   :  { %v9727_v36 = vpop.trf.xlu0 }
  0xda   :  { %14879 = vst [vmem:[#allocation22_spill] sm:$0xff] %v11157_v34  ;;  %14880 = vst [vmem:[#allocation23_spill] sm:$0xff] %v11163_v35  ;;  %8869 = vmatprep.subr.bf16.mxu1 %v11157_v34  ;;  %v9728_v38 = vunpack.i.l.bf16 %v9727_v36  ;;  %v9731_v39 = vunpack.i.h.bf16 %v9727_v36  ;;  %v10165_v36 = vld [vmem:[#allocation2 + $0x44] ss:$8 sps:$4 sm:$0xff]  }
  0xdb   :  { %8870 = vmatpush3.bf16.msra.mxu1 %v11163_v35 }
  0xdd   :  { %v9732_v37 = vpop.trf.xlu0 }
  0xde   :  { %v9733_v40 = vunpack.i.l.bf16 %v9732_v37  ;;  %v9736_v41 = vunpack.i.h.bf16 %v9732_v37  ;;  %v10167_v37 = vld [vmem:[#allocation2 + $0x40] ss:$8 sps:$4 sm:$0xff]  }
  0xe0   :  { %v11167_v42 = vpack.c.bf16 %v9733_v40, %v9728_v38  ;;  %v11169_v43 = vpack.c.bf16 %v9736_v41, %v9731_v39  ;;  %v10168_v38 = vld [vmem:[#allocation2 + $0x54] ss:$8 sps:$4 sm:$0xff]   ;;  %v10170_v39 = vld [vmem:[#allocation2 + $0x50] ss:$8 sps:$4 sm:$0xff]   ;;  %v10171_v40 = vld [vmem:[#allocation2 + $0x64] ss:$8 sps:$4 sm:$0xff]  }
  0xe1   :  { %v9737_v44 = vpop.trf.xlu0  ;;  %v10173_v41 = vld [vmem:[#allocation2 + $0x60] ss:$8 sps:$4 sm:$0xff]  }
  0xe2   :  { %14881 = vst [vmem:[#allocation24_spill] sm:$0xff] %v11167_v42  ;;  %14882 = vst [vmem:[#allocation25_spill] sm:$0xff] %v11169_v43  ;;  %8871 = vmatprep.subr.bf16.mxu1 %v11167_v42  ;;  %v9741_v45 = vunpack.i.h.bf16 %v9737_v44  ;;  %v9738_v46 = vunpack.i.l.bf16 %v9737_v44  ;;  %v10174_v44 = vld [vmem:[#allocation2 + $0x74] ss:$8 sps:$4 sm:$0xff]  }
  0xe3   :  { %8872 = vmatpush3.bf16.msra.mxu1 %v11169_v43 }
  0xe5   :  { %v9742_v47 = vpop.trf.xlu0 }
  0xe6   :  { %v9746_v48 = vunpack.i.h.bf16 %v9742_v47  ;;  %v9743_v49 = vunpack.i.l.bf16 %v9742_v47  ;;  %v258_v47 = vpop.permute.xlu1 %257 }
  0xe8   :  { %v11173_v50 = vpack.c.bf16 %v9743_v49, %v9738_v46  ;;  %v11175_v51 = vpack.c.bf16 %v9746_v48, %v9741_v45  ;;  %v10176_v45 = vld [vmem:[#allocation2 + $0x70] ss:$8 sps:$4 sm:$0xff]   ;;  %v11191_v46 = vld [vmem:[#allocation5] sm:$0xff] }
  0xe9   :  { %v9747_v52 = vpop.trf.xlu0 }
  0xea   :  { %14883 = vst [vmem:[#allocation26_spill] sm:$0xff] %v11173_v50  ;;  %14884 = vst [vmem:[#allocation27_spill] sm:$0xff] %v11175_v51  ;;  %8873 = vmatprep.subr.bf16.mxu1 %v11173_v50  ;;  %v9751_v54 = vunpack.i.h.bf16 %v9747_v52  ;;  %v9748_v55 = vunpack.i.l.bf16 %v9747_v52  ;;  %v263_v48 = vpop.permute.xlu1 %262 }
  0xeb   :  { %8874 = vmatpush3.bf16.msra.mxu1 %v11175_v51 }
  0xed   :  { %v9752_v57 = vpop.trf.xlu0 }
  0xee   :  { %v9756_v59 = vunpack.i.h.bf16 %v9752_v57  ;;  %v9753_v61 = vunpack.i.l.bf16 %v9752_v57  ;;  %v298_v49 = vpop.permute.xlu1 %297 }
  0xf0   :  { %v11179_v0 = vpack.c.bf16 %v9753_v61, %v9748_v55  ;;  %v11181_v2 = vpack.c.bf16 %v9756_v59, %v9751_v54 }
  0xf1   :  { %v9757_v3 = vpop.trf.xlu0 }
  0xf2   :  { %14885 = vst [vmem:[#allocation28_spill] sm:$0xff] %v11179_v0  ;;  %14886 = vst [vmem:[#allocation29_spill] sm:$0xff] %v11181_v2  ;;  %8875 = vmatprep.subr.bf16.mxu1 %v11179_v0  ;;  %v9761_v5 = vunpack.i.h.bf16 %v9757_v3  ;;  %v9758_v7 = vunpack.i.l.bf16 %v9757_v3  ;;  %v303_v52 = vpop.permute.xlu1 %302 }
  0xf3   :  { %8876 = vmatpush3.bf16.msra.mxu1 %v11181_v2 }
  0xf5   :  { %v9762_v9 = vpop.trf.xlu0 }
  0xf6   :  { %v9766_v12 = vunpack.i.h.bf16 %v9762_v9  ;;  %v9763_v14 = vunpack.i.l.bf16 %v9762_v9  ;;  %v268_v55 = vpop.permute.xlu1 %267 }
  0xf8   :  { %v11185_v15 = vpack.c.bf16 %v9763_v14, %v9758_v7  ;;  %v11187_v17 = vpack.c.bf16 %v9766_v12, %v9761_v5 }
  0xfa   :  { %14887 = vst [vmem:[#allocation30_spill] sm:$0xff] %v11185_v15  ;;  %14888 = vst [vmem:[#allocation31_spill] sm:$0xff] %v11187_v17  ;;  %8877 = vmatprep.subr.bf16.mxu1 %v11185_v15  ;;  %v273_v7 = vpop.permute.xlu1 %272 }
  0xfb   :  { %8878 = vmatpush3.bf16.msra.mxu1 %v11187_v17 }
  0xfe   :  { %448 = vmatmul.mubr.bf16.vlgmr.msra.gmra.mrb[0].mxu1 %v10153_v19 }
  0xff   :  { %455 = vmatprep.mubr.bf16.mxu1 %v10156_v21 }
 0x106   :  { %456 = vmatmul.mubr.bf16.gmra.mrb[4].mxu1 %v10158_v25 }
 0x107   :  { %463 = vmatprep.mubr.bf16.mxu1 %v10159_v27  ;;  %v308_v27 = vpop.permute.xlu1 %307 }
 0x10e   :  { %464 = vmatmul.mubr.bf16.gmra.mrb[8].mxu1 %v10161_v28 }
 0x10f   :  { %471 = vmatprep.mubr.bf16.mxu1 %v10162_v30 }
 0x116   :  { %472 = vmatmul.mubr.bf16.gmra.mrb[12].mxu1 %v10164_v32 }
 0x117   :  { %479 = vmatprep.mubr.bf16.mxu1 %v10165_v36 }
 0x11e   :  { %480 = vmatmul.mubr.bf16.gmra.mrb[16].mxu1 %v10167_v37  ;;  %v313_v37 = vpop.permute.xlu1 %312 }
 0x11f   :  { %487 = vmatprep.mubr.bf16.mxu1 %v10168_v38 }
 0x126   :  { %488 = vmatmul.mubr.bf16.gmra.mrb[20].mxu1 %v10170_v39 }
 0x127   :  { %495 = vmatprep.mubr.bf16.mxu1 %v10171_v40 }
 0x12e   :  { %496 = vmatmul.mubr.bf16.gmra.mrb[24].mxu1 %v10173_v41  ;;  %v283_v41 = vpop.permute.xlu1 %282 }
 0x12f   :  { %503 = vmatprep.mubr.bf16.mxu1 %v10174_v44 }
 0x136   :  { %504 = vmatmul.mubr.bf16.gmra.mrb[28].mxu1 %v10176_v45 }
 0x137   :  { %9103 = vmatprep.mubr.msk.f32.mxu1 %vm528_vm0, %v11191_v46 }
 0x1d1   :  { %v8879_v54 = vpop.f32.mrb[0].mxu1 }
 0x1d2   :  { %v8880_v57 = vpop.f32.mrb[1].mxu1 }
 0x1d3   :  { %v8881_v59 = vadd.f32 %v8880_v57, %v8879_v54  ;;  %v8882_v61 = vpop.f32.mrb[2].mxu1 }
 0x1d4   :  { %v8883_v3 = vpop.f32.mrb[3].mxu1 }
 0x1d5   :  { %v8884_v5 = vadd.f32 %v8883_v3, %v8882_v61  ;;  %v318_v3 = vpop.permute.xlu1 %317 }
 0x1d9   :  { %v8885_v9 = vpop.f32.mrb[4].mxu1  ;;  %v323_v33 = vpop.permute.xlu1 %322 }
 0x1da   :  { %v8886_v12 = vpop.f32.mrb[5].mxu1 }
 0x1db   :  { %v8887_v14 = vadd.f32 %v8886_v12, %v8885_v9  ;;  %v8888_v19 = vpop.f32.mrb[6].mxu1 }
 0x1dc   :  { %v8889_v21 = vpop.f32.mrb[7].mxu1 }
 0x1dd   :  { %v8890_v25 = vadd.f32 %v8889_v21, %v8888_v19 }
 0x1e1   :  { %v8891_v28 = vpop.f32.mrb[8].mxu1 }
 0x1e2   :  { %v8892_v30 = vpop.f32.mrb[9].mxu1 }
 0x1e3   :  { %v8893_v32 = vadd.f32 %v8892_v30, %v8891_v28  ;;  %v8894_v36 = vpop.f32.mrb[10].mxu1 }
 0x1e4   :  { %v8895_v38 = vpop.f32.mrb[11].mxu1 }
 0x1e5   :  { %v8896_v39 = vadd.f32 %v8895_v38, %v8894_v36  ;;  %v11201_v36 = vadd.f32 %v8881_v59, %v258_v47  ;;  %v11203_v38 = vadd.f32 %v8884_v5, %v263_v48  ;;  %v11213_v48 = vadd.f32 %v8887_v14, %v268_v55 }
 0x1e9   :  { %v8897_v40 = vpop.f32.mrb[12].mxu1 }
 0x1ea   :  { %v8898_v44 = vpop.f32.mrb[13].mxu1 }
 0x1eb   :  { %v11195_v45 = vadd.f32 %v8898_v44, %v8897_v40  ;;  %v8900_v54 = vpop.f32.mrb[14].mxu1 }
 0x1ec   :  { %v8901_v57 = vpop.f32.mrb[15].mxu1 }
 0x1ed   :  { %v11197_v61 = vadd.f32 %v8901_v57, %v8900_v54 }
 0x1f1   :  { %v8903_v9 = vpop.f32.mrb[16].mxu1 }
 0x1f2   :  { %v8904_v12 = vpop.f32.mrb[17].mxu1 }
 0x1f3   :  { %v8905_v19 = vadd.f32 %v8904_v12, %v8903_v9  ;;  %v8906_v21 = vpop.f32.mrb[18].mxu1 }
 0x1f4   :  { %v8907_v24 = vpop.f32.mrb[19].mxu1 }
 0x1f5   :  { %v11199_v28 = vadd.f32 %v8905_v19, %v298_v49  ;;  %v8908_v30 = vadd.f32 %v8907_v24, %v8906_v21  ;;  %v288_v19 = vpop.permute.xlu1 %287 }
 0x1f7   :  { %v11205_v40 = vadd.f32 %v8908_v30, %v303_v52  ;;  %v520_v54 = vadd.f32 %v11199_v28, %v11201_v36  ;;  %v11215_v52 = vadd.f32 %v8890_v25, %v273_v7  ;;  %v11227_v25 = vadd.f32 %v8896_v39, %v283_v41 }
 0x1f9   :  { %v8909_v44 = vpop.f32.mrb[20].mxu1  ;;  %v521_v57 = vadd.f32 %v11205_v40, %v11203_v38 }
 0x1fa   :  { %v8910_v9 = vpop.f32.mrb[21].mxu1 }
 0x1fb   :  { %v8911_v12 = vadd.f32 %v8910_v9, %v8909_v44  ;;  %v8912_v31 = vpop.f32.mrb[22].mxu1  ;;  %v9399_v49 = vpack.c.bf16 %v521_v57, %v520_v54  ;;  %v293_v54 = vpop.permute.xlu1 %292 }
 0x1fc   :  { %v8913_v24 = vpop.f32.mrb[23].mxu1 }
 0x1fd   :  { %v11211_v21 = vadd.f32 %v8911_v12, %v308_v27  ;;  %v8914_v47 = vadd.f32 %v8913_v24, %v8912_v31  ;;  %9400 = vmatprep.subr.bf16.mxu1 %v9399_v49  ;;  %v278_v12 = vpop.permute.xlu0 %277 }
 0x1fe   :  { %9402 = vmatpush3.bf16.msra.mxu1 %v9399_v49  ;;  %v11225_v14 = vadd.f32 %v8893_v32, %v278_v12  ;;  %v675_v32 = vmul.f32 %v11205_v40, %v11205_v40  ;;  %v11242_v12 = vadd.f32 %v11195_v45, %v288_v19 }
 0x1ff   :  { %v11217_v59 = vadd.f32 %v8914_v47, %v313_v37  ;;  %v522_v30 = vadd.f32 %v11211_v21, %v11213_v48  ;;  %v328_v24 = vpop.permute.xlu1 %327 }
 0x200   :  { %v672_v20 = vmul.f32 %v11242_v12, %v11242_v12 }
 0x201   :  { %v8915_v5 = vpop.f32.mrb[24].mxu1  ;;  %v523_v44 = vadd.f32 %v11217_v59, %v11215_v52 }
 0x202   :  { %v8916_v57 = vpop.f32.mrb[25].mxu1 }
 0x203   :  { %v8917_v27 = vadd.f32 %v8916_v57, %v8915_v5  ;;  %v8918_v9 = vpop.f32.mrb[26].mxu1  ;;  %v9403_v31 = vpack.c.bf16 %v523_v44, %v522_v30  ;;  %v333_v41 = vpop.permute.xlu1 %332 }
 0x204   :  { %v8919_v49 = vpop.f32.mrb[27].mxu1 }
 0x205   :  { %v11223_v55 = vadd.f32 %v8917_v27, %v318_v3  ;;  %v8920_v7 = vadd.f32 %v8919_v49, %v8918_v9  ;;  %9404 = vmatprep.subr.bf16.mxu1 %v9403_v31  ;;  %v11245_v49 = vadd.f32 %v11197_v61, %v293_v54  ;;  %v669_v61 = vmul.f32 %v11215_v52, %v11215_v52 }
 0x206   :  { %9406 = vmatpush3.bf16.msra.mxu1 %v9403_v31  ;;  %v667_v31 = vmul.f32 %v11203_v38, %v11203_v38  ;;  %v676_v54 = vmul.f32 %v11211_v21, %v11211_v21 }
 0x207   :  { %v11229_v37 = vadd.f32 %v8920_v7, %v323_v33  ;;  %v524_v5 = vadd.f32 %v11223_v55, %v11225_v14  ;;  %v674_v7 = vmul.f32 %v11199_v28, %v11199_v28 }
 0x208   :  { %v683_v19 = vadd.f32 %v675_v32, %v667_v31  ;;  %v671_v32 = vmul.f32 %v11227_v25, %v11227_v25  ;;  %v678_v31 = vmul.f32 %v11223_v55, %v11223_v55 }
 0x209   :  { %v8921_v47 = vpop.f32.mrb[28].mxu1  ;;  %v525_v30 = vadd.f32 %v11229_v37, %v11227_v25 }
 0x20a   :  { %v8922_v44 = vpop.f32.mrb[29].mxu1 }
 0x20b   :  { %v8923_v3 = vadd.f32 %v8922_v44, %v8921_v47  ;;  %v8924_v57 = vpop.f32.mrb[30].mxu1  ;;  %v9407_v27 = vpack.c.bf16 %v525_v30, %v524_v5  ;;  %v677_v5 = vmul.f32 %v11217_v59, %v11217_v59 }
 0x20c   :  { %v8925_v9 = vpop.f32.mrb[31].mxu1 }
 0x20d   :  { %v11237_v39 = vadd.f32 %v8923_v3, %v328_v24  ;;  %v8926_v33 = vadd.f32 %v8925_v9, %v8924_v57  ;;  %9408 = vmatprep.subr.bf16.mxu1 %v9407_v27  ;;  %v666_v24 = vmul.f32 %v11201_v36, %v11201_v36  ;;  %v668_v57 = vmul.f32 %v11213_v48, %v11213_v48 }
 0x20e   :  { %9410 = vmatpush3.bf16.msra.mxu1 %v9407_v27  ;;  %v679_v27 = vmul.f32 %v11229_v37, %v11229_v37 }
 0x20f   :  { %v11249_v47 = vadd.f32 %v8926_v33, %v333_v41  ;;  %v526_v30 = vadd.f32 %v11237_v39, %v11242_v12  ;;  %v682_v3 = vadd.f32 %v674_v7, %v666_v24  ;;  %v685_v33 = vadd.f32 %v677_v5, %v669_v61  ;;  %v513_v41 = vld [vmem:[#allocation5 + $0x8] sm:$0xff]  ;;  %v514_v7 = vld [vmem:[#allocation5 + $0x10] sm:$0xff]  ;;  %v515_v61 = vld [vmem:[#allocation5 + $0x18] sm:$0xff] }
 0x210   :  { %v670_v24 = vmul.f32 %v11225_v14, %v11225_v14 }
 0x211   :  { %v527_v45 = vadd.f32 %v11249_v47, %v11245_v49  ;;  %v9415_v9 = vpack.c.bf16 %v683_v19, %v682_v3  ;;  %v687_v19 = vadd.f32 %v679_v27, %v671_v32 }
 0x212   :  { %v686_v3 = vadd.f32 %v678_v31, %v670_v24  ;;  %v519_v31 = vld [vmem:[#allocation5 + $0x38] sm:$0xff] }
 0x213   :  { %v9411_v44 = vpack.c.bf16 %v527_v45, %v526_v30  ;;  %v684_v30 = vadd.f32 %v676_v54, %v668_v57  ;;  %v681_v45 = vmul.f32 %v11249_v47, %v11249_v47  ;;  %v680_v54 = vmul.f32 %v11237_v39, %v11237_v39  ;;  %v516_v57 = vld [vmem:[#allocation5 + $0x20] sm:$0xff] }
 0x215   :  { %9412 = vmatprep.subr.bf16.mxu1 %v9411_v44  ;;  %v9419_v5 = vpack.c.bf16 %v685_v33, %v684_v30  ;;  %v9423_v33 = vpack.c.bf16 %v687_v19, %v686_v3  ;;  %v688_v32 = vadd.f32 %v680_v54, %v672_v20  ;;  %v518_v30 = vld [vmem:[#allocation5 + $0x30] sm:$0xff]  ;;  %v11297_v20 = vpop.permute.xlu1 %885 }
 0x216   :  { %9414 = vmatpush3.bf16.msra.mxu1 %v9411_v44  ;;  %v673_v44 = vmul.f32 %v11245_v49, %v11245_v49 }
 0x217   :  { %9416 = vmatprep.subr.bf16.mxu1 %v9415_v9 }
 0x218   :  { %v689_v27 = vadd.f32 %v681_v45, %v673_v44 }
 0x219   :  { %9104 = vmatmul.mubr.msk.f32.vlgmr.msra.gmra.mrb[32].mxu1 %vm528_vm0, %v513_v41 }
 0x21a   :  { %9418 = vmatpush3.bf16.msra.mxu1 %v9415_v9  ;;  %9106 = vmatprep.mubr.msk.f32.mxu1 %vm528_vm0, %v514_v7  ;;  %v517_v9 = vld [vmem:[#allocation5 + $0x28] sm:$0xff]  ;;  %v9427_v18 = vpack.c.bf16 %v689_v27, %v688_v32 }
 0x21b   :  { %9420 = vmatprep.subr.bf16.mxu1 %v9419_v5 }
 0x21d   :  { %9107 = vmatmul.mubr.msk.f32.gmra.mrb[34].mxu1 %vm528_vm0, %v515_v61 }
 0x21e   :  { %9422 = vmatpush3.bf16.msra.mxu1 %v9419_v5  ;;  %9109 = vmatprep.mubr.msk.f32.mxu1 %vm528_vm0, %v516_v57 }
 0x21f   :  { %9424 = vmatprep.subr.bf16.mxu1 %v9423_v33 }
 0x221   :  { %9110 = vmatmul.mubr.msk.f32.gmra.mrb[36].mxu1 %vm528_vm0, %v517_v9 }
 0x222   :  { %9426 = vmatpush3.bf16.msra.mxu1 %v9423_v33  ;;  %9112 = vmatprep.mubr.msk.f32.mxu1 %vm528_vm0, %v518_v30 }
 0x223   :  { %9428 = vmatprep.subr.bf16.mxu1 %v9427_v18 }
 0x225   :  { %9113 = vmatmul.mubr.msk.f32.gmra.mrb[38].mxu1 %vm528_vm0, %v519_v31 }
 0x226   :  { %9430 = vmatpush3.bf16.msra.mxu1 %v9427_v18  ;;  %9131 = vmatprep.mubr.msk.f32.mxu1 %vm528_vm0, %v11191_v46  ;;  %v11299_v18 = vpop.permute.xlu1 %890 }
 0x229   :  { %9132 = vmatmul.mubr.msk.f32.vlgmr.msra.gmra.mrb[40].mxu1 %vm528_vm0, %v513_v41 }
 0x22a   :  { %9134 = vmatprep.mubr.msk.f32.mxu1 %vm528_vm0, %v514_v7  ;;  %v11301_v24 = vpop.permute.xlu1 %933 }
 0x22d   :  { %9135 = vmatmul.mubr.msk.f32.gmra.mrb[42].mxu1 %vm528_vm0, %v515_v61 }
 0x22e   :  { %9137 = vmatprep.mubr.msk.f32.mxu1 %vm528_vm0, %v516_v57  ;;  %v11303_v46 = vpop.permute.xlu1 %895 }
 0x231   :  { %9138 = vmatmul.mubr.msk.f32.gmra.mrb[44].mxu1 %vm528_vm0, %v517_v9 }
 0x232   :  { %9140 = vmatprep.mubr.msk.f32.mxu1 %vm528_vm0, %v518_v30  ;;  %v11305_v41 = vpop.permute.xlu1 %938 }
 0x235   :  { %9141 = vmatmul.mubr.msk.f32.gmra.mrb[46].mxu1 %vm528_vm0, %v519_v31 }
 0x236   :  { %v11307_v5 = vpop.permute.xlu1 %900 }
 0x23a   :  { %v11309_v44 = vpop.permute.xlu1 %943 }
 0x23e   :  { %v11313_v9 = vpop.permute.xlu1 %948 }
 0x242   :  { %v11325_v50 = vpop.permute.xlu1 %1013 }
 0x2ec   :  { %v9105_v7 = vpop.f32.mrb[32].mxu1 }
 0x2ed   :  { %v619_v45 = vpop.f32.mrb[33].mxu1  ;;  %v11311_v33 = vmul.f32 0.015625, %v9105_v7 }
 0x2ee   :  { %v11315_v32 = vmul.f32 0.015625, %v619_v45 }
 0x2ef   :  { %v804_v6 = vmul.f32 %v11311_v33, %v11311_v33 }
 0x2f0   :  { %v9108_v19 = vpop.f32.mrb[34].mxu1  ;;  %v803_v7 = vmul.f32 %v11315_v32, %v11315_v32 }
 0x2f1   :  { %v629_v61 = vpop.f32.mrb[35].mxu1  ;;  %v11317_v31 = vmul.f32 0.015625, %v9108_v19 }
 0x2f2   :  { %v11321_v58 = vmul.f32 0.015625, %v629_v61 }
 0x2f4   :  { %v9111_v54 = vpop.f32.mrb[36].mxu1  ;;  %v805_v17 = vmul.f32 %v11321_v58, %v11321_v58 }
 0x2f5   :  { %v639_v3 = vpop.f32.mrb[37].mxu1  ;;  %v11327_v34 = vmul.f32 0.015625, %v9111_v54 }
 0x2f6   :  { %v11331_v62 = vmul.f32 0.015625, %v639_v3  ;;  %v1019_v3 = vpop.permute.xlu1 %1018 }
 0x2f8   :  { %v9114_v57 = vpop.f32.mrb[38].mxu1 }
 0x2f9   :  { %v649_v27 = vpop.f32.mrb[39].mxu1  ;;  %v11335_v54 = vmul.f32 0.015625, %v9114_v57 }
 0x2fa   :  { %v11339_v51 = vmul.f32 0.015625, %v649_v27 }
 0x2fc   :  { %v9133_v30 = vpop.f32.mrb[40].mxu1  ;;  %v809_v27 = vmul.f32 %v11339_v51, %v11339_v51 }
 0x2fd   :  { %v796_v8 = vmul.f32 0.015625, %v9133_v30  ;;  %v756_v60 = vpop.f32.mrb[41].mxu1  ;;  %v806_v30 = vmul.f32 %v11317_v31, %v11317_v31 }
 0x2fe   :  { %v795_v15 = vmul.f32 0.015625, %v756_v60 }
 0x2ff   :  { %v812_v0 = vsub.f32 %v796_v8, %v804_v6 }
 0x300   :  { %v811_v42 = vsub.f32 %v795_v15, %v803_v7  ;;  %v9136_v45 = vpop.f32.mrb[42].mxu1 }
 0x301   :  { %v820_v19 = vadd.f32 1e-05, %v812_v0  ;;  %v798_v22 = vmul.f32 0.015625, %v9136_v45  ;;  %v766_v10 = vpop.f32.mrb[43].mxu1  ;;  %v808_v45 = vmul.f32 %v11327_v34, %v11327_v34 }
 0x302   :  { %v819_v61 = vadd.f32 1e-05, %v811_v42  ;;  %v797_v60 = vmul.f32 0.015625, %v766_v10 }
 0x303   :  { %10333 = vrsqrt.f32 %v820_v19  ;;  %v814_v6 = vsub.f32 %v798_v22, %v806_v30  ;;  %v807_v19 = vmul.f32 %v11331_v62, %v11331_v62 }
 0x304   :  { %10335 = vrsqrt.f32 %v819_v61  ;;  %v813_v8 = vsub.f32 %v797_v60, %v805_v17  ;;  %v9139_v15 = vpop.f32.mrb[44].mxu1  ;;  %v810_v60 = vmul.f32 %v11335_v54, %v11335_v54 }
 0x305   :  { %v822_v0 = vadd.f32 1e-05, %v814_v6  ;;  %v800_v7 = vmul.f32 0.015625, %v9139_v15  ;;  %v776_v2 = vpop.f32.mrb[45].mxu1 }
 0x306   :  { %v821_v10 = vadd.f32 1e-05, %v813_v8  ;;  %v799_v42 = vmul.f32 0.015625, %v776_v2  ;;  %v1062_v8 = vpop.permute.xlu1 %1061 }
 0x307   :  { %10337 = vrsqrt.f32 %v822_v0  ;;  %v816_v22 = vsub.f32 %v800_v7, %v808_v45  ;;  %v868_v0 = vsub.f32 %v11203_v38, %v11311_v33  ;;  %v996_v7 = vsub.f32 %v11205_v40, %v11311_v33  ;;  %v1067_v33 = vpop.permute.xlu0 %1066 }
 0x308   :  { %10339 = vrsqrt.f32 %v821_v10  ;;  %v815_v17 = vsub.f32 %v799_v42, %v807_v19  ;;  %v9142_v57 = vpop.f32.mrb[46].mxu1  ;;  %v867_v42 = vsub.f32 %v11201_v36, %v11315_v32  ;;  %v995_v19 = vsub.f32 %v11199_v28, %v11315_v32 }
 0x309   :  { %v824_v30 = vadd.f32 1e-05, %v816_v22  ;;  %v802_v61 = vmul.f32 0.015625, %v9142_v57  ;;  %v786_v6 = vpop.f32.mrb[47].mxu1  ;;  %v870_v38 = vsub.f32 %v11215_v52, %v11317_v31  ;;  %v869_v36 = vsub.f32 %v11213_v48, %v11321_v58 }
 0x30a   :  { %v823_v15 = vadd.f32 1e-05, %v815_v17  ;;  %v801_v43 = vmul.f32 0.015625, %v786_v6  ;;  %v997_v6 = vsub.f32 %v11211_v21, %v11321_v58  ;;  %v871_v58 = vsub.f32 %v11225_v14, %v11331_v62 }
 0x30b   :  { %10341 = vrsqrt.f32 %v824_v30  ;;  %v818_v2 = vsub.f32 %v802_v61, %v810_v60  ;;  %v999_v14 = vsub.f32 %v11223_v55, %v11331_v62 }
 0x30c   :  { %10343 = vrsqrt.f32 %v823_v15  ;;  %v817_v45 = vsub.f32 %v801_v43, %v809_v27  ;;  %v998_v43 = vsub.f32 %v11217_v59, %v11317_v31 }
 0x30d   :  { %v10334_v10 = vpop.eup %10333  ;;  %v826_v22 = vadd.f32 1e-05, %v818_v2 }
 0x30e   :  { %v10336_v17 = vpop.eup %10335  ;;  %v876_v57 = vmul.f32 %v10334_v10, %v868_v0  ;;  %v1004_v30 = vmul.f32 %v10334_v10, %v996_v7  ;;  %v825_v61 = vadd.f32 1e-05, %v817_v45  ;;  %v1024_v0 = vpop.permute.xlu1 %1023 }
 0x30f   :  { %v1003_v60 = vmul.f32 %v10336_v17, %v995_v19  ;;  %10345 = vrsqrt.f32 %v826_v22  ;;  %v875_v40 = vmul.f32 %v10336_v17, %v867_v42  ;;  %v1072_v22 = vpop.permute.xlu0 %1071 }
 0x310   :  { %10347 = vrsqrt.f32 %v825_v61  ;;  %v924_v28 = vmul.f32 %v11299_v18, %v876_v57  ;;  %v1052_v15 = vmul.f32 %v1019_v3, %v1004_v30  ;;  %v872_v18 = vsub.f32 %v11227_v25, %v11327_v34 }
 0x311   :  { %v10338_v32 = vpop.eup %10337  ;;  %v1051_v52 = vmul.f32 %v11325_v50, %v1003_v60  ;;  %v923_v27 = vmul.f32 %v11297_v20, %v875_v40  ;;  %v1000_v50 = vsub.f32 %v11229_v37, %v11327_v34  ;;  %v873_v34 = vsub.f32 %v11242_v12, %v11339_v51 }
 0x312   :  { %v10340_v2 = vpop.eup %10339  ;;  %v878_v7 = vmul.f32 %v10338_v32, %v870_v38  ;;  %v1006_v45 = vmul.f32 %v10338_v32, %v998_v43  ;;  %v972_v21 = vadd.f32 %v11305_v41, %v924_v28  ;;  %v1100_v3 = vadd.f32 %v1067_v33, %v1052_v15  ;;  %v1029_v17 = vpop.permute.xlu1 %1028 }
 0x313   :  { %v1099_v59 = vadd.f32 %v1062_v8, %v1051_v52  ;;  %v877_v31 = vmul.f32 %v10340_v2, %v869_v36  ;;  %v1005_v10 = vmul.f32 %v10340_v2, %v997_v6  ;;  %v971_v48 = vadd.f32 %v11301_v24, %v923_v27 }
 0x314   :  { %v874_v24 = vsub.f32 %v11245_v49, %v11335_v54  ;;  %v926_v41 = vmul.f32 %v11307_v5, %v878_v7  ;;  %v1054_v62 = vmul.f32 %v1029_v17, %v1006_v45  ;;  %v1001_v12 = vsub.f32 %v11237_v39, %v11339_v51  ;;  %v8592_v7 = vld [vmem:[%s14788_s1 + $0x1] ss:$0 sm:$0xff] }
 0x315   :  { %v10342_v20 = vpop.eup %10341  ;;  %10349 = vtanh.f32 %v1099_v59  ;;  %v1053_v42 = vmul.f32 %v1024_v0, %v1005_v10  ;;  %v925_v8 = vmul.f32 %v11303_v46, %v877_v31  ;;  %v1002_v46 = vsub.f32 %v11249_v47, %v11335_v54  ;;  %v858_v0 = vld [vmem:[%s14793_s6 + $0x38] sm:$0xff]  ;;  %v8596_v45 = vld [vmem:[%s14789_s2 + $0x1] ss:$0 sm:$0xff]  ;;  %v848_v31 = vld [vmem:[%s14792_s5 + $0x68] sm:$0xff] }
 0x316   :  { %v10344_v19 = vpop.eup %10343  ;;  %v11377_v25 = vmul.f32 %v10342_v20, %v872_v18  ;;  %10351 = vtanh.f32 %v971_v48  ;;  %v11391_v30 = vmul.f32 %v10342_v20, %v1000_v50  ;;  %v974_v40 = vadd.f32 %v11313_v9, %v926_v41  ;;  %v847_v59 = vld [vmem:[%s14792_s5 + $0x60] sm:$0xff]  ;;  %v849_v48 = vld [vmem:[%s14792_s5 + $0x70] sm:$0xff]  ;;  %v864_v18 = vld [vmem:[%s14793_s6 + $0x68] sm:$0xff] }
 0x317   :  { %v11383_v37 = vmul.f32 %v10344_v19, %v871_v58  ;;  %10353 = vtanh.f32 %v972_v21  ;;  %v973_v49 = vadd.f32 %v11309_v44, %v925_v8  ;;  %v11389_v57 = vmul.f32 %v10344_v19, %v999_v14  ;;  %v1077_v44 = vpop.permute.xlu0 %1076  ;;  %v863_v10 = vld [vmem:[%s14793_s6 + $0x60] sm:$0xff]  ;;  %v11428_v58 = vpop.permute.xlu1 %1532 }
 0x318   :  { %10355 = vtanh.f32 %v1100_v3  ;;  %v1101_v55 = vadd.f32 %v1072_v22, %v1053_v42  ;;  %v1102_v33 = vadd.f32 %v1077_v44, %v1054_v62 }
 0x319   :  { %v10346_v61 = vpop.eup %10345  ;;  %10357 = vtanh.f32 %v973_v49 }
 0x31a   :  { %v10348_v38 = vpop.eup %10347  ;;  %v11395_v5 = vmul.f32 %v10346_v61, %v874_v24  ;;  %v11397_v60 = vmul.f32 %v10346_v61, %v1002_v46  ;;  %10359 = vtanh.f32 %v1101_v55 }
 0x31b   :  { %v11399_v47 = vmul.f32 %v10348_v38, %v873_v34  ;;  %v11401_v54 = vmul.f32 %v10348_v38, %v1001_v12  ;;  %10361 = vtanh.f32 %v974_v40  ;;  %v11430_v21 = vpop.permute.xlu0 %1476  ;;  %v11432_v50 = vpop.permute.xlu1 %905 }
 0x31c   :  { %10363 = vtanh.f32 %v1102_v33 }
 0x31f   :  { %v10350_v43 = vpop.eup %10349  ;;  %v11434_v20 = vpop.permute.xlu0 %953 }
 0x320   :  { %v10352_v36 = vpop.eup %10351  ;;  %1179 = vxpose.xlu0.b32.start [1/4] (short) (narrow) %v10350_v43, 64  ;;  %v11436_v3 = vpop.permute.xlu1 %910 }
 0x321   :  { %v987_v51 = vmul.f32 0.4204482, %v10352_v36  ;;  %v10354_v39 = vpop.eup %10353 }
 0x322   :  { %v10356_v28 = vpop.eup %10355  ;;  %v988_v32 = vmul.f32 0.4204482, %v10354_v39 }
 0x323   :  { %1115 = vxpose.xlu1.b32.start [1/4] (short) (narrow) %v987_v51, 64  ;;  %v10358_v6 = vpop.eup %10357  ;;  %v11438_v42 = vpop.permute.xlu0 %958 }
 0x324   :  { %1180 = vxpose.xlu0.b32.cont [2/4] (short) (narrow) %v10356_v28, 64  ;;  %v10360_v15 = vpop.eup %10359  ;;  %v989_v52 = vmul.f32 0.4204482, %v10358_v6  ;;  %v11440_v8 = vpop.permute.xlu1 %915 }
 0x325   :  { %v10362_v27 = vpop.eup %10361 }
 0x326   :  { %v10364_v9 = vpop.eup %10363  ;;  %v990_v2 = vmul.f32 0.4204482, %v10362_v27  ;;  %v865_v27 = vld [vmem:[%s14793_s6 + $0x70] sm:$0xff] }
 0x327   :  { %1116 = vxpose.xlu1.b32.cont [2/4] (short) (narrow) %v988_v32, 64  ;;  %v11442_v19 = vpop.permute.xlu0 %963 }
 0x328   :  { %1181 = vxpose.xlu0.b32.cont [3/4] (short) (narrow) %v10360_v15, 64  ;;  %v11444_v22 = vpop.permute.xlu1 %920 }
 0x32b   :  { %1117 = vxpose.xlu1.b32.cont [3/4] (short) (narrow) %v989_v52, 64 }
 0x32c   :  { %1182 = vxpose.xlu0.b32.end [4/4] (short) (narrow) %v10364_v9, 64  ;;  %v866_v9 = vld [vmem:[%s14793_s6 + $0x78] sm:$0xff] }
 0x32f   :  { %1118 = vxpose.xlu1.b32.end [4/4] (short) (narrow) %v990_v2, 64  ;;  %v850_v2 = vld [vmem:[%s14792_s5 + $0x78] sm:$0xff] }
 0x35d   :  { %968 = vperm.xlu1 %9767, %v858_v0  }
 0x361   :  { %1480 = vperm.xlu1 %9767, %v8592_v7  }
 0x365   :  { %1536 = vperm.xlu1 %9767, %v8596_v45   ;;  %1033 = vperm.xlu0 %9768, %v847_v59  }
 0x369   :  { %1038 = vperm.xlu1 %9767, %v848_v31   ;;  %1081 = vperm.xlu0 %9768, %v863_v10  }
 0x36d   :  { %1043 = vperm.xlu0 %9768, %v849_v48  }
 0x371   :  { %1086 = vperm.xlu0 %9768, %v864_v18  }
 0x3a0   :  { %v11446_v24 = vpop.trf.xlu0 }
 0x3a1   :  { %1307 = vxpose.xlu0.b32.start [1/4] (short) (narrow) %v11446_v24, 32 }
 0x3a3   :  { %v1131_v14 = vpop.trf.xlu1 }
 0x3a4   :  { %v11449_v34 = vpop.trf.xlu0 }
 0x3a5   :  { %1308 = vxpose.xlu0.b32.cont [2/4] (short) (narrow) %v11449_v34, 32 }
 0x3a7   :  { %v1132_v41 = vpop.trf.xlu1 }
 0x3a8   :  { %v3499_v46 = vpack.c.bf16 %v1132_v41, %v1131_v14  ;;  %v11452_v17 = vpop.trf.xlu0  ;;  %v927_v41 = vmul.f32 %v11432_v50, %v11383_v37 }
 0x3a9   :  { %1309 = vxpose.xlu0.b32.cont [3/4] (short) (narrow) %v11452_v17, 32 }
 0x3aa   :  { %9559 = vmatprep.subr.msk.bf16.mxu1 %vm3507_vm1, %v3499_v46  ;;  %v3509_v49 = vsel %vm3507_vm1, %v3499_v46, 0  ;;  %9147 = vmatprep.mubr.msk.bf16.mxu1 %vm3507_vm1, %v3499_v46 }
 0x3ab   :  { %9144 = vmatpush3.bf16.xpose.msra.mxu1 %v3509_v49  ;;  %v1133_v61 = vpop.trf.xlu1 }
 0x3ac   :  { %v11458_v62 = vpop.trf.xlu0 }
 0x3ad   :  { %1310 = vxpose.xlu0.b32.end [4/4] (short) (narrow) %v11458_v62, 32 }
 0x3af   :  { %v1134_v55 = vpop.trf.xlu1 }
 0x3b0   :  { %v3500_v12 = vpack.c.bf16 %v1134_v55, %v1133_v61  ;;  %v11461_v38 = vpop.trf.xlu0  ;;  %v928_v55 = vmul.f32 %v11436_v3, %v11377_v25 }
 0x3b1   :  { %1339 = vxpose.xlu1.b32.start [1/4] (short) (narrow) %v11461_v38, 32 }
 0x3b2   :  { %9560 = vmatprep.subr.msk.bf16.mxu1 %vm3507_vm1, %v3500_v12  ;;  %v3512_v44 = vsel %vm3507_vm1, %v3500_v12, 0  ;;  %v976_v37 = vadd.f32 %v11438_v42, %v928_v55 }
 0x3b3   :  { %9146 = vmatpush3.bf16.xpose.msra.mxu1 %v3512_v44  ;;  %v1135_v40 = vpop.trf.xlu1  ;;  %v929_v44 = vmul.f32 %v11440_v8, %v11399_v47 }
 0x3b4   :  { %v11466_v33 = vpop.trf.xlu0 }
 0x3b5   :  { %1340 = vxpose.xlu1.b32.cont [2/4] (short) (narrow) %v11466_v33, 32 }
 0x3b7   :  { %v1136_v43 = vpop.trf.xlu1 }
 0x3b8   :  { %v3501_v36 = vpack.c.bf16 %v1136_v43, %v1135_v40  ;;  %v11469_v51 = vpop.trf.xlu0 }
 0x3b9   :  { %1341 = vxpose.xlu1.b32.cont [3/4] (short) (narrow) %v11469_v51, 32 }
 0x3ba   :  { %9148 = vmatmul.mubr.msk.bf16.vlgmr.msra.gmra.mrb[48].mxu1 %vm3507_vm1, %v3500_v12  ;;  %9561 = vmatprep.subr.msk.bf16.mxu1 %vm3507_vm1, %v3501_v36  ;;  %v3564_v39 = vsel %vm3507_vm1, %v3501_v36, 0 }
 0x3bb   :  { %9152 = vmatpush3.bf16.xpose.msra.mxu1 %v3564_v39  ;;  %v1137_v28 = vpop.trf.xlu1  ;;  %9155 = vmatprep.mubr.msk.bf16.mxu1 %vm3507_vm1, %v3501_v36 }
 0x3bc   :  { %v11476_v32 = vpop.trf.xlu0 }
 0x3bd   :  { %1342 = vxpose.xlu1.b32.end [4/4] (short) (narrow) %v11476_v32, 32 }
 0x3bf   :  { %v1138_v6 = vpop.trf.xlu1 }
 0x3c0   :  { %v3502_v15 = vpack.c.bf16 %v1138_v6, %v1137_v28 }
 0x3c2   :  { %9562 = vmatprep.subr.msk.bf16.mxu1 %vm3507_vm1, %v3502_v15  ;;  %v3567_v52 = vsel %vm3507_vm1, %v3502_v15, 0 }
 0x3c3   :  { %9154 = vmatpush3.bf16.xpose.msra.mxu1 %v3567_v52 }
 0x3ca   :  { %9156 = vmatmul.mubr.msk.bf16.vlgmr.msra.gmra.mrb[52].mxu1 %vm3507_vm1, %v3502_v15 }
 0x3d6   :  { %1091 = vperm.xlu0 %9768, %v865_v27  }
 0x3da   :  { %1096 = vperm.xlu0 %9768, %v866_v9  }
 0x3db   :  { %1048 = vperm.xlu1 %9767, %v850_v2  }
 0x3dc   :  { %v969_v0 = vpop.permute.xlu1 %968 }
 0x3e0   :  { %v11491_v7 = vpop.permute.xlu1 %1480 }
 0x3e4   :  { %v1034_v45 = vpop.permute.xlu0 %1033  ;;  %v11493_v59 = vpop.permute.xlu1 %1536 }
 0x3e5   :  { %v1055_v31 = vmul.f32 %v1034_v45, %v11389_v57  ;;  %v975_v57 = vadd.f32 %v11434_v20, %v927_v41 }
 0x3e8   :  { %v1082_v10 = vpop.permute.xlu0 %1081  ;;  %v1039_v18 = vpop.permute.xlu1 %1038 }
 0x3e9   :  { %v1103_v48 = vadd.f32 %v1082_v10, %v1055_v31  ;;  %v1056_v49 = vmul.f32 %v1039_v18, %v11391_v30  ;;  %v930_v30 = vmul.f32 %v11444_v22, %v11395_v5 }
 0x3eb   :  { %10365 = vtanh.f32 %v1103_v48  ;;  %v978_v25 = vadd.f32 %v969_v0, %v930_v30 }
 0x3ec   :  { %v1044_v14 = vpop.permute.xlu0 %1043 }
 0x3ed   :  { %v11499_v46 = vmul.f32 %v1044_v14, %v11401_v54  ;;  %v977_v54 = vadd.f32 %v11442_v19, %v929_v44 }
 0x3f0   :  { %v1087_v61 = vpop.permute.xlu0 %1086 }
 0x3f1   :  { %v1104_v12 = vadd.f32 %v1087_v61, %v1056_v49 }
 0x3f3   :  { %10367 = vtanh.f32 %v1104_v12 }
 0x3f4   :  { %10369 = vtanh.f32 %v975_v57 }
 0x3f5   :  { %v10366_v50 = vpop.eup %10365  ;;  %10371 = vtanh.f32 %v976_v37 }
 0x3f6   :  { %10373 = vtanh.f32 %v977_v54 }
 0x3f7   :  { %10375 = vtanh.f32 %v978_v25 }
 0x3f8   :  { %1211 = vxpose.xlu0.b32.start [1/4] (short) (narrow) %v10366_v50, 64 }
 0x3fd   :  { %v10368_v40 = vpop.eup %10367 }
 0x3fe   :  { %1212 = vxpose.xlu0.b32.cont [2/4] (short) (narrow) %v10368_v40, 64  ;;  %v10370_v20 = vpop.eup %10369 }
 0x3ff   :  { %v991_v3 = vmul.f32 0.4204482, %v10370_v20  ;;  %v10372_v43 = vpop.eup %10371 }
 0x400   :  { %v992_v47 = vmul.f32 0.4204482, %v10372_v43  ;;  %v10374_v8 = vpop.eup %10373 }
 0x401   :  { %v993_v42 = vmul.f32 0.4204482, %v10374_v8  ;;  %v10376_v36 = vpop.eup %10375 }
 0x402   :  { %v994_v39 = vmul.f32 0.4204482, %v10376_v36 }
 0x404   :  { %1147 = vxpose.xlu1.b32.start [1/4] (short) (narrow) %v991_v3, 64 }
 0x408   :  { %1148 = vxpose.xlu1.b32.cont [2/4] (short) (narrow) %v992_v47, 64 }
 0x40c   :  { %1149 = vxpose.xlu1.b32.cont [3/4] (short) (narrow) %v993_v42, 64 }
 0x410   :  { %1150 = vxpose.xlu1.b32.end [4/4] (short) (narrow) %v994_v39, 64  ;;  %v8594_v39 = vld [vmem:[%s14788_s1 + $0x3] ss:$0 sm:$0xff] }
 0x421   :  { %v1323_v19 = vpop.trf.xlu0 }
 0x422   :  { %v1435_v5 = vsub.f32 %v11446_v24, %v1323_v19 }
 0x424   :  { %v1491_v22 = vmul.f32 %v11430_v21, %v1435_v5 }
 0x425   :  { %v1324_v28 = vpop.trf.xlu0 }
 0x426   :  { %v1547_v6 = vadd.f32 %v11428_v58, %v1491_v22  ;;  %v1436_v15 = vsub.f32 %v11449_v34, %v1324_v28 }
 0x428   :  { %v1563_v52 = vand.u32 2147483647, %v1547_v6  ;;  %v1492_v27 = vmul.f32 %v11430_v21, %v1436_v15  ;;  %v1572_v30 = vand.u32 2147483648, %v1547_v6 }
 0x429   :  { %v1325_v9 = vpop.trf.xlu0 }
 0x42a   :  { %v1565_v2 = vmul.f32 0.00048828125, %v1563_v52  ;;  %v11517_v0 = vadd.f32 %v11428_v58, %v1492_v27  ;;  %v1437_v45 = vsub.f32 %v11452_v17, %v1325_v9 }
 0x42c   :  { %v1566_v31 = vfloor.f32 %v1565_v2  ;;  %v1574_v24 = vand.u32 2147483647, %v11517_v0  ;;  %v1493_v10 = vmul.f32 %v11430_v21, %v1437_v45  ;;  %v8598_v2 = vld [vmem:[%s14789_s2 + $0x3] ss:$0 sm:$0xff] }
 0x42d   :  { %v1326_v48 = vpop.trf.xlu0 }
 0x42e   :  { %v1567_v18 = vmul.f32 2048.0, %v1566_v31  ;;  %v1576_v14 = vmul.f32 0.00048828125, %v1574_v24  ;;  %v1549_v34 = vadd.f32 %v11428_v58, %v1493_v10  ;;  %v1438_v41 = vsub.f32 %v11458_v62, %v1326_v48 }
 0x430   :  { %v1568_v49 = vsub.f32 %v1563_v52, %v1567_v18  ;;  %v1585_v61 = vand.u32 2147483647, %v1549_v34  ;;  %v1494_v55 = vmul.f32 %v11430_v21, %v1438_v41  ;;  %v1577_v57 = vfloor.f32 %v1576_v14 }
 0x431   :  { %v1355_v12 = vpop.trf.xlu1  ;;  %v1594_v15 = vand.u32 2147483648, %v1549_v34 }
 0x432   :  { %vm1569_vm2 = vcmp.eq.f32.partialorder %v1568_v49, 2048.0  ;;  %v1587_v17 = vmul.f32 0.00048828125, %v1585_v61  ;;  %v11526_v37 = vadd.f32 %v11428_v58, %v1494_v55  ;;  %v1578_v20 = vmul.f32 2048.0, %v1577_v57 }
 0x433   :  { %v1570_v44 = vsel %vm1569_vm2, 0.0, %v1568_v49  ;;  %v1439_v5 = vsub.f32 %v11461_v38, %v1355_v12 }
 0x434   :  { %v1571_v50 = vand.u32 2147483647, %v1570_v44  ;;  %v1588_v54 = vfloor.f32 %v1587_v17  ;;  %v1596_v40 = vand.u32 2147483647, %v11526_v37  ;;  %v1579_v42 = vsub.f32 %v1574_v24, %v1578_v20 }
 0x435   :  { %v1356_v25 = vpop.trf.xlu1  ;;  %v1495_v38 = vmul.f32 %v11491_v7, %v1439_v5 }
 0x436   :  { %v1589_v62 = vmul.f32 2048.0, %v1588_v54  ;;  %v1573_v3 = vor.u32 %v1572_v30, %v1571_v50  ;;  %v1598_v43 = vmul.f32 0.00048828125, %v1596_v40  ;;  %v1440_v22 = vsub.f32 %v11466_v33, %v1356_v25 }
 0x437   :  { %vm1580_vm7 = vcmp.eq.f32.partialorder %v1579_v42, 2048.0  ;;  %v11552_v41 = vadd.f32 %v11493_v59, %v1495_v38  ;;  %v1583_v50 = vand.u32 2147483648, %v11517_v0 }
 0x438   :  { %v1590_v47 = vsub.f32 %v1585_v61, %v1589_v62  ;;  %v1599_v21 = vfloor.f32 %v1598_v43  ;;  %vm1739_vm3 = vcmp.ne.f32.partialorder %v1573_v3, 0.0  ;;  %vm1755_vm4 = vcmp.lt.f32.partialorder %v1573_v3, 0.0 }
 0x439   :  { %v1357_v8 = vpop.trf.xlu1  ;;  %v1787_v28 = vadd.f32 2048.0, %v1573_v3  ;;  %vm11535_vm6 = vmand %vm1755_vm4, %vm1739_vm3  ;;  %v1496_v33 = vmul.f32 %v11491_v7, %v1440_v22  ;;  %v1581_v10 = vsel %vm1580_vm7, 0.0, %v1579_v42  ;;  %v1607_v25 = vand.u32 2147483647, %v11552_v41 }
 0x43a   :  { %v1441_v36 = vsub.f32 %v11469_v51, %v1357_v8  ;;  %vm1591_vm5 = vcmp.eq.f32.partialorder %v1590_v47, 2048.0  ;;  %v1600_v58 = vmul.f32 2048.0, %v1599_v21  ;;  %v1582_v12 = vand.u32 2147483647, %v1581_v10 }
 0x43b   :  { %v1592_v19 = vsel %vm1591_vm5, 0.0, %v1590_v47  ;;  %v1803_v24 = vsel %vm11535_vm6, %v1787_v28, %v1573_v3  ;;  %v11555_v57 = vadd.f32 %v11493_v59, %v1496_v33  ;;  %v1609_v8 = vmul.f32 0.00048828125, %v1607_v25 }
 0x43c   :  { %v1593_v6 = vand.u32 2147483647, %v1592_v19  ;;  %v1601_v52 = vsub.f32 %v1596_v40, %v1600_v58  ;;  %v1497_v51 = vmul.f32 %v11491_v7, %v1441_v36  ;;  %v1819_v55 = vfloor.f32 %v1803_v24 }
 0x43d   :  { %v1358_v18 = vpop.trf.xlu1  ;;  %v1605_v40 = vand.u32 2147483648, %v11526_v37  ;;  %v11565_v62 = vor.u32 %v1583_v50, %v1582_v12  ;;  %v1618_v3 = vand.u32 2147483647, %v11555_v57 }
 0x43e   :  { %1488 = vperm.xlu1 %9767, %v8594_v39   ;;  %v1595_v9 = vor.u32 %v1594_v15, %v1593_v6  ;;  %vm1602_vm8 = vcmp.eq.f32.partialorder %v1601_v52, 2048.0  ;;  %v11546_v45 = vadd.f32 %v11493_v59, %v1497_v51  ;;  %v1442_v17 = vsub.f32 %v11476_v32, %v1358_v18 }
 0x43f   :  { %v1603_v14 = vsel %vm1602_vm8, 0.0, %v1601_v52  ;;  %v11563_v20 = vmul.f32 0.0030694604, %v1819_v55  ;;  %vm1740_vm12 = vcmp.ne.f32.partialorder %v11565_v62, 0.0  ;;  %vm1756_vm13 = vcmp.lt.f32.partialorder %v11565_v62, 0.0 }
 0x440   :  { %vm1741_vm9 = vcmp.ne.f32.partialorder %v1595_v9, 0.0  ;;  %vm1757_vm10 = vcmp.lt.f32.partialorder %v1595_v9, 0.0  ;;  %v1789_v31 = vadd.f32 2048.0, %v1595_v9  ;;  %v1629_v48 = vand.u32 2147483647, %v11546_v45  ;;  %vm11583_vm0 = vmand %vm1756_vm13, %vm1740_vm12 }
 0x441   :  { %vm1773_vm11 = vmand %vm1757_vm10, %vm1741_vm9  ;;  %v1604_v44 = vand.u32 2147483647, %v1603_v14  ;;  %v1498_v43 = vmul.f32 %v11491_v7, %v1442_v17  ;;  %v1854_v42 = vand.u32 2139095040, %v11563_v20  ;;  %v1620_v36 = vmul.f32 0.00048828125, %v1618_v3 }
 0x442   :  { %1544 = vperm.xlu1 %9767, %v8598_v2   ;;  %v1805_v34 = vsel %vm1773_vm11, %v1789_v31, %v1595_v9  ;;  %v1631_v49 = vmul.f32 0.00048828125, %v1629_v48  ;;  %v11588_v28 = vadd.f32 2048.0, %v11565_v62  ;;  %v1610_v52 = vfloor.f32 %v1609_v8 }
 0x443   :  { %v1821_v61 = vfloor.f32 %v1805_v34  ;;  %v1606_v47 = vor.u32 %v1605_v40, %v1604_v44  ;;  %v11579_v7 = vadd.f32 %v11493_v59, %v1498_v43  ;;  %v1855_v5 = vshrl.u32 %v1854_v42, 23 }
 0x444   :  { %v1632_v54 = vfloor.f32 %v1631_v49  ;;  %v1621_v59 = vfloor.f32 %v1620_v36  ;;  %v14821_v38 = vand.u32 2147483647, %v11563_v20  ;;  %v14836_v40 = vmov 683565275  }
 0x445   :  { %v11559_v30 = vmul.f32 0.0030694604, %v1821_v61  ;;  %vm1742_vm14 = vcmp.ne.f32.partialorder %v1606_v47, 0.0  ;;  %vm1758_vm15 = vcmp.lt.f32.partialorder %v1606_v47, 0.0  ;;  %v1790_v6 = vadd.f32 2048.0, %v1606_v47 }
 0x446   :  { %v1633_v21 = vmul.f32 2048.0, %v1632_v54  ;;  %v14823_v27 = vand.u32 2147483647, %v11579_v7  ;;  %v8599_v51 = vadd.s32 4294967169, %v1855_v5  ;;  %vm11591_vm2 = vmand %vm1758_vm15, %vm1742_vm14  ;;  %v11602_v18 = vmul.f32 2048.0, %v1621_v59 }
 0x447   :  { %v2060_v32 = vand.u32 2139095040, %v11559_v30  ;;  %v14822_v0 = vand.u32 2147483647, %v11559_v30  ;;  %v1806_v24 = vsel %vm11591_vm2, %v1790_v6, %v1606_v47  ;;  %v11615_v17 = vand.u32 8388607, %v14821_v38 }
 0x448   :  { %v1634_v19 = vsub.f32 %v1629_v48, %v1633_v21  ;;  %v1861_v31 = vadd.s32 1, %v8599_v51  ;;  %v1611_v48 = vmul.f32 2048.0, %v1610_v52  ;;  %v11606_v14 = vmul.f32 0.00048828125, %v14823_v27 }
 0x449   :  { %v2061_v37 = vshrl.u32 %v2060_v32, 23  ;;  %v2064_v39 = vand.u32 8388607, %v14822_v0  ;;  %v1822_v54 = vfloor.f32 %v1806_v24  ;;  %v14831_v32 = vmov 2475754826  }
 0x44a   :  { %vm1635_vm4 = vcmp.eq.f32.partialorder %v1634_v19, 2048.0  ;;  %vm1862_vm5 = vcmp.gt.s32.totalorder %v1861_v31, 0  ;;  %v14829_v21 = vmov 2131351028   ;;  %v14833_v36 = vmov 2102212464  }
 0x44b   :  { %v8607_v58 = vadd.s32 4294967169, %v2061_v37  ;;  %v2065_v2 = vor.u32 8388608, %v2064_v39  ;;  %v11608_v61 = vsel %vm1635_vm4, 0.0, %v1634_v19  ;;  %v14824_v5 = vmov 920167782  }
 0x44c   :  { %v14826_v52 = vmov 1326507024  }
 0x44d   :  { %v2067_v15 = vadd.s32 1, %v8607_v58  ;;  %v11611_v12 = vshll.u32 %v2065_v2, 8 }
 0x44f   :  { %vm2068_vm3 = vcmp.gt.s32.totalorder %v2067_v15, 0 }
 0x450   :  { %v2069_v33 = vsel %vm2068_vm3, %v2067_v15, 0 }
 0x451   :  { %v2071_v49 = vand.u32 31, %v2069_v33  ;;  %v2070_v44 = vshrl.u32 %v2069_v33, 5 }
 0x453   :  { %v2072_v50 = vsub.s32 32, %v2071_v49  ;;  %v2074_v43 = vshll.u32 %v14836_v40, %v2071_v49  ;;  %v2077_v47 = vshll.u32 %v14831_v32, %v2071_v49  ;;  %v2083_v19 = vshll.u32 %v14833_v36, %v2071_v49 }
 0x454   :  { %v2086_v15 = vshll.u32 %v14824_v5, %v2071_v49  ;;  %vm2089_vm6 = vcmp.lt.s32.totalorder %v2070_v44, 1  ;;  %vm2090_vm7 = vcmp.lt.s32.totalorder %v2070_v44, 2  ;;  %vm2091_vm8 = vcmp.lt.s32.totalorder %v2070_v44, 3 }
 0x455   :  { %v1092_v34 = vpop.permute.xlu0 %1091  ;;  %v2073_v8 = vshrl.u32 %v14836_v40, %v2072_v50  ;;  %v2075_v37 = vshrl.u32 %v14831_v32, %v2072_v50  ;;  %v2078_v42 = vshrl.u32 %v14829_v21, %v2072_v50  ;;  %v2081_v58 = vshrl.u32 %v14833_v36, %v2072_v50 }
 0x456   :  { %v1105_v55 = vadd.f32 %v1092_v34, %v11499_v46  ;;  %v2080_v46 = vshll.u32 %v14829_v21, %v2071_v49  ;;  %v2084_v6 = vshrl.u32 %v14824_v5, %v2072_v50  ;;  %v2087_v59 = vshrl.u32 %v14826_v52, %v2072_v50 }
 0x457   :  { %v2076_v9 = vor.u32 %v2075_v37, %v2074_v43  ;;  %v2079_v2 = vor.u32 %v2078_v42, %v2077_v47  ;;  %vm2092_vm9 = vcmp.lt.s32.totalorder %v2070_v44, 4  ;;  %v11631_v37 = vmul.f32 0.0030694604, %v1822_v54 }
 0x458   :  { %10377 = vtanh.f32 %v1105_v55  ;;  %v2082_v33 = vor.u32 %v2081_v58, %v2080_v46  ;;  %v2085_v34 = vor.u32 %v2084_v6, %v2083_v19  ;;  %v2088_v55 = vor.u32 %v2087_v59, %v2086_v15 }
 0x459   :  { %v1097_v24 = vpop.permute.xlu0 %1096  ;;  %v2093_v0 = vsel %vm2089_vm6, %v2073_v8, %v2076_v9  ;;  %v2097_v10 = vsel %vm2089_vm6, %v2076_v9, %v2079_v2  ;;  %v1863_v46 = vsel %vm1862_vm5, %v1861_v31, 0  ;;  %v1637_v44 = vand.u32 2147483647, %v11608_v61 }
 0x45a   :  { %v1049_v39 = vpop.permute.xlu1 %1048  ;;  %v2094_v27 = vsel %vm2092_vm9, %v2082_v33, 2102212464  ;;  %v2098_v49 = vsel %vm2092_vm9, %v2085_v34, 920167782  ;;  %v2101_v5 = vsel %vm2089_vm6, %v2079_v2, %v2082_v33  ;;  %v1865_v31 = vand.u32 31, %v1863_v46 }
 0x45b   :  { %v1058_v51 = vmul.f32 %v1049_v39, %v11397_v60  ;;  %v2095_v50 = vsel %vm2091_vm8, %v2079_v2, %v2094_v27  ;;  %v2099_v52 = vsel %vm2091_vm8, %v2082_v33, %v2098_v49  ;;  %v2102_v60 = vsel %vm2092_vm9, %v2088_v55, 1326507024 }
 0x45c   :  { %v2100_v43 = vsel %vm2090_vm7, %v2097_v10, %v2099_v52  ;;  %v2103_v47 = vsel %vm2091_vm8, %v2085_v34, %v2102_v60  ;;  %v2096_v42 = vsel %vm2090_vm7, %v2093_v0, %v2095_v50  ;;  %v11642_v27 = vsub.f32 %v1607_v25, %v1611_v48 }
 0x45d   :  { %v1106_v38 = vadd.f32 %v1097_v24, %v1058_v51  ;;  %v2104_v58 = vsel %vm2090_vm7, %v2101_v5, %v2103_v47  ;;  %v11636_v8 = vmul.u32.u64.low %v11611_v12, %v2100_v43  ;;  %v11637_v39 = vmul.u32.u64.high %v11611_v12, %v2100_v43, %v11636_v8 }
 0x45e   :  { %v11645_v10 = vmul.u32.u64.low %v11611_v12, %v2104_v58  ;;  %v11646_v19 = vmul.u32.u64.high %v11611_v12, %v2104_v58, %v11645_v10  ;;  %v11651_v0 = vsub.f32 %v1618_v3, %v11602_v18  ;;  %v1643_v54 = vfloor.f32 %v11606_v14 }
 0x45f   :  { %10379 = vtanh.f32 %v1106_v38  ;;  %v1859_v5 = vor.u32 8388608, %v11615_v17  ;;  %v2112_v25 = vmul.u32 %v11611_v12, %v2096_v42  ;;  %v1864_v48 = vshrl.u32 %v1863_v46, 5 }
 0x460   :  { %v1866_v6 = vsub.s32 32, %v1865_v31  ;;  %v2163_v15 = vand.u32 2139095040, %v11631_v37  ;;  %v2115_v52 = vadd.s32 1, %v11637_v39  ;;  %v1868_v59 = vshll.u32 %v14836_v40, %v1865_v31 }
 0x461   :  { %v1871_v3 = vshll.u32 %v14831_v32, %v1865_v31  ;;  %v1874_v18 = vshll.u32 %v14829_v21, %v1865_v31  ;;  %vm2114_vm10 = vc.u32 %v11646_v19, %v11636_v8  ;;  %v1877_v17 = vshll.u32 %v14833_v36, %v1865_v31 }
 0x462   :  { %v10378_v38 = vpop.eup %10377  ;;  %v1869_v14 = vshrl.u32 %v14831_v32, %v1866_v6  ;;  %v14895_v12 = vmov 920167782   ;;  %vm1613_vm11 = vcmp.eq.f32.partialorder %v11642_v27, 2048.0  ;;  %v2116_v9 = vsel %vm2114_vm10, %v2115_v52, %v11637_v39 }
 0x463   :  { %1213 = vxpose.xlu0.b32.cont [3/4] (short) (narrow) %v10378_v38, 64  ;;  %v1880_v51 = vshll.u32 %v14895_v12, %v1865_v31  ;;  %v1872_v2 = vshrl.u32 %v14829_v21, %v1866_v6  ;;  %v1875_v33 = vshrl.u32 %v14833_v36, %v1866_v6  ;;  %v1878_v24 = vshrl.u32 %v14895_v12, %v1866_v6 }
 0x464   :  { %v2117_v34 = vadd.s32 %v2116_v9, %v2112_v25  ;;  %v1870_v55 = vor.u32 %v1869_v14, %v1868_v59  ;;  %v14896_v49 = vmov 1326507024   ;;  %vm1883_vm12 = vcmp.lt.s32.totalorder %v1864_v48, 1 }
 0x465   :  { %v1881_v50 = vshrl.u32 %v14896_v49, %v1866_v6  ;;  %v1867_v43 = vshrl.u32 %v14836_v40, %v1866_v6  ;;  %v1873_v47 = vor.u32 %v1872_v2, %v1871_v3  ;;  %v1876_v46 = vor.u32 %v1875_v33, %v1874_v18 }
 0x466   :  { %v1879_v42 = vor.u32 %v1878_v24, %v1877_v17  ;;  %v2118_v58 = vadd.s32 536870912, %v2117_v34  ;;  %vm1885_vm13 = vcmp.lt.s32.totalorder %v1864_v48, 3  ;;  %vm1886_vm14 = vcmp.lt.s32.totalorder %v1864_v48, 4 }
 0x467   :  { %v1882_v39 = vor.u32 %v1881_v50, %v1880_v51  ;;  %v1888_v38 = vsel %vm1886_vm14, %v1876_v46, 2102212464  ;;  %v1891_v10 = vsel %vm1883_vm12, %v1870_v55, %v1873_v47  ;;  %v1895_v25 = vsel %vm1883_vm12, %v1873_v47, %v1876_v46 }
 0x468   :  { %v1892_v31 = vsel %vm1886_vm14, %v1879_v42, 920167782  ;;  %v11676_v52 = vshrl.u32 %v2118_v58, 30  ;;  %vm1884_vm15 = vcmp.lt.s32.totalorder %v1864_v48, 2  ;;  %v1899_v14 = vshll.u32 %v1859_v5, 8 }
 0x469   :  { %v10380_v60 = vpop.eup %10379  ;;  %v1893_v59 = vsel %vm1885_vm13, %v1876_v46, %v1892_v31  ;;  %v1896_v6 = vsel %vm1886_vm14, %v1882_v39, 1326507024  ;;  %v14897_v17 = vsel %vm11583_vm0, %v11588_v28, %v11565_v62  ;;  %v1887_v2 = vsel %vm1883_vm12, %v1867_v43, %v1870_v55 }
 0x46a   :  { %1214 = vxpose.xlu0.b32.end [4/4] (short) (narrow) %v10380_v60, 64  ;;  %v1894_v3 = vsel %vm1884_vm15, %v1891_v10, %v1893_v59  ;;  %v1897_v18 = vsel %vm1885_vm13, %v1879_v42, %v1896_v6  ;;  %v1820_v51 = vfloor.f32 %v14897_v17  ;;  %v2120_v9 = vshll.u32 %v11676_v52, 30 }
 0x46b   :  { %v1889_v33 = vsel %vm1885_vm13, %v1873_v47, %v1888_v38  ;;  %v1898_v24 = vsel %vm1884_vm15, %v1895_v25, %v1897_v18  ;;  %v11693_v46 = vmul.u32.u64.low %v1899_v14, %v1894_v3  ;;  %v11694_v42 = vmul.u32.u64.high %v1899_v14, %v1894_v3, %v11693_v46 }
 0x46c   :  { %v11690_v50 = vmul.u32.u64.low %v1899_v14, %v1898_v24  ;;  %v11691_v60 = vmul.u32.u64.high %v1899_v14, %v1898_v24, %v11690_v50  ;;  %v1644_v22 = vmul.f32 2048.0, %v1643_v54  ;;  %v11697_v5 = vsub.s32 %v2117_v34, %v2120_v9 }
 0x46d   :  { %v2164_v62 = vshrl.u32 %v2163_v15, 23  ;;  %v1638_v28 = vand.u32 2147483648, %v11546_v45  ;;  %v1890_v58 = vsel %vm1884_vm15, %v1887_v2, %v1889_v33  ;;  %v1614_v55 = vsel %vm1613_vm11, 0.0, %v11642_v27 }
 0x46e   :  { %vm1624_vm0 = vcmp.eq.f32.partialorder %v11651_v0, 2048.0  ;;  %v2123_v43 = vsub.s32 0, %v11697_v5  ;;  %vm1908_vm2 = vc.u32 %v11691_v60, %v11693_v46  ;;  %v1909_v45 = vadd.s32 1, %v11694_v42 }
 0x46f   :  { %v8611_v47 = vadd.s32 4294967169, %v2164_v62  ;;  %v11708_v39 = vor.u32 %v1638_v28, %v1637_v44  ;;  %v11713_v54 = vmul.f32 0.0030694604, %v1820_v51  ;;  %v1616_v48 = vand.u32 2147483648, %v11552_v41 }
 0x470   :  { %v14898_v27 = vand.u32 2147483647, %v11579_v7  ;;  %v8608_v34 = vmin.u32 %v2123_v43, %v11697_v5  ;;  %v1906_v38 = vmul.u32 %v1899_v14, %v1890_v58  ;;  %v1910_v61 = vsel %vm1908_vm2, %v1909_v45, %v11694_v42 }
 0x471   :  { %v14828_v44 = vand.u32 2147483647, %v11631_v37  ;;  %v2170_v31 = vadd.s32 1, %v8611_v47  ;;  %v1615_v25 = vand.u32 2147483647, %v1614_v55  ;;  %v11725_v59 = vsel %vm1624_vm0, 0.0, %v11651_v0 }
 0x472   :  { %v1645_v15 = vsub.f32 %v14898_v27, %v1644_v22  ;;  %v2125_v41 = vclz %v8608_v34  ;;  %v1911_v6 = vadd.s32 %v1910_v61, %v1906_v38  ;;  %vm1745_vm3 = vcmp.ne.f32.partialorder %v11708_v39, 0.0 }
 0x473   :  { %vm1761_vm4 = vcmp.lt.f32.partialorder %v11708_v39, 0.0  ;;  %vm2171_vm5 = vcmp.gt.s32.totalorder %v2170_v31, 0  ;;  %v1957_v3 = vand.u32 2139095040, %v11713_v54  ;;  %v11731_v51 = vadd.f32 2048.0, %v11708_v39 }
 0x474   :  { %vm1646_vm6 = vcmp.eq.f32.partialorder %v1645_v15, 2048.0  ;;  %v8609_v18 = vadd.s32 4294967294, %v2125_v41  ;;  %v1912_v14 = vadd.s32 536870912, %v1911_v6  ;;  %v2172_v17 = vsel %vm2171_vm5, %v2170_v31, 0  ;;  %vm11739_vm7 = vmand %vm1761_vm4, %vm1745_vm3 }
 0x475   :  { %v2167_v0 = vand.u32 8388607, %v14828_v44  ;;  %v2174_v2 = vand.u32 31, %v2172_v17  ;;  %v11736_v33 = vor.u32 %v1616_v48, %v1615_v25  ;;  %v1626_v24 = vand.u32 2147483647, %v11725_v59 }
 0x476   :  { %vm8610_vm8 = vcmp.lt.s32.totalorder %v8609_v18, 0  ;;  %v11743_v42 = vshrl.u32 %v1912_v14, 30  ;;  %v11745_v22 = vsel %vm1646_vm6, 0.0, %v1645_v15  ;;  %v1958_v58 = vshrl.u32 %v1957_v3, 23 }
 0x477   :  { %v2128_v62 = vsel %vm8610_vm8, 0, %v8609_v18  ;;  %v2175_v28 = vsub.s32 32, %v2174_v2  ;;  %v2113_v55 = vadd.s32 %v11636_v8, %v11646_v19  ;;  %v2143_v27 = vsub.s32 4, %v11676_v52 }
 0x478   :  { %v2129_v43 = vsub.s32 32, %v2128_v62  ;;  %v2133_v47 = vsub.s32 4294967266, %v2128_v62  ;;  %v1914_v45 = vshll.u32 %v11743_v42, 30  ;;  %v2130_v48 = vshll.u32 %v11697_v5, %v2128_v62 }
 0x479   :  { %v2168_v34 = vor.u32 8388608, %v2167_v0  ;;  %v1809_v15 = vsel %vm11739_vm7, %v11731_v51, %v11708_v39  ;;  %v2178_v8 = vshrl.u32 %v14831_v32, %v2175_v28  ;;  %v11759_v19 = vshrl.u32 %v2172_v17, 5 }
 0x47a   :  { %v2131_v38 = vshrl.u32 %v2113_v55, %v2129_v43  ;;  %v2134_v61 = vadd.s32 127, %v2133_v47  ;;  %v11756_v31 = vsub.s32 %v1911_v6, %v1914_v45  ;;  %v2181_v25 = vshrl.u32 %v14829_v21, %v2175_v28 }
 0x47b   :  { %v2184_v5 = vshrl.u32 %v14833_v36, %v2175_v28  ;;  %v8603_v41 = vadd.s32 4294967169, %v1958_v58  ;;  %v2177_v0 = vshll.u32 %v14836_v40, %v2174_v2  ;;  %vm2059_vm9 = vcmp.lt.s32.totalorder %v11559_v30, 0 }
 0x47c   :  { %v2132_v3 = vor.u32 %v2131_v38, %v2130_v48  ;;  %v2135_v18 = vshll.u32 %v2134_v61, 23  ;;  %v1917_v14 = vsub.s32 0, %v11756_v31  ;;  %v2180_v6 = vshll.u32 %v14831_v32, %v2174_v2 }
 0x47d   :  { %v2183_v62 = vshll.u32 %v14829_v21, %v2174_v2  ;;  %v2186_v17 = vshll.u32 %v14833_v36, %v2174_v2  ;;  %v2187_v55 = vshrl.u32 %v14895_v12, %v2175_v28  ;;  %v1907_v58 = vadd.s32 %v11693_v46, %v11691_v60 }
 0x47e   :  { %v2136_v43 = vor.u32 4788187, %v2135_v18  ;;  %v8600_v47 = vmin.u32 %v1917_v14, %v11756_v31  ;;  %v2179_v45 = vor.u32 %v2178_v8, %v2177_v0  ;;  %v14901_v48 = vand.u32 2147483647, %v11559_v30 }
 0x47f   :  { %v2139_v61 = vcvt.s32.f32 %v2132_v3  ;;  %v2182_v44 = vor.u32 %v2181_v25, %v2180_v6  ;;  %v2185_v21 = vor.u32 %v2184_v5, %v2183_v62  ;;  %v2188_v32 = vor.u32 %v2187_v55, %v2186_v17 }
 0x480   :  { %vm11775_vm10 = vcmp.le.f32.partialorder %v14901_v48, 0.7853982  ;;  %v2137_v36 = vand.u32 2147483647, %v2136_v43  ;;  %v1919_v9 = vclz %v8600_v47  ;;  %v2189_v18 = vshll.u32 %v14895_v12, %v2174_v2 }
 0x481   :  { %v2190_v10 = vshrl.u32 %v14896_v49, %v2175_v28  ;;  %v2176_v60 = vshrl.u32 %v14836_v40, %v2175_v28  ;;  %vm2192_vm11 = vcmp.lt.s32.totalorder %v11759_v19, 1  ;;  %v2208_v46 = vshll.u32 %v2168_v34, 8 }
 0x482   :  { %v1964_v8 = vadd.s32 1, %v8603_v41  ;;  %v2140_v14 = vmul.f32 %v2139_v61, %v2137_v36  ;;  %v8601_v0 = vadd.s32 4294967294, %v1919_v9  ;;  %vm2195_vm12 = vcmp.lt.s32.totalorder %v11759_v19, 4 }
 0x483   :  { %v2191_v48 = vor.u32 %v2190_v10, %v2189_v18  ;;  %vm2193_vm13 = vcmp.lt.s32.totalorder %v11759_v19, 2  ;;  %vm2194_vm14 = vcmp.lt.s32.totalorder %v11759_v19, 3  ;;  %v2200_v2 = vsel %vm2192_vm11, %v2179_v45, %v2182_v44 }
 0x484   :  { %v2201_v25 = vsel %vm2195_vm12, %v2188_v32, 920167782  ;;  %v2141_v5 = vxor.u32 2147483648, %v2140_v14  ;;  %vm8602_vm15 = vcmp.lt.s32.totalorder %v8601_v0, 0  ;;  %v2197_v28 = vsel %vm2195_vm12, %v2185_v21, 2102212464 }
 0x485   :  { %v2202_v34 = vsel %vm2194_vm14, %v2185_v21, %v2201_v25  ;;  %v1922_v41 = vsel %vm8602_vm15, 0, %v8601_v0  ;;  %v2204_v10 = vsel %vm2192_vm11, %v2182_v44, %v2185_v21  ;;  %v2205_v9 = vsel %vm2195_vm12, %v2191_v48, 1326507024 }
 0x486   :  { %v2203_v36 = vsel %vm2193_vm13, %v2200_v2, %v2202_v34  ;;  %v2142_v3 = vsel %vm2059_vm9, %v2141_v5, %v2140_v14  ;;  %v1923_v6 = vsub.s32 32, %v1922_v41  ;;  %v1927_v62 = vsub.s32 4294967266, %v1922_v41 }
 0x487   :  { %v2196_v17 = vsel %vm2192_vm11, %v2176_v60, %v2179_v45  ;;  %v2198_v55 = vsel %vm2194_vm14, %v2182_v44, %v2197_v28  ;;  %v2206_v43 = vsel %vm2194_vm14, %v2188_v32, %v2205_v9  ;;  %v2145_v21 = vsel %vm11775_vm10, %v11559_v30, %v2142_v3 }
 0x488   :  { %v11802_v47 = vmul.u32.u64.low %v2208_v46, %v2203_v36  ;;  %v11803_v61 = vmul.u32.u64.high %v2208_v46, %v2203_v36, %v11802_v47  ;;  %v1928_v18 = vadd.s32 127, %v1927_v62  ;;  %v2207_v14 = vsel %vm2193_vm13, %v2204_v10, %v2206_v43 }
 0x489   :  { %v14835_v45 = vand.u32 2147483647, %v11713_v54  ;;  %v1925_v44 = vshrl.u32 %v1907_v58, %v1923_v6  ;;  %v11814_v0 = vmul.u32.u64.low %v2208_v46, %v2207_v14  ;;  %v11815_v48 = vmul.u32.u64.high %v2208_v46, %v2207_v14, %v11814_v0 }
 0x48a   :  { %vm1965_vm0 = vcmp.gt.s32.totalorder %v1964_v8, 0  ;;  %v1648_v32 = vand.u32 2147483647, %v11745_v22  ;;  %v1929_v2 = vshll.u32 %v1928_v18, 23  ;;  %v2199_v5 = vsel %vm2193_vm13, %v2196_v17, %v2198_v55 }
 0x48b   :  { %v1966_v28 = vsel %vm1965_vm0, %v1964_v8, 0  ;;  %v2144_v34 = vsel %vm2059_vm9, %v2143_v27, %v11676_v52  ;;  %v1924_v58 = vshll.u32 %v11756_v31, %v1922_v41  ;;  %v2218_v36 = vadd.s32 1, %v11803_v61 }
 0x48c   :  { %v1968_v22 = vand.u32 31, %v1966_v28  ;;  %10381 = vcosq.f32 %v2145_v21  ;;  %v1930_v9 = vor.u32 4788187, %v1929_v2  ;;  %v1961_v19 = vand.u32 8388607, %v14835_v45 }
 0x48d   :  { %v11812_v60 = vpop.f32.mrb[48].mxu1  ;;  %v1825_v52 = vfloor.f32 %v1809_v15  ;;  %v1926_v27 = vor.u32 %v1925_v44, %v1924_v58  ;;  %v2215_v31 = vmul.u32 %v2208_v46, %v2199_v5  ;;  %vm2217_vm2 = vc.u32 %v11815_v48, %v11802_v47 }
 0x48e   :  { %v11818_v25 = vpop.f32.mrb[49].mxu1  ;;  %v1969_v8 = vsub.s32 32, %v1968_v22  ;;  %v11843_v41 = vadd.f32 2048.0, %v11736_v33  ;;  %v2219_v6 = vsel %vm2217_vm2, %v2218_v36, %v11803_v61  ;;  %v14904_v62 = vand.u32 2147483648, %v11555_v57 }
 0x48f   :  { %v11829_v10 = vpop.f32.mrb[50].mxu1  ;;  %v14905_v39 = vand.u32 2147483648, %v11579_v7  ;;  %vm1853_vm3 = vcmp.lt.s32.totalorder %v11563_v20, 0  ;;  %v1931_v15 = vand.u32 2147483647, %v1930_v9  ;;  %v2220_v46 = vadd.s32 %v2219_v6, %v2215_v31 }
 0x490   :  { %v11833_v3 = vpop.f32.mrb[51].mxu1  ;;  %v11850_v50 = vor.u32 %v14904_v62, %v1626_v24  ;;  %v2146_v17 = vsel %vm11775_vm10, 0, %v2144_v34  ;;  %v1937_v55 = vsub.s32 4, %v11743_v42  ;;  %v1962_v43 = vor.u32 8388608, %v1961_v19 }
 0x491   :  { %v11854_v51 = vor.u32 %v14905_v39, %v1648_v32  ;;  %v11860_v61 = vmul.f32 0.0030694604, %v1825_v52  ;;  %10383 = vsinq.f32 %v2145_v21  ;;  %v1933_v57 = vcvt.s32.f32 %v1926_v27 }
 0x492   :  { %v2221_v59 = vadd.s32 536870912, %v2220_v46  ;;  %v14906_v24 = vmov 2102212464   ;;  %vm1743_vm4 = vcmp.ne.f32.partialorder %v11736_v33, 0.0  ;;  %vm1759_vm5 = vcmp.lt.f32.partialorder %v11736_v33, 0.0 }
 0x493   :  { %v1978_v18 = vshrl.u32 %v14906_v24, %v1969_v8  ;;  %v14907_v7 = vmov 2475754826   ;;  %v14908_v44 = vmov 2131351028   ;;  %v1981_v38 = vshrl.u32 %v14895_v12, %v1969_v8  ;;  %vm11928_vm12 = vmand %vm1759_vm5, %vm1743_vm4 }
 0x494   :  { %v1972_v14 = vshrl.u32 %v14907_v7, %v1969_v8  ;;  %v1975_v0 = vshrl.u32 %v14908_v44, %v1969_v8  ;;  %v1984_v32 = vshrl.u32 %v14896_v49, %v1969_v8  ;;  %v1934_v2 = vmul.f32 %v1933_v57, %v1931_v15 }
 0x495   :  { %v11869_v5 = vshrl.u32 %v2221_v59, 30  ;;  %v11871_v21 = vshrl.u32 %v1966_v28, 5  ;;  %v1977_v34 = vshll.u32 %v14908_v44, %v1968_v22  ;;  %v1971_v58 = vshll.u32 %v14836_v40, %v1968_v22 }
 0x496   :  { %v1974_v36 = vshll.u32 %v14907_v7, %v1968_v22  ;;  %v1980_v9 = vshll.u32 %v14906_v24, %v1968_v22  ;;  %v1983_v19 = vshll.u32 %v14895_v12, %v1968_v22  ;;  %v11879_v52 = vadd.f32 2048.0, %v11850_v50  ;;  %v11885_v6 = vpop.eup %10381 }
 0x497   :  { %v11882_v27 = vadd.f32 2048.0, %v11854_v51  ;;  %v2223_v31 = vshll.u32 %v11869_v5, 30  ;;  %v1979_v28 = vor.u32 %v1978_v18, %v1977_v34  ;;  %v1973_v62 = vor.u32 %v1972_v14, %v1971_v58 }
 0x498   :  { %v1976_v39 = vor.u32 %v1975_v0, %v1974_v36  ;;  %v1982_v15 = vor.u32 %v1981_v38, %v1980_v9  ;;  %v1985_v57 = vor.u32 %v1984_v32, %v1983_v19  ;;  %v11887_v59 = vand.u32 3, %v2146_v17 }
 0x499   :  { %v14909_v45 = vand.u32 2147483647, %v11563_v20  ;;  %v1935_v40 = vxor.u32 2147483648, %v1934_v2  ;;  %v11895_v35 = vsub.s32 %v2220_v46, %v2223_v31  ;;  %v11897_v23 = vshll.u32 %v1962_v43, 8 }
 0x49a   :  { %v11902_v18 = vsel %vm1853_vm3, %v1937_v55, %v11743_v42  ;;  %v14912_v14 = vmov 683565275   ;;  %vm1989_vm7 = vcmp.lt.s32.totalorder %v11871_v21, 4  ;;  %v2472_v17 = vand.u32 2139095040, %v11860_v61 }
 0x49b   :  { %vm11891_vm6 = vcmp.le.f32.partialorder %v14909_v45, 0.7853982  ;;  %v1970_v0 = vshrl.u32 %v14912_v14, %v1969_v8  ;;  %v2156_v45 = vxor.u32 2147483648, %v11885_v6  ;;  %v2226_v38 = vsub.s32 0, %v11895_v35  ;;  %v10384_v8 = vpop.eup %10383 }
 0x49c   :  { %vm1986_vm8 = vcmp.lt.s32.totalorder %v11871_v21, 1  ;;  %v1991_v46 = vsel %vm1989_vm7, %v1979_v28, 2102212464  ;;  %v1995_v34 = vsel %vm1989_vm7, %v1982_v15, 920167782  ;;  %v1936_v36 = vsel %vm1853_vm3, %v1935_v40, %v1934_v2 }
 0x49d   :  { %v11910_v43 = vpop.f32.mrb[52].mxu1  ;;  %v1994_v32 = vsel %vm1986_vm8, %v1973_v62, %v1976_v39  ;;  %v1998_v58 = vsel %vm1986_vm8, %v1976_v39, %v1979_v28  ;;  %v1999_v42 = vsel %vm1989_vm7, %v1985_v57, 1326507024  ;;  %v8612_v9 = vmin.u32 %v2226_v38, %v11895_v35 }
 0x49e   :  { %v11912_v55 = vpop.f32.mrb[53].mxu1  ;;  %vm1987_vm9 = vcmp.lt.s32.totalorder %v11871_v21, 2  ;;  %vm1988_vm10 = vcmp.lt.s32.totalorder %v11871_v21, 3  ;;  %v1990_v19 = vsel %vm1986_vm8, %v1970_v0, %v1973_v62  ;;  %v2473_v63 = vshrl.u32 %v2472_v17, 23 }
 0x49f   :  { %v1996_v31 = vsel %vm1988_vm10, %v1979_v28, %v1995_v34  ;;  %v2000_v11 = vsel %vm1988_vm10, %v1982_v15, %v1999_v42  ;;  %vm2162_vm11 = vcmp.lt.s32.totalorder %v11631_v37, 0  ;;  %v2228_v29 = vclz %v8612_v9  ;;  %v11941_v0 = vpop.f32.mrb[54].mxu1 }
 0x4a0   :  { %v1992_v57 = vsel %vm1988_vm10, %v1976_v39, %v1991_v46  ;;  %v1997_v26 = vsel %vm1987_vm9, %v1994_v32, %v1996_v31  ;;  %v2001_v40 = vsel %vm1987_vm9, %v1998_v58, %v2000_v11  ;;  %vm2152_vm13 = vcmp.eq.s32.totalorder %v11887_v59, 0 }
 0x4a1   :  { %v11933_v28 = vmul.u32.u64.low %v11897_v23, %v2001_v40  ;;  %v11934_v62 = vmul.u32.u64.high %v11897_v23, %v2001_v40, %v11933_v28  ;;  %v11937_v39 = vmul.u32.u64.low %v11897_v23, %v1997_v26  ;;  %v11938_v15 = vmul.u32.u64.high %v11897_v23, %v1997_v26, %v11937_v39 }
 0x4a2   :  { %vm2155_vm14 = vcmp.eq.s32.totalorder %v11887_v59, 2  ;;  %v8613_v11 = vadd.s32 4294967294, %v2228_v29  ;;  %v8623_v17 = vadd.s32 4294967169, %v2473_v63  ;;  %v2153_v38 = vxor.u32 2147483648, %v10384_v8 }
 0x4a3   :  { %v1939_v46 = vsel %vm11891_vm6, %v11563_v20, %v1936_v36  ;;  %v1940_v32 = vsel %vm11891_vm6, 0, %v11902_v18  ;;  %v14915_v26 = vand.u32 2147483647, %v11631_v37  ;;  %v1807_v63 = vsel %vm11928_vm12, %v11843_v41, %v11736_v33 }
 0x4a4   :  { %vm8614_vm0 = vcmp.lt.s32.totalorder %v8613_v11, 0  ;;  %v1993_v29 = vsel %vm1987_vm9, %v1990_v19, %v1992_v57  ;;  %v14844_v58 = vand.u32 2147483647, %v11860_v61  ;;  %v2479_v42 = vadd.s32 1, %v8623_v17 }
 0x4a5   :  { %vm11953_vm15 = vcmp.le.f32.partialorder %v14915_v26, 0.7853982  ;;  %v2157_v22 = vsel %vm2155_vm14, %v2156_v45, %v10384_v8  ;;  %v2216_v18 = vadd.s32 %v11802_v47, %v11815_v48  ;;  %v2231_v36 = vsel %vm8614_vm0, 0, %v8613_v11 }
 0x4a6   :  { %v2246_v9 = vsub.s32 4, %v11869_v5  ;;  %10385 = vcosq.f32 %v1939_v46  ;;  %v2232_v31 = vsub.s32 32, %v2231_v36  ;;  %v2236_v40 = vsub.s32 4294967266, %v2231_v36 }
 0x4a7   :  { %vm2011_vm2 = vc.u32 %v11934_v62, %v11937_v39  ;;  %v2154_v33 = vsel %vm2152_vm13, %v11885_v6, %v2153_v38  ;;  %v2009_v41 = vmul.u32 %v11897_v23, %v1993_v29  ;;  %v2012_v21 = vadd.s32 1, %v11938_v15 }
 0x4a8   :  { %vm2480_vm3 = vcmp.gt.s32.totalorder %v2479_v42, 0  ;;  %v2233_v47 = vshll.u32 %v11895_v35, %v2231_v36  ;;  %v2234_v48 = vshrl.u32 %v2216_v18, %v2232_v31  ;;  %v2237_v45 = vadd.s32 127, %v2236_v40 }
 0x4a9   :  { %v2481_v8 = vsel %vm2480_vm3, %v2479_v42, 0  ;;  %v11978_v19 = vsel %vm2162_vm11, %v2246_v9, %v11869_v5  ;;  %v2013_v57 = vsel %vm2011_vm2, %v2012_v21, %v11938_v15  ;;  %v2476_v6 = vand.u32 8388607, %v14844_v58 }
 0x4aa   :  { %v2483_v2 = vand.u32 31, %v2481_v8  ;;  %vm2151_vm4 = vcmp.lt.s32.totalorder %v11887_v59, 2  ;;  %v2235_v23 = vor.u32 %v2234_v48, %v2233_v47  ;;  %v2238_v28 = vshll.u32 %v2237_v45, 23 }
 0x4ab   :  { %v2014_v11 = vadd.s32 %v2013_v57, %v2009_v41  ;;  %v11984_v35 = vsel %vm2151_vm4, %v2154_v33, %v2157_v22  ;;  %v11986_v17 = vand.u32 3, %v1940_v32  ;;  %v1823_v26 = vfloor.f32 %v1807_v63 }
 0x4ac   :  { %v2484_v38 = vsub.s32 32, %v2483_v2  ;;  %10387 = vsinq.f32 %v1939_v46  ;;  %v2239_v5 = vor.u32 4788187, %v2238_v28  ;;  %vm1746_vm5 = vcmp.ne.f32.partialorder %v11854_v51, 0.0 }
 0x4ad   :  { %v2015_v29 = vadd.s32 536870912, %v2014_v11  ;;  %vm1762_vm6 = vcmp.lt.f32.partialorder %v11854_v51, 0.0  ;;  %v2242_v59 = vcvt.s32.f32 %v2235_v23  ;;  %v2477_v42 = vor.u32 8388608, %v2476_v6 }
 0x4ae   :  { %v2487_v22 = vshrl.u32 %v14907_v7, %v2484_v38  ;;  %v2490_v32 = vshrl.u32 %v14908_v44, %v2484_v38  ;;  %v2240_v18 = vand.u32 2147483647, %v2239_v5  ;;  %v2493_v46 = vshrl.u32 %v14906_v24, %v2484_v38  ;;  %vm12038_vm2 = vmand %vm1762_vm6, %vm1746_vm5 }
 0x4af   :  { %v11995_v36 = vshrl.u32 %v2015_v29, 30  ;;  %v2496_v63 = vshrl.u32 %v14895_v12, %v2484_v38  ;;  %v2486_v9 = vshll.u32 %v14912_v14, %v2483_v2  ;;  %v2489_v31 = vshll.u32 %v14907_v7, %v2483_v2 }
 0x4b0   :  { %v2495_v40 = vshll.u32 %v14906_v24, %v2483_v2  ;;  %v2499_v33 = vshrl.u32 %v14896_v49, %v2484_v38  ;;  %v12003_v41 = vpop.eup %10385  ;;  %v2243_v21 = vmul.f32 %v2242_v59, %v2240_v18  ;;  %v2482_v48 = vshrl.u32 %v2481_v8, 5 }
 0x4b1   :  { %v2017_v47 = vshll.u32 %v11995_v36, 30  ;;  %v2492_v45 = vshll.u32 %v14908_v44, %v2483_v2  ;;  %v2488_v57 = vor.u32 %v2487_v22, %v2486_v9  ;;  %v2491_v6 = vor.u32 %v2490_v32, %v2489_v31 }
 0x4b2   :  { %v2497_v23 = vor.u32 %v2496_v63, %v2495_v40  ;;  %v2498_v28 = vshll.u32 %v14895_v12, %v2483_v2  ;;  %vm2149_vm7 = vweird.f32 %v11559_v30  ;;  %v2244_v5 = vxor.u32 2147483648, %v2243_v21 }
 0x4b3   :  { %v12009_v29 = vsub.s32 %v2014_v11, %v2017_v47  ;;  %v2494_v58 = vor.u32 %v2493_v46, %v2492_v45  ;;  %v12011_v15 = vmul.f32 0.0030694604, %v1823_v26  ;;  %v1950_v59 = vxor.u32 2147483648, %v12003_v41 }
 0x4b4   :  { %v2485_v18 = vshrl.u32 %v14912_v14, %v2484_v38  ;;  %v2500_v8 = vor.u32 %v2499_v33, %v2498_v28  ;;  %v12015_v16 = vshll.u32 %v2477_v42, 8  ;;  %v2245_v22 = vsel %vm2162_vm11, %v2244_v5, %v2243_v21  ;;  %v1163_v42 = vpop.trf.xlu1 }
 0x4b5   :  { %v2020_v2 = vsub.s32 0, %v12009_v29  ;;  %vm2501_vm8 = vcmp.lt.s32.totalorder %v2482_v48, 1  ;;  %vm2504_vm9 = vcmp.lt.s32.totalorder %v2482_v48, 4  ;;  %vm1946_vm10 = vcmp.eq.s32.totalorder %v11986_v17, 0 }
 0x4b6   :  { %vm1949_vm12 = vcmp.eq.s32.totalorder %v11986_v17, 2  ;;  %v2248_v11 = vsel %vm11953_vm15, %v11631_v37, %v2245_v22  ;;  %vm2503_vm13 = vcmp.lt.s32.totalorder %v2482_v48, 3  ;;  %v2509_v38 = vsel %vm2501_vm8, %v2488_v57, %v2491_v6  ;;  %v10388_v32 = vpop.eup %10387 }
 0x4b7   :  { %v2510_v26 = vsel %vm2504_vm9, %v2497_v23, 920167782  ;;  %vm1744_vm11 = vcmp.ne.f32.partialorder %v11850_v50, 0.0  ;;  %vm1760_vm14 = vcmp.lt.f32.partialorder %v11850_v50, 0.0  ;;  %10389 = vcosq.f32 %v2248_v11 }
 0x4b8   :  { %v8604_v46 = vmin.u32 %v2020_v2, %v12009_v29  ;;  %v2506_v63 = vsel %vm2504_vm9, %v2494_v58, 2102212464  ;;  %v2513_v9 = vsel %vm2501_vm8, %v2491_v6, %v2494_v58  ;;  %10391 = vsinq.f32 %v2248_v11 }
 0x4b9   :  { %vm2502_vm0 = vcmp.lt.s32.totalorder %v2482_v48, 2  ;;  %v2511_v31 = vsel %vm2503_vm13, %v2494_v58, %v2510_v26  ;;  %v2514_v40 = vsel %vm2504_vm9, %v2500_v8, 1326507024  ;;  %v2505_v47 = vsel %vm2501_vm8, %v2485_v18, %v2488_v57  ;;  %vm12109_vm8 = vmand %vm1760_vm14, %vm1744_vm11 }
 0x4ba   :  { %v2022_v21 = vclz %v8604_v46  ;;  %v2512_v45 = vsel %vm2502_vm0, %v2509_v38, %v2511_v31  ;;  %v2515_v28 = vsel %vm2503_vm13, %v2497_v23, %v2514_v40  ;;  %vm1945_vm3 = vcmp.lt.s32.totalorder %v11986_v17, 2 }
 0x4bb   :  { %v2507_v58 = vsel %vm2503_vm13, %v2491_v6, %v2506_v63  ;;  %v2516_v5 = vsel %vm2502_vm0, %v2513_v9, %v2515_v28  ;;  %v12049_v8 = vmul.u32.u64.low %v12015_v16, %v2512_v45  ;;  %v12050_v22 = vmul.u32.u64.high %v12015_v16, %v2512_v45, %v12049_v8  ;;  %v1164_v63 = vpop.trf.xlu1 }
 0x4bc   :  { %v1947_v2 = vxor.u32 2147483648, %v10388_v32  ;;  %v8605_v11 = vadd.s32 4294967294, %v2022_v21  ;;  %v12054_v26 = vmul.u32.u64.low %v12015_v16, %v2516_v5  ;;  %v12055_v57 = vmul.u32.u64.high %v12015_v16, %v2516_v5, %v12054_v26 }
 0x4bd   :  { %v12060_v23 = vsel %vm2149_vm7, nan, %v11984_v35  ;;  %v14920_v6 = vsel %vm11953_vm15, 0, %v11978_v19  ;;  %vm1956_vm4 = vcmp.lt.s32.totalorder %v11713_v54, 0  ;;  %v2266_v38 = vand.u32 2139095040, %v12011_v15 }
 0x4be   :  { %v12066_v18 = vand.u32 3, %v14920_v6  ;;  %v1810_v46 = vsel %vm12038_vm2, %v11882_v27, %v11854_v51  ;;  %v2010_v30 = vadd.s32 %v11937_v39, %v11934_v62  ;;  %vm8606_vm5 = vcmp.lt.s32.totalorder %v8605_v11, 0 }
 0x4bf   :  { %v2508_v34 = vsel %vm2502_vm0, %v2505_v47, %v2507_v58  ;;  %v12077_v35 = vpack.c.bf16 %v1164_v63, %v1163_v42  ;;  %vm1943_vm15 = vweird.f32 %v11563_v20  ;;  %v2025_v19 = vsel %vm8606_vm5, 0, %v8605_v11  ;;  %v12103_v58 = vpop.f32.mrb[55].mxu1 }
 0x4c0   :  { %v2527_v9 = vadd.s32 1, %v12050_v22  ;;  %v14846_v31 = vand.u32 2147483647, %v12011_v15  ;;  %v2267_v40 = vshrl.u32 %v2266_v38, 23  ;;  %v1948_v51 = vsel %vm1946_vm10, %v12003_v41, %v1947_v2 }
 0x4c1   :  { %v1951_v27 = vsel %vm1949_vm12, %v1950_v59, %v10388_v32  ;;  %v2026_v62 = vsub.s32 32, %v2025_v19  ;;  %v2030_v39 = vsub.s32 4294967266, %v2025_v19  ;;  %9563 = vmatprep.subr.msk.bf16.mxu1 %vm3507_vm1, %v12077_v35  ;;  %9163 = vmatprep.mubr.msk.bf16.mxu1 %vm3507_vm1, %v12077_v35  ;;  %v14921_v48 = vand.u32 2147483647, %v11713_v54  ;;  %v10390_v32 = vpop.eup %10389 }
 0x4c2   :  { %v2040_v33 = vsub.s32 4, %v11995_v36  ;;  %v2524_v41 = vmul.u32 %v12015_v16, %v2508_v34  ;;  %vm2526_vm7 = vc.u32 %v12055_v57, %v12049_v8  ;;  %v8615_v59 = vadd.s32 4294967169, %v2267_v40  ;;  %v10392_v5 = vpop.eup %10391 }
 0x4c3   :  { %vm12093_vm6 = vcmp.le.f32.partialorder %v14921_v48, 0.7853982  ;;  %v2027_v21 = vshll.u32 %v12009_v29, %v2025_v19  ;;  %v2028_v47 = vshrl.u32 %v2010_v30, %v2026_v62  ;;  %v2031_v45 = vadd.s32 127, %v2030_v39 }
 0x4c4   :  { %v2528_v28 = vsel %vm2526_vm7, %v2527_v9, %v12050_v22  ;;  %vm2254_vm9 = vcmp.lt.s32.totalorder %v12066_v18, 2  ;;  %v2270_v29 = vand.u32 8388607, %v14846_v31  ;;  %v2273_v11 = vadd.s32 1, %v8615_v59 }
 0x4c5   :  { %v2529_v2 = vadd.s32 %v2528_v28, %v2524_v41  ;;  %v1826_v26 = vfloor.f32 %v1810_v46  ;;  %v1952_v22 = vsel %vm1945_vm3, %v1948_v51, %v1951_v27  ;;  %vm2255_vm10 = vcmp.eq.s32.totalorder %v12066_v18, 0 }
 0x4c6   :  { %v2029_v6 = vor.u32 %v2028_v47, %v2027_v21  ;;  %v2032_v38 = vshll.u32 %v2031_v45, 23  ;;  %v2256_v63 = vxor.u32 2147483648, %v10392_v5  ;;  %v2259_v30 = vxor.u32 2147483648, %v10390_v32 }
 0x4c7   :  { %v2530_v34 = vadd.s32 536870912, %v2529_v2  ;;  %vm2274_vm12 = vcmp.gt.s32.totalorder %v2273_v11, 0  ;;  %v12122_v9 = vsel %vm1956_vm4, %v2040_v33, %v11995_v36  ;;  %v1808_v17 = vsel %vm12109_vm8, %v11879_v52, %v11850_v50 }
 0x4c8   :  { %v2033_v19 = vor.u32 4788187, %v2032_v38  ;;  %v2275_v40 = vsel %vm2274_vm12, %v2273_v11, 0  ;;  %v2271_v51 = vor.u32 8388608, %v2270_v29  ;;  %v12130_v62 = vmul.f32 0.0030694604, %v1826_v26 }
 0x4c9   :  { %v12128_v46 = vshrl.u32 %v2530_v34, 30  ;;  %v2277_v27 = vand.u32 31, %v2275_v40  ;;  %v12134_v39 = vsel %vm1943_vm15, nan, %v1952_v22  ;;  %vm2258_vm13 = vcmp.eq.s32.totalorder %v12066_v18, 2 }
 0x4ca   :  { %v2034_v36 = vand.u32 2147483647, %v2033_v19  ;;  %v2036_v48 = vcvt.s32.f32 %v2029_v6  ;;  %v2257_v33 = vsel %vm2255_vm10, %v10390_v32, %v2256_v63  ;;  %v2260_v41 = vsel %vm2258_vm13, %v2259_v30, %v10392_v5 }
 0x4cb   :  { %v2532_v50 = vshll.u32 %v12128_v46, 30  ;;  %v2278_v52 = vsub.s32 32, %v2277_v27  ;;  %v2525_v20 = vadd.s32 %v12049_v8, %v12055_v57  ;;  %v12145_v47 = vfloor.f32 %v1808_v17 }
 0x4cc   :  { %v2037_v59 = vmul.f32 %v2036_v48, %v2034_v36  ;;  %v12150_v16 = vshll.u32 %v2271_v51, 8  ;;  %v12155_v5 = vsel %vm2254_vm9, %v2257_v33, %v2260_v41  ;;  %v2276_v57 = vshrl.u32 %v2275_v40, 5 }
 0x4cd   :  { %v12147_v45 = vsub.s32 %v2529_v2, %v2532_v50  ;;  %v2281_v28 = vshrl.u32 %v14907_v7, %v2278_v52  ;;  %v2284_v11 = vshrl.u32 %v14908_v44, %v2278_v52  ;;  %v2287_v26 = vshrl.u32 %v14906_v24, %v2278_v52 }
 0x4ce   :  { %v2038_v29 = vxor.u32 2147483648, %v2037_v59  ;;  %v2280_v2 = vshll.u32 %v14912_v14, %v2277_v27  ;;  %v2283_v22 = vshll.u32 %v14907_v7, %v2277_v27  ;;  %v2286_v38 = vshll.u32 %v14908_v44, %v2277_v27 }
 0x4cf   :  { %v2535_v8 = vsub.s32 0, %v12147_v45  ;;  %v2289_v18 = vshll.u32 %v14906_v24, %v2277_v27  ;;  %v2290_v63 = vshrl.u32 %v14895_v12, %v2278_v52  ;;  %v2555_v17 = vsub.s32 4, %v12128_v46 }
 0x4d0   :  { %v2039_v6 = vsel %vm1956_vm4, %v2038_v29, %v2037_v59  ;;  %v2282_v19 = vor.u32 %v2281_v28, %v2280_v2  ;;  %v2285_v40 = vor.u32 %v2284_v11, %v2283_v22  ;;  %v2288_v51 = vor.u32 %v2287_v26, %v2286_v38 }
 0x4d1   :  { %v2042_v30 = vsel %vm12093_vm6, %v11713_v54, %v2039_v6  ;;  %v8624_v34 = vmin.u32 %v2535_v8, %v12147_v45  ;;  %v2291_v36 = vor.u32 %v2290_v63, %v2289_v18  ;;  %v2575_v48 = vand.u32 2139095040, %v12130_v62 }
 0x4d2   :  { %10393 = vcosq.f32 %v2042_v30  ;;  %v2292_v41 = vshll.u32 %v14895_v12, %v2277_v27  ;;  %v2293_v50 = vshrl.u32 %v14896_v49, %v2278_v52  ;;  %vm2471_vm11 = vcmp.lt.s32.totalorder %v11860_v61, 0 }
 0x4d3   :  { %v2537_v33 = vclz %v8624_v34  ;;  %10395 = vsinq.f32 %v2042_v30  ;;  %v2279_v59 = vshrl.u32 %v14912_v14, %v2278_v52  ;;  %vm2295_vm14 = vcmp.lt.s32.totalorder %v2276_v57, 1 }
 0x4d4   :  { %vm2296_vm0 = vcmp.lt.s32.totalorder %v2276_v57, 2  ;;  %vm2252_vm2 = vweird.f32 %v11631_v37  ;;  %v2294_v29 = vor.u32 %v2293_v50, %v2292_v41  ;;  %vm2298_vm3 = vcmp.lt.s32.totalorder %v2276_v57, 4 }
 0x4d5   :  { %v8625_v28 = vadd.s32 4294967294, %v2537_v33  ;;  %v2303_v11 = vsel %vm2295_vm14, %v2282_v19, %v2285_v40  ;;  %vm2297_vm4 = vcmp.lt.s32.totalorder %v2276_v57, 3  ;;  %v2300_v26 = vsel %vm2298_vm3, %v2288_v51, 2102212464 }
 0x4d6   :  { %v2304_v8 = vsel %vm2298_vm3, %v2291_v36, 920167782  ;;  %v2307_v27 = vsel %vm2295_vm14, %v2285_v40, %v2288_v51  ;;  %v14926_v2 = vand.u32 2147483647, %v11860_v61  ;;  %v2308_v6 = vsel %vm2298_vm3, %v2294_v29, 1326507024 }
 0x4d7   :  { %vm8626_vm15 = vcmp.lt.s32.totalorder %v8625_v28, 0  ;;  %v2305_v52 = vsel %vm2297_vm4, %v2288_v51, %v2304_v8  ;;  %v2576_v38 = vshrl.u32 %v2575_v48, 23  ;;  %v2299_v63 = vsel %vm2295_vm14, %v2279_v59, %v2282_v19 }
 0x4d8   :  { %vm12182_vm5 = vcmp.le.f32.partialorder %v14926_v2, 0.7853982  ;;  %v2540_v18 = vsel %vm8626_vm15, 0, %v8625_v28  ;;  %v2306_v30 = vsel %vm2296_vm0, %v2303_v11, %v2305_v52  ;;  %v2309_v34 = vsel %vm2297_vm4, %v2291_v36, %v2308_v6 }
 0x4d9   :  { %v2541_v33 = vsub.s32 32, %v2540_v18  ;;  %v2545_v41 = vsub.s32 4294967266, %v2540_v18  ;;  %v2301_v50 = vsel %vm2297_vm4, %v2285_v40, %v2300_v26  ;;  %v2310_v31 = vsel %vm2296_vm0, %v2307_v27, %v2309_v34 }
 0x4da   :  { %v12190_v2 = vmul.u32.u64.low %v12150_v16, %v2310_v31  ;;  %v12191_v32 = vmul.u32.u64.high %v12150_v16, %v2310_v31, %v12190_v2  ;;  %v12194_v21 = vmul.u32.u64.low %v12150_v16, %v2306_v30  ;;  %v12195_v51 = vmul.u32.u64.high %v12150_v16, %v2306_v30, %v12194_v21 }
 0x4db   :  { %v2542_v48 = vshll.u32 %v12147_v45, %v2540_v18  ;;  %v2543_v19 = vshrl.u32 %v2525_v20, %v2541_v33  ;;  %v2546_v59 = vadd.s32 127, %v2545_v41  ;;  %v8627_v28 = vadd.s32 4294967169, %v2576_v38 }
 0x4dc   :  { %v12201_v36 = vmul.f32 %v11812_v60, %v12060_v23  ;;  %v12205_v40 = vmul.f32 %v11818_v25, %v12134_v39  ;;  %v14929_v31 = vsel %vm12093_vm6, 0, %v12122_v9  ;;  %v2302_v11 = vsel %vm2296_vm0, %v2299_v63, %v2301_v50  ;;  %v10394_v45 = vpop.eup %10393 }
 0x4dd   :  { %v12211_v29 = vand.u32 3, %v14929_v31  ;;  %v2544_v20 = vor.u32 %v2543_v19, %v2542_v48  ;;  %v2547_v26 = vshll.u32 %v2546_v59, 23  ;;  %v2556_v60 = vsel %vm2471_vm11, %v2555_v17, %v12128_v46  ;;  %v10396_v8 = vpop.eup %10395 }
 0x4de   :  { %v2582_v23 = vadd.s32 1, %v8627_v28  ;;  %v2262_v25 = vsel %vm2252_vm2, nan, %v12155_v5  ;;  %vm2320_vm6 = vc.u32 %v12191_v32, %v12194_v21  ;;  %v2321_v42 = vadd.s32 1, %v12195_v51 }
 0x4df   :  { %v12224_v9 = vmul.f32 0.0030694604, %v12145_v47  ;;  %v2548_v39 = vor.u32 4788187, %v2547_v26  ;;  %v2318_v57 = vmul.u32 %v12150_v16, %v2302_v11  ;;  %v14930_v27 = vand.u32 2147483647, %v12130_v62 }
 0x4e0   :  { %vm2583_vm7 = vcmp.gt.s32.totalorder %v2582_v23, 0  ;;  %v2053_v17 = vxor.u32 2147483648, %v10394_v45  ;;  %v2558_v37 = vsel %vm12182_vm5, 0, %v2556_v60  ;;  %v2322_v5 = vsel %vm2320_vm6, %v2321_v42, %v12195_v51 }
 0x4e1   :  { %v2579_v46 = vand.u32 8388607, %v14930_v27  ;;  %v2584_v52 = vsel %vm2583_vm7, %v2582_v23, 0  ;;  %v2050_v6 = vxor.u32 2147483648, %v10396_v8  ;;  %v2549_v38 = vand.u32 2147483647, %v2548_v39 }
 0x4e2   :  { %v2551_v18 = vcvt.s32.f32 %v2544_v20  ;;  %v2323_v63 = vadd.s32 %v2322_v5, %v2318_v57  ;;  %vm2048_vm8 = vcmp.lt.s32.totalorder %v12211_v29, 2  ;;  %vm2049_vm9 = vcmp.eq.s32.totalorder %v12211_v29, 0 }
 0x4e3   :  { %vm2052_vm10 = vcmp.eq.s32.totalorder %v12211_v29, 2  ;;  %v2586_v47 = vand.u32 31, %v2584_v52  ;;  %v12237_v16 = vsel %vm3507_vm1, %v12205_v40, -inf  ;;  %v12240_v30 = vmul.f32 %v11829_v10, %v2262_v25 }
 0x4e4   :  { %v2552_v34 = vmul.f32 %v2551_v18, %v2549_v38  ;;  %v12242_v33 = vand.u32 3, %v2558_v37  ;;  %v2324_v41 = vadd.s32 536870912, %v2323_v63  ;;  %v2054_v50 = vsel %vm2052_vm10, %v2053_v17, %v10396_v8 }
 0x4e5   :  { %v2580_v2 = vor.u32 8388608, %v2579_v46  ;;  %v2587_v51 = vsub.s32 32, %v2586_v47  ;;  %v2369_v48 = vand.u32 2139095040, %v12224_v9  ;;  %v2051_v19 = vsel %vm2049_vm9, %v10394_v45, %v2050_v6 }
 0x4e6   :  { %v2553_v59 = vxor.u32 2147483648, %v2552_v34  ;;  %v12245_v28 = vshrl.u32 %v2324_v41, 30  ;;  %v2589_v31 = vshll.u32 %v14912_v14, %v2586_v47  ;;  %v2592_v10 = vshll.u32 %v14907_v7, %v2586_v47 }
 0x4e7   :  { %v2590_v11 = vshrl.u32 %v14907_v7, %v2587_v51  ;;  %v2593_v20 = vshrl.u32 %v14908_v44, %v2587_v51  ;;  %v2596_v26 = vshrl.u32 %v14906_v24, %v2587_v51  ;;  %v2595_v45 = vshll.u32 %v14908_v44, %v2586_v47 }
 0x4e8   :  { %v2554_v60 = vsel %vm2471_vm11, %v2553_v59, %v2552_v34  ;;  %v2326_v23 = vshll.u32 %v12245_v28, 30  ;;  %v2599_v8 = vshrl.u32 %v14895_v12, %v2587_v51  ;;  %v2585_v42 = vshrl.u32 %v2584_v52, 5 }
 0x4e9   :  { %v2557_v25 = vsel %vm12182_vm5, %v11860_v61, %v2554_v60  ;;  %v2591_v39 = vor.u32 %v2590_v11, %v2589_v31  ;;  %v2598_v57 = vshll.u32 %v14906_v24, %v2586_v47  ;;  %v2594_v46 = vor.u32 %v2593_v20, %v2592_v10 }
 0x4ea   :  { %10397 = vcosq.f32 %v2557_v25  ;;  %v12261_v27 = vsub.s32 %v2323_v63, %v2326_v23  ;;  %v2597_v17 = vor.u32 %v2596_v26, %v2595_v45  ;;  %v2601_v5 = vshll.u32 %v14895_v12, %v2586_v47  ;;  %v12271_v63 = vpop.trf.xlu1 }
 0x4eb   :  { %10399 = vsinq.f32 %v2557_v25  ;;  %v2600_v37 = vor.u32 %v2599_v8, %v2598_v57  ;;  %v2602_v6 = vshrl.u32 %v14896_v49, %v2587_v51  ;;  %vm2046_vm12 = vweird.f32 %v11713_v54 }
 0x4ec   :  { %v2055_v22 = vsel %vm2048_vm8, %v2051_v19, %v2054_v50  ;;  %v2329_v52 = vsub.s32 0, %v12261_v27  ;;  %v12269_v38 = vshll.u32 %v2580_v2, 8  ;;  %v2370_v18 = vshrl.u32 %v2369_v48, 23 }
 0x4ed   :  { %vm2265_vm13 = vcmp.lt.s32.totalorder %v12011_v15, 0  ;;  %v2588_v34 = vshrl.u32 %v14912_v14, %v2587_v51  ;;  %v2603_v41 = vor.u32 %v2602_v6, %v2601_v5  ;;  %vm2604_vm11 = vcmp.lt.s32.totalorder %v2585_v42, 1 }
 0x4ee   :  { %vm2607_vm14 = vcmp.lt.s32.totalorder %v2585_v42, 4  ;;  %v8616_v47 = vmin.u32 %v2329_v52, %v12261_v27  ;;  %vm2605_vm0 = vcmp.lt.s32.totalorder %v2585_v42, 2  ;;  %v2612_v29 = vsel %vm2604_vm11, %v2591_v39, %v2594_v46 }
 0x4ef   :  { %v2609_v59 = vsel %vm2607_vm14, %v2597_v17, 2102212464  ;;  %vm2606_vm2 = vcmp.lt.s32.totalorder %v2585_v42, 3  ;;  %v2613_v50 = vsel %vm2607_vm14, %v2600_v37, 920167782  ;;  %v2616_v19 = vsel %vm2604_vm11, %v2594_v46, %v2597_v17 }
 0x4f0   :  { %v2617_v2 = vsel %vm2607_vm14, %v2603_v41, 1326507024  ;;  %vm2564_vm3 = vcmp.eq.s32.totalorder %v12242_v33, 0  ;;  %vm2567_vm4 = vcmp.eq.s32.totalorder %v12242_v33, 2  ;;  %v2331_v48 = vclz %v8616_v47 }
 0x4f1   :  { %v2608_v31 = vsel %vm2604_vm11, %v2588_v34, %v2591_v39  ;;  %v2614_v11 = vsel %vm2606_vm2, %v2597_v17, %v2613_v50  ;;  %v2618_v51 = vsel %vm2606_vm2, %v2600_v37, %v2617_v2  ;;  %v2610_v10 = vsel %vm2606_vm2, %v2594_v46, %v2609_v59  ;;  %v12291_v17 = vpop.trf.xlu1 }
 0x4f2   :  { %v2615_v20 = vsel %vm2605_vm0, %v2612_v29, %v2614_v11  ;;  %v2619_v26 = vsel %vm2605_vm0, %v2616_v19, %v2618_v51  ;;  %v8619_v60 = vadd.s32 4294967169, %v2370_v18  ;;  %v14931_v23 = vand.u32 2147483647, %v12011_v15 }
 0x4f3   :  { %v8617_v8 = vadd.s32 4294967294, %v2331_v48  ;;  %v2349_v25 = vsub.s32 4, %v12245_v28  ;;  %v12288_v57 = vmul.u32.u64.low %v12269_v38, %v2619_v26  ;;  %v12289_v39 = vmul.u32.u64.high %v12269_v38, %v2619_v26, %v12288_v57 }
 0x4f4   :  { %vm12282_vm5 = vcmp.le.f32.partialorder %v14931_v23, 0.7853982  ;;  %v12294_v46 = vmul.u32.u64.low %v12269_v38, %v2615_v20  ;;  %v12295_v37 = vmul.u32.u64.high %v12269_v38, %v2615_v20, %v12294_v46  ;;  %v2366_v5 = vand.u32 2147483647, %v12224_v9  ;;  %v10398_v52 = vpop.eup %10397 }
 0x4f5   :  { %v2376_v6 = vadd.s32 1, %v8619_v60  ;;  %v2319_v18 = vadd.s32 %v12194_v21, %v12191_v32  ;;  %vm8618_vm15 = vcmp.lt.s32.totalorder %v8617_v8, 0  ;;  %v2611_v34 = vsel %vm2605_vm0, %v2608_v31, %v2610_v10  ;;  %v10400_v47 = vpop.eup %10399 }
 0x4f6   :  { %v3750_v41 = vsel %vm3507_vm1, %v12201_v36, -inf  ;;  %v2056_v59 = vsel %vm2046_vm12, nan, %v2055_v22  ;;  %v2568_v29 = vxor.u32 2147483648, %v10398_v52  ;;  %v2334_v50 = vsel %vm8618_vm15, 0, %v8617_v8 }
 0x4f7   :  { %vm2377_vm6 = vcmp.gt.s32.totalorder %v2376_v6, 0  ;;  %3751 = vmax.xlane.f32.xlu0 %v3750_v41  ;;  %v2565_v19 = vxor.u32 2147483648, %v10400_v47  ;;  %v2335_v2 = vsub.s32 32, %v2334_v50  ;;  %v2339_v48 = vsub.s32 4294967266, %v2334_v50 }
 0x4f8   :  { %v12309_v21 = vsel %vm2265_vm13, %v2349_v25, %v12245_v28  ;;  %vm2561_vm7 = vweird.f32 %v11860_v61  ;;  %v2627_v32 = vmul.u32 %v12269_v38, %v2611_v34  ;;  %vm2629_vm8 = vc.u32 %v12289_v39, %v12294_v46  ;;  %v12321_v28 = vpop.trf.xlu1 }
 0x4f9   :  { %v2630_v54 = vadd.s32 1, %v12295_v37  ;;  %v12318_v42 = vand.u32 8388607, %v2366_v5  ;;  %v2336_v22 = vshll.u32 %v12261_v27, %v2334_v50  ;;  %v2337_v31 = vshrl.u32 %v2319_v18, %v2335_v2 }
 0x4fa   :  { %v2340_v11 = vadd.s32 127, %v2339_v48  ;;  %v2378_v51 = vsel %vm2377_vm6, %v2376_v6, 0  ;;  %v2566_v10 = vsel %vm2564_vm3, %v10398_v52, %v2565_v19  ;;  %v2569_v38 = vsel %vm2567_vm4, %v2568_v29, %v10400_v47 }
 0x4fb   :  { %v2631_v20 = vsel %vm2629_vm8, %v2630_v54, %v12295_v37  ;;  %v2380_v26 = vand.u32 31, %v2378_v51  ;;  %3745 = vmax.xlane.f32.xlu0 %v12237_v16  ;;  %vm2563_vm9 = vcmp.lt.s32.totalorder %v12242_v33, 2  ;;  %v2338_v60 = vor.u32 %v2337_v31, %v2336_v22 }
 0x4fc   :  { %v2341_v27 = vshll.u32 %v2340_v11, 23  ;;  %v2632_v23 = vadd.s32 %v2631_v20, %v2627_v32  ;;  %v12331_v8 = vmul.f32 %v11833_v3, %v2056_v59  ;;  %v2352_v25 = vsel %vm12282_vm5, 0, %v12309_v21  ;;  %v1168_v19 = vpop.trf.xlu1 }
 0x4fd   :  { %v2374_v57 = vor.u32 8388608, %v12318_v42  ;;  %v2381_v6 = vsub.s32 32, %v2380_v26  ;;  %v2570_v52 = vsel %vm2563_vm9, %v2566_v10, %v2569_v38  ;;  %v3753_v16 = vsel %vm3507_vm1, %v12240_v30, -inf }
 0x4fe   :  { %v2342_v37 = vor.u32 4788187, %v2341_v27  ;;  %v2633_v18 = vadd.s32 536870912, %v2632_v23  ;;  %v2345_v33 = vcvt.s32.f32 %v2338_v60  ;;  %v2389_v29 = vshll.u32 %v14908_v44, %v2380_v26 }
 0x4ff   :  { %v2384_v34 = vshrl.u32 %v14907_v7, %v2381_v6  ;;  %v2387_v41 = vshrl.u32 %v14908_v44, %v2381_v6  ;;  %v2390_v3 = vshrl.u32 %v14906_v24, %v2381_v6  ;;  %3754 = vmax.xlane.f32.xlu0 %v3753_v16  ;;  %v2393_v50 = vshrl.u32 %v14895_v12, %v2381_v6 }
 0x500   :  { %v2343_v47 = vand.u32 2147483647, %v2342_v37  ;;  %v12342_v59 = vshrl.u32 %v2633_v18, 30  ;;  %v2379_v2 = vshrl.u32 %v2378_v51, 5  ;;  %v2383_v48 = vshll.u32 %v14912_v14, %v2380_v26 }
 0x501   :  { %v2386_v32 = vshll.u32 %v14907_v7, %v2380_v26  ;;  %v2392_v54 = vshll.u32 %v14906_v24, %v2380_v26  ;;  %v2571_v42 = vsel %vm2561_vm7, nan, %v2570_v52  ;;  %v2391_v11 = vor.u32 %v2390_v3, %v2389_v29 }
 0x502   :  { %v2346_v22 = vmul.f32 %v2345_v33, %v2343_v47  ;;  %v2635_v31 = vshll.u32 %v12342_v59, 30  ;;  %v2385_v10 = vor.u32 %v2384_v34, %v2383_v48  ;;  %v2396_v60 = vshrl.u32 %v14896_v49, %v2381_v6 }
 0x503   :  { %v2388_v38 = vor.u32 %v2387_v41, %v2386_v32  ;;  %v2394_v20 = vor.u32 %v2393_v50, %v2392_v54  ;;  %v2395_v37 = vshll.u32 %v14895_v12, %v2380_v26  ;;  %v12358_v18 = vpack.c.bf16 %v12291_v17, %v12271_v63  ;;  %v1169_v26 = vpop.trf.xlu1 }
 0x504   :  { %v2347_v27 = vxor.u32 2147483648, %v2346_v22  ;;  %v12353_v51 = vsub.s32 %v2632_v23, %v2635_v31  ;;  %v12361_v61 = vmul.f32 %v11910_v43, %v2571_v42  ;;  %v2382_v52 = vshrl.u32 %v14912_v14, %v2381_v6 }
 0x505   :  { %vm2398_vm10 = vcmp.lt.s32.totalorder %v2379_v2, 1  ;;  %vm2401_vm12 = vcmp.lt.s32.totalorder %v2379_v2, 4  ;;  %v2397_v23 = vor.u32 %v2396_v60, %v2395_v37  ;;  %vm2399_vm11 = vcmp.lt.s32.totalorder %v2379_v2, 2 }
 0x506   :  { %v2348_v16 = vsel %vm2265_vm13, %v2347_v27, %v2346_v22  ;;  %v2638_v33 = vsub.s32 0, %v12353_v51  ;;  %v2403_v34 = vsel %vm2401_vm12, %v2391_v11, 2102212464  ;;  %v2406_v43 = vsel %vm2398_vm10, %v2385_v10, %v2388_v38 }
 0x507   :  { %v2351_v63 = vsel %vm12282_vm5, %v12011_v15, %v2348_v16  ;;  %v2407_v17 = vsel %vm2401_vm12, %v2394_v20, 920167782  ;;  %vm2400_vm14 = vcmp.lt.s32.totalorder %v2379_v2, 3  ;;  %v2402_v41 = vsel %vm2398_vm10, %v2382_v52, %v2385_v10 }
 0x508   :  { %10401 = vcosq.f32 %v2351_v63  ;;  %v8628_v6 = vmin.u32 %v2638_v33, %v12353_v51  ;;  %v2404_v3 = vsel %vm2400_vm14, %v2388_v38, %v2403_v34  ;;  %v2408_v47 = vsel %vm2400_vm14, %v2391_v11, %v2407_v17 }
 0x509   :  { %10403 = vsinq.f32 %v2351_v63  ;;  %v2410_v29 = vsel %vm2398_vm10, %v2388_v38, %v2391_v11  ;;  %v2409_v48 = vsel %vm2399_vm11, %v2406_v43, %v2408_v47  ;;  %v2411_v32 = vsel %vm2401_vm12, %v2397_v23, 1326507024  ;;  %v1170_v38 = vpop.trf.xlu1 }
 0x50a   :  { %v2640_v50 = vclz %v8628_v6  ;;  %v2414_v54 = vshll.u32 %v2374_v57, 8  ;;  %v2412_v42 = vsel %vm2400_vm14, %v2394_v20, %v2411_v32  ;;  %v3762_v22 = vsel %vm3507_vm1, %v12361_v61, -inf }
 0x50b   :  { %v3505_v31 = vpack.c.bf16 %v1168_v19, %v12321_v28  ;;  %v3747_v10 = vsel %vm3507_vm1, %v12331_v8, -inf  ;;  %v2413_v27 = vsel %vm2399_vm11, %v2410_v29, %v2412_v42  ;;  %3763 = vmax.xlane.f32.xlu1 %v3762_v22  ;;  %v3506_v52 = vpack.c.bf16 %v1170_v38, %v1169_v26 }
 0x50c   :  { %v8629_v60 = vadd.s32 4294967294, %v2640_v50  ;;  %v12384_v37 = vmul.u32.u64.low %v2414_v54, %v2409_v48  ;;  %v12385_v11 = vmul.u32.u64.high %v2414_v54, %v2409_v48, %v12384_v37  ;;  %3748 = vmax.xlane.f32.xlu0 %v3747_v10  ;;  %v2405_v28 = vsel %vm2399_vm11, %v2402_v41, %v2404_v3 }
 0x50d   :  { %v12388_v57 = vmul.u32.u64.low %v2414_v54, %v2413_v27  ;;  %v12389_v20 = vmul.u32.u64.high %v2414_v54, %v2413_v27, %v12388_v57  ;;  %9565 = vmatprep.subr.msk.bf16.mxu0 %vm3507_vm1, %v3505_v31  ;;  %9171 = vmatprep.mubr.msk.bf16.mxu0 %vm3507_vm1, %v3505_v31  ;;  %v3619_v19 = vsel %vm3507_vm1, %v12077_v35, 0  ;;  %v3674_v16 = vsel %vm3507_vm1, %v3505_v31, 0 }
 0x50e   :  { %vm8630_vm13 = vcmp.lt.s32.totalorder %v8629_v60, 0  ;;  %v2356_v33 = vand.u32 3, %v2352_v25  ;;  %9160 = vmatpush3.bf16.xpose.msra.mxu1 %v3619_v19  ;;  %9168 = vmatpush3.bf16.xpose.msra.mxu0 %v3674_v16  ;;  %v2628_v34 = vadd.s32 %v12294_v46, %v12289_v39  ;;  %v2424_v2 = vadd.s32 1, %v12385_v11 }
 0x50f   :  { %v2643_v23 = vsel %vm8630_vm13, 0, %v8629_v60  ;;  %9564 = vmatprep.subr.msk.bf16.mxu1 %vm3507_vm1, %v12358_v18  ;;  %9566 = vmatprep.subr.msk.bf16.mxu0 %vm3507_vm1, %v3506_v52  ;;  %v2421_v35 = vmul.u32 %v2414_v54, %v2405_v28  ;;  %vm2423_vm0 = vc.u32 %v12389_v20, %v12384_v37  ;;  %v3622_v41 = vsel %vm3507_vm1, %v12358_v18, 0 }
 0x510   :  { %v2644_v26 = vsub.s32 32, %v2643_v23  ;;  %v2648_v63 = vsub.s32 4294967266, %v2643_v23  ;;  %v2645_v21 = vshll.u32 %v12353_v51, %v2643_v23  ;;  %v2425_v39 = vsel %vm2423_vm0, %v2424_v2, %v12385_v11 }
 0x511   :  { %vm2361_vm2 = vcmp.eq.s32.totalorder %v2356_v33, 2  ;;  %v2426_v6 = vadd.s32 %v2425_v39, %v2421_v35  ;;  %v3677_v50 = vsel %vm3507_vm1, %v3506_v52, 0  ;;  %vm2358_vm3 = vcmp.eq.s32.totalorder %v2356_v33, 0 }
 0x512   :  { %v10402_v45 = vpop.eup %10401  ;;  %v2646_v25 = vshrl.u32 %v2628_v34, %v2644_v26  ;;  %v2649_v43 = vadd.s32 127, %v2648_v63  ;;  %vm2357_vm4 = vcmp.lt.s32.totalorder %v2356_v33, 2  ;;  %vm2355_vm5 = vweird.f32 %v12011_v15 }
 0x513   :  { %v10404_v46 = vpop.eup %10403  ;;  %v2362_v17 = vxor.u32 2147483648, %v10402_v45  ;;  %v2427_v32 = vadd.s32 536870912, %v2426_v6  ;;  %vm2574_vm15 = vcmp.lt.s32.totalorder %v12130_v62, 0  ;;  %v14934_v16 = vand.u32 2147483647, %v12130_v62 }
 0x514   :  { %v2359_v3 = vxor.u32 2147483648, %v10404_v46  ;;  %v2647_v47 = vor.u32 %v2646_v25, %v2645_v21  ;;  %v2650_v29 = vshll.u32 %v2649_v43, 23  ;;  %v2658_v23 = vsub.s32 4, %v12342_v59 }
 0x515   :  { %v2363_v48 = vsel %vm2361_vm2, %v2362_v17, %v10404_v46  ;;  %v12415_v22 = vshrl.u32 %v2427_v32, 30  ;;  %vm12426_vm6 = vcmp.le.f32.partialorder %v14934_v16, 0.7853982  ;;  %vm2664_vm12 = vweird.f32 %v12130_v62 }
 0x516   :  { %v2360_v51 = vsel %vm2358_vm3, %v10402_v45, %v2359_v3  ;;  %v2651_v54 = vor.u32 4788187, %v2650_v29  ;;  %9162 = vmatpush3.bf16.xpose.msra.mxu1 %v3622_v41  ;;  %9170 = vmatpush3.bf16.xpose.msra.mxu0 %v3677_v50  ;;  %v2654_v60 = vcvt.s32.f32 %v2647_v47  ;;  %v2659_v2 = vsel %vm2574_vm15, %v2658_v23, %v12342_v59 }
 0x517   :  { %v2364_v42 = vsel %vm2357_vm4, %v2360_v51, %v2363_v48  ;;  %v2429_v11 = vshll.u32 %v12415_v22, 30  ;;  %v2661_v45 = vsel %vm12426_vm6, 0, %v2659_v2  ;;  %vm2368_vm11 = vcmp.lt.s32.totalorder %v12224_v9, 0 }
 0x518   :  { %v2365_v31 = vsel %vm2355_vm5, nan, %v2364_v42  ;;  %v2652_v10 = vand.u32 2147483647, %v2651_v54  ;;  %v2665_v43 = vand.u32 3, %v2661_v45  ;;  %vm2367_vm14 = vcmp.le.f32.partialorder %v2366_v5, 0.7853982 }
 0x519   :  { %v12418_v27 = vmul.f32 %v11912_v55, %v2365_v31  ;;  %v2430_v57 = vsub.s32 %v2426_v6, %v2429_v11  ;;  %vm2458_vm3 = vweird.f32 %v12224_v9 }
 0x51a   :  { %v2655_v38 = vmul.f32 %v2654_v60, %v2652_v10  ;;  %vm2670_vm8 = vcmp.eq.s32.totalorder %v2665_v43, 2  ;;  %vm2667_vm9 = vcmp.eq.s32.totalorder %v2665_v43, 0  ;;  %vm2666_vm10 = vcmp.lt.s32.totalorder %v2665_v43, 2 }
 0x51b   :  { %v3756_v28 = vsel %vm3507_vm1, %v12418_v27, -inf  ;;  %v2432_v15 = vsub.s32 0, %v2430_v57 }
 0x51c   :  { %v2656_v19 = vxor.u32 2147483648, %v2655_v38  ;;  %3757 = vmax.xlane.f32.xlu1 %v3756_v28 }
 0x51d   :  { %9164 = vmatmul.mubr.msk.bf16.vlgmr.msra.gmra.mrb[56].mxu1 %vm3507_vm1, %v12358_v18  ;;  %9172 = vmatmul.mubr.msk.bf16.vlgmr.msra.gmra.mrb[0].mxu0 %vm3507_vm1, %v3506_v52  ;;  %v8620_v26 = vmin.u32 %v2432_v15, %v2430_v57  ;;  %v2422_v18 = vadd.s32 %v12384_v37, %v12389_v20 }
 0x51e   :  { %v2657_v55 = vsel %vm2574_vm15, %v2656_v19, %v2655_v38 }
 0x51f   :  { %v2660_v34 = vsel %vm12426_vm6, %v12130_v62, %v2657_v55  ;;  %v2434_v63 = vclz %v8620_v26  ;;  %v2452_v62 = vsub.s32 4, %v12415_v22 }
 0x520   :  { %10405 = vcosq.f32 %v2660_v34 }
 0x521   :  { %10407 = vsinq.f32 %v2660_v34  ;;  %v8621_v35 = vadd.s32 4294967294, %v2434_v63  ;;  %v12455_v34 = vpop.trf.xlu0 }
 0x523   :  { %vm8622_vm7 = vcmp.lt.s32.totalorder %v8621_v35, 0 }
 0x524   :  { %v2437_v21 = vsel %vm8622_vm7, 0, %v8621_v35 }
 0x525   :  { %v2438_v52 = vsub.s32 32, %v2437_v21  ;;  %v2442_v25 = vsub.s32 4294967266, %v2437_v21  ;;  %v2439_v39 = vshll.u32 %v2430_v57, %v2437_v21  ;;  %v12462_v2 = vpop.trf.xlu0 }
 0x527   :  { %v2440_v46 = vshrl.u32 %v2422_v18, %v2438_v52  ;;  %v2443_v17 = vadd.s32 127, %v2442_v25 }
 0x529   :  { %v2441_v47 = vor.u32 %v2440_v46, %v2439_v39  ;;  %v2444_v59 = vshll.u32 %v2443_v17, 23  ;;  %v12464_v35 = vpop.trf.xlu0 }
 0x52a   :  { %v10406_v6 = vpop.eup %10405 }
 0x52b   :  { %v10408_v41 = vpop.eup %10407  ;;  %v2671_v3 = vxor.u32 2147483648, %v10406_v6  ;;  %v2445_v48 = vor.u32 4788187, %v2444_v59  ;;  %v2448_v51 = vcvt.s32.f32 %v2441_v47 }
 0x52c   :  { %v2668_v29 = vxor.u32 2147483648, %v10408_v41 }
 0x52d   :  { %v2672_v50 = vsel %vm2670_vm8, %v2671_v3, %v10408_v41  ;;  %v2446_v20 = vand.u32 2147483647, %v2445_v48  ;;  %v12466_v45 = vpop.trf.xlu0 }
 0x52e   :  { %v2669_v32 = vsel %vm2667_vm9, %v10406_v6, %v2668_v29  ;;  %14937 = vst [vmem:[#allocation32_spill] sm:$0xff] %v12466_v45 }
 0x52f   :  { %v2673_v37 = vsel %vm2666_vm10, %v2669_v32, %v2672_v50  ;;  %v2449_v31 = vmul.f32 %v2448_v51, %v2446_v20  ;;  %v12491_v50 = vpop.permute.xlu1 %1488 }
 0x530   :  { %v2674_v54 = vsel %vm2664_vm12, nan, %v2673_v37 }
 0x531   :  { %v12444_v42 = vmul.f32 %v11941_v0, %v2674_v54  ;;  %v2450_v10 = vxor.u32 2147483648, %v2449_v31  ;;  %v2453_v0 = vsel %vm2368_vm11, %v2452_v62, %v12415_v22  ;;  %v12468_v21 = vpop.trf.xlu0 }
 0x532   :  { %v2455_v57 = vsel %vm2367_vm14, 0, %v2453_v0 }
 0x533   :  { %v3765_v60 = vsel %vm3507_vm1, %v12444_v42, -inf  ;;  %v2451_v11 = vsel %vm2368_vm11, %v2450_v10, %v2449_v31  ;;  %v2459_v28 = vand.u32 3, %v2455_v57  ;;  %v12498_v20 = vpop.permute.xlu1 %1544 }
 0x534   :  { %3766 = vmax.xlane.f32.xlu1 %v3765_v60  ;;  %v2454_v38 = vsel %vm2367_vm14, %v12224_v9, %v2451_v11 }
 0x535   :  { %10409 = vcosq.f32 %v2454_v38  ;;  %vm2464_vm13 = vcmp.eq.s32.totalorder %v2459_v28, 2  ;;  %vm2461_vm0 = vcmp.eq.s32.totalorder %v2459_v28, 0  ;;  %vm2460_vm2 = vcmp.lt.s32.totalorder %v2459_v28, 2  ;;  %v12470_v9 = vpop.trf.xlu0 }
 0x536   :  { %10411 = vsinq.f32 %v2454_v38 }
 0x539   :  { %v12473_v18 = vpop.trf.xlu0 }
 0x53f   :  { %v10410_v19 = vpop.eup %10409 }
 0x540   :  { %v10412_v15 = vpop.eup %10411  ;;  %v2465_v16 = vxor.u32 2147483648, %v10410_v19 }
 0x541   :  { %v2462_v33 = vxor.u32 2147483648, %v10412_v15 }
 0x542   :  { %v2466_v55 = vsel %vm2464_vm13, %v2465_v16, %v10412_v15 }
 0x543   :  { %v2463_v5 = vsel %vm2461_vm0, %v10410_v19, %v2462_v33  ;;  %v14938_v33 = vunpack.i.h.bf16 %v11053_v53 }
 0x544   :  { %v2467_v23 = vsel %vm2460_vm2, %v2463_v5, %v2466_v55  ;;  %v14939_v55 = vunpack.i.h.bf16 %v11061_v56  ;;  %v14940_v5 = vunpack.i.h.bf16 %v11081_v1 }
 0x545   :  { %v2468_v26 = vsel %vm2458_vm3, nan, %v2467_v23  ;;  %v14941_v23 = vunpack.i.h.bf16 %v11091_v4 }
 0x546   :  { %v12458_v63 = vmul.f32 %v12103_v58, %v2468_v26  ;;  %v12477_v58 = vpop.trf.xlu0 }
 0x548   :  { %v3759_v22 = vsel %vm3507_vm1, %v12458_v63, -inf }
 0x549   :  { %3760 = vmax.xlane.f32.xlu0 %v3759_v22 }
 0x567   :  { %1403 = vxpose.xlu1.b32.start [1/4] (short) (narrow) %v12468_v21, 32 }
 0x56b   :  { %1404 = vxpose.xlu1.b32.cont [2/4] (short) (narrow) %v12470_v9, 32 }
 0x56f   :  { %1405 = vxpose.xlu1.b32.cont [3/4] (short) (narrow) %v12473_v18, 32 }
 0x573   :  { %1406 = vxpose.xlu1.b32.end [4/4] (short) (narrow) %v12477_v58, 32 }
 0x584   :  { %v3752_v52 = vpop.xlane.xlu0 %3751 }
 0x585   :  { %v3794_v25 = vsub.f32 %v12201_v36, %v3752_v52 }
 0x587   :  { %v3812_v43 = vmul.f32 1.442695, %v3794_v25 }
 0x588   :  { %v3746_v39 = vpop.xlane.xlu0 %3745 }
 0x589   :  { %10413 = vpow2.f32 %v3812_v43  ;;  %v3792_v46 = vsub.f32 %v12205_v40, %v3746_v39 }
 0x58b   :  { %v3808_v17 = vmul.f32 1.442695, %v3792_v46 }
 0x58c   :  { %v3755_v6 = vpop.xlane.xlu0 %3754 }
 0x58d   :  { %10415 = vpow2.f32 %v3808_v17  ;;  %v3795_v41 = vsub.f32 %v12240_v30, %v3755_v6 }
 0x58f   :  { %v3814_v3 = vmul.f32 1.442695, %v3795_v41 }
 0x591   :  { %10417 = vpow2.f32 %v3814_v3 }
 0x593   :  { %v12483_v47 = vpop.eup %10413 }
 0x594   :  { %v3846_v59 = vsel %vm3507_vm1, %v12483_v47, 0.0 }
 0x595   :  { %3847 = vadd.xlane.f32.xlu0 %v3846_v59 }
 0x597   :  { %v12487_v29 = vpop.eup %10415 }
 0x598   :  { %v3840_v36 = vsel %vm3507_vm1, %v12487_v29, 0.0  ;;  %v3764_v51 = vpop.xlane.xlu1 %3763 }
 0x599   :  { %v3749_v40 = vpop.xlane.xlu0 %3748  ;;  %3841 = vadd.xlane.f32.xlu0 %v3840_v36  ;;  %v3798_v54 = vsub.f32 %v12361_v61, %v3764_v51 }
 0x59a   :  { %v3793_v48 = vsub.f32 %v12331_v8, %v3749_v40 }
 0x59b   :  { %v12494_v30 = vpop.eup %10417  ;;  %v3820_v11 = vmul.f32 1.442695, %v3798_v54 }
 0x59c   :  { %v3810_v32 = vmul.f32 1.442695, %v3793_v48  ;;  %v3849_v37 = vsel %vm3507_vm1, %v12494_v30, 0.0 }
 0x59d   :  { %3850 = vadd.xlane.f32.xlu0 %v3849_v37 }
 0x59e   :  { %10419 = vpow2.f32 %v3810_v32 }
 0x5a8   :  { %v12501_v31 = vpop.eup %10419 }
 0x5a9   :  { %v3758_v10 = vpop.xlane.xlu1 %3757  ;;  %v3843_v8 = vsel %vm3507_vm1, %v12501_v31, 0.0 }
 0x5aa   :  { %v3796_v60 = vsub.f32 %v12418_v27, %v3758_v10  ;;  %3844 = vadd.xlane.f32.xlu0 %v3843_v8 }
 0x5ac   :  { %v3816_v62 = vmul.f32 1.442695, %v3796_v60 }
 0x5ae   :  { %10421 = vpow2.f32 %v3816_v62 }
 0x5af   :  { %10423 = vpow2.f32 %v3820_v11 }
 0x5b8   :  { %v12506_v38 = vpop.eup %10421 }
 0x5b9   :  { %v3852_v0 = vsel %vm3507_vm1, %v12506_v38, 0.0  ;;  %v12510_v57 = vpop.eup %10423 }
 0x5ba   :  { %3853 = vadd.xlane.f32.xlu1 %v3852_v0  ;;  %v3858_v61 = vsel %vm3507_vm1, %v12510_v57, 0.0 }
 0x5be   :  { %3859 = vadd.xlane.f32.xlu1 %v3858_v61 }
 0x5c1   :  { %v3767_v27 = vpop.xlane.xlu1 %3766 }
 0x5c2   :  { %v3799_v28 = vsub.f32 %v12444_v42, %v3767_v27 }
 0x5c4   :  { %v3822_v19 = vmul.f32 1.442695, %v3799_v28 }
 0x5c6   :  { %10425 = vpow2.f32 %v3822_v19 }
 0x5d0   :  { %v12515_v15 = vpop.eup %10425 }
 0x5d1   :  { %v3861_v16 = vsel %vm3507_vm1, %v12515_v15, 0.0 }
 0x5d2   :  { %3862 = vadd.xlane.f32.xlu1 %v3861_v16 }
 0x5d6   :  { %v3761_v27 = vpop.xlane.xlu0 %3760 }
 0x5d7   :  { %1243 = vxpose.xlu0.b32.start [1/4] (short) (narrow) %v14938_v33, 64 }
 0x5db   :  { %1244 = vxpose.xlu0.b32.cont [2/4] (short) (narrow) %v14939_v55, 64 }
 0x5df   :  { %1245 = vxpose.xlu0.b32.cont [3/4] (short) (narrow) %v14940_v5, 64 }
 0x5e3   :  { %1246 = vxpose.xlu0.b32.end [4/4] (short) (narrow) %v14941_v23, 64  ;;  %v3797_v23 = vsub.f32 %v12458_v63, %v3761_v27 }
 0x5e7   :  { %v1419_v42 = vpop.trf.xlu1 }
 0x5e8   :  { %v1447_v26 = vsub.f32 %v12468_v21, %v1419_v42 }
 0x5ea   :  { %v1503_v22 = vmul.f32 %v12491_v50, %v1447_v26 }
 0x5eb   :  { %v1420_v52 = vpop.trf.xlu1 }
 0x5ec   :  { %v1559_v25 = vadd.f32 %v12498_v20, %v1503_v22  ;;  %v1448_v53 = vsub.f32 %v12470_v9, %v1420_v52 }
 0x5ee   :  { %v1695_v43 = vand.u32 2147483647, %v1559_v25  ;;  %v1504_v56 = vmul.f32 %v12491_v50, %v1448_v53  ;;  %v1704_v19 = vand.u32 2147483648, %v1559_v25 }
 0x5ef   :  { %v1421_v39 = vpop.trf.xlu1 }
 0x5f0   :  { %v1697_v46 = vmul.f32 0.00048828125, %v1695_v43  ;;  %v1560_v1 = vadd.f32 %v12498_v20, %v1504_v56  ;;  %v1449_v4 = vsub.f32 %v12473_v18, %v1421_v39  ;;  %v12534_v17 = vpop.f32.mrb[56].mxu1  ;;  %v12536_v6 = vpop.f32.mrb[0].mxu0  ;;  %v3818_v39 = vmul.f32 1.442695, %v3797_v23 }
 0x5f1   :  { %14942 = vst [vmem:[#allocation33_spill] sm:$0xff] %v12534_v17  ;;  %v12539_v59 = vpop.f32.mrb[57].mxu1  ;;  %v12541_v9 = vpop.f32.mrb[1].mxu0 }
 0x5f2   :  { %v1698_v21 = vfloor.f32 %v1697_v46  ;;  %v1706_v41 = vand.u32 2147483647, %v1560_v1  ;;  %v1505_v3 = vmul.f32 %v12491_v50, %v1449_v4  ;;  %14943 = vst [vmem:[#allocation34_spill] sm:$0xff] %v12539_v59  ;;  %v12543_v40 = vpop.f32.mrb[58].mxu1  ;;  %v1715_v26 = vand.u32 2147483648, %v1560_v1 }
 0x5f3   :  { %v1422_v36 = vpop.trf.xlu1  ;;  %14944 = vst [vmem:[#allocation35_spill] sm:$0xff] %v12543_v40  ;;  %v12547_v51 = vpop.f32.mrb[59].mxu1  ;;  %10427 = vpow2.f32 %v3818_v39 }
 0x5f4   :  { %v1699_v48 = vmul.f32 2048.0, %v1698_v21  ;;  %v1708_v32 = vmul.f32 0.00048828125, %v1706_v41  ;;  %v1561_v37 = vadd.f32 %v12498_v20, %v1505_v3  ;;  %v1450_v18 = vsub.f32 %v12477_v58, %v1422_v36  ;;  %14945 = vst [vmem:[#allocation36_spill] sm:$0xff] %v12547_v51 }
 0x5f6   :  { %v1700_v54 = vsub.f32 %v1695_v43, %v1699_v48  ;;  %v1709_v10 = vfloor.f32 %v1708_v32  ;;  %v1717_v60 = vand.u32 2147483647, %v1561_v37  ;;  %v1506_v8 = vmul.f32 %v12491_v50, %v1450_v18  ;;  %v12552_v43 = vpop.f32.mrb[2].mxu0 }
 0x5f7   :  { %v12560_v32 = vpop.f32.mrb[3].mxu0 }
 0x5f8   :  { %vm1701_vm4 = vcmp.eq.f32.partialorder %v1700_v54, 2048.0  ;;  %v1710_v11 = vmul.f32 2048.0, %v1709_v10  ;;  %v1719_v62 = vmul.f32 0.00048828125, %v1717_v60  ;;  %v1562_v61 = vadd.f32 %v12498_v20, %v1506_v8 }
 0x5f9   :  { %v1702_v0 = vsel %vm1701_vm4, 0.0, %v1700_v54 }
 0x5fa   :  { %v1703_v28 = vand.u32 2147483647, %v1702_v0  ;;  %v1711_v16 = vsub.f32 %v1706_v41, %v1710_v11  ;;  %v1720_v33 = vfloor.f32 %v1719_v62  ;;  %v1728_v55 = vand.u32 2147483647, %v1562_v61 }
 0x5fb   :  { %v1726_v41 = vand.u32 2147483648, %v1561_v37 }
 0x5fc   :  { %v1705_v58 = vor.u32 %v1704_v19, %v1703_v28  ;;  %vm1712_vm5 = vcmp.eq.f32.partialorder %v1711_v16, 2048.0  ;;  %v1721_v5 = vmul.f32 2048.0, %v1720_v33  ;;  %v1730_v50 = vmul.f32 0.00048828125, %v1728_v55 }
 0x5fd   :  { %v1713_v42 = vsel %vm1712_vm5, 0.0, %v1711_v16 }
 0x5fe   :  { %vm1751_vm15 = vcmp.ne.f32.partialorder %v1705_v58, 0.0  ;;  %vm1767_vm6 = vcmp.lt.f32.partialorder %v1705_v58, 0.0  ;;  %v1799_v22 = vadd.f32 2048.0, %v1705_v58  ;;  %v1714_v52 = vand.u32 2147483647, %v1713_v42 }
 0x5ff   :  { %v1722_v53 = vsub.f32 %v1717_v60, %v1721_v5  ;;  %v1731_v20 = vfloor.f32 %v1730_v50  ;;  %vm1783_vm7 = vmand %vm1767_vm6, %vm1751_vm15  ;;  %v1737_v60 = vand.u32 2147483648, %v1562_v61  ;;  %v12574_v50 = vpop.eup %10427 }
 0x600   :  { %v1716_v25 = vor.u32 %v1715_v26, %v1714_v52  ;;  %v1815_v56 = vsel %vm1783_vm7, %v1799_v22, %v1705_v58 }
 0x601   :  { %vm1723_vm8 = vcmp.eq.f32.partialorder %v1722_v53, 2048.0  ;;  %v1732_v46 = vmul.f32 2048.0, %v1731_v20  ;;  %v1831_v4 = vfloor.f32 %v1815_v56 }
 0x602   :  { %vm1752_vm9 = vcmp.ne.f32.partialorder %v1716_v25, 0.0  ;;  %vm1768_vm10 = vcmp.lt.f32.partialorder %v1716_v25, 0.0  ;;  %v1800_v63 = vadd.f32 2048.0, %v1716_v25  ;;  %v1724_v1 = vsel %vm1723_vm8, 0.0, %v1722_v53 }
 0x603   :  { %v1725_v21 = vand.u32 2147483647, %v1724_v1  ;;  %v1733_v3 = vsub.f32 %v1728_v55, %v1732_v46  ;;  %v12554_v36 = vmul.f32 0.0030694604, %v1831_v4  ;;  %vm12556_vm12 = vmand %vm1768_vm10, %vm1752_vm9 }
 0x604   :  { %v1816_v54 = vsel %vm12556_vm12, %v1800_v63, %v1716_v25  ;;  %v3855_v63 = vsel %vm3507_vm1, %v12574_v50, 0.0 }
 0x605   :  { %v1727_v18 = vor.u32 %v1726_v41, %v1725_v21  ;;  %vm1734_vm11 = vcmp.eq.f32.partialorder %v1733_v3, 2048.0  ;;  %v14847_v8 = vand.u32 2147483647, %v12554_v36  ;;  %v3090_v37 = vand.u32 2139095040, %v12554_v36 }
 0x606   :  { %v1735_v10 = vsel %vm1734_vm11, 0.0, %v1733_v3  ;;  %v1832_v27 = vfloor.f32 %v1816_v54 }
 0x607   :  { %vm1753_vm14 = vcmp.ne.f32.partialorder %v1727_v18, 0.0  ;;  %vm1769_vm13 = vcmp.lt.f32.partialorder %v1727_v18, 0.0  ;;  %v1801_v11 = vadd.f32 2048.0, %v1727_v18  ;;  %v1736_v62 = vand.u32 2147483647, %v1735_v10 }
 0x608   :  { %vm1785_vm0 = vmand %vm1769_vm13, %vm1753_vm14  ;;  %v3091_v0 = vshrl.u32 %v3090_v37, 23  ;;  %v3094_v61 = vand.u32 8388607, %v14847_v8  ;;  %v12570_v23 = vmul.f32 0.0030694604, %v1832_v27 }
 0x609   :  { %v1738_v28 = vor.u32 %v1737_v60, %v1736_v62  ;;  %v1817_v19 = vsel %vm1785_vm0, %v1801_v11, %v1727_v18 }
 0x60a   :  { %v1833_v16 = vfloor.f32 %v1817_v19  ;;  %v8647_v33 = vadd.s32 4294967169, %v3091_v0  ;;  %v3095_v22 = vor.u32 8388608, %v3094_v61  ;;  %v3193_v56 = vand.u32 2139095040, %v12570_v23 }
 0x60b   :  { %vm1754_vm2 = vcmp.ne.f32.partialorder %v1738_v28, 0.0  ;;  %vm1770_vm3 = vcmp.lt.f32.partialorder %v1738_v28, 0.0  ;;  %v1802_v55 = vadd.f32 2048.0, %v1738_v28 }
 0x60c   :  { %v12568_v58 = vmul.f32 0.0030694604, %v1833_v16  ;;  %v3097_v5 = vadd.s32 1, %v8647_v33  ;;  %vm1786_vm4 = vmand %vm1770_vm3, %vm1754_vm2  ;;  %v12581_v21 = vshll.u32 %v3095_v22, 8  ;;  %v12585_v18 = vshrl.u32 %v3193_v56, 23 }
 0x60d   :  { %v1818_v52 = vsel %vm1786_vm4, %v1802_v55, %v1738_v28 }
 0x60e   :  { %v14848_v42 = vand.u32 2147483647, %v12568_v58  ;;  %v3296_v26 = vand.u32 2139095040, %v12568_v58  ;;  %vm3098_vm5 = vcmp.gt.s32.totalorder %v3097_v5, 0  ;;  %v1834_v4 = vfloor.f32 %v1818_v52 }
 0x60f   :  { %v3099_v25 = vsel %vm3098_vm5, %v3097_v5, 0  ;;  %vm3295_vm4 = vcmp.lt.s32.totalorder %v12568_v58, 0 }
 0x610   :  { %v3297_v53 = vshrl.u32 %v3296_v26, 23  ;;  %v3300_v20 = vand.u32 8388607, %v14848_v42  ;;  %v3101_v39 = vand.u32 31, %v3099_v25  ;;  %v12583_v48 = vshrl.u32 %v3099_v25, 5 }
 0x611   :  { %v12595_v0 = vmul.f32 0.0030694604, %v1834_v4 }
 0x612   :  { %v8655_v46 = vadd.s32 4294967169, %v3297_v53  ;;  %v3102_v1 = vsub.s32 32, %v3101_v39  ;;  %v3301_v41 = vor.u32 8388608, %v3300_v20  ;;  %v3104_v54 = vshll.u32 %v14912_v14, %v3101_v39 }
 0x613   :  { %v3107_v19 = vshll.u32 %v14907_v7, %v3101_v39  ;;  %v3110_v16 = vshll.u32 %v14908_v44, %v3101_v39  ;;  %v3113_v61 = vshll.u32 %v14906_v24, %v3101_v39  ;;  %v3116_v5 = vshll.u32 %v14895_v12, %v3101_v39 }
 0x614   :  { %v3303_v3 = vadd.s32 1, %v8655_v46  ;;  %v3105_v10 = vshrl.u32 %v14907_v7, %v3102_v1  ;;  %v3108_v60 = vshrl.u32 %v14908_v44, %v3102_v1  ;;  %v3111_v37 = vshrl.u32 %v14906_v24, %v3102_v1 }
 0x615   :  { %v3114_v11 = vshrl.u32 %v14895_v12, %v3102_v1  ;;  %v12593_v62 = vshrl.u32 %v14896_v49, %v3102_v1  ;;  %v12599_v55 = vshll.u32 %v3301_v41, 8  ;;  %v3103_v26 = vshrl.u32 %v14912_v14, %v3102_v1 }
 0x616   :  { %vm3304_vm15 = vcmp.gt.s32.totalorder %v3303_v3, 0  ;;  %v3106_v28 = vor.u32 %v3105_v10, %v3104_v54  ;;  %v3109_v22 = vor.u32 %v3108_v60, %v3107_v19  ;;  %v3112_v52 = vor.u32 %v3111_v37, %v3110_v16 }
 0x617   :  { %v3305_v27 = vsel %vm3304_vm15, %v3303_v3, 0  ;;  %vm3119_vm6 = vcmp.lt.s32.totalorder %v12583_v48, 1  ;;  %v3115_v25 = vor.u32 %v3114_v11, %v3113_v61  ;;  %v3118_v56 = vor.u32 %v12593_v62, %v3116_v5 }
 0x618   :  { %v3307_v33 = vand.u32 31, %v3305_v27  ;;  %v3306_v53 = vshrl.u32 %v3305_v27, 5  ;;  %vm3122_vm7 = vcmp.lt.s32.totalorder %v12583_v48, 4  ;;  %v3123_v39 = vsel %vm3119_vm6, %v3103_v26, %v3106_v28 }
 0x619   :  { %vm3121_vm8 = vcmp.lt.s32.totalorder %v12583_v48, 3  ;;  %vm3120_vm9 = vcmp.lt.s32.totalorder %v12583_v48, 2 }
 0x61a   :  { %v3308_v20 = vsub.s32 32, %v3307_v33  ;;  %v3310_v46 = vshll.u32 %v14912_v14, %v3307_v33  ;;  %v3313_v4 = vshll.u32 %v14907_v7, %v3307_v33  ;;  %v3316_v3 = vshll.u32 %v14908_v44, %v3307_v33 }
 0x61b   :  { %v3319_v10 = vshll.u32 %v14906_v24, %v3307_v33  ;;  %v3322_v37 = vshll.u32 %v14895_v12, %v3307_v33  ;;  %vm3325_vm10 = vcmp.lt.s32.totalorder %v3306_v53, 1  ;;  %vm3326_vm12 = vcmp.lt.s32.totalorder %v3306_v53, 2 }
 0x61c   :  { %v3311_v1 = vshrl.u32 %v14907_v7, %v3308_v20  ;;  %v3314_v41 = vshrl.u32 %v14908_v44, %v3308_v20  ;;  %v3317_v54 = vshrl.u32 %v14906_v24, %v3308_v20  ;;  %v3320_v60 = vshrl.u32 %v14895_v12, %v3308_v20 }
 0x61d   :  { %v3323_v11 = vshrl.u32 %v14896_v49, %v3308_v20  ;;  %vm3328_vm11 = vcmp.lt.s32.totalorder %v3306_v53, 4  ;;  %vm3327_vm14 = vcmp.lt.s32.totalorder %v3306_v53, 3  ;;  %v3309_v33 = vshrl.u32 %v14912_v14, %v3308_v20 }
 0x61e   :  { %v3312_v62 = vor.u32 %v3311_v1, %v3310_v46  ;;  %v3315_v27 = vor.u32 %v3314_v41, %v3313_v4  ;;  %v3318_v19 = vor.u32 %v3317_v54, %v3316_v3  ;;  %v3321_v16 = vor.u32 %v3320_v60, %v3319_v10 }
 0x61f   :  { %v3324_v61 = vor.u32 %v3323_v11, %v3322_v37  ;;  %v3124_v46 = vsel %vm3122_vm7, %v3112_v52, 2102212464  ;;  %v3127_v41 = vsel %vm3119_vm6, %v3106_v28, %v3109_v22  ;;  %v3128_v3 = vsel %vm3122_vm7, %v3115_v25, 920167782 }
 0x620   :  { %v3330_v5 = vsel %vm3328_vm11, %v3318_v19, 2102212464  ;;  %v3333_v26 = vsel %vm3325_vm10, %v3312_v62, %v3315_v27  ;;  %v3337_v8 = vsel %vm3325_vm10, %v3315_v27, %v3318_v19  ;;  %3856 = vadd.xlane.f32.xlu0 %v3855_v63  ;;  %v3334_v42 = vsel %vm3328_vm11, %v3321_v16, 920167782 }
 0x621   :  { %v3338_v40 = vsel %vm3328_vm11, %v3324_v61, 1326507024  ;;  %v3335_v4 = vsel %vm3327_vm14, %v3318_v19, %v3334_v42  ;;  %v3329_v54 = vsel %vm3325_vm10, %v3309_v33, %v3312_v62  ;;  %v3331_v10 = vsel %vm3327_vm14, %v3315_v27, %v3330_v5 }
 0x622   :  { %v3339_v1 = vsel %vm3327_vm14, %v3321_v16, %v3338_v40  ;;  %v3336_v63 = vsel %vm3326_vm12, %v3333_v26, %v3335_v4  ;;  %v3125_v28 = vsel %vm3121_vm8, %v3109_v22, %v3124_v46  ;;  %v3129_v11 = vsel %vm3121_vm8, %v3112_v52, %v3128_v3 }
 0x623   :  { %v3340_v20 = vsel %vm3326_vm12, %v3337_v8, %v3339_v1  ;;  %v12638_v42 = vmul.u32.u64.low %v12599_v55, %v3336_v63  ;;  %v12639_v40 = vmul.u32.u64.high %v12599_v55, %v3336_v63, %v12638_v42  ;;  %v3131_v62 = vsel %vm3119_vm6, %v3109_v22, %v3112_v52 }
 0x624   :  { %v12634_v60 = vmul.u32.u64.low %v12599_v55, %v3340_v20  ;;  %v12635_v37 = vmul.u32.u64.high %v12599_v55, %v3340_v20, %v12634_v60  ;;  %v3132_v8 = vsel %vm3122_vm7, %v3118_v56, 1326507024  ;;  %v3332_v27 = vsel %vm3326_vm12, %v3329_v54, %v3331_v10 }
 0x625   :  { %v3130_v19 = vsel %vm3120_vm9, %v3127_v41, %v3129_v11  ;;  %v3133_v16 = vsel %vm3121_vm8, %v3115_v25, %v3132_v8  ;;  %v8651_v61 = vadd.s32 4294967169, %v12585_v18  ;;  %v3351_v22 = vadd.s32 1, %v12639_v40 }
 0x626   :  { %v3134_v5 = vsel %vm3120_vm9, %v3131_v62, %v3133_v16  ;;  %v12658_v26 = vmul.u32.u64.low %v12581_v21, %v3130_v19  ;;  %v12659_v33 = vmul.u32.u64.high %v12581_v21, %v3130_v19, %v12658_v26  ;;  %vm3350_vm13 = vc.u32 %v12635_v37, %v12638_v42 }
 0x627   :  { %v3126_v52 = vsel %vm3120_vm9, %v3123_v39, %v3125_v28  ;;  %v3348_v53 = vmul.u32 %v12599_v55, %v3332_v27  ;;  %v12667_v25 = vmul.u32.u64.low %v12581_v21, %v3134_v5  ;;  %v12668_v56 = vmul.u32.u64.high %v12581_v21, %v3134_v5, %v12667_v25  ;;  %v3848_v55 = vpop.xlane.xlu0 %3847 }
 0x628   :  { %v3399_v18 = vand.u32 2139095040, %v12595_v0  ;;  %v3352_v46 = vsel %vm3350_vm13, %v3351_v22, %v12639_v40  ;;  %v14849_v4 = vand.u32 2147483647, %v12570_v23  ;;  %v3200_v1 = vadd.s32 1, %v8651_v61 }
 0x629   :  { %v3353_v41 = vadd.s32 %v3352_v46, %v3348_v53  ;;  %v3145_v3 = vadd.s32 1, %v12659_v33  ;;  %v3142_v48 = vmul.u32 %v12581_v21, %v3126_v52  ;;  %v14850_v39 = vand.u32 2147483647, %v12595_v0 }
 0x62a   :  { %v3400_v54 = vshrl.u32 %v3399_v18, 23  ;;  %vm3144_vm0 = vc.u32 %v12668_v56, %v12658_v26  ;;  %vm3201_vm2 = vcmp.gt.s32.totalorder %v3200_v1, 0  ;;  %v3197_v60 = vand.u32 8388607, %v14849_v4 }
 0x62b   :  { %v3354_v10 = vadd.s32 536870912, %v3353_v41  ;;  %v3146_v20 = vsel %vm3144_vm0, %v3145_v3, %v12659_v33  ;;  %v3403_v62 = vand.u32 8388607, %v14850_v39  ;;  %v3202_v21 = vsel %vm3201_vm2, %v3200_v1, 0  ;;  %v3842_v61 = vpop.xlane.xlu0 %3841 }
 0x62c   :  { %v8659_v63 = vadd.s32 4294967169, %v3400_v54  ;;  %v3147_v28 = vadd.s32 %v3146_v20, %v3142_v48  ;;  %v3198_v16 = vor.u32 8388608, %v3197_v60  ;;  %v12686_v33 = vand.u32 31, %v3202_v21 }
 0x62d   :  { %v3355_v40 = vshrl.u32 %v3354_v10, 30  ;;  %v3404_v52 = vor.u32 8388608, %v3403_v62  ;;  %10429 = vrcp.f32 %v3848_v55  ;;  %v12696_v48 = vadd.s32 %v12658_v26, %v12668_v56 }
 0x62e   :  { %v3406_v11 = vadd.s32 1, %v8659_v63  ;;  %v3148_v27 = vadd.s32 536870912, %v3147_v28  ;;  %10431 = vrcp.f32 %v3842_v61  ;;  %v12691_v3 = vshll.u32 %v3198_v16, 8 }
 0x62f   :  { %v3356_v8 = vshll.u32 %v3355_v40, 30  ;;  %v3379_v18 = vsub.s32 4, %v3355_v40  ;;  %v12699_v55 = vsub.s32 32, %v12686_v33  ;;  %v12704_v20 = vshll.u32 %v3404_v52, 8 }
 0x630   :  { %vm3407_vm3 = vcmp.gt.s32.totalorder %v3406_v11, 0  ;;  %v12684_v22 = vshrl.u32 %v3148_v27, 30  ;;  %v12706_v60 = vshrl.u32 %v3202_v21, 5  ;;  %v12715_v26 = vshll.u32 %v14912_v14, %v12686_v33 }
 0x631   :  { %v3408_v19 = vsel %vm3407_vm3, %v3406_v11, 0  ;;  %v12682_v5 = vsub.s32 %v3353_v41, %v3356_v8  ;;  %v3349_v41 = vadd.s32 %v12638_v42, %v12635_v37  ;;  %v12710_v37 = vsel %vm3295_vm4, %v3379_v18, %v3355_v40 }
 0x632   :  { %v3410_v53 = vand.u32 31, %v3408_v19  ;;  %v3150_v46 = vshll.u32 %v12684_v22, 30  ;;  %v12726_v16 = vshrl.u32 %v14907_v7, %v12699_v55  ;;  %vm3089_vm12 = vcmp.lt.s32.totalorder %v12554_v36, 0 }
 0x633   :  { %v3359_v25 = vsub.s32 0, %v12682_v5  ;;  %vm3222_vm13 = vcmp.lt.s32.totalorder %v12706_v60, 1  ;;  %vm3224_vm0 = vcmp.lt.s32.totalorder %v12706_v60, 3  ;;  %vm3225_vm2 = vcmp.lt.s32.totalorder %v12706_v60, 4 }
 0x634   :  { %v3411_v1 = vsub.s32 32, %v3410_v53  ;;  %v12701_v10 = vsub.s32 %v3147_v28, %v3150_v46  ;;  %v12718_v28 = vshrl.u32 %v3408_v19, 5  ;;  %v3413_v62 = vshll.u32 %v14912_v14, %v3410_v53 }
 0x635   :  { %v8656_v54 = vmin.u32 %v3359_v25, %v12682_v5  ;;  %v3416_v21 = vshll.u32 %v14907_v7, %v3410_v53  ;;  %v3419_v27 = vshll.u32 %v14908_v44, %v3410_v53  ;;  %v3422_v46 = vshll.u32 %v14906_v24, %v3410_v53 }
 0x636   :  { %v3414_v63 = vshrl.u32 %v14907_v7, %v3411_v1  ;;  %v3417_v42 = vshrl.u32 %v14908_v44, %v3411_v1  ;;  %v3153_v56 = vsub.s32 0, %v12701_v10  ;;  %v3420_v40 = vshrl.u32 %v14906_v24, %v3411_v1 }
 0x637   :  { %v3361_v11 = vclz %v8656_v54  ;;  %v3412_v52 = vshrl.u32 %v14912_v14, %v3411_v1  ;;  %v3423_v54 = vshrl.u32 %v14895_v12, %v3411_v1  ;;  %v3425_v39 = vshll.u32 %v14895_v12, %v3410_v53  ;;  %v12734_v51 = vpop.eup %10429 }
 0x638   :  { %v8648_v61 = vmin.u32 %v3153_v56, %v12701_v10  ;;  %v3415_v25 = vor.u32 %v3414_v63, %v3413_v62  ;;  %v3418_v19 = vor.u32 %v3417_v42, %v3416_v21  ;;  %v3421_v18 = vor.u32 %v3420_v40, %v3419_v27  ;;  %v12737_v63 = vpop.eup %10431 }
 0x639   :  { %v8657_v8 = vadd.s32 4294967294, %v3361_v11  ;;  %v3426_v17 = vshrl.u32 %v14896_v49, %v3411_v1  ;;  %v3424_v13 = vor.u32 %v3423_v54, %v3422_v46  ;;  %vm3428_vm15 = vcmp.lt.s32.totalorder %v12718_v28, 1 }
 0x63a   :  { %v3155_v4 = vclz %v8648_v61  ;;  %vm3429_vm6 = vcmp.lt.s32.totalorder %v12718_v28, 2  ;;  %v14948_v53 = vand.u32 2147483647, %v12568_v58  ;;  %vm3430_vm8 = vcmp.lt.s32.totalorder %v12718_v28, 3 }
 0x63b   :  { %vm8658_vm5 = vcmp.lt.s32.totalorder %v8657_v8, 0  ;;  %v3427_v21 = vor.u32 %v3426_v17, %v3425_v39  ;;  %vm3431_vm9 = vcmp.lt.s32.totalorder %v12718_v28, 4  ;;  %v3432_v17 = vsel %vm3428_vm15, %v3412_v52, %v3415_v25 }
 0x63c   :  { %v3364_v11 = vsel %vm8658_vm5, 0, %v8657_v8  ;;  %v8649_v62 = vadd.s32 4294967294, %v3155_v4  ;;  %v12741_v8 = vpop.xlane.xlu0 %3850  ;;  %vm12745_vm7 = vcmp.le.f32.partialorder %v14948_v53, 0.7853982  ;;  %v3433_v4 = vsel %vm3431_vm9, %v3421_v18, 2102212464 }
 0x63d   :  { %v3365_v59 = vsub.s32 32, %v3364_v11  ;;  %v3369_v56 = vsub.s32 4294967266, %v3364_v11  ;;  %v3366_v42 = vshll.u32 %v12682_v5, %v3364_v11  ;;  %v3437_v39 = vsel %vm3431_vm9, %v3424_v13, 920167782 }
 0x63e   :  { %vm8650_vm10 = vcmp.lt.s32.totalorder %v8649_v62, 0  ;;  %v3438_v45 = vsel %vm3430_vm8, %v3421_v18, %v3437_v39  ;;  %v3173_v1 = vsub.s32 4, %v12684_v22  ;;  %vm3223_vm3 = vcmp.lt.s32.totalorder %v12706_v60, 2 }
 0x63f   :  { %v3367_v27 = vshrl.u32 %v3349_v41, %v3365_v59  ;;  %v3370_v40 = vadd.s32 127, %v3369_v56  ;;  %v3158_v46 = vsel %vm8650_vm10, 0, %v8649_v62  ;;  %v3436_v59 = vsel %vm3428_vm15, %v3415_v25, %v3418_v19 }
 0x640   :  { %v3159_v41 = vsub.s32 32, %v3158_v46  ;;  %v3160_v54 = vshll.u32 %v12701_v10, %v3158_v46  ;;  %v3163_v11 = vsub.s32 4294967266, %v3158_v46  ;;  %v3434_v56 = vsel %vm3430_vm8, %v3418_v19, %v3433_v4  ;;  %v3845_v46 = vpop.xlane.xlu0 %3844 }
 0x641   :  { %v3368_v5 = vor.u32 %v3367_v27, %v3366_v42  ;;  %v3371_v61 = vshll.u32 %v3370_v40, 23  ;;  %v3440_v42 = vsel %vm3428_vm15, %v3418_v19, %v3421_v18  ;;  %v3439_v25 = vsel %vm3429_vm6, %v3436_v59, %v3438_v45 }
 0x642   :  { %v3161_v62 = vshrl.u32 %v12696_v48, %v3159_v41  ;;  %v3164_v27 = vadd.s32 127, %v3163_v11  ;;  %v3441_v10 = vsel %vm3431_vm9, %v3427_v21, 1326507024  ;;  %v3435_v48 = vsel %vm3429_vm6, %v3432_v17, %v3434_v56 }
 0x643   :  { %v3372_v52 = vor.u32 4788187, %v3371_v61  ;;  %v3375_v53 = vcvt.s32.f32 %v3368_v5  ;;  %v3442_v4 = vsel %vm3430_vm8, %v3424_v13, %v3441_v10  ;;  %v3210_v13 = vshll.u32 %v14907_v7, %v12686_v33 }
 0x644   :  { %v12774_v5 = vmul.u32.u64.low %v12704_v20, %v3439_v25  ;;  %v12775_v39 = vmul.u32.u64.high %v12704_v20, %v3439_v25, %v12774_v5  ;;  %v3162_v19 = vor.u32 %v3161_v62, %v3160_v54  ;;  %v3165_v18 = vshll.u32 %v3164_v27, 23 }
 0x645   :  { %v3373_v40 = vand.u32 2147483647, %v3372_v52  ;;  %v3443_v45 = vsel %vm3429_vm6, %v3440_v42, %v3442_v4  ;;  %v3382_v41 = vsel %vm12745_vm7, 0, %v12710_v37  ;;  %v14951_v54 = vand.u32 2147483647, %v12554_v36 }
 0x646   :  { %v12784_v21 = vmul.u32.u64.low %v12704_v20, %v3443_v45  ;;  %v12785_v59 = vmul.u32.u64.high %v12704_v20, %v3443_v45, %v12784_v21  ;;  %v3166_v28 = vor.u32 4788187, %v3165_v18  ;;  %10433 = vrcp.f32 %v3845_v46 }
 0x647   :  { %v3376_v61 = vmul.f32 %v3375_v53, %v3373_v40  ;;  %vm12794_vm11 = vcmp.le.f32.partialorder %v14951_v54, 0.7853982  ;;  %v3211_v11 = vshrl.u32 %v14908_v44, %v12699_v55  ;;  %v3451_v52 = vmul.u32 %v12704_v20, %v3435_v48 }
 0x648   :  { %v3454_v53 = vadd.s32 1, %v12775_v39  ;;  %v3214_v42 = vshrl.u32 %v14906_v24, %v12699_v55  ;;  %v3167_v37 = vand.u32 2147483647, %v3166_v28  ;;  %v3169_v62 = vcvt.s32.f32 %v3162_v19 }
 0x649   :  { %v3377_v56 = vxor.u32 2147483648, %v3376_v61  ;;  %v3209_v27 = vor.u32 %v12726_v16, %v12715_v26  ;;  %v3213_v25 = vshll.u32 %v14908_v44, %v12686_v33  ;;  %vm3453_vm14 = vc.u32 %v12785_v59, %v12774_v5 }
 0x64a   :  { %v3212_v20 = vor.u32 %v3211_v11, %v3210_v13  ;;  %v3216_v40 = vshll.u32 %v14906_v24, %v12686_v33  ;;  %v3170_v4 = vmul.f32 %v3169_v62, %v3167_v37  ;;  %v3455_v26 = vsel %vm3453_vm14, %v3454_v53, %v12775_v39 }
 0x64b   :  { %v3378_v10 = vsel %vm3295_vm4, %v3377_v56, %v3376_v61  ;;  %v3217_v16 = vshrl.u32 %v14895_v12, %v12699_v55  ;;  %v3456_v19 = vadd.s32 %v3455_v26, %v3451_v52  ;;  %v3215_v18 = vor.u32 %v3214_v42, %v3213_v25 }
 0x64c   :  { %v3381_v46 = vsel %vm12745_vm7, %v12568_v58, %v3378_v10  ;;  %v3220_v48 = vshrl.u32 %v14896_v49, %v12699_v55  ;;  %v3171_v45 = vxor.u32 2147483648, %v3170_v4  ;;  %v3219_v21 = vshll.u32 %v14895_v12, %v12686_v33 }
 0x64d   :  { %10435 = vcosq.f32 %v3381_v46  ;;  %v3218_v61 = vor.u32 %v3217_v16, %v3216_v40  ;;  %v3457_v13 = vadd.s32 536870912, %v3456_v19  ;;  %v3206_v39 = vshrl.u32 %v14912_v14, %v12699_v55 }
 0x64e   :  { %10437 = vsinq.f32 %v3381_v46  ;;  %v3172_v54 = vsel %vm3089_vm12, %v3171_v45, %v3170_v4  ;;  %v3221_v28 = vor.u32 %v3220_v48, %v3219_v21  ;;  %v3230_v56 = vsel %vm3222_vm13, %v3209_v27, %v3212_v20 }
 0x64f   :  { %v3175_v33 = vsel %vm12794_vm11, %v12554_v36, %v3172_v54  ;;  %v12835_v11 = vshrl.u32 %v3457_v13, 30  ;;  %v3231_v55 = vsel %vm3225_vm2, %v3218_v61, 920167782  ;;  %v3386_v53 = vand.u32 3, %v3382_v41 }
 0x650   :  { %v10434_v52 = vpop.eup %10433  ;;  %10439 = vcosq.f32 %v3175_v33  ;;  %v3227_v42 = vsel %vm3225_vm2, %v3215_v18, 2102212464  ;;  %v3232_v37 = vsel %vm3224_vm0, %v3215_v18, %v3231_v55  ;;  %v3234_v25 = vsel %vm3222_vm13, %v3212_v20, %v3215_v18 }
 0x651   :  { %10441 = vsinq.f32 %v3175_v33  ;;  %v3459_v62 = vshll.u32 %v12835_v11, 30  ;;  %v3174_v41 = vsel %vm3089_vm12, %v3173_v1, %v12684_v22  ;;  %v3233_v10 = vsel %vm3223_vm3, %v3230_v56, %v3232_v37 }
 0x652   :  { %10443 = vrcp.f32 %v12741_v8  ;;  %v3235_v40 = vsel %vm3225_vm2, %v3221_v28, 1326507024  ;;  %v3226_v4 = vsel %vm3222_vm13, %v3206_v39, %v3209_v27  ;;  %v3228_v26 = vsel %vm3224_vm0, %v3212_v20, %v3227_v42 }
 0x653   :  { %v12857_v46 = vsub.s32 %v3456_v19, %v3459_v62  ;;  %v3236_v8 = vsel %vm3224_vm0, %v3218_v61, %v3235_v40  ;;  %vm3387_vm4 = vcmp.lt.s32.totalorder %v3386_v53, 2  ;;  %v3176_v27 = vsel %vm12794_vm11, 0, %v3174_v41 }
 0x654   :  { %v3237_v22 = vsel %vm3223_vm3, %v3234_v25, %v3236_v8  ;;  %v12868_v16 = vmul.u32.u64.low %v12691_v3, %v3233_v10  ;;  %v12869_v18 = vmul.u32.u64.high %v12691_v3, %v3233_v10, %v12868_v16  ;;  %v3229_v13 = vsel %vm3223_vm3, %v3226_v4, %v3228_v26 }
 0x655   :  { %v3462_v45 = vsub.s32 0, %v12857_v46  ;;  %v12876_v20 = vmul.u32.u64.low %v12691_v3, %v3237_v22  ;;  %v12877_v21 = vmul.u32.u64.high %v12691_v3, %v3237_v22, %v12876_v20  ;;  %v3904_v39 = vmul.f32 %v12737_v63, %v12487_v29 }
 0x656   :  { %v3905_v54 = vmul.f32 %v10434_v52, %v12501_v31  ;;  %vm3388_vm5 = vcmp.eq.s32.totalorder %v3386_v53, 0  ;;  %vm3391_vm15 = vcmp.eq.s32.totalorder %v3386_v53, 2  ;;  %v3180_v56 = vand.u32 3, %v3176_v27 }
 0x657   :  { %v1259_v19 = vpop.trf.xlu0  ;;  %v10436_v48 = vpop.eup %10435  ;;  %v8660_v17 = vmin.u32 %v3462_v45, %v12857_v46  ;;  %v3248_v55 = vadd.s32 1, %v12869_v18  ;;  %v3245_v60 = vmul.u32 %v12691_v3, %v3229_v13  ;;  %vm3247_vm6 = vc.u32 %v12877_v21, %v12868_v16 }
 0x658   :  { %v10438_v61 = vpop.eup %10437  ;;  %v3392_v1 = vxor.u32 2147483648, %v10436_v48  ;;  %v3920_v42 = vpack.c.bf16 %v3905_v54, %v3904_v39  ;;  %vm3385_vm7 = vweird.f32 %v12568_v58  ;;  %vm3185_vm8 = vcmp.eq.s32.totalorder %v3180_v56, 2 }
 0x659   :  { %v3389_v28 = vxor.u32 2147483648, %v10438_v61  ;;  %v3464_v25 = vclz %v8660_v17  ;;  %v3249_v63 = vsel %vm3247_vm6, %v3248_v55, %v12869_v18  ;;  %vm3182_vm9 = vcmp.eq.s32.totalorder %v3180_v56, 0 }
 0x65a   :  { %v3393_v33 = vsel %vm3391_vm15, %v3392_v1, %v10438_v61  ;;  %v10440_v29 = vpop.eup %10439  ;;  %9179 = vmatprep.mubr.msk.bf16.mxu1 %vm3507_vm1, %v3920_v42  ;;  %v3250_v26 = vadd.s32 %v3249_v63, %v3245_v60  ;;  %vm3181_vm12 = vcmp.lt.s32.totalorder %v3180_v56, 2  ;;  %vm3179_vm11 = vweird.f32 %v12554_v36 }
 0x65b   :  { %v1260_v37 = vpop.trf.xlu0  ;;  %v3390_v62 = vsel %vm3388_vm5, %v10436_v48, %v3389_v28  ;;  %v10442_v41 = vpop.eup %10441  ;;  %v3186_v40 = vxor.u32 2147483648, %v10440_v29  ;;  %v8661_v4 = vadd.s32 4294967294, %v3464_v25  ;;  %v3906_v56 = vmul.f32 %v12734_v51, %v12483_v47 }
 0x65c   :  { %v3394_v31 = vsel %vm3387_vm4, %v3390_v62, %v3393_v33  ;;  %v3928_v52 = vpack.c.bf16 %v1260_v37, %v1259_v19  ;;  %v10444_v8 = vpop.eup %10443  ;;  %v3183_v22 = vxor.u32 2147483648, %v10442_v41  ;;  %v3251_v53 = vadd.s32 536870912, %v3250_v26 }
 0x65d   :  { %v3395_v10 = vsel %vm3385_vm7, nan, %v3394_v31  ;;  %v3187_v58 = vsel %vm3185_vm8, %v3186_v40, %v10442_v41  ;;  %vm8662_vm10 = vcmp.lt.s32.totalorder %v8661_v4, 0  ;;  %v3907_v39 = vmul.f32 %v10444_v8, %v12494_v30 }
 0x65e   :  { %v12894_v3 = vmul.f32 %v12536_v6, %v3395_v10  ;;  %9175 = vmatprep.subr.bf16.mxu1 %v3928_v52  ;;  %v3184_v18 = vsel %vm3182_vm9, %v10440_v29, %v3183_v22  ;;  %v3467_v19 = vsel %vm8662_vm10, 0, %v8661_v4  ;;  %v3452_v6 = vadd.s32 %v12774_v5, %v12785_v59 }
 0x65f   :  { %v1261_v48 = vpop.trf.xlu0  ;;  %9176 = vmatpush3.bf16.msra.mxu1 %v3928_v52  ;;  %v3188_v27 = vsel %vm3181_vm12, %v3184_v18, %v3187_v58  ;;  %v3468_v45 = vsub.s32 32, %v3467_v19  ;;  %v3472_v20 = vsub.s32 4294967266, %v3467_v19  ;;  %v12899_v1 = vshrl.u32 %v3251_v53, 30 }
 0x660   :  { %v3189_v61 = vsel %vm3179_vm11, nan, %v3188_v27  ;;  %v3469_v59 = vshll.u32 %v12857_v46, %v3467_v19  ;;  %v3246_v4 = vadd.s32 %v12868_v16, %v12877_v21  ;;  %vm3398_vm13 = vcmp.lt.s32.totalorder %v12595_v0, 0 }
 0x661   :  { %v12903_v54 = vmul.f32 %v12541_v9, %v3189_v61  ;;  %v3473_v28 = vadd.s32 127, %v3472_v20  ;;  %v3470_v33 = vshrl.u32 %v3452_v6, %v3468_v45  ;;  %v3253_v36 = vshll.u32 %v12899_v1, 30 }
 0x662   :  { %v3921_v9 = vpack.c.bf16 %v3907_v39, %v3906_v56  ;;  %v14954_v20 = vand.u32 2147483647, %v12595_v0  ;;  %vm3192_vm2 = vcmp.lt.s32.totalorder %v12570_v23, 0  ;;  %v3276_v56 = vsub.s32 4, %v12899_v1 }
 0x663   :  { %v1262_v13 = vpop.trf.xlu0  ;;  %v3474_v55 = vshll.u32 %v3473_v28, 23  ;;  %v3780_v5 = vsel %vm3507_vm1, %v12903_v54, -inf  ;;  %v3254_v42 = vsub.s32 %v3250_v26, %v3253_v36  ;;  %v3471_v37 = vor.u32 %v3470_v33, %v3469_v59 }
 0x664   :  { %v3929_v17 = vpack.c.bf16 %v1262_v13, %v1261_v48  ;;  %3781 = vmax.xlane.f32.xlu1 %v3780_v5  ;;  %vm12919_vm0 = vcmp.le.f32.partialorder %v14954_v20, 0.7853982  ;;  %v14957_v33 = vand.u32 2147483647, %v12570_v23  ;;  %v3277_v59 = vsel %vm3192_vm2, %v3276_v56, %v12899_v1 }
 0x665   :  { %v3475_v30 = vor.u32 4788187, %v3474_v55  ;;  %v3256_v62 = vsub.s32 0, %v3254_v42  ;;  %v3478_v47 = vcvt.s32.f32 %v3471_v37  ;;  %vm3282_vm9 = vweird.f32 %v12570_v23 }
 0x666   :  { %9177 = vmatprep.subr.bf16.mxu1 %v3929_v17  ;;  %vm3191_vm3 = vcmp.le.f32.partialorder %v14957_v33, 0.7853982  ;;  %vm3488_vm10 = vweird.f32 %v12595_v0 }
 0x667   :  { %9178 = vmatpush3.bf16.msra.mxu1 %v3929_v17  ;;  %v1263_v25 = vpop.trf.xlu0  ;;  %v3476_v60 = vand.u32 2147483647, %v3475_v30  ;;  %v8652_v29 = vmin.u32 %v3256_v62, %v3254_v42  ;;  %v3482_v17 = vsub.s32 4, %v12835_v11  ;;  %v3279_v37 = vsel %vm3191_vm3, 0, %v3277_v59 }
 0x669   :  { %v3258_v51 = vclz %v8652_v29  ;;  %v3479_v52 = vmul.f32 %v3478_v47, %v3476_v60  ;;  %v3483_v5 = vsel %vm3398_vm13, %v3482_v17, %v12835_v11  ;;  %v3283_v29 = vand.u32 3, %v3279_v37 }
 0x66a   :  { %9180 = vmatmul.mubr.msk.bf16.vlgmr.msra.gmra.mrb[60].mxu1 %vm3507_vm1, %v3921_v9  ;;  %v3485_v30 = vsel %vm12919_vm0, 0, %v3483_v5 }
 0x66b   :  { %v1264_v31 = vpop.trf.xlu0  ;;  %v8653_v41 = vadd.s32 4294967294, %v3258_v51  ;;  %v3480_v40 = vxor.u32 2147483648, %v3479_v52  ;;  %v3489_v62 = vand.u32 3, %v3485_v30  ;;  %vm3288_vm15 = vcmp.eq.s32.totalorder %v3283_v29, 2 }
 0x66c   :  { %v3930_v63 = vpack.c.bf16 %v1264_v31, %v1263_v25  ;;  %vm3285_vm6 = vcmp.eq.s32.totalorder %v3283_v29, 0  ;;  %vm3284_vm8 = vcmp.lt.s32.totalorder %v3283_v29, 2 }
 0x66d   :  { %vm8654_vm14 = vcmp.lt.s32.totalorder %v8653_v41, 0  ;;  %v3481_v19 = vsel %vm3398_vm13, %v3480_v40, %v3479_v52  ;;  %vm3491_vm4 = vcmp.eq.s32.totalorder %v3489_v62, 0  ;;  %vm3494_vm5 = vcmp.eq.s32.totalorder %v3489_v62, 2 }
 0x66e   :  { %9183 = vmatprep.subr.bf16.mxu1 %v3930_v63  ;;  %v3261_v10 = vsel %vm8654_vm14, 0, %v8653_v41  ;;  %v3484_v21 = vsel %vm12919_vm0, %v12595_v0, %v3481_v19  ;;  %vm3490_vm7 = vcmp.lt.s32.totalorder %v3489_v62, 2 }
 0x66f   :  { %v1265_v46 = vpop.trf.xlu0  ;;  %9184 = vmatpush3.bf16.msra.mxu1 %v3930_v63  ;;  %v3262_v26 = vsub.s32 32, %v3261_v10  ;;  %v3266_v8 = vsub.s32 4294967266, %v3261_v10  ;;  %v3263_v22 = vshll.u32 %v3254_v42, %v3261_v10  ;;  %10445 = vcosq.f32 %v3484_v21 }
 0x670   :  { %10447 = vsinq.f32 %v3484_v21 }
 0x671   :  { %v3264_v48 = vshrl.u32 %v3246_v4, %v3262_v26  ;;  %v3267_v58 = vadd.s32 127, %v3266_v8 }
 0x673   :  { %v1266_v53 = vpop.trf.xlu0  ;;  %v3265_v27 = vor.u32 %v3264_v48, %v3263_v22  ;;  %v3268_v45 = vshll.u32 %v3267_v58, 23  ;;  %v3786_v48 = vsel %vm3507_vm1, %v12894_v3, -inf  ;;  %v3854_v58 = vpop.xlane.xlu1 %3853 }
 0x674   :  { %v3931_v18 = vpack.c.bf16 %v1266_v53, %v1265_v46 }
 0x675   :  { %v3269_v16 = vor.u32 4788187, %v3268_v45  ;;  %v3272_v13 = vcvt.s32.f32 %v3265_v27 }
 0x676   :  { %9185 = vmatprep.subr.bf16.mxu1 %v3931_v18 }
 0x677   :  { %9186 = vmatpush3.bf16.msra.mxu1 %v3931_v18  ;;  %v3270_v6 = vand.u32 2147483647, %v3269_v16 }
 0x679   :  { %v3273_v39 = vmul.f32 %v3272_v13, %v3270_v6  ;;  %v10446_v42 = vpop.eup %10445 }
 0x67a   :  { %v10448_v9 = vpop.eup %10447  ;;  %v3495_v60 = vxor.u32 2147483648, %v10446_v42 }
 0x67b   :  { %v3274_v28 = vxor.u32 2147483648, %v3273_v39  ;;  %v3492_v25 = vxor.u32 2147483648, %v10448_v9 }
 0x67c   :  { %v3496_v11 = vsel %vm3494_vm5, %v3495_v60, %v10448_v9 }
 0x67d   :  { %v3275_v36 = vsel %vm3192_vm2, %v3274_v28, %v3273_v39  ;;  %v3493_v63 = vsel %vm3491_vm4, %v10446_v42, %v3492_v25  ;;  %v14958_v28 = vld [vmem:[#allocation32_spill] sm:$0xff] }
 0x67e   :  { %v3278_v55 = vsel %vm3191_vm3, %v12570_v23, %v3275_v36  ;;  %v3497_v46 = vsel %vm3490_vm7, %v3493_v63, %v3496_v11  ;;  %v3860_v23 = vpop.xlane.xlu1 %3859 }
 0x67f   :  { %10449 = vcosq.f32 %v3278_v55  ;;  %v3498_v26 = vsel %vm3488_vm10, nan, %v3497_v46 }
 0x680   :  { %10451 = vsinq.f32 %v3278_v55  ;;  %v3743_v22 = vmul.f32 %v12552_v43, %v3498_v26  ;;  %v8597_v43 = vld [vmem:[%s14789_s2 + $0x2] ss:$0 sm:$0xff] }
 0x682   :  { %v3789_v53 = vsel %vm3507_vm1, %v3743_v22, -inf  ;;  %v3863_v18 = vpop.xlane.xlu1 %3862 }
 0x683   :  { %10453 = vrcp.f32 %v3863_v18 }
 0x684   :  { %10455 = vrcp.f32 %v3854_v58 }
 0x685   :  { %10457 = vrcp.f32 %v3860_v23 }
 0x689   :  { %v10450_v47 = vpop.eup %10449 }
 0x68a   :  { %v10452_v51 = vpop.eup %10451  ;;  %v3289_v31 = vxor.u32 2147483648, %v10450_v47 }
 0x68b   :  { %v3286_v52 = vxor.u32 2147483648, %v10452_v51 }
 0x68c   :  { %v3290_v1 = vsel %vm3288_vm15, %v3289_v31, %v10452_v51 }
 0x68d   :  { %v3287_v41 = vsel %vm3285_vm6, %v10450_v47, %v3286_v52  ;;  %v10454_v19 = vpop.eup %10453 }
 0x68e   :  { %v3291_v10 = vsel %vm3284_vm8, %v3287_v41, %v3290_v1  ;;  %v10456_v27 = vpop.eup %10455  ;;  %v3911_v61 = vmul.f32 %v10454_v19, %v12515_v15 }
 0x68f   :  { %v3292_v40 = vsel %vm3282_vm9, nan, %v3291_v10  ;;  %v10458_v45 = vpop.eup %10457  ;;  %v3908_v16 = vmul.f32 %v10456_v27, %v12506_v38 }
 0x690   :  { %v3741_v4 = vmul.f32 %v12560_v32, %v3292_v40  ;;  %v8593_v32 = vld [vmem:[%s14788_s1 + $0x2] ss:$0 sm:$0xff]  ;;  %v3910_v6 = vmul.f32 %v10458_v45, %v12510_v57 }
 0x692   :  { %v3783_v8 = vsel %vm3507_vm1, %v3741_v4, -inf  ;;  %v3923_v39 = vpack.c.bf16 %v3911_v61, %v3910_v6 }
 0x693   :  { %3784 = vmax.xlane.f32.xlu1 %v3783_v8 }
 0x697   :  { %3787 = vmax.xlane.f32.xlu1 %v3786_v48 }
 0x69b   :  { %3790 = vmax.xlane.f32.xlu1 %v3789_v53 }
 0x6ac   :  { %1484 = vperm.xlu1 %9767, %v8593_v32  }
 0x6ad   :  { %v3857_v0 = vpop.xlane.xlu0 %3856 }
 0x6ae   :  { %10459 = vrcp.f32 %v3857_v0 }
 0x6b0   :  { %1540 = vperm.xlu1 %9767, %v8597_v43  }
 0x6b8   :  { %v10460_v20 = vpop.eup %10459 }
 0x6b9   :  { %v3909_v21 = vmul.f32 %v10460_v20, %v12574_v50 }
 0x6bb   :  { %v3922_v13 = vpack.c.bf16 %v3909_v21, %v3908_v16 }
 0x6bd   :  { %9187 = vmatprep.mubr.msk.bf16.mxu1 %vm3507_vm1, %v3922_v13 }
 0x6be   :  { %9188 = vmatmul.mubr.msk.bf16.vlgmr.msra.gmra.mrb[64].mxu1 %vm3507_vm1, %v3923_v39 }
 0x6d9   :  { %1371 = vxpose.xlu1.b32.start [1/4] (short) (narrow) %v12455_v34, 32 }
 0x6dd   :  { %1372 = vxpose.xlu1.b32.cont [2/4] (short) (narrow) %v12462_v2, 32 }
 0x6e1   :  { %1373 = vxpose.xlu1.b32.cont [3/4] (short) (narrow) %v12464_v35, 32 }
 0x6e5   :  { %1374 = vxpose.xlu1.b32.end [4/4] (short) (narrow) %v14958_v28, 32 }
 0x6f1   :  { %v3782_v15 = vpop.xlane.xlu1 %3781 }
 0x6f2   :  { %v3804_v50 = vsub.f32 %v12903_v54, %v3782_v15 }
 0x6f4   :  { %v3832_v33 = vmul.f32 1.442695, %v3804_v50 }
 0x720   :  { %v3785_v38 = vpop.xlane.xlu1 %3784 }
 0x721   :  { %v3805_v5 = vsub.f32 %v3741_v4, %v3785_v38 }
 0x723   :  { %v3834_v42 = vmul.f32 1.442695, %v3805_v5 }
 0x724   :  { %v3788_v17 = vpop.xlane.xlu1 %3787 }
 0x725   :  { %v3806_v57 = vsub.f32 %v12894_v3, %v3788_v17 }
 0x727   :  { %v3836_v36 = vmul.f32 1.442695, %v3806_v57 }
 0x728   :  { %v3791_v56 = vpop.xlane.xlu1 %3790 }
 0x729   :  { %10461 = vpow2.f32 %v3836_v36  ;;  %v3807_v55 = vsub.f32 %v3743_v22, %v3791_v56  ;;  %v14959_v36 = vld [vmem:[#allocation16_spill] sm:$0xff] }
 0x72a   :  { %10463 = vpow2.f32 %v3832_v33  ;;  %v14960_v56 = vunpack.i.h.bf16 %v14959_v36 }
 0x72b   :  { %v3838_v59 = vmul.f32 1.442695, %v3807_v55 }
 0x72c   :  { %v1485_v52 = vpop.permute.xlu1 %1484 }
 0x72d   :  { %10465 = vpow2.f32 %v3838_v59 }
 0x72e   :  { %10467 = vpow2.f32 %v3834_v42 }
 0x730   :  { %v1541_v1 = vpop.permute.xlu1 %1540 }
 0x733   :  { %v12964_v30 = vpop.eup %10461 }
 0x734   :  { %v3882_v9 = vsel %vm3507_vm1, %v12964_v30, 0.0  ;;  %v12968_v54 = vpop.eup %10463 }
 0x735   :  { %3883 = vadd.xlane.f32.xlu0 %v3882_v9  ;;  %v3876_v3 = vsel %vm3507_vm1, %v12968_v54, 0.0 }
 0x737   :  { %v12972_v37 = vpop.eup %10465 }
 0x738   :  { %v3885_v29 = vsel %vm3507_vm1, %v12972_v37, 0.0  ;;  %v12986_v31 = vpop.eup %10467 }
 0x739   :  { %3877 = vadd.xlane.f32.xlu0 %v3876_v3  ;;  %v3879_v11 = vsel %vm3507_vm1, %v12986_v31, 0.0 }
 0x73d   :  { %v12974_v62 = vpop.f32.mrb[60].mxu1  ;;  %3886 = vadd.xlane.f32.xlu0 %v3885_v29 }
 0x73e   :  { %v12976_v25 = vpop.f32.mrb[61].mxu1 }
 0x73f   :  { %v12978_v60 = vpop.f32.mrb[62].mxu1 }
 0x740   :  { %v4157_v47 = vpack.c.bf16 %v12978_v60, %v12974_v62  ;;  %v12984_v51 = vpop.f32.mrb[63].mxu1  ;;  %v14987_v62 = vld [vmem:[#allocation27_spill] sm:$0xff]  ;;  %v10185_v60 = vld [vmem:[#allocation7 + $0x4] ss:$8 sps:$4 sm:$0xff]  }
 0x741   :  { %v4156_v63 = vpack.c.bf16 %v12984_v51, %v12976_v25  ;;  %3880 = vadd.xlane.f32.xlu0 %v3879_v11  ;;  %v14985_v25 = vld [vmem:[#allocation23_spill] sm:$0xff]  ;;  %v14986_v51 = vld [vmem:[#allocation25_spill] sm:$0xff] }
 0x759   :  { %v1387_v41 = vpop.trf.xlu1 }
 0x75a   :  { %v1443_v46 = vsub.f32 %v12455_v34, %v1387_v41 }
 0x75c   :  { %v1499_v10 = vmul.f32 %v1485_v52, %v1443_v46 }
 0x75d   :  { %v1388_v40 = vpop.trf.xlu1 }
 0x75e   :  { %v1555_v4 = vadd.f32 %v1541_v1, %v1499_v10  ;;  %v1444_v26 = vsub.f32 %v12462_v2, %v1388_v40 }
 0x760   :  { %v1651_v8 = vand.u32 2147483647, %v1555_v4  ;;  %v1500_v22 = vmul.f32 %v1485_v52, %v1444_v26 }
 0x761   :  { %v1389_v48 = vpop.trf.xlu1 }
 0x762   :  { %v1653_v58 = vmul.f32 0.00048828125, %v1651_v8  ;;  %v1556_v53 = vadd.f32 %v1541_v1, %v1500_v22  ;;  %v1445_v23 = vsub.f32 %v12464_v35, %v1389_v48  ;;  %v1660_v35 = vand.u32 2147483648, %v1555_v4 }
 0x764   :  { %v1654_v18 = vfloor.f32 %v1653_v58  ;;  %v1662_v32 = vand.u32 2147483647, %v1556_v53  ;;  %v1501_v0 = vmul.f32 %v1485_v52, %v1445_v23  ;;  %v1671_v55 = vand.u32 2147483648, %v1556_v53  ;;  %v14963_v58 = vld [vmem:[#allocation20_spill] sm:$0xff] }
 0x765   :  { %v1390_v43 = vpop.trf.xlu1  ;;  %v14964_v53 = vunpack.i.h.bf16 %v14963_v58 }
 0x766   :  { %v1655_v19 = vmul.f32 2048.0, %v1654_v18  ;;  %v1664_v27 = vmul.f32 0.00048828125, %v1662_v32  ;;  %v1557_v45 = vadd.f32 %v1541_v1, %v1501_v0  ;;  %v1446_v34 = vsub.f32 %v14958_v28, %v1390_v43 }
 0x768   :  { %v1656_v20 = vsub.f32 %v1651_v8, %v1655_v19  ;;  %v1665_v61 = vfloor.f32 %v1664_v27  ;;  %v1673_v16 = vand.u32 2147483647, %v1557_v45  ;;  %v1502_v2 = vmul.f32 %v1485_v52, %v1446_v34  ;;  %v14961_v52 = vld [vmem:[#allocation17_spill] sm:$0xff] }
 0x769   :  { %v1682_v26 = vand.u32 2147483648, %v1557_v45  ;;  %v14965_v45 = vld [vmem:[#allocation21_spill] sm:$0xff] }
 0x76a   :  { %vm1657_vm12 = vcmp.eq.f32.partialorder %v1656_v20, 2048.0  ;;  %v1666_v21 = vmul.f32 2048.0, %v1665_v61  ;;  %v1675_v6 = vmul.f32 0.00048828125, %v1673_v16  ;;  %v1558_v39 = vadd.f32 %v1541_v1, %v1502_v2 }
 0x76b   :  { %v1658_v13 = vsel %vm1657_vm12, 0.0, %v1656_v20  ;;  %v14962_v1 = vunpack.i.h.bf16 %v14961_v52  ;;  %v14966_v34 = vunpack.i.h.bf16 %v14965_v45 }
 0x76c   :  { %v1659_v15 = vand.u32 2147483647, %v1658_v13  ;;  %v1667_v38 = vsub.f32 %v1662_v32, %v1666_v21  ;;  %v1676_v50 = vfloor.f32 %v1675_v6  ;;  %v1684_v17 = vand.u32 2147483647, %v1558_v39 }
 0x76d   :  { %v1693_v6 = vand.u32 2147483648, %v1558_v39 }
 0x76e   :  { %v1661_v57 = vor.u32 %v1660_v35, %v1659_v15  ;;  %vm1668_vm11 = vcmp.eq.f32.partialorder %v1667_v38, 2048.0  ;;  %v1677_v33 = vmul.f32 2048.0, %v1676_v50  ;;  %1275 = vxpose.xlu0.b32.start [1/4] (short) (narrow) %v14960_v56, 64  ;;  %v1686_v5 = vmul.f32 0.00048828125, %v1684_v17 }
 0x76f   :  { %v1669_v28 = vsel %vm1668_vm11, 0.0, %v1667_v38 }
 0x770   :  { %vm1747_vm14 = vcmp.ne.f32.partialorder %v1661_v57, 0.0  ;;  %vm1763_vm13 = vcmp.lt.f32.partialorder %v1661_v57, 0.0  ;;  %v1795_v59 = vadd.f32 2048.0, %v1661_v57  ;;  %v1670_v42 = vand.u32 2147483647, %v1669_v28 }
 0x771   :  { %vm1779_vm0 = vmand %vm1763_vm13, %vm1747_vm14  ;;  %v1678_v9 = vsub.f32 %v1673_v16, %v1677_v33  ;;  %v1687_v3 = vfloor.f32 %v1686_v5 }
 0x772   :  { %v1811_v29 = vsel %vm1779_vm0, %v1795_v59, %v1661_v57  ;;  %v1672_v11 = vor.u32 %v1671_v55, %v1670_v42  ;;  %1276 = vxpose.xlu0.b32.cont [2/4] (short) (narrow) %v14962_v1, 64 }
 0x773   :  { %v1827_v41 = vfloor.f32 %v1811_v29  ;;  %vm1679_vm2 = vcmp.eq.f32.partialorder %v1678_v9, 2048.0  ;;  %v1688_v46 = vmul.f32 2048.0, %v1687_v3 }
 0x774   :  { %vm1748_vm3 = vcmp.ne.f32.partialorder %v1672_v11, 0.0  ;;  %vm1764_vm4 = vcmp.lt.f32.partialorder %v1672_v11, 0.0  ;;  %v1796_v10 = vadd.f32 2048.0, %v1672_v11  ;;  %v1680_v40 = vsel %vm1679_vm2, 0.0, %v1678_v9 }
 0x775   :  { %vm1780_vm5 = vmand %vm1764_vm4, %vm1748_vm3  ;;  %v1681_v4 = vand.u32 2147483647, %v1680_v40  ;;  %v1689_v8 = vsub.f32 %v1684_v17, %v1688_v46  ;;  %v13000_v22 = vmul.f32 0.0030694604, %v1827_v41 }
 0x776   :  { %v1812_v48 = vsel %vm1780_vm5, %v1796_v10, %v1672_v11  ;;  %1277 = vxpose.xlu0.b32.cont [3/4] (short) (narrow) %v14964_v53, 64 }
 0x777   :  { %v1828_v23 = vfloor.f32 %v1812_v48  ;;  %v1683_v18 = vor.u32 %v1682_v26, %v1681_v4  ;;  %vm1690_vm15 = vcmp.eq.f32.partialorder %v1689_v8, 2048.0  ;;  %v2675_v32 = vand.u32 2147483647, %v13000_v22 }
 0x778   :  { %v1691_v0 = vsel %vm1690_vm15, 0.0, %v1689_v8  ;;  %v2678_v43 = vand.u32 2139095040, %v13000_v22 }
 0x779   :  { %vm1749_vm6 = vcmp.ne.f32.partialorder %v1683_v18, 0.0  ;;  %vm1765_vm7 = vcmp.lt.f32.partialorder %v1683_v18, 0.0  ;;  %v1797_v19 = vadd.f32 2048.0, %v1683_v18  ;;  %v1692_v27 = vand.u32 2147483647, %v1691_v0 }
 0x77a   :  { %vm1781_vm8 = vmand %vm1765_vm7, %vm1749_vm6  ;;  %1278 = vxpose.xlu0.b32.end [4/4] (short) (narrow) %v14966_v34, 64  ;;  %v2679_v20 = vshrl.u32 %v2678_v43, 23  ;;  %v2682_v16 = vand.u32 8388607, %v2675_v32  ;;  %v13010_v2 = vmul.f32 0.0030694604, %v1828_v23 }
 0x77b   :  { %v1813_v61 = vsel %vm1781_vm8, %v1797_v19, %v1683_v18  ;;  %v13013_v35 = vor.u32 %v1693_v6, %v1692_v27 }
 0x77c   :  { %v1829_v21 = vfloor.f32 %v1813_v61  ;;  %v8631_v13 = vadd.s32 4294967169, %v2679_v20  ;;  %v2778_v15 = vand.u32 2147483647, %v13010_v2  ;;  %v2781_v50 = vand.u32 2139095040, %v13010_v2 }
 0x77d   :  { %v2683_v17 = vor.u32 8388608, %v2682_v16  ;;  %vm1750_vm10 = vcmp.ne.f32.partialorder %v13013_v35, 0.0  ;;  %vm1766_vm12 = vcmp.lt.f32.partialorder %v13013_v35, 0.0  ;;  %v13023_v55 = vadd.f32 2048.0, %v13013_v35 }
 0x77e   :  { %v2685_v38 = vadd.s32 1, %v8631_v13  ;;  %v2785_v57 = vand.u32 8388607, %v2778_v15  ;;  %v2782_v33 = vshrl.u32 %v2781_v50, 23  ;;  %v13018_v36 = vmul.f32 0.0030694604, %v1829_v21  ;;  %vm13046_vm3 = vmand %vm1766_vm12, %vm1750_vm10 }
 0x77f   :  { %v13025_v5 = vshll.u32 %v2683_v17, 8  ;;  %vm2677_vm10 = vcmp.lt.s32.totalorder %v13000_v22, 0 }
 0x780   :  { %vm2686_vm9 = vcmp.gt.s32.totalorder %v2685_v38, 0  ;;  %v2786_v59 = vor.u32 8388608, %v2785_v57  ;;  %v8635_v3 = vadd.s32 4294967169, %v2782_v33  ;;  %v2884_v29 = vand.u32 2139095040, %v13018_v36 }
 0x781   :  { %v2687_v56 = vsel %vm2686_vm9, %v2685_v38, 0 }
 0x782   :  { %v2688_v39 = vshrl.u32 %v2687_v56, 5  ;;  %v2689_v28 = vand.u32 31, %v2687_v56  ;;  %v2788_v23 = vadd.s32 1, %v8635_v3  ;;  %v2885_v13 = vshrl.u32 %v2884_v29, 23 }
 0x784   :  { %v2690_v42 = vsub.s32 32, %v2689_v28  ;;  %v2692_v9 = vshll.u32 %v14912_v14, %v2689_v28  ;;  %v2695_v11 = vshll.u32 %v14907_v7, %v2689_v28  ;;  %v2698_v52 = vshll.u32 %v14908_v44, %v2689_v28 }
 0x785   :  { %v2701_v1 = vshll.u32 %v14906_v24, %v2689_v28  ;;  %v2704_v41 = vshll.u32 %v14895_v12, %v2689_v28  ;;  %vm2707_vm11 = vcmp.lt.s32.totalorder %v2688_v39, 1  ;;  %vm2708_vm14 = vcmp.lt.s32.totalorder %v2688_v39, 2 }
 0x786   :  { %v2693_v46 = vshrl.u32 %v14907_v7, %v2690_v42  ;;  %v2696_v10 = vshrl.u32 %v14908_v44, %v2690_v42  ;;  %v2699_v40 = vshrl.u32 %v14906_v24, %v2690_v42  ;;  %v2691_v4 = vshrl.u32 %v14912_v14, %v2690_v42 }
 0x787   :  { %v2702_v26 = vshrl.u32 %v14895_v12, %v2690_v42  ;;  %v2705_v8 = vshrl.u32 %v14896_v49, %v2690_v42  ;;  %vm2709_vm13 = vcmp.lt.s32.totalorder %v2688_v39, 3  ;;  %vm2710_vm0 = vcmp.lt.s32.totalorder %v2688_v39, 4 }
 0x788   :  { %v2694_v48 = vor.u32 %v2693_v46, %v2692_v9  ;;  %v2697_v58 = vor.u32 %v2696_v10, %v2695_v11  ;;  %v2700_v53 = vor.u32 %v2699_v40, %v2698_v52  ;;  %vm2789_vm2 = vcmp.gt.s32.totalorder %v2788_v23, 0 }
 0x789   :  { %v2703_v18 = vor.u32 %v2702_v26, %v2701_v1  ;;  %v2706_v0 = vor.u32 %v2705_v8, %v2704_v41  ;;  %v2790_v6 = vsel %vm2789_vm2, %v2788_v23, 0  ;;  %v1814_v39 = vsel %vm13046_vm3, %v13023_v55, %v13013_v35 }
 0x78a   :  { %v2711_v43 = vsel %vm2707_vm11, %v2691_v4, %v2694_v48  ;;  %v2712_v19 = vsel %vm2710_vm0, %v2700_v53, 2102212464  ;;  %v2715_v27 = vsel %vm2707_vm11, %v2694_v48, %v2697_v58  ;;  %v2719_v45 = vsel %vm2707_vm11, %v2697_v58, %v2700_v53 }
 0x78b   :  { %v2713_v34 = vsel %vm2709_vm13, %v2697_v58, %v2712_v19  ;;  %v2716_v20 = vsel %vm2710_vm0, %v2703_v18, 920167782  ;;  %v2720_v61 = vsel %vm2710_vm0, %v2706_v0, 1326507024  ;;  %v13053_v33 = vshrl.u32 %v2790_v6, 5 }
 0x78c   :  { %v2717_v16 = vsel %vm2709_vm13, %v2700_v53, %v2716_v20  ;;  %v2721_v21 = vsel %vm2709_vm13, %v2703_v18, %v2720_v61  ;;  %v2714_v50 = vsel %vm2708_vm14, %v2711_v43, %v2713_v34  ;;  %v2792_v3 = vand.u32 31, %v2790_v6 }
 0x78d   :  { %v2718_v17 = vsel %vm2708_vm14, %v2715_v27, %v2717_v16  ;;  %v2722_v57 = vsel %vm2708_vm14, %v2719_v45, %v2721_v21  ;;  %v2730_v11 = vmul.u32 %v13025_v5, %v2714_v50  ;;  %v13071_v52 = vshll.u32 %v2786_v59, 8 }
 0x78e   :  { %v13056_v56 = vmul.u32.u64.low %v13025_v5, %v2722_v57  ;;  %v13057_v28 = vmul.u32.u64.high %v13025_v5, %v2722_v57, %v13056_v56  ;;  %v13060_v42 = vmul.u32.u64.low %v13025_v5, %v2718_v17  ;;  %v13061_v9 = vmul.u32.u64.high %v13025_v5, %v2718_v17, %v13060_v42 }
 0x78f   :  { %v2881_v1 = vand.u32 2147483647, %v13018_v36  ;;  %v2793_v41 = vsub.s32 32, %v2792_v3  ;;  %v2795_v46 = vshll.u32 %v14912_v14, %v2792_v3  ;;  %vm2810_vm4 = vcmp.lt.s32.totalorder %v13053_v33, 1 }
 0x790   :  { %v8639_v10 = vadd.s32 4294967169, %v2885_v13  ;;  %vm2732_vm5 = vc.u32 %v13057_v28, %v13060_v42  ;;  %v2733_v4 = vadd.s32 1, %v13061_v9  ;;  %v2798_v35 = vshll.u32 %v14907_v7, %v2792_v3 }
 0x791   :  { %v13064_v29 = vpop.f32.mrb[64].mxu1  ;;  %v2801_v55 = vshll.u32 %v14908_v44, %v2792_v3  ;;  %v2796_v59 = vshrl.u32 %v14907_v7, %v2793_v41  ;;  %v2799_v26 = vshrl.u32 %v14908_v44, %v2793_v41  ;;  %v2802_v8 = vshrl.u32 %v14906_v24, %v2793_v41 }
 0x792   :  { %v13076_v40 = vpop.f32.mrb[65].mxu1  ;;  %v2804_v48 = vshll.u32 %v14906_v24, %v2792_v3  ;;  %v2734_v53 = vsel %vm2732_vm5, %v2733_v4, %v13061_v9  ;;  %v2805_v23 = vshrl.u32 %v14895_v12, %v2793_v41  ;;  %v2807_v18 = vshll.u32 %v14895_v12, %v2792_v3 }
 0x793   :  { %v13083_v5 = vpop.f32.mrb[66].mxu1  ;;  %v2808_v0 = vshrl.u32 %v14896_v49, %v2793_v41  ;;  %v2735_v43 = vadd.s32 %v2734_v53, %v2730_v11  ;;  %v2797_v19 = vor.u32 %v2796_v59, %v2795_v46  ;;  %v2800_v27 = vor.u32 %v2799_v26, %v2798_v35 }
 0x794   :  { %v13089_v58 = vpop.f32.mrb[67].mxu1  ;;  %v2803_v45 = vor.u32 %v2802_v8, %v2801_v55  ;;  %v2806_v34 = vor.u32 %v2805_v23, %v2804_v48  ;;  %vm2812_vm15 = vcmp.lt.s32.totalorder %v13053_v33, 3  ;;  %v2891_v61 = vadd.s32 1, %v8639_v10 }
 0x795   :  { %v2809_v20 = vor.u32 %v2808_v0, %v2807_v18  ;;  %v2736_v16 = vadd.s32 536870912, %v2735_v43  ;;  %v2794_v21 = vshrl.u32 %v14912_v14, %v2793_v41  ;;  %vm2813_vm6 = vcmp.lt.s32.totalorder %v13053_v33, 4 }
 0x796   :  { %v2818_v6 = vsel %vm2810_vm4, %v2797_v19, %v2800_v27  ;;  %v2815_v13 = vsel %vm2813_vm6, %v2803_v45, 2102212464  ;;  %v2819_v38 = vsel %vm2813_vm6, %v2806_v34, 920167782  ;;  %v2822_v50 = vsel %vm2810_vm4, %v2800_v27, %v2803_v45 }
 0x797   :  { %v2823_v17 = vsel %vm2813_vm6, %v2809_v20, 1326507024  ;;  %v13102_v57 = vshrl.u32 %v2736_v16, 30  ;;  %vm2811_vm7 = vcmp.lt.s32.totalorder %v13053_v33, 2  ;;  %v2820_v56 = vsel %vm2812_vm15, %v2803_v45, %v2819_v38 }
 0x798   :  { %v2824_v9 = vsel %vm2812_vm15, %v2806_v34, %v2823_v17  ;;  %v2814_v3 = vsel %vm2810_vm4, %v2794_v21, %v2797_v19  ;;  %v2821_v11 = vsel %vm2811_vm7, %v2818_v6, %v2820_v56  ;;  %vm2892_vm8 = vcmp.gt.s32.totalorder %v2891_v61, 0 }
 0x799   :  { %v2825_v41 = vsel %vm2811_vm7, %v2822_v50, %v2824_v9  ;;  %v2738_v46 = vshll.u32 %v13102_v57, 30  ;;  %v2816_v10 = vsel %vm2812_vm15, %v2800_v27, %v2815_v13  ;;  %v2893_v26 = vsel %vm2892_vm8, %v2891_v61, 0 }
 0x79a   :  { %v13119_v4 = vmul.u32.u64.low %v13071_v52, %v2825_v41  ;;  %v13120_v35 = vmul.u32.u64.high %v13071_v52, %v2825_v41, %v13119_v4  ;;  %v13123_v55 = vmul.u32.u64.low %v13071_v52, %v2821_v11  ;;  %v13124_v59 = vmul.u32.u64.high %v13071_v52, %v2821_v11, %v13123_v55 }
 0x79b   :  { %v2739_v8 = vsub.s32 %v2735_v43, %v2738_v46  ;;  %v2895_v48 = vand.u32 31, %v2893_v26  ;;  %v1830_v53 = vfloor.f32 %v1814_v39  ;;  %v2817_v23 = vsel %vm2811_vm7, %v2814_v3, %v2816_v10 }
 0x79c   :  { %v2888_v18 = vand.u32 8388607, %v2881_v1  ;;  %vm2835_vm9 = vc.u32 %v13120_v35, %v13123_v55  ;;  %v2836_v19 = vadd.s32 1, %v13124_v59  ;;  %v2833_v34 = vmul.u32 %v13071_v52, %v2817_v23 }
 0x79d   :  { %v2741_v0 = vsub.s32 0, %v2739_v8  ;;  %v2896_v27 = vsub.s32 32, %v2895_v48  ;;  %v2731_v43 = vadd.s32 %v13060_v42, %v13057_v28  ;;  %v13138_v20 = vmul.f32 0.0030694604, %v1830_v53 }
 0x79e   :  { %v2837_v39 = vsel %vm2835_vm9, %v2836_v19, %v13124_v59  ;;  %v2889_v33 = vor.u32 8388608, %v2888_v18  ;;  %v13140_v21 = vshrl.u32 %v2893_v26, 5  ;;  %v2907_v52 = vshll.u32 %v14906_v24, %v2895_v48 }
 0x79f   :  { %v8632_v45 = vmin.u32 %v2741_v0, %v2739_v8  ;;  %v2838_v16 = vadd.s32 %v2837_v39, %v2833_v34  ;;  %v2899_v6 = vshrl.u32 %v14907_v7, %v2896_v27  ;;  %v2902_v13 = vshrl.u32 %v14908_v44, %v2896_v27 }
 0x7a0   :  { %v2905_v38 = vshrl.u32 %v14906_v24, %v2896_v27  ;;  %v2908_v50 = vshrl.u32 %v14895_v12, %v2896_v27  ;;  %v2898_v17 = vshll.u32 %v14912_v14, %v2895_v48  ;;  %v2901_v56 = vshll.u32 %v14907_v7, %v2895_v48 }
 0x7a1   :  { %v2743_v61 = vclz %v8632_v45  ;;  %v2839_v42 = vadd.s32 536870912, %v2838_v16  ;;  %v2904_v9 = vshll.u32 %v14908_v44, %v2895_v48  ;;  %v2910_v11 = vshll.u32 %v14895_v12, %v2895_v48 }
 0x7a2   :  { %v2909_v3 = vor.u32 %v2908_v50, %v2907_v52  ;;  %v2911_v41 = vshrl.u32 %v14896_v49, %v2896_v27  ;;  %v2761_v46 = vsub.s32 4, %v13102_v57  ;;  %v2900_v4 = vor.u32 %v2899_v6, %v2898_v17 }
 0x7a3   :  { %v8633_v28 = vadd.s32 4294967294, %v2743_v61  ;;  %v13154_v10 = vshrl.u32 %v2839_v42, 30  ;;  %v2903_v26 = vor.u32 %v2902_v13, %v2901_v56  ;;  %v2906_v53 = vor.u32 %v2905_v38, %v2904_v9 }
 0x7a4   :  { %v2912_v23 = vor.u32 %v2911_v41, %v2910_v11  ;;  %vm2916_vm11 = vcmp.lt.s32.totalorder %v13140_v21, 4  ;;  %vm13160_vm14 = vcmp.le.f32.partialorder %v2675_v32, 0.7853982  ;;  %vm2913_vm13 = vcmp.lt.s32.totalorder %v13140_v21, 1 }
 0x7a5   :  { %vm8634_vm12 = vcmp.lt.s32.totalorder %v8633_v28, 0  ;;  %v2841_v19 = vshll.u32 %v13154_v10, 30  ;;  %vm2915_vm0 = vcmp.lt.s32.totalorder %v13140_v21, 3  ;;  %v2922_v45 = vsel %vm2916_vm11, %v2909_v3, 920167782 }
 0x7a6   :  { %v2746_v59 = vsel %vm8634_vm12, 0, %v8633_v28  ;;  %v2929_v34 = vshll.u32 %v2889_v33, 8  ;;  %v2921_v38 = vsel %vm2913_vm13, %v2900_v4, %v2903_v26  ;;  %v2923_v32 = vsel %vm2915_vm0, %v2906_v53, %v2922_v45 }
 0x7a7   :  { %v2747_v18 = vsub.s32 32, %v2746_v59  ;;  %v2751_v0 = vsub.s32 4294967266, %v2746_v59  ;;  %v2748_v39 = vshll.u32 %v2739_v8, %v2746_v59  ;;  %v2842_v13 = vsub.s32 %v2838_v16, %v2841_v19 }
 0x7a8   :  { %v2925_v52 = vsel %vm2913_vm13, %v2903_v26, %v2906_v53  ;;  %v2926_v50 = vsel %vm2916_vm11, %v2912_v23, 1326507024  ;;  %v2918_v8 = vsel %vm2916_vm11, %v2906_v53, 2102212464  ;;  %vm2914_vm2 = vcmp.lt.s32.totalorder %v13140_v21, 2 }
 0x7a9   :  { %v2749_v61 = vshrl.u32 %v2731_v43, %v2747_v18  ;;  %v2752_v6 = vadd.s32 127, %v2751_v0  ;;  %v2844_v17 = vsub.s32 0, %v2842_v13  ;;  %v2897_v43 = vshrl.u32 %v14912_v14, %v2896_v27 }
 0x7aa   :  { %v2927_v33 = vsel %vm2915_vm0, %v2909_v3, %v2926_v50  ;;  %v2987_v16 = vand.u32 2139095040, %v13138_v20  ;;  %v2924_v11 = vsel %vm2914_vm2, %v2921_v38, %v2923_v32  ;;  %v2762_v27 = vsel %vm2677_vm10, %v2761_v46, %v13102_v57 }
 0x7ab   :  { %v2750_v28 = vor.u32 %v2749_v61, %v2748_v39  ;;  %v2753_v42 = vshll.u32 %v2752_v6, 23  ;;  %v8636_v9 = vmin.u32 %v2844_v17, %v2842_v13  ;;  %v2928_v41 = vsel %vm2914_vm2, %v2925_v52, %v2927_v33 }
 0x7ac   :  { %v2917_v53 = vsel %vm2913_vm13, %v2897_v43, %v2900_v4  ;;  %v2919_v3 = vsel %vm2915_vm0, %v2903_v26, %v2918_v8  ;;  %v13194_v0 = vmul.u32.u64.low %v2929_v34, %v2928_v41  ;;  %v13195_v19 = vmul.u32.u64.high %v2929_v34, %v2928_v41, %v13194_v0 }
 0x7ad   :  { %v2754_v56 = vor.u32 4788187, %v2753_v42  ;;  %v2757_v59 = vcvt.s32.f32 %v2750_v28  ;;  %v2846_v18 = vclz %v8636_v9  ;;  %vm2780_vm3 = vcmp.lt.s32.totalorder %v13010_v2, 0 }
 0x7ae   :  { %v13198_v45 = vmul.u32.u64.low %v2929_v34, %v2924_v11  ;;  %v13199_v39 = vmul.u32.u64.high %v2929_v34, %v2924_v11, %v13198_v45  ;;  %v2988_v61 = vshrl.u32 %v2987_v16, 23  ;;  %v2764_v57 = vsel %vm13160_vm14, 0, %v2762_v27 }
 0x7af   :  { %v2755_v23 = vand.u32 2147483647, %v2754_v56  ;;  %v8637_v46 = vadd.s32 4294967294, %v2846_v18  ;;  %v4159_v4 = vpack.c.bf16 %v13083_v5, %v13064_v29  ;;  %v2920_v26 = vsel %vm2914_vm2, %v2917_v53, %v2919_v3  ;;  %v14992_v29 = vld [vmem:[#allocation18_spill] sm:$0xff] }
 0x7b0   :  { %v2984_v38 = vand.u32 2147483647, %v13138_v20  ;;  %v8643_v32 = vadd.s32 4294967169, %v2988_v61  ;;  %v4158_v52 = vpack.c.bf16 %v13089_v58, %v13076_v40  ;;  %v2834_v28 = vadd.s32 %v13123_v55, %v13120_v35  ;;  %v14990_v40 = vld [vmem:[#allocation12_spill] sm:$0xff]  ;;  %v14991_v58 = vld [vmem:[#allocation14_spill] sm:$0xff] }
 0x7b1   :  { %v2758_v6 = vmul.f32 %v2757_v59, %v2755_v23  ;;  %vm8638_vm4 = vcmp.lt.s32.totalorder %v8637_v46, 0  ;;  %vm2938_vm5 = vc.u32 %v13195_v19, %v13198_v45  ;;  %v2864_v17 = vsub.s32 4, %v13154_v10  ;;  %v14993_v5 = vld [vmem:[#allocation22_spill] sm:$0xff] }
 0x7b2   :  { %v2849_v42 = vsel %vm8638_vm4, 0, %v8637_v46  ;;  %v2939_v8 = vadd.s32 1, %v13199_v39  ;;  %v2994_v21 = vadd.s32 1, %v8643_v32  ;;  %v2936_v56 = vmul.u32 %v2929_v34, %v2920_v26 }
 0x7b3   :  { %v2759_v50 = vxor.u32 2147483648, %v2758_v6  ;;  %v2850_v33 = vsub.s32 32, %v2849_v42  ;;  %v2854_v16 = vsub.s32 4294967266, %v2849_v42  ;;  %v2851_v35 = vshll.u32 %v2842_v13, %v2849_v42 }
 0x7b4   :  { %v2940_v55 = vsel %vm2938_vm5, %v2939_v8, %v13199_v39  ;;  %vm2995_vm15 = vcmp.gt.s32.totalorder %v2994_v21, 0  ;;  %v2865_v27 = vsel %vm2780_vm3, %v2864_v17, %v13154_v10  ;;  %v2768_v3 = vand.u32 3, %v2764_v57 }
 0x7b5   :  { %v2760_v43 = vsel %vm2677_vm10, %v2759_v50, %v2758_v6  ;;  %v2852_v11 = vshrl.u32 %v2834_v28, %v2850_v33  ;;  %v2855_v41 = vadd.s32 127, %v2854_v16  ;;  %v2941_v59 = vadd.s32 %v2940_v55, %v2936_v56 }
 0x7b6   :  { %v2763_v9 = vsel %vm13160_vm14, %v13000_v22, %v2760_v43  ;;  %v2996_v53 = vsel %vm2995_vm15, %v2994_v21, 0  ;;  %vm13226_vm6 = vcmp.le.f32.partialorder %v2778_v15, 0.7853982  ;;  %v13236_v10 = vand.u32 8388607, %v2984_v38 }
 0x7b7   :  { %10469 = vcosq.f32 %v2763_v9  ;;  %v2853_v34 = vor.u32 %v2852_v11, %v2851_v35  ;;  %v2856_v23 = vshll.u32 %v2855_v41, 23  ;;  %v2942_v18 = vadd.s32 536870912, %v2941_v59 }
 0x7b8   :  { %10471 = vsinq.f32 %v2763_v9  ;;  %v2998_v13 = vand.u32 31, %v2996_v53  ;;  %v2867_v39 = vsel %vm13226_vm6, 0, %v2865_v27  ;;  %v13238_v6 = vshrl.u32 %v2996_v53, 5 }
 0x7b9   :  { %v2857_v0 = vor.u32 4788187, %v2856_v23  ;;  %v13232_v61 = vshrl.u32 %v2942_v18, 30  ;;  %vm2769_vm7 = vcmp.lt.s32.totalorder %v2768_v3, 2  ;;  %v2860_v15 = vcvt.s32.f32 %v2853_v34 }
 0x7ba   :  { %v2999_v57 = vsub.s32 32, %v2998_v13  ;;  %vm2767_vm8 = vweird.f32 %v13000_v22  ;;  %vm2770_vm9 = vcmp.eq.s32.totalorder %v2768_v3, 0  ;;  %vm2773_vm10 = vcmp.eq.s32.totalorder %v2768_v3, 2 }
 0x7bb   :  { %v2858_v46 = vand.u32 2147483647, %v2857_v0  ;;  %v2944_v26 = vshll.u32 %v13232_v61, 30  ;;  %v13242_v32 = vand.u32 3, %v2867_v39  ;;  %v2992_v17 = vor.u32 8388608, %v13236_v10 }
 0x7bc   :  { %v3002_v50 = vshrl.u32 %v14907_v7, %v2999_v57  ;;  %v3005_v8 = vshrl.u32 %v14908_v44, %v2999_v57  ;;  %v2937_v43 = vadd.s32 %v13198_v45, %v13195_v19  ;;  %v3001_v33 = vshll.u32 %v14912_v14, %v2998_v13 }
 0x7bd   :  { %v2861_v28 = vmul.f32 %v2860_v15, %v2858_v46  ;;  %v13245_v42 = vsub.s32 %v2941_v59, %v2944_v26  ;;  %v3008_v16 = vshrl.u32 %v14906_v24, %v2999_v57  ;;  %vm3016_vm12 = vcmp.lt.s32.totalorder %v13238_v6, 1 }
 0x7be   :  { %v3004_v55 = vshll.u32 %v14907_v7, %v2998_v13  ;;  %v3011_v11 = vshrl.u32 %v14895_v12, %v2999_v57  ;;  %v3003_v27 = vor.u32 %v3002_v50, %v3001_v33  ;;  %v3007_v53 = vshll.u32 %v14908_v44, %v2998_v13  ;;  %v14973_v33 = vld [vmem:[#allocation34_spill] sm:$0xff] }
 0x7bf   :  { %v2862_v9 = vxor.u32 2147483648, %v2861_v28  ;;  %v2947_v35 = vsub.s32 0, %v13245_v42  ;;  %v3010_v19 = vshll.u32 %v14906_v24, %v2998_v13  ;;  %v3014_v46 = vshrl.u32 %v14896_v49, %v2999_v57 }
 0x7c0   :  { %v3006_v18 = vor.u32 %v3005_v8, %v3004_v55  ;;  %v3009_v10 = vor.u32 %v3008_v16, %v3007_v53  ;;  %v3000_v50 = vshrl.u32 %v14912_v14, %v2999_v57  ;;  %vm3019_vm11 = vcmp.lt.s32.totalorder %v13238_v6, 4 }
 0x7c1   :  { %v10470_v56 = vpop.eup %10469  ;;  %v2863_v34 = vsel %vm2780_vm3, %v2862_v9, %v2861_v28  ;;  %v8640_v23 = vmin.u32 %v2947_v35, %v13245_v42  ;;  %v3012_v15 = vor.u32 %v3011_v11, %v3010_v19  ;;  %v3013_v28 = vshll.u32 %v14895_v12, %v2998_v13 }
 0x7c2   :  { %v13249_v21 = vpop.xlane.xlu0 %3883  ;;  %v10472_v41 = vpop.eup %10471  ;;  %v2774_v59 = vxor.u32 2147483648, %v10470_v56  ;;  %v2866_v7 = vsel %vm13226_vm6, %v13010_v2, %v2863_v34  ;;  %v3021_v3 = vsel %vm3019_vm11, %v3009_v10, 2102212464  ;;  %v3024_v14 = vsel %vm3016_vm12, %v3003_v27, %v3006_v18 }
 0x7c3   :  { %v2771_v45 = vxor.u32 2147483648, %v10472_v41  ;;  %v2949_v44 = vclz %v8640_v23  ;;  %vm3017_vm13 = vcmp.lt.s32.totalorder %v13238_v6, 2  ;;  %vm3018_vm0 = vcmp.lt.s32.totalorder %v13238_v6, 3 }
 0x7c4   :  { %v2775_v39 = vsel %vm2773_vm10, %v2774_v59, %v10472_v41  ;;  %v3025_v12 = vsel %vm3019_vm11, %v3012_v15, 920167782  ;;  %v3020_v57 = vsel %vm3016_vm12, %v3000_v50, %v3003_v27  ;;  %v3022_v11 = vsel %vm3018_vm0, %v3006_v18, %v3021_v3 }
 0x7c5   :  { %v2772_v24 = vsel %vm2770_vm9, %v10470_v56, %v2771_v45  ;;  %v8641_v48 = vadd.s32 4294967294, %v2949_v44  ;;  %v3015_v56 = vor.u32 %v3014_v46, %v3013_v28  ;;  %v3026_v9 = vsel %vm3018_vm0, %v3009_v10, %v3025_v12 }
 0x7c6   :  { %v3878_v0 = vpop.xlane.xlu0 %3877  ;;  %v2776_v26 = vsel %vm2769_vm7, %v2772_v24, %v2775_v39  ;;  %v3027_v41 = vsel %vm3017_vm13, %v3024_v14, %v3026_v9  ;;  %v3028_v19 = vsel %vm3016_vm12, %v3006_v18, %v3009_v10  ;;  %v3032_v45 = vshll.u32 %v2992_v17, 8 }
 0x7c7   :  { %10473 = vrcp.f32 %v3878_v0  ;;  %v2777_v8 = vsel %vm2767_vm8, nan, %v2776_v26  ;;  %vm8642_vm14 = vcmp.lt.s32.totalorder %v8641_v48, 0  ;;  %v3029_v27 = vsel %vm3019_vm11, %v3015_v56, 1326507024 }
 0x7c8   :  { %10475 = vcosq.f32 %v2866_v7  ;;  %v13278_v16 = vmul.f32 %v14973_v33, %v2777_v8  ;;  %v2952_v13 = vsel %vm8642_vm14, 0, %v8641_v48  ;;  %v3030_v0 = vsel %vm3018_vm0, %v3012_v15, %v3029_v27 }
 0x7c9   :  { %10477 = vsinq.f32 %v2866_v7  ;;  %v2953_v35 = vsub.s32 32, %v2952_v13  ;;  %v2957_v55 = vsub.s32 4294967266, %v2952_v13  ;;  %v2954_v53 = vshll.u32 %v13245_v42, %v2952_v13 }
 0x7ca   :  { %v13275_v49 = vpop.xlane.xlu0 %3886  ;;  %v3768_v22 = vsel %vm3507_vm1, %v13278_v16, -inf  ;;  %v3023_v39 = vsel %vm3017_vm13, %v3020_v57, %v3022_v11  ;;  %v3031_v7 = vsel %vm3017_vm13, %v3028_v19, %v3030_v0  ;;  %vm2873_vm2 = vcmp.eq.s32.totalorder %v13242_v32, 0 }
 0x7cb   :  { %3769 = vmax.xlane.f32.xlu1 %v3768_v22  ;;  %v2955_v34 = vshrl.u32 %v2937_v43, %v2953_v35  ;;  %v2958_v23 = vadd.s32 127, %v2957_v55  ;;  %v13309_v42 = vmul.u32.u64.low %v3032_v45, %v3027_v41  ;;  %v13310_v46 = vmul.u32.u64.high %v3032_v45, %v3027_v41, %v13309_v42  ;;  %v14974_v35 = vld [vmem:[#allocation36_spill] sm:$0xff] }
 0x7cc   :  { %v13313_v17 = vmul.u32.u64.low %v3032_v45, %v3031_v7  ;;  %v13314_v44 = vmul.u32.u64.high %v3032_v45, %v3031_v7, %v13313_v17  ;;  %vm2876_vm3 = vcmp.eq.s32.totalorder %v13242_v32, 2  ;;  %v3039_v6 = vmul.u32 %v3032_v45, %v3023_v39 }
 0x7cd   :  { %v2956_v10 = vor.u32 %v2955_v34, %v2954_v53  ;;  %v2959_v24 = vshll.u32 %v2958_v23, 23  ;;  %v3042_v8 = vadd.s32 1, %v13310_v46  ;;  %vm2872_vm5 = vcmp.lt.s32.totalorder %v13242_v32, 2 }
 0x7ce   :  { %v3881_v59 = vpop.xlane.xlu0 %3880  ;;  %vm3041_vm4 = vc.u32 %v13314_v44, %v13309_v42  ;;  %vm2870_vm15 = vweird.f32 %v13010_v2  ;;  %vm13329_vm6 = vcmp.le.f32.partialorder %v2881_v1, 0.7853982  ;;  %vm2883_vm7 = vcmp.lt.s32.totalorder %v13018_v36, 0 }
 0x7cf   :  { %10479 = vrcp.f32 %v3881_v59  ;;  %v2960_v50 = vor.u32 4788187, %v2959_v24  ;;  %v2963_v56 = vcvt.s32.f32 %v2956_v10  ;;  %v3043_v14 = vsel %vm3041_vm4, %v3042_v8, %v13310_v46 }
 0x7d0   :  { %v3044_v13 = vadd.s32 %v3043_v14, %v3039_v6  ;;  %v2967_v27 = vsub.s32 4, %v13232_v61  ;;  %vm2973_vm11 = vweird.f32 %v13018_v36  ;;  %vm2986_vm14 = vcmp.lt.s32.totalorder %v13138_v20, 0 }
 0x7d1   :  { %v10474_v18 = vpop.eup %10473  ;;  %v2961_v33 = vand.u32 2147483647, %v2960_v50  ;;  %vm13357_vm13 = vcmp.le.f32.partialorder %v2984_v38, 0.7853982  ;;  %vm3076_vm4 = vweird.f32 %v13138_v20 }
 0x7d2   :  { %v10476_v43 = vpop.eup %10475  ;;  %v3045_v41 = vadd.s32 536870912, %v3044_v13  ;;  %v3916_v2 = vmul.f32 %v10474_v18, %v12968_v54  ;;  %v2968_v54 = vsel %vm2883_vm7, %v2967_v27, %v13232_v61 }
 0x7d3   :  { %v10478_v26 = vpop.eup %10477  ;;  %v2877_v15 = vxor.u32 2147483648, %v10476_v43  ;;  %v2964_v22 = vmul.f32 %v2963_v56, %v2961_v33  ;;  %v2970_v39 = vsel %vm13329_vm6, 0, %v2968_v54 }
 0x7d4   :  { %v2874_v28 = vxor.u32 2147483648, %v10478_v26  ;;  %v3046_v45 = vshrl.u32 %v3045_v41, 30  ;;  %v2974_v46 = vand.u32 3, %v2970_v39 }
 0x7d5   :  { %v2878_v48 = vsel %vm2876_vm3, %v2877_v15, %v10478_v26  ;;  %v2965_v11 = vxor.u32 2147483648, %v2964_v22 }
 0x7d6   :  { %v2875_v3 = vsel %vm2873_vm2, %v10476_v43, %v2874_v28  ;;  %v3047_v23 = vshll.u32 %v3046_v45, 30  ;;  %vm2979_vm8 = vcmp.eq.s32.totalorder %v2974_v46, 2  ;;  %vm2975_vm10 = vcmp.lt.s32.totalorder %v2974_v46, 2 }
 0x7d7   :  { %v2879_v12 = vsel %vm2872_vm5, %v2875_v3, %v2878_v48  ;;  %v2966_v19 = vsel %vm2883_vm7, %v2965_v11, %v2964_v22  ;;  %vm2976_vm12 = vcmp.eq.s32.totalorder %v2974_v46, 0  ;;  %v3040_v28 = vadd.s32 %v13309_v42, %v13314_v44 }
 0x7d8   :  { %v2880_v57 = vsel %vm2870_vm15, nan, %v2879_v12  ;;  %v2969_v1 = vsel %vm13329_vm6, %v13018_v36, %v2966_v19  ;;  %v14977_v12 = vld [vmem:[#allocation33_spill] sm:$0xff]  ;;  %v3070_v27 = vsub.s32 4, %v3046_v45 }
 0x7d9   :  { %v10480_v9 = vpop.eup %10479  ;;  %v13325_v55 = vmul.f32 %v14974_v35, %v2880_v57  ;;  %10481 = vcosq.f32 %v2969_v1 }
 0x7da   :  { %v3917_v32 = vmul.f32 %v10480_v9, %v12986_v31  ;;  %10483 = vsinq.f32 %v2969_v1  ;;  %v3048_v31 = vsub.s32 %v3044_v13, %v3047_v23  ;;  %v3071_v54 = vsel %vm2986_vm14, %v3070_v27, %v3046_v45 }
 0x7db   :  { %v3771_v53 = vsel %vm3507_vm1, %v13325_v55, -inf  ;;  %v3073_v38 = vsel %vm13357_vm13, 0, %v3071_v54 }
 0x7dc   :  { %3772 = vmax.xlane.f32.xlu0 %v3771_v53  ;;  %v3926_v34 = vpack.c.bf16 %v3917_v32, %v3916_v2  ;;  %v3050_v0 = vsub.s32 0, %v3048_v31  ;;  %v3077_v39 = vand.u32 3, %v3073_v38  ;;  %v10197_v53 = vld [vmem:[#allocation7 + $0x40] ss:$8 sps:$4 sm:$0xff]  }
 0x7de   :  { %9203 = vmatprep.mubr.msk.bf16.mxu1 %vm3507_vm1, %v3926_v34  ;;  %v8644_v7 = vmin.u32 %v3050_v0, %v3048_v31  ;;  %vm3082_vm0 = vcmp.eq.s32.totalorder %v3077_v39, 2  ;;  %vm3079_vm2 = vcmp.eq.s32.totalorder %v3077_v39, 0  ;;  %vm3078_vm3 = vcmp.lt.s32.totalorder %v3077_v39, 2 }
 0x7e0   :  { %v3052_v18 = vclz %v8644_v7 }
 0x7e2   :  { %v8645_v24 = vadd.s32 4294967294, %v3052_v18 }
 0x7e3   :  { %v10482_v10 = vpop.eup %10481 }
 0x7e4   :  { %v10484_v17 = vpop.eup %10483  ;;  %v2980_v43 = vxor.u32 2147483648, %v10482_v10  ;;  %vm8646_vm9 = vcmp.lt.s32.totalorder %v8645_v24, 0 }
 0x7e5   :  { %v2977_v26 = vxor.u32 2147483648, %v10484_v17  ;;  %v3055_v50 = vsel %vm8646_vm9, 0, %v8645_v24 }
 0x7e6   :  { %v2981_v15 = vsel %vm2979_vm8, %v2980_v43, %v10484_v17  ;;  %v3056_v6 = vsub.s32 32, %v3055_v50  ;;  %v3060_v8 = vsub.s32 4294967266, %v3055_v50  ;;  %v3057_v56 = vshll.u32 %v3048_v31, %v3055_v50 }
 0x7e7   :  { %v2978_v61 = vsel %vm2976_vm12, %v10482_v10, %v2977_v26 }
 0x7e8   :  { %v2982_v48 = vsel %vm2975_vm10, %v2978_v61, %v2981_v15  ;;  %v3058_v3 = vshrl.u32 %v3040_v28, %v3056_v6  ;;  %v3061_v14 = vadd.s32 127, %v3060_v8  ;;  %v10179_v6 = vld [vmem:[%s14796_s9 + $0x4] ss:$8 sps:$4 sm:$0xff]   ;;  %v14980_v8 = vld [vmem:[#allocation35_spill] sm:$0xff] }
 0x7e9   :  { %v2983_v33 = vsel %vm2973_vm11, nan, %v2982_v48 }
 0x7ea   :  { %v13350_v22 = vmul.f32 %v14977_v12, %v2983_v33  ;;  %v3059_v57 = vor.u32 %v3058_v3, %v3057_v56  ;;  %v3062_v9 = vshll.u32 %v3061_v14, 23  ;;  %v10182_v3 = vld [vmem:[%s14796_s9 + $0x14] ss:$8 sps:$4 sm:$0xff]   ;;  %v14981_v14 = vmov 0   ;;  %v14982_v12 = vld [vmem:[#allocation13_spill] sm:$0xff] }
 0x7ec   :  { %v3774_v35 = vsel %vm3507_vm1, %v13350_v22, -inf  ;;  %v3063_v42 = vor.u32 4788187, %v3062_v9  ;;  %v3066_v41 = vcvt.s32.f32 %v3059_v57  ;;  %v14984_v57 = vld [vmem:[#allocation19_spill] sm:$0xff]  ;;  %v14996_v9 = vld [vmem:[#allocation28_spill] sm:$0xff] }
 0x7ed   :  { %3775 = vmax.xlane.f32.xlu1 %v3774_v35  ;;  %v10183_v35 = vld [vmem:[#allocation7] ss:$8 sps:$4 sm:$0xff]  }
 0x7ee   :  { %v1291_v13 = vpop.trf.xlu0  ;;  %v3064_v11 = vand.u32 2147483647, %v3063_v42  ;;  %v14997_v42 = vld [vmem:[#allocation30_spill] sm:$0xff] }
 0x7f0   :  { %v3067_v59 = vmul.f32 %v3066_v41, %v3064_v11  ;;  %v10188_v11 = vld [vmem:[#allocation7 + $0x10] ss:$8 sps:$4 sm:$0xff]   ;;  %v10189_v41 = vld [vmem:[#allocation7 + $0x24] ss:$8 sps:$4 sm:$0xff]  }
 0x7f2   :  { %v1292_v44 = vpop.trf.xlu0  ;;  %v3068_v32 = vxor.u32 2147483648, %v3067_v59 }
 0x7f3   :  { %v3932_v36 = vpack.c.bf16 %v1292_v44, %v1291_v13  ;;  %v14983_v13 = vld [vmem:[#allocation15_spill] sm:$0xff] }
 0x7f4   :  { %v3069_v19 = vsel %vm2986_vm14, %v3068_v32, %v3067_v59  ;;  %v10186_v44 = vld [vmem:[#allocation7 + $0x14] ss:$8 sps:$4 sm:$0xff]   ;;  %v10195_v32 = vld [vmem:[#allocation7 + $0x44] ss:$8 sps:$4 sm:$0xff]  }
 0x7f5   :  { %9191 = vmatprep.subr.bf16.mxu0 %v3932_v36  ;;  %v3072_v1 = vsel %vm13357_vm13, %v13138_v20, %v3069_v19  ;;  %v10192_v59 = vld [vmem:[#allocation7 + $0x34] ss:$8 sps:$4 sm:$0xff]  }
 0x7f6   :  { %v1293_v2 = vpop.trf.xlu0  ;;  %9192 = vmatpush3.bf16.msra.mxu0 %v3932_v36  ;;  %10485 = vcosq.f32 %v3072_v1  ;;  %v10191_v36 = vld [vmem:[#allocation7 + $0x20] ss:$8 sps:$4 sm:$0xff]   ;;  %v10198_v19 = vld [vmem:[#allocation7 + $0x54] ss:$8 sps:$4 sm:$0xff]  }
 0x7f7   :  { %10487 = vsinq.f32 %v3072_v1 }
 0x7f8   :  { %10489 = vrcp.f32 %v13275_v49 }
 0x7f9   :  { %10491 = vrcp.f32 %v13249_v21 }
 0x7fa   :  { %v1294_v34 = vpop.trf.xlu0 }
 0x7fb   :  { %v3933_v23 = vpack.c.bf16 %v1294_v34, %v1293_v2  ;;  %v10194_v2 = vld [vmem:[#allocation7 + $0x30] ss:$8 sps:$4 sm:$0xff]  }
 0x7fc   :  { %v10200_v34 = vld [vmem:[#allocation7 + $0x50] ss:$8 sps:$4 sm:$0xff]  }
 0x7fd   :  { %9193 = vmatprep.subr.bf16.mxu0 %v3933_v23 }
 0x7fe   :  { %v1295_v31 = vpop.trf.xlu0  ;;  %9194 = vmatpush3.bf16.msra.mxu0 %v3933_v23 }
 0x800   :  { %v10486_v46 = vpop.eup %10485 }
 0x801   :  { %v10488_v18 = vpop.eup %10487  ;;  %v3083_v10 = vxor.u32 2147483648, %v10486_v46 }
 0x802   :  { %v1296_v0 = vpop.trf.xlu0  ;;  %v3080_v45 = vxor.u32 2147483648, %v10488_v18  ;;  %v10490_v17 = vpop.eup %10489 }
 0x803   :  { %v3934_v7 = vpack.c.bf16 %v1296_v0, %v1295_v31  ;;  %v3084_v49 = vsel %vm3082_vm0, %v3083_v10, %v10488_v18  ;;  %v10492_v21 = vpop.eup %10491  ;;  %v3919_v50 = vmul.f32 %v10490_v17, %v12972_v37  ;;  %v10177_v37 = vld [vmem:[%s14796_s9] ss:$8 sps:$4 sm:$0xff]   ;;  %v10201_v31 = vld [vmem:[#allocation7 + $0x64] ss:$8 sps:$4 sm:$0xff]   ;;  %v10204_v10 = vld [vmem:[#allocation7 + $0x74] ss:$8 sps:$4 sm:$0xff]  }
 0x804   :  { %v3081_v43 = vsel %vm3079_vm2, %v10486_v46, %v3080_v45  ;;  %v3918_v33 = vmul.f32 %v10492_v21, %v12964_v30  ;;  %v10180_v30 = vld [vmem:[%s14796_s9 + $0x10] ss:$8 sps:$4 sm:$0xff]   ;;  %v10203_v18 = vld [vmem:[#allocation7 + $0x60] ss:$8 sps:$4 sm:$0xff]   ;;  %v10207_v45 = vld [vmem:[#allocation7 + $0x84] ss:$8 sps:$4 sm:$0xff]  }
 0x805   :  { %9199 = vmatprep.subr.bf16.mxu1 %v3934_v7  ;;  %v3085_v26 = vsel %vm3078_vm3, %v3081_v43, %v3084_v49  ;;  %v10209_v43 = vld [vmem:[#allocation7 + $0x80] ss:$8 sps:$4 sm:$0xff]  }
 0x806   :  { %v1297_v24 = vpop.trf.xlu0  ;;  %9200 = vmatpush3.bf16.msra.mxu1 %v3934_v7  ;;  %v3086_v61 = vsel %vm3076_vm4, nan, %v3085_v26  ;;  %v3927_v20 = vpack.c.bf16 %v3919_v50, %v3918_v33  ;;  %v10210_v26 = vld [vmem:[#allocation7 + $0x94] ss:$8 sps:$4 sm:$0xff]  }
 0x807   :  { %v13374_v48 = vmul.f32 %v14980_v8, %v3086_v61  ;;  %v10212_v61 = vld [vmem:[#allocation7 + $0x90] ss:$8 sps:$4 sm:$0xff]   ;;  %v10215_v8 = vld [vmem:[#allocation7 + $0xa0] ss:$8 sps:$4 sm:$0xff]   ;;  %v10216_v33 = vld [vmem:[#allocation7 + $0xb4] ss:$8 sps:$4 sm:$0xff]  }
 0x809   :  { %v3777_v56 = vsel %vm3507_vm1, %v13374_v48, -inf }
 0x80a   :  { %v1298_v15 = vpop.trf.xlu0  ;;  %3778 = vmax.xlane.f32.xlu1 %v3777_v56 }
 0x80b   :  { %v3935_v28 = vpack.c.bf16 %v1298_v15, %v1297_v24  ;;  %v10206_v24 = vld [vmem:[#allocation7 + $0x70] ss:$8 sps:$4 sm:$0xff]  }
 0x80d   :  { %9201 = vmatprep.subr.bf16.mxu1 %v3935_v28 }
 0x80e   :  { %9202 = vmatpush3.bf16.msra.mxu1 %v3935_v28  ;;  %v10213_v28 = vld [vmem:[#allocation7 + $0xa4] ss:$8 sps:$4 sm:$0xff]  }
 0x80f   :  { %4196 = vmatprep.subr.bf16.mxu1 %v10179_v6 }
 0x811   :  { %9204 = vmatmul.mubr.msk.bf16.vlgmr.msra.gmra.mrb[68].mxu1 %vm3507_vm1, %v3927_v20  ;;  %v10218_v20 = vld [vmem:[#allocation7 + $0xb0] ss:$8 sps:$4 sm:$0xff]  }
 0x812   :  { %4197 = vmatpush1.bf16.msra.mxu1 %v10177_v37  ;;  %4228 = vmatprep.mubr.bf16.mxu1 %v14981_v14 }
 0x813   :  { %4198 = vmatprep.subr.bf16.mxu1 %v10182_v3  ;;  %v10219_v3 = vld [vmem:[#allocation7 + $0xc4] ss:$8 sps:$4 sm:$0xff]  }
 0x816   :  { %4199 = vmatpush1.bf16.msra.mxu1 %v10180_v30  ;;  %v10222_v30 = vld [vmem:[#allocation7 + $0xd4] ss:$8 sps:$4 sm:$0xff]  }
 0x817   :  { %4838 = vmatprep.subr.bf16.mxu1 %v14981_v14 }
 0x819   :  { %8683 = vmatmul.mubr.msk.bf16.vlgmr.msra.gmra.mrb[72].mxu1 %vm3507_vm1, %v4156_v63  ;;  %v14989_v63 = vld [vmem:[#allocation31_spill] sm:$0xff] }
 0x81a   :  { %4839 = vmatpush1.bf16.msra.mxu1 %v14982_v12  ;;  %4238 = vmatprep.mubr.bf16.mxu1 %v14981_v14  ;;  %v10224_v12 = vld [vmem:[#allocation7 + $0xd0] ss:$8 sps:$4 sm:$0xff]  }
 0x81b   :  { %4840 = vmatprep.subr.bf16.mxu1 %v14981_v14 }
 0x81e   :  { %4841 = vmatpush1.bf16.msra.mxu1 %v14983_v13  ;;  %v10225_v13 = vld [vmem:[#allocation7 + $0xe4] ss:$8 sps:$4 sm:$0xff]  }
 0x81f   :  { %4842 = vmatprep.subr.bf16.mxu1 %v14981_v14 }
 0x821   :  { %8684 = vmatmul.mubr.msk.bf16.gmra.mrb[76].mxu1 %vm3507_vm1, %v4157_v47  ;;  %v14988_v47 = vld [vmem:[#allocation29_spill] sm:$0xff] }
 0x822   :  { %4843 = vmatpush1.bf16.msra.mxu1 %v14984_v57  ;;  %4248 = vmatprep.mubr.bf16.mxu1 %v14981_v14  ;;  %v10227_v57 = vld [vmem:[#allocation7 + $0xe0] ss:$8 sps:$4 sm:$0xff]  }
 0x823   :  { %4844 = vmatprep.subr.bf16.mxu1 %v14981_v14 }
 0x826   :  { %4845 = vmatpush1.bf16.msra.mxu1 %v14985_v25  ;;  %v10228_v25 = vld [vmem:[#allocation7 + $0xf4] ss:$8 sps:$4 sm:$0xff]  }
 0x827   :  { %4846 = vmatprep.subr.bf16.mxu1 %v14981_v14 }
 0x829   :  { %8685 = vmatmul.mubr.msk.bf16.gmra.mrb[80].mxu1 %vm3507_vm1, %v4158_v52  ;;  %v14995_v52 = vld [vmem:[#allocation26_spill] sm:$0xff] }
 0x82a   :  { %4847 = vmatpush1.bf16.msra.mxu1 %v14986_v51  ;;  %4258 = vmatprep.mubr.bf16.mxu1 %v14981_v14  ;;  %v10230_v51 = vld [vmem:[#allocation7 + $0xf0] ss:$8 sps:$4 sm:$0xff]  }
 0x82b   :  { %4848 = vmatprep.subr.bf16.mxu1 %v14981_v14 }
 0x82e   :  { %4849 = vmatpush1.bf16.msra.mxu1 %v14987_v62  ;;  %v10231_v62 = vld [vmem:[#allocation7 + $0x104] ss:$8 sps:$4 sm:$0xff]  }
 0x82f   :  { %4850 = vmatprep.subr.bf16.mxu1 %v14981_v14 }
 0x831   :  { %8686 = vmatmul.mubr.msk.bf16.gmra.mrb[84].mxu1 %vm3507_vm1, %v4159_v4  ;;  %v14994_v4 = vld [vmem:[#allocation24_spill] sm:$0xff] }
 0x832   :  { %4851 = vmatpush1.bf16.msra.mxu1 %v14988_v47  ;;  %4870 = vmatprep.mubr.bf16.mxu1 %v10185_v60  ;;  %v10233_v60 = vld [vmem:[#allocation7 + $0x100] ss:$8 sps:$4 sm:$0xff]   ;;  %v10234_v47 = vld [vmem:[#allocation7 + $0x114] ss:$8 sps:$4 sm:$0xff]  }
 0x833   :  { %4852 = vmatprep.subr.bf16.mxu1 %v14981_v14 }
 0x836   :  { %4853 = vmatpush1.bf16.msra.mxu1 %v14989_v63  ;;  %v10236_v63 = vld [vmem:[#allocation7 + $0x110] ss:$8 sps:$4 sm:$0xff]  }
 0x837   :  { %4854 = vmatprep.subr.bf16.mxu1 %v14981_v14 }
 0x83a   :  { %4855 = vmatpush1.bf16.msra.mxu1 %v14990_v40  ;;  %v10237_v40 = vld [vmem:[#allocation7 + $0x124] ss:$8 sps:$4 sm:$0xff]  }
 0x83b   :  { %4856 = vmatprep.subr.bf16.mxu1 %v14981_v14 }
 0x83e   :  { %4857 = vmatpush1.bf16.msra.mxu1 %v14991_v58 }
 0x83f   :  { %4858 = vmatprep.subr.bf16.mxu1 %v14981_v14 }
 0x842   :  { %4859 = vmatpush1.bf16.msra.mxu1 %v14992_v29 }
 0x843   :  { %4860 = vmatprep.subr.bf16.mxu1 %v14981_v14 }
 0x846   :  { %4861 = vmatpush1.bf16.msra.mxu1 %v14993_v5  ;;  %v10239_v5 = vld [vmem:[#allocation7 + $0x120] ss:$8 sps:$4 sm:$0xff]  }
 0x847   :  { %4862 = vmatprep.subr.bf16.mxu1 %v14981_v14 }
 0x84a   :  { %4863 = vmatpush1.bf16.msra.mxu1 %v14994_v4 }
 0x84b   :  { %4864 = vmatprep.subr.bf16.mxu1 %v14981_v14 }
 0x84e   :  { %4865 = vmatpush1.bf16.msra.mxu1 %v14995_v52  ;;  %v10240_v52 = vld [vmem:[#allocation7 + $0x134] ss:$8 sps:$4 sm:$0xff]  }
 0x84f   :  { %4866 = vmatprep.subr.bf16.mxu1 %v14981_v14 }
 0x852   :  { %4867 = vmatpush1.bf16.msra.mxu1 %v14996_v9 }
 0x853   :  { %4868 = vmatprep.subr.bf16.mxu1 %v14981_v14 }
 0x856   :  { %4869 = vmatpush1.bf16.msra.mxu1 %v14997_v42 }
 0x858   :  { %v3770_v27 = vpop.xlane.xlu1 %3769 }
 0x859   :  { %4871 = vmatmul.mubr.bf16.vlgmr.msra.gmra.mrb[88].mxu1 %v10183_v35  ;;  %v3800_v1 = vsub.f32 %v13278_v16, %v3770_v27 }
 0x85a   :  { %4878 = vmatprep.mubr.bf16.mxu1 %v10186_v44 }
 0x85b   :  { %v3824_v0 = vmul.f32 1.442695, %v3800_v1  ;;  %v10246_v1 = vld [vmem:[#allocation7 + $0x154] ss:$8 sps:$4 sm:$0xff]  }
 0x861   :  { %4879 = vmatmul.mubr.bf16.gmra.mrb[92].mxu1 %v10188_v11 }
 0x862   :  { %4886 = vmatprep.mubr.bf16.mxu1 %v10189_v41  ;;  %v10242_v41 = vld [vmem:[#allocation7 + $0x130] ss:$8 sps:$4 sm:$0xff]  }
 0x869   :  { %4887 = vmatmul.mubr.bf16.gmra.mrb[96].mxu1 %v10191_v36  ;;  %v3773_v23 = vpop.xlane.xlu0 %3772 }
 0x86a   :  { %4894 = vmatprep.mubr.bf16.mxu1 %v10192_v59  ;;  %v3801_v39 = vsub.f32 %v13325_v55, %v3773_v23  ;;  %v10243_v59 = vld [vmem:[#allocation7 + $0x144] ss:$8 sps:$4 sm:$0xff]  }
 0x86c   :  { %v3826_v46 = vmul.f32 1.442695, %v3801_v39 }
 0x871   :  { %4895 = vmatmul.mubr.bf16.gmra.mrb[100].mxu1 %v10194_v2 }
 0x872   :  { %4902 = vmatprep.mubr.bf16.mxu1 %v10195_v32 }
 0x879   :  { %4903 = vmatmul.mubr.bf16.gmra.mrb[104].mxu1 %v10197_v53 }
 0x87a   :  { %4910 = vmatprep.mubr.bf16.mxu1 %v10198_v19  ;;  %v3776_v54 = vpop.xlane.xlu1 %3775  ;;  %v10245_v19 = vld [vmem:[#allocation7 + $0x140] ss:$8 sps:$4 sm:$0xff]  }
 0x87b   :  { %v3802_v38 = vsub.f32 %v13350_v22, %v3776_v54 }
 0x87d   :  { %v3828_v7 = vmul.f32 1.442695, %v3802_v38 }
 0x87f   :  { %10493 = vpow2.f32 %v3828_v7 }
 0x880   :  { %10495 = vpow2.f32 %v3824_v0  ;;  %v10249_v0 = vld [vmem:[#allocation7 + $0x164] ss:$8 sps:$4 sm:$0xff]  }
 0x881   :  { %4911 = vmatmul.mubr.bf16.gmra.mrb[108].mxu1 %v10200_v34  ;;  %10497 = vpow2.f32 %v3826_v46 }
 0x882   :  { %4918 = vmatprep.mubr.bf16.mxu1 %v10201_v31  ;;  %v10248_v31 = vld [vmem:[#allocation7 + $0x150] ss:$8 sps:$4 sm:$0xff]  }
 0x889   :  { %4919 = vmatmul.mubr.bf16.gmra.mrb[112].mxu1 %v10203_v18  ;;  %v13444_v16 = vpop.eup %10493  ;;  %v10251_v18 = vld [vmem:[#allocation7 + $0x160] ss:$8 sps:$4 sm:$0xff]  }
 0x88a   :  { %4926 = vmatprep.mubr.bf16.mxu1 %v10204_v10  ;;  %v3870_v22 = vsel %vm3507_vm1, %v13444_v16, 0.0  ;;  %v13448_v17 = vpop.eup %10495 }
 0x88b   :  { %3871 = vadd.xlane.f32.xlu1 %v3870_v22  ;;  %v3864_v55 = vsel %vm3507_vm1, %v13448_v17, 0.0  ;;  %v13452_v49 = vpop.eup %10497 }
 0x88c   :  { %v3867_v21 = vsel %vm3507_vm1, %v13452_v49, 0.0 }
 0x88f   :  { %3865 = vadd.xlane.f32.xlu1 %v3864_v55 }
 0x891   :  { %4927 = vmatmul.mubr.bf16.gmra.mrb[116].mxu1 %v10206_v24  ;;  %v10252_v24 = vld [vmem:[#allocation7 + $0x174] ss:$8 sps:$4 sm:$0xff]  }
 0x892   :  { %4934 = vmatprep.mubr.bf16.mxu1 %v10207_v45  ;;  %v10254_v45 = vld [vmem:[#allocation7 + $0x170] ss:$8 sps:$4 sm:$0xff]  }
 0x893   :  { %3868 = vadd.xlane.f32.xlu1 %v3867_v21 }
 0x897   :  { %v3779_v15 = vpop.xlane.xlu1 %3778 }
 0x898   :  { %v3803_v50 = vsub.f32 %v13374_v48, %v3779_v15  ;;  %v10221_v48 = vld [vmem:[#allocation7 + $0xc0] ss:$8 sps:$4 sm:$0xff]  }
 0x899   :  { %4935 = vmatmul.mubr.bf16.gmra.mrb[120].mxu1 %v10209_v43 }
 0x89a   :  { %4942 = vmatprep.mubr.bf16.mxu1 %v10210_v26  ;;  %v3830_v6 = vmul.f32 1.442695, %v3803_v50 }
 0x89c   :  { %10499 = vpow2.f32 %v3830_v6 }
 0x8a1   :  { %4943 = vmatmul.mubr.bf16.gmra.mrb[124].mxu1 %v10212_v61 }
 0x8a2   :  { %4950 = vmatprep.mubr.bf16.mxu1 %v10213_v28 }
 0x8a6   :  { %v13457_v56 = vpop.eup %10499 }
 0x8a7   :  { %v3873_v37 = vsel %vm3507_vm1, %v13457_v56, 0.0 }
 0x8a8   :  { %3874 = vadd.xlane.f32.xlu1 %v3873_v37 }
 0x8a9   :  { %4951 = vmatmul.mubr.bf16.gmra.mrb[128].mxu1 %v10215_v8 }
 0x8aa   :  { %4958 = vmatprep.mubr.bf16.mxu1 %v10216_v33 }
 0x8b1   :  { %4959 = vmatmul.mubr.bf16.gmra.mrb[132].mxu1 %v10218_v20 }
 0x8b2   :  { %4966 = vmatprep.mubr.bf16.mxu1 %v10219_v3 }
 0x8b9   :  { %4967 = vmatmul.mubr.bf16.gmra.mrb[136].mxu1 %v10221_v48 }
 0x8ba   :  { %4974 = vmatprep.mubr.bf16.mxu1 %v10222_v30 }
 0x8c1   :  { %4975 = vmatmul.mubr.bf16.gmra.mrb[140].mxu1 %v10224_v12 }
 0x8c2   :  { %4982 = vmatprep.mubr.bf16.mxu1 %v10225_v13 }
 0x8c9   :  { %4983 = vmatmul.mubr.bf16.gmra.mrb[144].mxu1 %v10227_v57 }
 0x8ca   :  { %4990 = vmatprep.mubr.bf16.mxu1 %v10228_v25 }
 0x8d1   :  { %4991 = vmatmul.mubr.bf16.gmra.mrb[148].mxu1 %v10230_v51 }
 0x8d2   :  { %4998 = vmatprep.mubr.bf16.mxu1 %v10231_v62 }
 0x8d9   :  { %4999 = vmatmul.mubr.bf16.gmra.mrb[152].mxu1 %v10233_v60 }
 0x8da   :  { %5006 = vmatprep.mubr.bf16.mxu1 %v10234_v47 }
 0x8e1   :  { %5007 = vmatmul.mubr.bf16.gmra.mrb[156].mxu1 %v10236_v63 }
 0x8e2   :  { %5014 = vmatprep.mubr.bf16.mxu1 %v10237_v40 }
 0x8e4   :  { %v13461_v58 = vpop.f32.mrb[68].mxu1 }
 0x8e5   :  { %v13463_v29 = vpop.f32.mrb[69].mxu1 }
 0x8e6   :  { %v13465_v4 = vpop.f32.mrb[70].mxu1 }
 0x8e7   :  { %v4163_v9 = vpack.c.bf16 %v13465_v4, %v13461_v58  ;;  %v13469_v35 = vpop.f32.mrb[71].mxu1 }
 0x8e8   :  { %v4162_v42 = vpack.c.bf16 %v13469_v35, %v13463_v29 }
 0x8e9   :  { %5015 = vmatmul.mubr.bf16.gmra.mrb[160].mxu1 %v10239_v5 }
 0x8ea   :  { %5022 = vmatprep.mubr.bf16.mxu1 %v10240_v52 }
 0x8ec   :  { %v13473_v44 = vpop.f32.mrb[72].mxu1 }
 0x8ed   :  { %14998 = vst [vmem:[#allocation32_spill] sm:$0xff] %v13473_v44  ;;  %v13475_v11 = vpop.f32.mrb[73].mxu1 }
 0x8ee   :  { %14999 = vst [vmem:[#allocation16_spill] sm:$0xff] %v13475_v11  ;;  %v13477_v36 = vpop.f32.mrb[74].mxu1 }
 0x8ef   :  { %15000 = vst [vmem:[#allocation17_spill] sm:$0xff] %v13477_v36  ;;  %v13479_v2 = vpop.f32.mrb[75].mxu1 }
 0x8f0   :  { %15001 = vst [vmem:[#allocation20_spill] sm:$0xff] %v13479_v2 }
 0x8f1   :  { %5023 = vmatmul.mubr.bf16.gmra.mrb[164].mxu1 %v10242_v41 }
 0x8f2   :  { %5030 = vmatprep.mubr.bf16.mxu1 %v10243_v59 }
 0x8f4   :  { %v13481_v32 = vpop.f32.mrb[76].mxu1 }
 0x8f5   :  { %15002 = vst [vmem:[#allocation21_spill] sm:$0xff] %v13481_v32  ;;  %v13483_v53 = vpop.f32.mrb[77].mxu1 }
 0x8f6   :  { %15003 = vst [vmem:[#allocation34_spill] sm:$0xff] %v13483_v53  ;;  %v13485_v27 = vpop.f32.mrb[78].mxu1 }
 0x8f7   :  { %15004 = vst [vmem:[#allocation36_spill] sm:$0xff] %v13485_v27  ;;  %v13487_v34 = vpop.f32.mrb[79].mxu1 }
 0x8f8   :  { %15005 = vst [vmem:[#allocation33_spill] sm:$0xff] %v13487_v34 }
 0x8f9   :  { %5031 = vmatmul.mubr.bf16.gmra.mrb[168].mxu1 %v10245_v19 }
 0x8fa   :  { %5038 = vmatprep.mubr.bf16.mxu1 %v10246_v1 }
 0x8fc   :  { %v13489_v23 = vpop.f32.mrb[80].mxu1 }
 0x8fd   :  { %15006 = vst [vmem:[#allocation35_spill] sm:$0xff] %v13489_v23  ;;  %v13491_v54 = vpop.f32.mrb[81].mxu1 }
 0x8fe   :  { %15007 = vst [vmem:[#allocation13_spill] sm:$0xff] %v13491_v54  ;;  %v13493_v38 = vpop.f32.mrb[82].mxu1 }
 0x8ff   :  { %15008 = vst [vmem:[#allocation15_spill] sm:$0xff] %v13493_v38  ;;  %v13495_v39 = vpop.f32.mrb[83].mxu1 }
 0x900   :  { %15009 = vst [vmem:[#allocation19_spill] sm:$0xff] %v13495_v39 }
 0x901   :  { %5039 = vmatmul.mubr.bf16.gmra.mrb[172].mxu1 %v10248_v31 }
 0x902   :  { %5046 = vmatprep.mubr.bf16.mxu1 %v10249_v0 }
 0x904   :  { %v13497_v7 = vpop.f32.mrb[84].mxu1 }
 0x905   :  { %15010 = vst [vmem:[#allocation23_spill] sm:$0xff] %v13497_v7  ;;  %v13499_v46 = vpop.f32.mrb[85].mxu1 }
 0x906   :  { %15011 = vst [vmem:[#allocation25_spill] sm:$0xff] %v13499_v46  ;;  %v13501_v10 = vpop.f32.mrb[86].mxu1 }
 0x907   :  { %15012 = vst [vmem:[#allocation27_spill] sm:$0xff] %v13501_v10  ;;  %v13503_v22 = vpop.f32.mrb[87].mxu1 }
 0x908   :  { %15013 = vst [vmem:[#allocation29_spill] sm:$0xff] %v13503_v22 }
 0x909   :  { %5047 = vmatmul.mubr.bf16.gmra.mrb[176].mxu1 %v10251_v18 }
 0x90a   :  { %5054 = vmatprep.mubr.bf16.mxu1 %v10252_v24 }
 0x911   :  { %5055 = vmatmul.mubr.bf16.gmra.mrb[180].mxu1 %v10254_v45 }
 0x918   :  { %v3872_v55 = vpop.xlane.xlu1 %3871 }
 0x91c   :  { %v3866_v43 = vpop.xlane.xlu1 %3865 }
 0x91d   :  { %10501 = vrcp.f32 %v3866_v43 }
 0x920   :  { %v3869_v21 = vpop.xlane.xlu1 %3868 }
 0x921   :  { %10503 = vrcp.f32 %v3869_v21 }
 0x922   :  { %10505 = vrcp.f32 %v3872_v55 }
 0x927   :  { %v10502_v15 = vpop.eup %10501 }
 0x928   :  { %v3912_v8 = vmul.f32 %v10502_v15, %v13448_v17 }
 0x92b   :  { %v10504_v28 = vpop.eup %10503 }
 0x92c   :  { %v13505_v26 = vpop.f32.mrb[88].mxu1  ;;  %v3913_v33 = vmul.f32 %v10504_v28, %v13452_v49  ;;  %v10506_v51 = vpop.eup %10505  ;;  %v10255_v28 = vld [vmem:[%s14796_s9 + $0x20] ss:$8 sps:$4 sm:$0xff]  }
 0x92d   :  { %v4874_v50 = vpop.f32.mrb[89].mxu1  ;;  %v3914_v47 = vmul.f32 %v10506_v51, %v13444_v16 }
 0x92e   :  { %v13507_v61 = vpop.f32.mrb[90].mxu1  ;;  %v3924_v37 = vpack.c.bf16 %v3913_v33, %v3912_v8 }
 0x92f   :  { %v4877_v6 = vpop.f32.mrb[91].mxu1 }
 0x930   :  { %9195 = vmatprep.mubr.msk.bf16.mxu0 %vm3507_vm1, %v3924_v37  ;;  %v10257_v6 = vld [vmem:[%s14796_s9 + $0x24] ss:$8 sps:$4 sm:$0xff]  }
 0x931   :  { %4301 = vmatprep.subr.bf16.mxu0 %v10257_v6 }
 0x934   :  { %v13512_v20 = vpop.f32.mrb[92].mxu1 }
 0x935   :  { %v4882_v3 = vpop.f32.mrb[93].mxu1  ;;  %v3875_v12 = vpop.xlane.xlu1 %3874  ;;  %v5161_v6 = vmul.f32 0.17677669, %v13512_v20 }
 0x936   :  { %v13514_v48 = vpop.f32.mrb[94].mxu1  ;;  %10507 = vrcp.f32 %v3875_v12 }
 0x937   :  { %v4885_v30 = vpop.f32.mrb[95].mxu1 }
 0x93c   :  { %v13516_v13 = vpop.f32.mrb[96].mxu1 }
 0x93d   :  { %v4890_v57 = vpop.f32.mrb[97].mxu1 }
 0x93e   :  { %v13518_v25 = vpop.f32.mrb[98].mxu1 }
 0x93f   :  { %v4893_v17 = vpop.f32.mrb[99].mxu1 }
 0x940   :  { %v10508_v62 = vpop.eup %10507 }
 0x941   :  { %v3915_v63 = vmul.f32 %v10508_v62, %v13457_v56 }
 0x943   :  { %v3925_v52 = vpack.c.bf16 %v3915_v63, %v3914_v47 }
 0x944   :  { %v13520_v49 = vpop.f32.mrb[100].mxu1 }
 0x945   :  { %v4898_v60 = vpop.f32.mrb[101].mxu1  ;;  %9196 = vmatmul.mubr.msk.bf16.vlgmr.msra.gmra.mrb[4].mxu0 %vm3507_vm1, %v3925_v52 }
 0x946   :  { %v13524_v40 = vpop.f32.mrb[102].mxu1  ;;  %4333 = vmatprep.mubr.bf16.mxu0 %v14981_v14  ;;  %4302 = vmatpush1.bf16.msra.mxu0 %v10255_v28 }
 0x947   :  { %v4901_v5 = vpop.f32.mrb[103].mxu1 }
 0x94c   :  { %v13528_v41 = vpop.f32.mrb[104].mxu1 }
 0x94d   :  { %v4906_v59 = vpop.f32.mrb[105].mxu1 }
 0x94e   :  { %v13530_v19 = vpop.f32.mrb[106].mxu1 }
 0x94f   :  { %v4909_v1 = vpop.f32.mrb[107].mxu1 }
 0x950   :  { %v5159_v1 = vmul.f32 0.17677669, %v13505_v26 }
 0x954   :  { %v13532_v31 = vpop.f32.mrb[108].mxu1 }
 0x955   :  { %v4914_v0 = vpop.f32.mrb[109].mxu1 }
 0x956   :  { %v13534_v16 = vpop.f32.mrb[110].mxu1 }
 0x957   :  { %v4917_v56 = vpop.f32.mrb[111].mxu1 }
 0x958   :  { %v5160_v56 = vmul.f32 0.17677669, %v13507_v61  ;;  %v5163_v61 = vmul.f32 0.17677669, %v13516_v13  ;;  %v5165_v13 = vmul.f32 0.17677669, %v13520_v49 }
 0x95c   :  { %v13536_v18 = vpop.f32.mrb[112].mxu1 }
 0x95d   :  { %v4922_v24 = vpop.f32.mrb[113].mxu1 }
 0x95e   :  { %v13538_v45 = vpop.f32.mrb[114].mxu1 }
 0x95f   :  { %v4925_v55 = vpop.f32.mrb[115].mxu1 }
 0x964   :  { %v13540_v43 = vpop.f32.mrb[116].mxu1 }
 0x965   :  { %v4930_v21 = vpop.f32.mrb[117].mxu1 }
 0x966   :  { %v13542_v15 = vpop.f32.mrb[118].mxu1 }
 0x967   :  { %v4933_v50 = vpop.f32.mrb[119].mxu1 }
 0x96c   :  { %v13550_v8 = vpop.f32.mrb[120].mxu1 }
 0x96d   :  { %v4938_v33 = vpop.f32.mrb[121].mxu1 }
 0x96e   :  { %v13552_v37 = vpop.f32.mrb[122].mxu1 }
 0x96f   :  { %v4941_v3 = vpop.f32.mrb[123].mxu1 }
 0x970   :  { %v5162_v3 = vmul.f32 0.17677669, %v13514_v48  ;;  %v10258_v48 = vld [vmem:[%s14796_s9 + $0x30] ss:$8 sps:$4 sm:$0xff]  }
 0x974   :  { %v13554_v30 = vpop.f32.mrb[124].mxu1 }
 0x975   :  { %v4946_v12 = vpop.f32.mrb[125].mxu1 }
 0x976   :  { %v13556_v57 = vpop.f32.mrb[126].mxu1 }
 0x977   :  { %v4949_v17 = vpop.f32.mrb[127].mxu1 }
 0x97c   :  { %v13558_v51 = vpop.f32.mrb[128].mxu1 }
 0x97d   :  { %v4954_v62 = vpop.f32.mrb[129].mxu1 }
 0x97e   :  { %v13560_v60 = vpop.f32.mrb[130].mxu1 }
 0x97f   :  { %v4957_v47 = vpop.f32.mrb[131].mxu1 }
 0x984   :  { %v13562_v63 = vpop.f32.mrb[132].mxu1 }
 0x985   :  { %v4962_v5 = vpop.f32.mrb[133].mxu1 }
 0x986   :  { %v13564_v52 = vpop.f32.mrb[134].mxu1 }
 0x987   :  { %v4965_v59 = vpop.f32.mrb[135].mxu1 }
 0x988   :  { %v5164_v59 = vmul.f32 0.17677669, %v13518_v25 }
 0x98c   :  { %v4968_v0 = vpop.f32.mrb[136].mxu1 }
 0x98d   :  { %v9769_v24 = vpack.i.bf16 %v5159_v1, %v4968_v0  ;;  %v4970_v55 = vpop.f32.mrb[137].mxu1 }
 0x98e   :  { %v4971_v21 = vpop.f32.mrb[138].mxu1  ;;  %v10260_v55 = vld [vmem:[%s14796_s9 + $0x34] ss:$8 sps:$4 sm:$0xff]  }
 0x98f   :  { %v9771_v50 = vpack.i.bf16 %v5160_v56, %v4971_v21  ;;  %9770 = vxpose.xlu1.b32.start [1/4] (short) (narrow) %v9769_v24, 64  ;;  %v4973_v28 = vpop.f32.mrb[139].mxu1  ;;  %4303 = vmatprep.subr.bf16.mxu0 %v10260_v55  ;;  %v5166_v21 = vmul.f32 0.17677669, %v13524_v40  ;;  %v5169_v40 = vmul.f32 0.17677669, %v13532_v31 }
 0x990   :  { %4304 = vmatpush1.bf16.msra.mxu0 %v10258_v48  ;;  %v5172_v55 = vmul.f32 0.17677669, %v13538_v45  ;;  %v5175_v45 = vmul.f32 0.17677669, %v13550_v8 }
 0x993   :  { %9772 = vxpose.xlu1.b32.cont [2/4] (short) (narrow) %v9771_v50, 64 }
 0x994   :  { %v4976_v33 = vpop.f32.mrb[140].mxu1 }
 0x995   :  { %v9773_v12 = vpack.i.bf16 %v5161_v6, %v4976_v33  ;;  %v4978_v17 = vpop.f32.mrb[141].mxu1 }
 0x996   :  { %v4979_v62 = vpop.f32.mrb[142].mxu1 }
 0x997   :  { %v9775_v47 = vpack.i.bf16 %v5162_v3, %v4979_v62  ;;  %9774 = vxpose.xlu1.b32.cont [3/4] (short) (narrow) %v9773_v12, 64  ;;  %v4981_v26 = vpop.f32.mrb[143].mxu1  ;;  %v5167_v12 = vmul.f32 0.17677669, %v13528_v41  ;;  %v5168_v62 = vmul.f32 0.17677669, %v13530_v19 }
 0x998   :  { %v5171_v19 = vmul.f32 0.17677669, %v13536_v18 }
 0x99b   :  { %9776 = vxpose.xlu1.b32.end [4/4] (short) (narrow) %v9775_v47, 64 }
 0x99c   :  { %v4984_v5 = vpop.f32.mrb[144].mxu1 }
 0x99d   :  { %v9817_v1 = vpack.i.bf16 %v5163_v61, %v4984_v5  ;;  %v4986_v0 = vpop.f32.mrb[145].mxu1 }
 0x99e   :  { %v4987_v56 = vpop.f32.mrb[146].mxu1 }
 0x99f   :  { %v9819_v20 = vpack.i.bf16 %v5164_v59, %v4987_v56  ;;  %9818 = vxpose.xlu0.b32.start [1/4] (short) (narrow) %v9817_v1, 64  ;;  %v4989_v24 = vpop.f32.mrb[147].mxu1  ;;  %v5170_v1 = vmul.f32 0.17677669, %v13534_v16  ;;  %v5173_v16 = vmul.f32 0.17677669, %v13540_v43 }
 0x9a3   :  { %9820 = vxpose.xlu0.b32.cont [2/4] (short) (narrow) %v9819_v20, 64 }
 0x9a4   :  { %v4992_v25 = vpop.f32.mrb[148].mxu1 }
 0x9a5   :  { %v9821_v50 = vpack.i.bf16 %v5165_v13, %v4992_v25  ;;  %v4994_v28 = vpop.f32.mrb[149].mxu1 }
 0x9a6   :  { %v4995_v6 = vpop.f32.mrb[150].mxu1 }
 0x9a7   :  { %v9823_v33 = vpack.i.bf16 %v5166_v21, %v4995_v6  ;;  %9822 = vxpose.xlu0.b32.cont [3/4] (short) (narrow) %v9821_v50, 64  ;;  %v4997_v3 = vpop.f32.mrb[151].mxu1  ;;  %v5174_v6 = vmul.f32 0.17677669, %v13542_v15  ;;  %v5177_v15 = vmul.f32 0.17677669, %v13554_v30 }
 0x9ab   :  { %9824 = vxpose.xlu0.b32.end [4/4] (short) (narrow) %v9823_v33, 64 }
 0x9ac   :  { %v5000_v17 = vpop.f32.mrb[152].mxu1 }
 0x9ad   :  { %v9865_v47 = vpack.i.bf16 %v5167_v12, %v5000_v17  ;;  %v5002_v26 = vpop.f32.mrb[153].mxu1 }
 0x9ae   :  { %v5003_v49 = vpop.f32.mrb[154].mxu1 }
 0x9af   :  { %v9867_v61 = vpack.i.bf16 %v5168_v62, %v5003_v49  ;;  %9866 = vxpose.xlu1.b32.start [1/4] (short) (narrow) %v9865_v47, 64  ;;  %v5005_v5 = vpop.f32.mrb[155].mxu1  ;;  %v5176_v47 = vmul.f32 0.17677669, %v13552_v37  ;;  %v5179_v37 = vmul.f32 0.17677669, %v13558_v51 }
 0x9b3   :  { %9868 = vxpose.xlu1.b32.cont [2/4] (short) (narrow) %v9867_v61, 64 }
 0x9b4   :  { %v5008_v59 = vpop.f32.mrb[156].mxu1 }
 0x9b5   :  { %v9869_v0 = vpack.i.bf16 %v5169_v40, %v5008_v59  ;;  %v5010_v56 = vpop.f32.mrb[157].mxu1  ;;  %v5178_v59 = vmul.f32 0.17677669, %v13556_v57  ;;  %v5181_v57 = vmul.f32 0.17677669, %v13562_v63 }
 0x9b6   :  { %v5011_v20 = vpop.f32.mrb[158].mxu1 }
 0x9b7   :  { %v9871_v41 = vpack.i.bf16 %v5170_v1, %v5011_v20  ;;  %9870 = vxpose.xlu1.b32.cont [3/4] (short) (narrow) %v9869_v0, 64  ;;  %v5013_v24 = vpop.f32.mrb[159].mxu1 }
 0x9b8   :  { %v5180_v24 = vmul.f32 0.17677669, %v13560_v60 }
 0x9bb   :  { %9872 = vxpose.xlu1.b32.end [4/4] (short) (narrow) %v9871_v41, 64 }
 0x9bc   :  { %v5016_v48 = vpop.f32.mrb[160].mxu1 }
 0x9bd   :  { %v9913_v13 = vpack.i.bf16 %v5171_v19, %v5016_v48  ;;  %v5018_v25 = vpop.f32.mrb[161].mxu1 }
 0x9be   :  { %v5019_v21 = vpop.f32.mrb[162].mxu1 }
 0x9bf   :  { %v9915_v31 = vpack.i.bf16 %v5172_v55, %v5019_v21  ;;  %9914 = vxpose.xlu0.b32.start [1/4] (short) (narrow) %v9913_v13, 64  ;;  %v5021_v50 = vpop.f32.mrb[163].mxu1  ;;  %v5182_v21 = vmul.f32 0.17677669, %v13564_v52 }
 0x9c3   :  { %9916 = vxpose.xlu0.b32.cont [2/4] (short) (narrow) %v9915_v31, 64 }
 0x9c4   :  { %v5024_v28 = vpop.f32.mrb[164].mxu1 }
 0x9c5   :  { %v9917_v33 = vpack.i.bf16 %v5173_v16, %v5024_v28  ;;  %v5026_v3 = vpop.f32.mrb[165].mxu1 }
 0x9c6   :  { %v5027_v12 = vpop.f32.mrb[166].mxu1 }
 0x9c7   :  { %v9919_v18 = vpack.i.bf16 %v5174_v6, %v5027_v12  ;;  %9918 = vxpose.xlu0.b32.cont [3/4] (short) (narrow) %v9917_v33, 64  ;;  %v5029_v17 = vpop.f32.mrb[167].mxu1 }
 0x9cb   :  { %9920 = vxpose.xlu0.b32.end [4/4] (short) (narrow) %v9919_v18, 64 }
 0x9cc   :  { %v5032_v62 = vpop.f32.mrb[168].mxu1 }
 0x9cd   :  { %v9961_v26 = vpack.i.bf16 %v5175_v45, %v5032_v62  ;;  %v5034_v49 = vpop.f32.mrb[169].mxu1 }
 0x9ce   :  { %v5035_v61 = vpop.f32.mrb[170].mxu1 }
 0x9cf   :  { %v9963_v43 = vpack.i.bf16 %v5176_v47, %v5035_v61  ;;  %9962 = vxpose.xlu1.b32.start [1/4] (short) (narrow) %v9961_v26, 64  ;;  %v5037_v5 = vpop.f32.mrb[171].mxu1 }
 0x9d3   :  { %9964 = vxpose.xlu1.b32.cont [2/4] (short) (narrow) %v9963_v43, 64 }
 0x9d4   :  { %v5040_v40 = vpop.f32.mrb[172].mxu1 }
 0x9d5   :  { %v9965_v1 = vpack.i.bf16 %v5177_v15, %v5040_v40  ;;  %v5042_v0 = vpop.f32.mrb[173].mxu1 }
 0x9d6   :  { %v5043_v56 = vpop.f32.mrb[174].mxu1 }
 0x9d7   :  { %v9967_v8 = vpack.i.bf16 %v5178_v59, %v5043_v56  ;;  %9966 = vxpose.xlu1.b32.cont [3/4] (short) (narrow) %v9965_v1, 64  ;;  %v5045_v20 = vpop.f32.mrb[175].mxu1 }
 0x9db   :  { %9968 = vxpose.xlu1.b32.end [4/4] (short) (narrow) %v9967_v8, 64 }
 0x9dc   :  { %v5048_v41 = vpop.f32.mrb[176].mxu1 }
 0x9dd   :  { %v10009_v19 = vpack.i.bf16 %v5179_v37, %v5048_v41  ;;  %v5050_v48 = vpop.f32.mrb[177].mxu1 }
 0x9de   :  { %v5051_v55 = vpop.f32.mrb[178].mxu1 }
 0x9df   :  { %v10011_v30 = vpack.i.bf16 %v5180_v24, %v5051_v55  ;;  %10010 = vxpose.xlu0.b32.start [1/4] (short) (narrow) %v10009_v19, 64  ;;  %v5053_v13 = vpop.f32.mrb[179].mxu1 }
 0x9e3   :  { %10012 = vxpose.xlu0.b32.cont [2/4] (short) (narrow) %v10011_v30, 64 }
 0x9e4   :  { %v5056_v25 = vpop.f32.mrb[180].mxu1 }
 0x9e5   :  { %v10013_v31 = vpack.i.bf16 %v5181_v57, %v5056_v25  ;;  %v5058_v50 = vpop.f32.mrb[181].mxu1 }
 0x9e6   :  { %v5059_v16 = vpop.f32.mrb[182].mxu1 }
 0x9e7   :  { %v10015_v51 = vpack.i.bf16 %v5182_v21, %v5059_v16  ;;  %10014 = vxpose.xlu0.b32.cont [3/4] (short) (narrow) %v10013_v31, 64  ;;  %v5061_v28 = vpop.f32.mrb[183].mxu1 }
 0x9eb   :  { %10016 = vxpose.xlu0.b32.end [4/4] (short) (narrow) %v10015_v51, 64 }
 0xa0f   :  { %v9777_v60 = vpop.trf.xlu1 }
 0xa10   :  { %v9778_v33 = vunpack.i.l.bf16 %v9777_v60  ;;  %v9781_v25 = vunpack.i.h.bf16 %v9777_v60 }
 0xa13   :  { %v9782_v6 = vpop.trf.xlu1 }
 0xa14   :  { %v9783_v3 = vunpack.i.l.bf16 %v9782_v6  ;;  %v9786_v13 = vunpack.i.h.bf16 %v9782_v6 }
 0xa16   :  { %v5783_v12 = vpack.c.bf16 %v9783_v3, %v9778_v33  ;;  %v5759_v31 = vpack.c.bf16 %v9786_v13, %v9781_v25 }
 0xa17   :  { %v9787_v18 = vpop.trf.xlu1 }
 0xa18   :  { %9567 = vmatprep.subr.msk.bf16.mxu0 %vm3507_vm1, %v5783_v12  ;;  %v9197_v17 = vpop.f32.mrb[4].mxu0  ;;  %v9788_v47 = vunpack.i.l.bf16 %v9787_v18  ;;  %v5814_v15 = vsel %vm3507_vm1, %v5783_v12, 0  ;;  %v9791_v60 = vunpack.i.h.bf16 %v9787_v18 }
 0xa19   :  { %v4086_v62 = vpop.f32.mrb[5].mxu0 }
 0xa1a   :  { %v9198_v52 = vpop.f32.mrb[6].mxu0 }
 0xa1b   :  { %v9792_v63 = vpop.trf.xlu1  ;;  %v4161_v49 = vpack.c.bf16 %v9198_v52, %v9197_v17  ;;  %v4089_v61 = vpop.f32.mrb[7].mxu0 }
 0xa1c   :  { %v9793_v45 = vunpack.i.l.bf16 %v9792_v63  ;;  %v4160_v5 = vpack.c.bf16 %v4089_v61, %v4086_v62  ;;  %v9796_v16 = vunpack.i.h.bf16 %v9792_v63 }
 0xa1e   :  { %v5784_v40 = vpack.c.bf16 %v9793_v45, %v9788_v47  ;;  %8691 = vmatmul.mubr.msk.bf16.vlgmr.msra.gmra.mrb[8].mxu0 %vm3507_vm1, %v4160_v5  ;;  %v5760_v58 = vpack.c.bf16 %v9796_v16, %v9791_v60 }
 0xa1f   :  { %v9797_v26 = vpop.trf.xlu1  ;;  %v13597_v43 = vpop.trf.xlu0  ;;  %4343 = vmatprep.mubr.bf16.mxu0 %v14981_v14  ;;  %9208 = vmatpush3.bf16.xpose.msra.mxu0 %v5814_v15 }
 0xa20   :  { %9568 = vmatprep.subr.msk.bf16.mxu0 %vm3507_vm1, %v5784_v40  ;;  %v9798_v56 = vunpack.i.l.bf16 %v9797_v26  ;;  %v5817_v37 = vsel %vm3507_vm1, %v5784_v40, 0  ;;  %v9801_v28 = vunpack.i.h.bf16 %v9797_v26  ;;  %v9826_v18 = vunpack.i.l.bf16 %v13597_v43 }
 0xa23   :  { %v9802_v59 = vpop.trf.xlu1  ;;  %v13602_v1 = vpop.trf.xlu0 }
 0xa24   :  { %v9803_v0 = vunpack.i.l.bf16 %v9802_v59  ;;  %v9806_v35 = vunpack.i.h.bf16 %v9802_v59  ;;  %v9831_v45 = vunpack.i.l.bf16 %v13602_v1  ;;  %v9829_v59 = vunpack.i.h.bf16 %v13597_v43 }
 0xa26   :  { %v5785_v41 = vpack.c.bf16 %v9803_v0, %v9798_v56  ;;  %8692 = vmatmul.mubr.msk.bf16.gmra.mrb[12].mxu0 %vm3507_vm1, %v4161_v49  ;;  %v5761_v3 = vpack.c.bf16 %v9806_v35, %v9801_v28  ;;  %v5787_v26 = vpack.c.bf16 %v9831_v45, %v9826_v18  ;;  %v9834_v0 = vunpack.i.h.bf16 %v13602_v1 }
 0xa27   :  { %v9807_v8 = vpop.trf.xlu1  ;;  %v13605_v20 = vpop.trf.xlu0  ;;  %4353 = vmatprep.mubr.bf16.mxu0 %v14981_v14  ;;  %9210 = vmatpush3.bf16.xpose.msra.mxu0 %v5817_v37 }
 0xa28   :  { %9569 = vmatprep.subr.msk.bf16.mxu0 %vm3507_vm1, %v5785_v41  ;;  %v9808_v6 = vunpack.i.l.bf16 %v9807_v8  ;;  %v5875_v4 = vsel %vm3507_vm1, %v5785_v41, 0  ;;  %v9836_v61 = vunpack.i.l.bf16 %v13605_v20  ;;  %v9811_v56 = vunpack.i.h.bf16 %v9807_v8 }
 0xa29   :  { %v9839_v60 = vunpack.i.h.bf16 %v13605_v20 }
 0xa2b   :  { %v9812_v24 = vpop.trf.xlu1  ;;  %v13610_v19 = vpop.trf.xlu0 }
 0xa2c   :  { %v9813_v51 = vunpack.i.l.bf16 %v9812_v24  ;;  %v9816_v15 = vunpack.i.h.bf16 %v9812_v24  ;;  %v9841_v40 = vunpack.i.l.bf16 %v13610_v19  ;;  %v5936_v24 = vsel %vm3507_vm1, %v5787_v26, 0 }
 0xa2e   :  { %8693 = vmatmul.mubr.msk.bf16.gmra.mrb[16].mxu0 %vm3507_vm1, %v4162_v42  ;;  %v5762_v13 = vpack.c.bf16 %v9816_v15, %v9811_v56  ;;  %v5788_v25 = vpack.c.bf16 %v9841_v40, %v9836_v61 }
 0xa2f   :  { %v13613_v48 = vpop.trf.xlu1  ;;  %v13615_v55 = vpop.trf.xlu0  ;;  %4363 = vmatprep.mubr.bf16.mxu0 %v14981_v14  ;;  %v10296_v14 = vld [vmem:[#allocation7 + $0x230] ss:$8 sps:$4 sm:$0xff]  }
 0xa30   :  { %v9846_v1 = vunpack.i.l.bf16 %v13615_v55 }
 0xa33   :  { %v13621_v30 = vpop.trf.xlu1  ;;  %v13624_v57 = vpop.trf.xlu0 }
 0xa34   :  { %v9851_v8 = vunpack.i.l.bf16 %v13624_v57 }
 0xa36   :  { %8694 = vmatmul.mubr.msk.bf16.gmra.mrb[20].mxu0 %vm3507_vm1, %v4163_v9  ;;  %v5786_v9 = vpack.c.bf16 %v9813_v51, %v9808_v6  ;;  %v5789_v28 = vpack.c.bf16 %v9851_v8, %v9846_v1  ;;  %v9844_v6 = vunpack.i.h.bf16 %v13610_v19 }
 0xa37   :  { %v13626_v21 = vpop.trf.xlu1  ;;  %v13628_v50 = vpop.trf.xlu0  ;;  %9211 = vmatprep.mubr.msk.bf16.mxu0 %vm3507_vm1, %v5759_v31  ;;  %v5763_v31 = vpack.c.bf16 %v9834_v0, %v9829_v59  ;;  %v9874_v59 = vunpack.i.l.bf16 %v13613_v48  ;;  %v9879_v0 = vunpack.i.l.bf16 %v13621_v30 }
 0xa38   :  { %v5878_v47 = vsel %vm3507_vm1, %v5786_v9, 0  ;;  %v9856_v45 = vunpack.i.l.bf16 %v13628_v50  ;;  %v5764_v61 = vpack.c.bf16 %v9844_v6, %v9839_v60  ;;  %v5997_v15 = vsel %vm3507_vm1, %v5789_v28, 0 }
 0xa39   :  { %v9882_v60 = vunpack.i.h.bf16 %v13621_v30 }
 0xa3b   :  { %v13634_v29 = vpop.trf.xlu1  ;;  %v13637_v42 = vpop.trf.xlu0 }
 0xa3c   :  { %v9864_v1 = vunpack.i.h.bf16 %v13637_v42 }
 0xa3e   :  { %9212 = vmatmul.mubr.msk.bf16.vlgmr.msra.gmra.mrb[24].mxu0 %vm3507_vm1, %v5760_v58 }
 0xa3f   :  { %v13639_v33 = vpop.trf.xlu1  ;;  %v13641_v12 = vpop.trf.xlu0  ;;  %9216 = vmatpush3.bf16.xpose.msra.mxu0 %v5875_v4  ;;  %9219 = vmatprep.mubr.msk.bf16.mxu0 %vm3507_vm1, %v5761_v3  ;;  %v5939_v3 = vsel %vm3507_vm1, %v5788_v25, 0  ;;  %v9849_v4 = vunpack.i.h.bf16 %v13615_v55 }
 0xa40   :  { %9570 = vmatprep.subr.msk.bf16.mxu0 %vm3507_vm1, %v5786_v9  ;;  %v9854_v9 = vunpack.i.h.bf16 %v13624_v57  ;;  %v9894_v30 = vunpack.i.l.bf16 %v13639_v33 }
 0xa42   :  { %v5765_v19 = vpack.c.bf16 %v9854_v9, %v9849_v4  ;;  %v9889_v4 = vunpack.i.l.bf16 %v13634_v29 }
 0xa43   :  { %v13645_v17 = vpop.trf.xlu1  ;;  %v13648_v63 = vpop.trf.xlu0 }
 0xa47   :  { %v13653_v62 = vpop.trf.xlu1  ;;  %v13655_v52 = vpop.trf.xlu0  ;;  %9218 = vmatpush3.bf16.xpose.msra.mxu0 %v5878_v47  ;;  %v9861_v47 = vunpack.i.l.bf16 %v13637_v42 }
 0xa48   :  { %9571 = vmatprep.subr.msk.bf16.mxu0 %vm3507_vm1, %v5787_v26 }
 0xa49   :  { %v5790_v55 = vpack.c.bf16 %v9861_v47, %v9856_v45 }
 0xa4b   :  { %v13658_v49 = vpop.trf.xlu1  ;;  %v13661_v5 = vpop.trf.xlu0 }
 0xa4e   :  { %9220 = vmatmul.mubr.msk.bf16.vlgmr.msra.gmra.mrb[28].mxu0 %vm3507_vm1, %v5762_v13 }
 0xa4f   :  { %v13667_v37 = vpop.trf.xlu1  ;;  %v13669_v41 = vpop.trf.xlu0  ;;  %9224 = vmatpush3.bf16.xpose.msra.mxu0 %v5936_v24  ;;  %9227 = vmatprep.mubr.msk.bf16.mxu0 %vm3507_vm1, %v5763_v31  ;;  %v5791_v31 = vpack.c.bf16 %v9879_v0, %v9874_v59  ;;  %v9859_v24 = vunpack.i.h.bf16 %v13628_v50  ;;  %v9887_v59 = vunpack.i.h.bf16 %v13626_v21  ;;  %v9892_v0 = vunpack.i.h.bf16 %v13634_v29 }
 0xa50   :  { %9572 = vmatprep.subr.msk.bf16.mxu0 %vm3507_vm1, %v5788_v25  ;;  %v6000_v25 = vsel %vm3507_vm1, %v5790_v55, 0  ;;  %v9927_v29 = vunpack.i.l.bf16 %v13648_v63 }
 0xa51   :  { %v5766_v9 = vpack.c.bf16 %v9864_v1, %v9859_v24  ;;  %v6058_v42 = vsel %vm3507_vm1, %v5791_v31, 0  ;;  %v9904_v24 = vunpack.i.l.bf16 %v13653_v62  ;;  %v9909_v1 = vunpack.i.l.bf16 %v13658_v49 }
 0xa53   :  { %v13673_v35 = vpop.trf.xlu1  ;;  %v13676_v43 = vpop.trf.xlu0 }
 0xa57   :  { %v13681_v16 = vpop.trf.xlu1  ;;  %v13683_v51 = vpop.trf.xlu0  ;;  %9226 = vmatpush3.bf16.xpose.msra.mxu0 %v5939_v3  ;;  %v9884_v3 = vunpack.i.l.bf16 %v13626_v21  ;;  %v9922_v21 = vunpack.i.l.bf16 %v13641_v12 }
 0xa58   :  { %9573 = vmatprep.subr.msk.bf16.mxu0 %vm3507_vm1, %v5789_v28  ;;  %v9877_v28 = vunpack.i.h.bf16 %v13613_v48 }
 0xa59   :  { %v5792_v47 = vpack.c.bf16 %v9889_v4, %v9884_v3  ;;  %v5794_v4 = vpack.c.bf16 %v9909_v1, %v9904_v24  ;;  %v9940_v24 = vunpack.i.h.bf16 %v13661_v5  ;;  %v9945_v1 = vunpack.i.h.bf16 %v13669_v41 }
 0xa5a   :  { %v5767_v45 = vpack.c.bf16 %v9882_v60, %v9877_v28  ;;  %v5768_v28 = vpack.c.bf16 %v9892_v0, %v9887_v59 }
 0xa5b   :  { %v13688_v58 = vpop.trf.xlu1  ;;  %v13692_v18 = vpop.trf.xlu0 }
 0xa5e   :  { %9228 = vmatmul.mubr.msk.bf16.vlgmr.msra.gmra.mrb[32].mxu0 %vm3507_vm1, %v5764_v61 }
 0xa5f   :  { %v13697_v20 = vpop.trf.xlu1  ;;  %v13699_v26 = vpop.trf.xlu0  ;;  %9232 = vmatpush3.bf16.xpose.msra.mxu0 %v5997_v15  ;;  %9235 = vmatprep.mubr.msk.bf16.mxu0 %vm3507_vm1, %v5765_v19  ;;  %v9899_v19 = vunpack.i.l.bf16 %v13645_v17  ;;  %v6061_v15 = vsel %vm3507_vm1, %v5792_v47, 0 }
 0xa60   :  { %9574 = vmatprep.subr.msk.bf16.mxu0 %vm3507_vm1, %v5790_v55 }
 0xa61   :  { %v5793_v55 = vpack.c.bf16 %v9899_v19, %v9894_v30  ;;  %v9932_v30 = vunpack.i.l.bf16 %v13655_v52  ;;  %v9937_v19 = vunpack.i.l.bf16 %v13661_v5  ;;  %v9970_v5 = vunpack.i.l.bf16 %v13667_v37 }
 0xa63   :  { %v13703_v57 = vpop.trf.xlu1  ;;  %v13706_v40 = vpop.trf.xlu0  ;;  %v6119_v3 = vsel %vm3507_vm1, %v5793_v55, 0  ;;  %v5796_v0 = vpack.c.bf16 %v9937_v19, %v9932_v30  ;;  %v9960_v30 = vunpack.i.h.bf16 %v13692_v18  ;;  %v9973_v19 = vunpack.i.h.bf16 %v13667_v37 }
 0xa64   :  { %v9990_v37 = vunpack.i.l.bf16 %v13697_v20 }
 0xa67   :  { %v13711_v56 = vpop.trf.xlu1  ;;  %v13713_v13 = vpop.trf.xlu0  ;;  %9234 = vmatpush3.bf16.xpose.msra.mxu0 %v6000_v25  ;;  %v9897_v25 = vunpack.i.h.bf16 %v13639_v33  ;;  %v6122_v33 = vsel %vm3507_vm1, %v5794_v4, 0 }
 0xa68   :  { %9575 = vmatprep.subr.msk.bf16.mxu0 %vm3507_vm1, %v5791_v31  ;;  %v9902_v31 = vunpack.i.h.bf16 %v13645_v17  ;;  %v5795_v17 = vpack.c.bf16 %v9927_v29, %v9922_v21 }
 0xa6a   :  { %v5769_v60 = vpack.c.bf16 %v9902_v31, %v9897_v25  ;;  %v6180_v59 = vsel %vm3507_vm1, %v5795_v17, 0  ;;  %v9935_v31 = vunpack.i.h.bf16 %v13655_v52 }
 0xa6b   :  { %v13718_v8 = vpop.trf.xlu1  ;;  %v13722_v6 = vpop.trf.xlu0 }
 0xa6c   :  { %v5772_v21 = vpack.c.bf16 %v9940_v24, %v9935_v31  ;;  %v10272_v31 = vld [vmem:[#allocation7 + $0x1b0] ss:$8 sps:$4 sm:$0xff]  }
 0xa6e   :  { %9236 = vmatmul.mubr.msk.bf16.vlgmr.msra.gmra.mrb[36].mxu0 %vm3507_vm1, %v5766_v9  ;;  %v9907_v9 = vunpack.i.h.bf16 %v13653_v62 }
 0xa6f   :  { %v13727_v50 = vpop.trf.xlu0  ;;  %9240 = vmatpush3.bf16.xpose.msra.mxu0 %v6058_v42  ;;  %9243 = vmatprep.mubr.msk.bf16.mxu0 %vm3507_vm1, %v5767_v45  ;;  %v9912_v45 = vunpack.i.h.bf16 %v13658_v49  ;;  %v9925_v42 = vunpack.i.h.bf16 %v13641_v12  ;;  %v9942_v12 = vunpack.i.l.bf16 %v13669_v41  ;;  %v6183_v49 = vsel %vm3507_vm1, %v5796_v0, 0 }
 0xa70   :  { %9576 = vmatprep.subr.msk.bf16.mxu0 %vm3507_vm1, %v5792_v47  ;;  %v9930_v47 = vunpack.i.h.bf16 %v13648_v63  ;;  %v9947_v63 = vunpack.i.l.bf16 %v13676_v43  ;;  %v9975_v41 = vunpack.i.l.bf16 %v13673_v35 }
 0xa72   :  { %v5797_v25 = vpack.c.bf16 %v9947_v63, %v9942_v12 }
 0xa73   :  { %v13732_v48 = vpop.trf.xlu0 }
 0xa74   :  { %v6241_v52 = vsel %vm3507_vm1, %v5797_v25, 0 }
 0xa77   :  { %v13737_v61 = vpop.trf.xlu0  ;;  %9242 = vmatpush3.bf16.xpose.msra.mxu0 %v6061_v15  ;;  %v5770_v15 = vpack.c.bf16 %v9912_v45, %v9907_v9  ;;  %v10266_v9 = vld [vmem:[#allocation7 + $0x190] ss:$8 sps:$4 sm:$0xff]  }
 0xa78   :  { %9577 = vmatprep.subr.msk.bf16.mxu0 %vm3507_vm1, %v5793_v55  ;;  %v5771_v55 = vpack.c.bf16 %v9930_v47, %v9925_v42  ;;  %v5799_v42 = vpack.c.bf16 %v9975_v41, %v9970_v5  ;;  %v9955_v47 = vunpack.i.h.bf16 %v13683_v51  ;;  %v10003_v41 = vunpack.i.h.bf16 %v13711_v56 }
 0xa7a   :  { %v5774_v12 = vpack.c.bf16 %v9960_v30, %v9955_v47  ;;  %v10033_v47 = vunpack.i.l.bf16 %v13722_v6 }
 0xa7b   :  { %v13767_v62 = vpop.trf.xlu0 }
 0xa7e   :  { %9244 = vmatmul.mubr.msk.bf16.vlgmr.msra.gmra.mrb[40].mxu0 %vm3507_vm1, %v5768_v28  ;;  %v9950_v28 = vunpack.i.h.bf16 %v13676_v43  ;;  %v10264_v43 = vld [vmem:[#allocation7 + $0x194] ss:$8 sps:$4 sm:$0xff]  }
 0xa7f   :  { %9248 = vmatpush3.bf16.xpose.msra.mxu0 %v6119_v3  ;;  %9251 = vmatprep.mubr.msk.bf16.mxu0 %vm3507_vm1, %v5769_v60  ;;  %v10261_v60 = vld [vmem:[#allocation7 + $0x184] ss:$8 sps:$4 sm:$0xff]   ;;  %v9952_v3 = vunpack.i.l.bf16 %v13683_v51  ;;  %v6302_v51 = vsel %vm3507_vm1, %v5799_v42, 0 }
 0xa80   :  { %9578 = vmatprep.subr.msk.bf16.mxu0 %vm3507_vm1, %v5794_v4  ;;  %v9957_v4 = vunpack.i.l.bf16 %v13692_v18  ;;  %5062 = vmatprep.mubr.bf16.mxu1 %v10261_v60  ;;  %v5773_v29 = vpack.c.bf16 %v9950_v28, %v9945_v1  ;;  %v10270_v18 = vld [vmem:[#allocation7 + $0x1b4] ss:$8 sps:$4 sm:$0xff]   ;;  %v9983_v28 = vunpack.i.h.bf16 %v13681_v16  ;;  %v9988_v60 = vunpack.i.h.bf16 %v13688_v58 }
 0xa87   :  { %9250 = vmatpush3.bf16.xpose.msra.mxu0 %v6122_v33  ;;  %v10263_v33 = vld [vmem:[#allocation7 + $0x180] ss:$8 sps:$4 sm:$0xff]  }
 0xa88   :  { %9579 = vmatprep.subr.msk.bf16.mxu0 %vm3507_vm1, %v5795_v17  ;;  %v5798_v17 = vpack.c.bf16 %v9957_v4, %v9952_v3  ;;  %5063 = vmatmul.mubr.bf16.gmra.mrb[184].mxu1 %v10263_v33  ;;  %v9993_v3 = vunpack.i.h.bf16 %v13697_v20  ;;  %v9998_v4 = vunpack.i.h.bf16 %v13703_v57  ;;  %v5776_v33 = vpack.c.bf16 %v9988_v60, %v9983_v28 }
 0xa89   :  { %5070 = vmatprep.mubr.bf16.mxu1 %v10264_v43  ;;  %v10008_v43 = vunpack.i.h.bf16 %v13718_v8 }
 0xa8a   :  { %v6244_v45 = vsel %vm3507_vm1, %v5798_v17, 0 }
 0xa8b   :  { %v5778_v30 = vpack.c.bf16 %v10008_v43, %v10003_v41  ;;  %v10281_v41 = vld [vmem:[#allocation7 + $0x1e0] ss:$8 sps:$4 sm:$0xff]  }
 0xa8e   :  { %9252 = vmatmul.mubr.msk.bf16.vlgmr.msra.gmra.mrb[44].mxu0 %vm3507_vm1, %v5770_v15  ;;  %v9978_v15 = vunpack.i.h.bf16 %v13673_v35  ;;  %v9995_v35 = vunpack.i.l.bf16 %v13703_v57 }
 0xa8f   :  { %9256 = vmatpush3.bf16.xpose.msra.mxu0 %v6180_v59  ;;  %9259 = vmatprep.mubr.msk.bf16.mxu0 %vm3507_vm1, %v5771_v55  ;;  %v10267_v55 = vld [vmem:[#allocation7 + $0x1a4] ss:$8 sps:$4 sm:$0xff]   ;;  %v9980_v59 = vunpack.i.l.bf16 %v13681_v16  ;;  %v10018_v16 = vunpack.i.l.bf16 %v13699_v26 }
 0xa90   :  { %9580 = vmatprep.subr.msk.bf16.mxu0 %vm3507_vm1, %v5796_v0  ;;  %5071 = vmatmul.mubr.bf16.gmra.mrb[188].mxu1 %v10266_v9  ;;  %v9985_v0 = vunpack.i.l.bf16 %v13688_v58  ;;  %v5775_v63 = vpack.c.bf16 %v9978_v15, %v9973_v19  ;;  %v5801_v1 = vpack.c.bf16 %v9995_v35, %v9990_v37  ;;  %v10023_v58 = vunpack.i.l.bf16 %v13706_v40 }
 0xa91   :  { %5078 = vmatprep.mubr.bf16.mxu1 %v10267_v55  ;;  %v10021_v9 = vunpack.i.h.bf16 %v13699_v26  ;;  %v10038_v26 = vunpack.i.l.bf16 %v13727_v50 }
 0xa92   :  { %v5803_v57 = vpack.c.bf16 %v10023_v58, %v10018_v16 }
 0xa94   :  { %v6424_v15 = vsel %vm3507_vm1, %v5803_v57, 0 }
 0xa97   :  { %9258 = vmatpush3.bf16.xpose.msra.mxu0 %v6183_v49  ;;  %v10269_v49 = vld [vmem:[#allocation7 + $0x1a0] ss:$8 sps:$4 sm:$0xff]  }
 0xa98   :  { %9581 = vmatprep.subr.msk.bf16.mxu0 %vm3507_vm1, %v5797_v25  ;;  %v5800_v25 = vpack.c.bf16 %v9985_v0, %v9980_v59  ;;  %5079 = vmatmul.mubr.bf16.gmra.mrb[192].mxu1 %v10269_v49  ;;  %v10031_v59 = vunpack.i.h.bf16 %v13713_v13  ;;  %v10036_v0 = vunpack.i.h.bf16 %v13722_v6  ;;  %v10048_v49 = vunpack.i.l.bf16 %v13737_v61 }
 0xa99   :  { %5086 = vmatprep.mubr.bf16.mxu1 %v10270_v18  ;;  %v10051_v6 = vunpack.i.h.bf16 %v13737_v61  ;;  %v10275_v61 = vld [vmem:[#allocation7 + $0x1c0] ss:$8 sps:$4 sm:$0xff]  }
 0xa9a   :  { %v6305_v24 = vsel %vm3507_vm1, %v5800_v25, 0 }
 0xa9e   :  { %9260 = vmatmul.mubr.msk.bf16.vlgmr.msra.gmra.mrb[48].mxu0 %vm3507_vm1, %v5772_v21  ;;  %v10000_v21 = vunpack.i.l.bf16 %v13711_v56 }
 0xa9f   :  { %9264 = vmatpush3.bf16.xpose.msra.mxu0 %v6241_v52  ;;  %9267 = vmatprep.mubr.msk.bf16.mxu0 %vm3507_vm1, %v5773_v29  ;;  %v10005_v29 = vunpack.i.l.bf16 %v13718_v8  ;;  %v5777_v52 = vpack.c.bf16 %v9998_v4, %v9993_v3  ;;  %v10273_v3 = vld [vmem:[#allocation7 + $0x1c4] ss:$8 sps:$4 sm:$0xff]  }
 0xaa0   :  { %9582 = vmatprep.subr.msk.bf16.mxu0 %vm3507_vm1, %v5798_v17  ;;  %5087 = vmatmul.mubr.bf16.gmra.mrb[196].mxu1 %v10272_v31  ;;  %v6363_v17 = vsel %vm3507_vm1, %v5801_v1, 0 }
 0xaa1   :  { %v5802_v5 = vpack.c.bf16 %v10005_v29, %v10000_v21  ;;  %5094 = vmatprep.mubr.bf16.mxu1 %v10273_v3  ;;  %v10276_v21 = vld [vmem:[#allocation7 + $0x1d4] ss:$8 sps:$4 sm:$0xff]  }
 0xaa3   :  { %v6366_v20 = vsel %vm3507_vm1, %v5802_v5, 0 }
 0xaa7   :  { %9266 = vmatpush3.bf16.xpose.msra.mxu0 %v6244_v45  ;;  %v10026_v45 = vunpack.i.h.bf16 %v13706_v40  ;;  %v10043_v40 = vunpack.i.l.bf16 %v13732_v48 }
 0xaa8   :  { %9583 = vmatprep.subr.msk.bf16.mxu0 %vm3507_vm1, %v5799_v42  ;;  %v10028_v42 = vunpack.i.l.bf16 %v13713_v13  ;;  %5095 = vmatmul.mubr.bf16.gmra.mrb[200].mxu1 %v10275_v61  ;;  %v10288_v61 = vld [vmem:[#allocation7 + $0x214] ss:$8 sps:$4 sm:$0xff]  }
 0xaa9   :  { %v5779_v19 = vpack.c.bf16 %v10026_v45, %v10021_v9  ;;  %v5805_v8 = vpack.c.bf16 %v10043_v40, %v10038_v26  ;;  %5102 = vmatprep.mubr.bf16.mxu1 %v10276_v21  ;;  %v10282_v9 = vld [vmem:[#allocation7 + $0x1f4] ss:$8 sps:$4 sm:$0xff]  }
 0xaaa   :  { %v5804_v55 = vpack.c.bf16 %v10033_v47, %v10028_v42  ;;  %v10284_v42 = vld [vmem:[#allocation7 + $0x1f0] ss:$8 sps:$4 sm:$0xff]  }
 0xaab   :  { %v6485_v35 = vsel %vm3507_vm1, %v5805_v8, 0 }
 0xaac   :  { %v6427_v56 = vsel %vm3507_vm1, %v5804_v55, 0 }
 0xaae   :  { %9268 = vmatmul.mubr.msk.bf16.vlgmr.msra.gmra.mrb[52].mxu0 %vm3507_vm1, %v5774_v12  ;;  %v10041_v12 = vunpack.i.h.bf16 %v13727_v50  ;;  %v10056_v50 = vunpack.i.h.bf16 %v13767_v62 }
 0xaaf   :  { %9272 = vmatpush3.bf16.xpose.msra.mxu0 %v6302_v51  ;;  %9275 = vmatprep.mubr.msk.bf16.mxu0 %vm3507_vm1, %v5775_v63  ;;  %v10046_v63 = vunpack.i.h.bf16 %v13732_v48  ;;  %v10053_v51 = vunpack.i.l.bf16 %v13767_v62 }
 0xab0   :  { %9584 = vmatprep.subr.msk.bf16.mxu0 %vm3507_vm1, %v5800_v25  ;;  %v5780_v25 = vpack.c.bf16 %v10036_v0, %v10031_v59  ;;  %v5782_v48 = vpack.c.bf16 %v10056_v50, %v10051_v6 }
 0xab1   :  { %v5781_v37 = vpack.c.bf16 %v10046_v63, %v10041_v12  ;;  %v5806_v18 = vpack.c.bf16 %v10053_v51, %v10048_v49 }
 0xab3   :  { %v6488_v13 = vsel %vm3507_vm1, %v5806_v18, 0 }
 0xab7   :  { %9274 = vmatpush3.bf16.xpose.msra.mxu0 %v6305_v24 }
 0xab8   :  { %9585 = vmatprep.subr.msk.bf16.mxu0 %vm3507_vm1, %v5801_v1 }
 0xabe   :  { %9276 = vmatmul.mubr.msk.bf16.vlgmr.msra.gmra.mrb[56].mxu0 %vm3507_vm1, %v5776_v33  ;;  %v10278_v33 = vld [vmem:[#allocation7 + $0x1d0] ss:$8 sps:$4 sm:$0xff]  }
 0xabf   :  { %9280 = vmatpush3.bf16.xpose.msra.mxu0 %v6363_v17  ;;  %9283 = vmatprep.mubr.msk.bf16.mxu0 %vm3507_vm1, %v5777_v52 }
 0xac0   :  { %9586 = vmatprep.subr.msk.bf16.mxu0 %vm3507_vm1, %v5802_v5  ;;  %5103 = vmatmul.mubr.bf16.gmra.mrb[204].mxu1 %v10278_v33 }
 0xac7   :  { %9282 = vmatpush3.bf16.xpose.msra.mxu0 %v6366_v20 }
 0xac8   :  { %9587 = vmatprep.subr.msk.bf16.mxu0 %vm3507_vm1, %v5803_v57  ;;  %v10279_v57 = vld [vmem:[#allocation7 + $0x1e4] ss:$8 sps:$4 sm:$0xff]  }
 0xac9   :  { %5110 = vmatprep.mubr.bf16.mxu1 %v10279_v57 }
 0xaca   :  { %5111 = vmatmul.mubr.bf16.gmra.mrb[208].mxu1 %v10281_v41 }
 0xacb   :  { %5118 = vmatprep.mubr.bf16.mxu1 %v10282_v9 }
 0xace   :  { %9284 = vmatmul.mubr.msk.bf16.vlgmr.msra.gmra.mrb[60].mxu0 %vm3507_vm1, %v5778_v30 }
 0xacf   :  { %9288 = vmatpush3.bf16.xpose.msra.mxu0 %v6424_v15  ;;  %9291 = vmatprep.mubr.msk.bf16.mxu0 %vm3507_vm1, %v5779_v19 }
 0xad0   :  { %9588 = vmatprep.subr.msk.bf16.mxu0 %vm3507_vm1, %v5804_v55 }
 0xad2   :  { %5119 = vmatmul.mubr.bf16.gmra.mrb[212].mxu1 %v10284_v42 }
 0xad7   :  { %9290 = vmatpush3.bf16.xpose.msra.mxu0 %v6427_v56 }
 0xad8   :  { %9589 = vmatprep.subr.msk.bf16.mxu0 %vm3507_vm1, %v5805_v8 }
 0xade   :  { %9292 = vmatmul.mubr.msk.bf16.vlgmr.msra.gmra.mrb[64].mxu0 %vm3507_vm1, %v5780_v25 }
 0xadf   :  { %9296 = vmatpush3.bf16.xpose.msra.mxu0 %v6485_v35  ;;  %9299 = vmatprep.mubr.msk.bf16.mxu0 %vm3507_vm1, %v5781_v37  ;;  %v10285_v37 = vld [vmem:[#allocation7 + $0x204] ss:$8 sps:$4 sm:$0xff]   ;;  %v10287_v35 = vld [vmem:[#allocation7 + $0x200] ss:$8 sps:$4 sm:$0xff]  }
 0xae0   :  { %9590 = vmatprep.subr.msk.bf16.mxu0 %vm3507_vm1, %v5806_v18  ;;  %5126 = vmatprep.mubr.bf16.mxu1 %v10285_v37 }
 0xae1   :  { %5127 = vmatmul.mubr.bf16.gmra.mrb[216].mxu1 %v10287_v35 }
 0xae2   :  { %5134 = vmatprep.mubr.bf16.mxu1 %v10288_v61 }
 0xae7   :  { %9298 = vmatpush3.bf16.xpose.msra.mxu0 %v6488_v13 }
 0xaee   :  { %9300 = vmatmul.mubr.msk.bf16.vlgmr.msra.gmra.mrb[68].mxu0 %vm3507_vm1, %v5782_v48 }
 0xb11   :  { %v13841_v31 = vpop.f32.mrb[24].mxu0 }
 0xb12   :  { %v13843_v24 = vpop.f32.mrb[25].mxu0  ;;  %v6545_v1 = vsel %vm3507_vm1, %v13841_v31, -inf }
 0xb13   :  { %6546 = vmax.xlane.f32.xlu1 %v6545_v1  ;;  %v13847_v28 = vpop.f32.mrb[26].mxu0  ;;  %v6539_v4 = vsel %vm3507_vm1, %v13843_v24, -inf }
 0xb14   :  { %v13849_v60 = vpop.f32.mrb[27].mxu0  ;;  %v6548_v29 = vsel %vm3507_vm1, %v13847_v28, -inf }
 0xb15   :  { %v6542_v62 = vsel %vm3507_vm1, %v13849_v60, -inf }
 0xb16   :  { %6543 = vmax.xlane.f32.xlu0 %v6542_v62  ;;  %v10290_v62 = vld [vmem:[#allocation7 + $0x210] ss:$8 sps:$4 sm:$0xff]  }
 0xb17   :  { %6540 = vmax.xlane.f32.xlu1 %v6539_v4  ;;  %5135 = vmatmul.mubr.bf16.gmra.mrb[220].mxu1 %v10290_v62 }
 0xb1b   :  { %6549 = vmax.xlane.f32.xlu1 %v6548_v29 }
 0xb21   :  { %v13857_v52 = vpop.f32.mrb[28].mxu0 }
 0xb22   :  { %v6557_v17 = vsel %vm3507_vm1, %v13857_v52, -inf  ;;  %v13861_v5 = vpop.f32.mrb[29].mxu0 }
 0xb23   :  { %6558 = vmax.xlane.f32.xlu1 %v6557_v17  ;;  %v13863_v16 = vpop.f32.mrb[30].mxu0  ;;  %v6551_v20 = vsel %vm3507_vm1, %v13861_v5, -inf }
 0xb24   :  { %v13865_v58 = vpop.f32.mrb[31].mxu0  ;;  %v6560_v43 = vsel %vm3507_vm1, %v13863_v16, -inf }
 0xb25   :  { %v6554_v45 = vsel %vm3507_vm1, %v13865_v58, -inf }
 0xb27   :  { %6552 = vmax.xlane.f32.xlu1 %v6551_v20 }
 0xb2b   :  { %6561 = vmax.xlane.f32.xlu1 %v6560_v43 }
 0xb2f   :  { %6555 = vmax.xlane.f32.xlu1 %v6554_v45 }
 0xb31   :  { %v13873_v47 = vpop.f32.mrb[32].mxu0 }
 0xb32   :  { %v13875_v30 = vpop.f32.mrb[33].mxu0  ;;  %v6569_v19 = vsel %vm3507_vm1, %v13873_v47, -inf }
 0xb33   :  { %6570 = vmax.xlane.f32.xlu0 %v6569_v19  ;;  %v13879_v15 = vpop.f32.mrb[34].mxu0  ;;  %v6563_v40 = vsel %vm3507_vm1, %v13875_v30, -inf }
 0xb34   :  { %v6572_v55 = vsel %vm3507_vm1, %v13879_v15, -inf  ;;  %v13883_v26 = vpop.f32.mrb[35].mxu0 }
 0xb35   :  { %6573 = vmax.xlane.f32.xlu1 %v6572_v55  ;;  %v6566_v56 = vsel %vm3507_vm1, %v13883_v26, -inf }
 0xb37   :  { %6564 = vmax.xlane.f32.xlu0 %v6563_v40 }
 0xb39   :  { %6567 = vmax.xlane.f32.xlu1 %v6566_v56 }
 0xb41   :  { %v13889_v8 = vpop.f32.mrb[36].mxu0 }
 0xb42   :  { %v13891_v59 = vpop.f32.mrb[37].mxu0  ;;  %v6581_v0 = vsel %vm3507_vm1, %v13889_v8, -inf }
 0xb43   :  { %6582 = vmax.xlane.f32.xlu0 %v6581_v0  ;;  %v13895_v12 = vpop.f32.mrb[38].mxu0  ;;  %v6575_v49 = vsel %vm3507_vm1, %v13891_v59, -inf }
 0xb44   :  { %v6584_v63 = vsel %vm3507_vm1, %v13895_v12, -inf  ;;  %v13901_v51 = vpop.f32.mrb[39].mxu0 }
 0xb45   :  { %6585 = vmax.xlane.f32.xlu1 %v6584_v63  ;;  %v6578_v25 = vsel %vm3507_vm1, %v13901_v51, -inf }
 0xb47   :  { %6576 = vmax.xlane.f32.xlu0 %v6575_v49 }
 0xb49   :  { %6579 = vmax.xlane.f32.xlu1 %v6578_v25 }
 0xb51   :  { %v13905_v18 = vpop.f32.mrb[40].mxu0 }
 0xb52   :  { %v13907_v13 = vpop.f32.mrb[41].mxu0  ;;  %v6593_v6 = vsel %vm3507_vm1, %v13905_v18, -inf }
 0xb53   :  { %6594 = vmax.xlane.f32.xlu0 %v6593_v6  ;;  %v13911_v50 = vpop.f32.mrb[42].mxu0  ;;  %v6587_v1 = vsel %vm3507_vm1, %v13907_v13, -inf }
 0xb54   :  { %v6596_v48 = vsel %vm3507_vm1, %v13911_v50, -inf  ;;  %v13917_v3 = vpop.f32.mrb[43].mxu0 }
 0xb55   :  { %6597 = vmax.xlane.f32.xlu1 %v6596_v48  ;;  %v6590_v4 = vsel %vm3507_vm1, %v13917_v3, -inf }
 0xb57   :  { %6588 = vmax.xlane.f32.xlu0 %v6587_v1 }
 0xb59   :  { %6591 = vmax.xlane.f32.xlu1 %v6590_v4 }
 0xb5b   :  { %v13953_v63 = vpop.f32.mrb[184].mxu1 }
 0xb5c   :  { %v5066_v49 = vpop.f32.mrb[185].mxu1 }
 0xb5d   :  { %v13955_v25 = vpop.f32.mrb[186].mxu1 }
 0xb5e   :  { %v5069_v37 = vpop.f32.mrb[187].mxu1 }
 0xb61   :  { %v13921_v21 = vpop.f32.mrb[44].mxu0 }
 0xb62   :  { %v13923_v29 = vpop.f32.mrb[45].mxu0  ;;  %v6605_v33 = vsel %vm3507_vm1, %v13921_v21, -inf }
 0xb63   :  { %6606 = vmax.xlane.f32.xlu0 %v6605_v33  ;;  %v13927_v17 = vpop.f32.mrb[46].mxu0  ;;  %v6599_v57 = vsel %vm3507_vm1, %v13923_v29, -inf  ;;  %v13957_v35 = vpop.f32.mrb[188].mxu1 }
 0xb64   :  { %v6608_v20 = vsel %vm3507_vm1, %v13927_v17, -inf  ;;  %v13933_v41 = vpop.f32.mrb[47].mxu0  ;;  %v5074_v6 = vpop.f32.mrb[189].mxu1 }
 0xb65   :  { %6609 = vmax.xlane.f32.xlu1 %v6608_v20  ;;  %v6602_v43 = vsel %vm3507_vm1, %v13933_v41, -inf  ;;  %v13961_v1 = vpop.f32.mrb[190].mxu1 }
 0xb66   :  { %v5077_v4 = vpop.f32.mrb[191].mxu1 }
 0xb67   :  { %6600 = vmax.xlane.f32.xlu0 %v6599_v57 }
 0xb69   :  { %6603 = vmax.xlane.f32.xlu1 %v6602_v43 }
 0xb6b   :  { %v13969_v20 = vpop.f32.mrb[192].mxu1 }
 0xb71   :  { %v13937_v9 = vpop.f32.mrb[48].mxu0 }
 0xb72   :  { %v13939_v45 = vpop.f32.mrb[49].mxu0  ;;  %v6617_v42 = vsel %vm3507_vm1, %v13937_v9, -inf }
 0xb73   :  { %6618 = vmax.xlane.f32.xlu0 %v6617_v42  ;;  %v13943_v19 = vpop.f32.mrb[50].mxu0  ;;  %v6611_v40 = vsel %vm3507_vm1, %v13939_v45, -inf }
 0xb74   :  { %v6620_v55 = vsel %vm3507_vm1, %v13943_v19, -inf  ;;  %v13949_v56 = vpop.f32.mrb[51].mxu0 }
 0xb75   :  { %6621 = vmax.xlane.f32.xlu1 %v6620_v55  ;;  %v6614_v0 = vsel %vm3507_vm1, %v13949_v56, -inf }
 0xb77   :  { %6612 = vmax.xlane.f32.xlu0 %v6611_v40  ;;  %v5082_v40 = vpop.f32.mrb[193].mxu1 }
 0xb78   :  { %v13981_v49 = vpop.f32.mrb[194].mxu1 }
 0xb79   :  { %6615 = vmax.xlane.f32.xlu1 %v6614_v0  ;;  %v5085_v6 = vpop.f32.mrb[195].mxu1 }
 0xb81   :  { %v13959_v48 = vpop.f32.mrb[52].mxu0 }
 0xb82   :  { %v13963_v61 = vpop.f32.mrb[53].mxu0  ;;  %v6629_v62 = vsel %vm3507_vm1, %v13959_v48, -inf }
 0xb83   :  { %6630 = vmax.xlane.f32.xlu0 %v6629_v62  ;;  %v13967_v33 = vpop.f32.mrb[54].mxu0  ;;  %v6623_v43 = vsel %vm3507_vm1, %v13963_v61, -inf  ;;  %v13985_v62 = vpop.f32.mrb[196].mxu1 }
 0xb84   :  { %v6632_v57 = vsel %vm3507_vm1, %v13967_v33, -inf  ;;  %v13975_v42 = vpop.f32.mrb[55].mxu0  ;;  %v5090_v22 = vpop.f32.mrb[197].mxu1 }
 0xb85   :  { %6633 = vmax.xlane.f32.xlu1 %v6632_v57  ;;  %v6626_v0 = vsel %vm3507_vm1, %v13975_v42, -inf  ;;  %v13989_v55 = vpop.f32.mrb[198].mxu1 }
 0xb86   :  { %v5093_v40 = vpop.f32.mrb[199].mxu1 }
 0xb87   :  { %6624 = vmax.xlane.f32.xlu0 %v6623_v43 }
 0xb89   :  { %6627 = vmax.xlane.f32.xlu1 %v6626_v0 }
 0xb91   :  { %v13993_v43 = vpop.f32.mrb[56].mxu0 }
 0xb92   :  { %v13995_v10 = vpop.f32.mrb[57].mxu0 }
 0xb93   :  { %v13997_v46 = vpop.f32.mrb[58].mxu0  ;;  %v6635_v0 = vsel %vm3507_vm1, %v13995_v10, -inf }
 0xb94   :  { %6636 = vmax.xlane.f32.xlu0 %v6635_v0  ;;  %v14001_v6 = vpop.f32.mrb[59].mxu0 }
 0xb95   :  { %v6638_v22 = vsel %vm3507_vm1, %v14001_v6, -inf }
 0xb96   :  { %6639 = vmax.xlane.f32.xlu1 %v6638_v22 }
 0xba0   :  { %v6547_v4 = vpop.xlane.xlu1 %6546 }
 0xba1   :  { %v6685_v57 = vsub.f32 %v13841_v31, %v6547_v4  ;;  %v14006_v40 = vpop.f32.mrb[60].mxu0 }
 0xba2   :  { %v14008_v37 = vpop.f32.mrb[61].mxu0 }
 0xba3   :  { %v6735_v7 = vmul.f32 1.442695, %v6685_v57  ;;  %v6544_v39 = vpop.xlane.xlu0 %6543  ;;  %v14010_v38 = vpop.f32.mrb[62].mxu0 }
 0xba4   :  { %v6541_v54 = vpop.xlane.xlu1 %6540  ;;  %v14012_v23 = vpop.f32.mrb[63].mxu0  ;;  %v6684_v34 = vsub.f32 %v13849_v60, %v6544_v39 }
 0xba5   :  { %10509 = vpow2.f32 %v6735_v7  ;;  %v6683_v0 = vsub.f32 %v13843_v24, %v6541_v54 }
 0xba6   :  { %v6733_v4 = vmul.f32 1.442695, %v6684_v34 }
 0xba7   :  { %v6731_v22 = vmul.f32 1.442695, %v6683_v0 }
 0xba8   :  { %v6550_v27 = vpop.xlane.xlu1 %6549 }
 0xba9   :  { %10511 = vpow2.f32 %v6731_v22  ;;  %v6686_v31 = vsub.f32 %v13847_v28, %v6550_v27 }
 0xbab   :  { %v6737_v53 = vmul.f32 1.442695, %v6686_v31 }
 0xbad   :  { %10513 = vpow2.f32 %v6737_v53 }
 0xbae   :  { %10515 = vpow2.f32 %v6733_v4 }
 0xbaf   :  { %v14017_v57 = vpop.eup %10509 }
 0xbb0   :  { %v6559_v32 = vpop.xlane.xlu1 %6558  ;;  %v6833_v2 = vsel %vm3507_vm1, %v14017_v57, 0.0 }
 0xbb1   :  { %v6689_v7 = vsub.f32 %v13857_v52, %v6559_v32  ;;  %6834 = vadd.xlane.f32.xlu0 %v6833_v2  ;;  %v14022_v54 = vpop.f32.mrb[64].mxu0 }
 0xbb2   :  { %v14024_v39 = vpop.f32.mrb[65].mxu0 }
 0xbb3   :  { %v14026_v24 = vpop.eup %10511  ;;  %v6743_v27 = vmul.f32 1.442695, %v6689_v7  ;;  %v14028_v34 = vpop.f32.mrb[66].mxu0 }
 0xbb4   :  { %v6553_v53 = vpop.xlane.xlu1 %6552  ;;  %v6827_v28 = vsel %vm3507_vm1, %v14026_v24, 0.0  ;;  %v14032_v60 = vpop.f32.mrb[67].mxu0 }
 0xbb5   :  { %10517 = vpow2.f32 %v6743_v27  ;;  %v6687_v0 = vsub.f32 %v13861_v5, %v6553_v53  ;;  %6828 = vadd.xlane.f32.xlu0 %v6827_v28 }
 0xbb7   :  { %v14035_v2 = vpop.eup %10513  ;;  %v6739_v32 = vmul.f32 1.442695, %v6687_v0 }
 0xbb8   :  { %v6562_v52 = vpop.xlane.xlu1 %6561  ;;  %v6836_v22 = vsel %vm3507_vm1, %v14035_v2, 0.0  ;;  %v14039_v31 = vpop.eup %10515 }
 0xbb9   :  { %10519 = vpow2.f32 %v6739_v32  ;;  %v6690_v4 = vsub.f32 %v13863_v16, %v6562_v52  ;;  %6837 = vadd.xlane.f32.xlu1 %v6836_v22  ;;  %v6830_v27 = vsel %vm3507_vm1, %v14039_v31, 0.0 }
 0xbbb   :  { %v6745_v7 = vmul.f32 1.442695, %v6690_v4 }
 0xbbc   :  { %v6556_v36 = vpop.xlane.xlu1 %6555 }
 0xbbd   :  { %10521 = vpow2.f32 %v6745_v7  ;;  %v6688_v5 = vsub.f32 %v13865_v58, %v6556_v36  ;;  %6831 = vadd.xlane.f32.xlu1 %v6830_v27 }
 0xbbf   :  { %v14045_v53 = vpop.eup %10517  ;;  %v6741_v28 = vmul.f32 1.442695, %v6688_v5 }
 0xbc0   :  { %15014 = vst [vmem:[#allocation31_spill] sm:$0xff] %v14045_v53  ;;  %v6571_v0 = vpop.xlane.xlu0 %6570  ;;  %v6845_v11 = vsel %vm3507_vm1, %v14045_v53, 0.0 }
 0xbc1   :  { %10523 = vpow2.f32 %v6741_v28  ;;  %v6693_v16 = vsub.f32 %v13873_v47, %v6571_v0  ;;  %6846 = vadd.xlane.f32.xlu0 %v6845_v11  ;;  %v14050_v32 = vpop.f32.mrb[68].mxu0 }
 0xbc2   :  { %v14052_v52 = vpop.f32.mrb[69].mxu0 }
 0xbc3   :  { %v14054_v22 = vpop.eup %10519  ;;  %v6751_v4 = vmul.f32 1.442695, %v6693_v16  ;;  %v14056_v36 = vpop.f32.mrb[70].mxu0 }
 0xbc4   :  { %15015 = vst [vmem:[#allocation12_spill] sm:$0xff] %v14054_v22  ;;  %v6565_v58 = vpop.xlane.xlu0 %6564  ;;  %v6839_v7 = vsel %vm3507_vm1, %v14054_v22, 0.0  ;;  %v14060_v27 = vpop.f32.mrb[71].mxu0 }
 0xbc5   :  { %15016 = vst [vmem:[#allocation14_spill] sm:$0xff] %v14060_v27  ;;  %10525 = vpow2.f32 %v6751_v4  ;;  %v6691_v5 = vsub.f32 %v13875_v30, %v6565_v58  ;;  %6840 = vadd.xlane.f32.xlu0 %v6839_v7  ;;  %v6641_v4 = vsel %vm3507_vm1, %v13993_v43, -inf }
 0xbc7   :  { %v14063_v11 = vpop.eup %10521  ;;  %v6747_v47 = vmul.f32 1.442695, %v6691_v5  ;;  %v6644_v5 = vsel %vm3507_vm1, %v13997_v46, -inf }
 0xbc8   :  { %15017 = vst [vmem:[#allocation18_spill] sm:$0xff] %v14063_v11  ;;  %v6848_v28 = vsel %vm3507_vm1, %v14063_v11, 0.0 }
 0xbc9   :  { %10527 = vpow2.f32 %v6747_v47  ;;  %6849 = vadd.xlane.f32.xlu1 %v6848_v28  ;;  %v6647_v47 = vsel %vm3507_vm1, %v14008_v37, -inf  ;;  %v6650_v28 = vsel %vm3507_vm1, %v14012_v23, -inf }
 0xbcb   :  { %v14067_v0 = vpop.eup %10523 }
 0xbcc   :  { %15018 = vst [vmem:[#allocation22_spill] sm:$0xff] %v14067_v0  ;;  %v6842_v16 = vsel %vm3507_vm1, %v14067_v0, 0.0 }
 0xbcd   :  { %6843 = vadd.xlane.f32.xlu1 %v6842_v16  ;;  %v10291_v16 = vld [vmem:[#allocation7 + $0x224] ss:$8 sps:$4 sm:$0xff]  }
 0xbce   :  { %5142 = vmatprep.mubr.bf16.mxu1 %v10291_v16  ;;  %v6668_v16 = vsel %vm3507_vm1, %v14028_v34, -inf }
 0xbcf   :  { %v14071_v44 = vpop.eup %10525 }
 0xbd0   :  { %15019 = vst [vmem:[#allocation24_spill] sm:$0xff] %v14071_v44  ;;  %v6857_v30 = vsel %vm3507_vm1, %v14071_v44, 0.0  ;;  %v6574_v44 = vpop.xlane.xlu1 %6573 }
 0xbd1   :  { %6858 = vadd.xlane.f32.xlu0 %v6857_v30  ;;  %6642 = vmax.xlane.f32.xlu1 %v6641_v4  ;;  %v10293_v30 = vld [vmem:[#allocation7 + $0x220] ss:$8 sps:$4 sm:$0xff]   ;;  %v6653_v4 = vsel %vm3507_vm1, %v14006_v40, -inf }
 0xbd2   :  { %5143 = vmatmul.mubr.bf16.gmra.mrb[224].mxu1 %v10293_v30  ;;  %v6694_v30 = vsub.f32 %v13879_v15, %v6574_v44 }
 0xbd3   :  { %v14077_v58 = vpop.eup %10527 }
 0xbd4   :  { %15020 = vst [vmem:[#allocation26_spill] sm:$0xff] %v14077_v58  ;;  %v6851_v7 = vsel %vm3507_vm1, %v14077_v58, 0.0  ;;  %v6583_v58 = vpop.xlane.xlu0 %6582 }
 0xbd5   :  { %6852 = vadd.xlane.f32.xlu0 %v6851_v7  ;;  %6645 = vmax.xlane.f32.xlu1 %v6644_v5  ;;  %v6656_v7 = vsel %vm3507_vm1, %v14010_v38, -inf  ;;  %v10294_v5 = vld [vmem:[#allocation7 + $0x234] ss:$8 sps:$4 sm:$0xff]   ;;  %v6697_v44 = vsub.f32 %v13889_v8, %v6583_v58  ;;  %v6680_v8 = vsel %vm3507_vm1, %v14056_v36, -inf }
 0xbd6   :  { %5150 = vmatprep.mubr.bf16.mxu1 %v10294_v5 }
 0xbd9   :  { %6648 = vmax.xlane.f32.xlu1 %v6647_v47  ;;  %v6659_v47 = vsel %vm3507_vm1, %v14024_v39, -inf }
 0xbda   :  { %5151 = vmatmul.mubr.bf16.gmra.mrb[228].mxu1 %v10296_v14  ;;  %v6671_v14 = vsel %vm3507_vm1, %v14052_v52, -inf }
 0xbdd   :  { %6651 = vmax.xlane.f32.xlu1 %v6650_v28  ;;  %v6665_v28 = vsel %vm3507_vm1, %v14022_v54, -inf }
 0xbe1   :  { %6654 = vmax.xlane.f32.xlu1 %v6653_v4  ;;  %v6568_v4 = vpop.xlane.xlu1 %6567 }
 0xbe2   :  { %v6692_v5 = vsub.f32 %v13883_v26, %v6568_v4  ;;  %v6677_v26 = vsel %vm3507_vm1, %v14050_v32, -inf  ;;  %v6759_v4 = vmul.f32 1.442695, %v6697_v44 }
 0xbe4   :  { %v6749_v11 = vmul.f32 1.442695, %v6692_v5 }
 0xbe5   :  { %6657 = vmax.xlane.f32.xlu1 %v6656_v7  ;;  %v6753_v7 = vmul.f32 1.442695, %v6694_v30  ;;  %v6586_v30 = vpop.xlane.xlu1 %6585 }
 0xbe7   :  { %10529 = vpow2.f32 %v6753_v7 }
 0xbe8   :  { %10531 = vpow2.f32 %v6749_v11 }
 0xbe9   :  { %6660 = vmax.xlane.f32.xlu1 %v6659_v47  ;;  %v14101_v47 = vpop.f32.mrb[200].mxu1  ;;  %10533 = vpow2.f32 %v6759_v4 }
 0xbea   :  { %v5098_v53 = vpop.f32.mrb[201].mxu1 }
 0xbeb   :  { %v14106_v15 = vpop.f32.mrb[202].mxu1 }
 0xbec   :  { %v5101_v22 = vpop.f32.mrb[203].mxu1 }
 0xbed   :  { %6666 = vmax.xlane.f32.xlu1 %v6665_v28  ;;  %v6674_v28 = vsel %vm3507_vm1, %v14060_v27, -inf  ;;  %v14108_v0 = vpop.f32.mrb[204].mxu1  ;;  %v6698_v22 = vsub.f32 %v13895_v12, %v6586_v30  ;;  %v6580_v27 = vpop.xlane.xlu1 %6579 }
 0xbee   :  { %v5106_v53 = vpop.f32.mrb[205].mxu1 }
 0xbef   :  { %v14113_v7 = vpop.f32.mrb[206].mxu1  ;;  %v6761_v4 = vmul.f32 1.442695, %v6698_v22 }
 0xbf0   :  { %v5109_v5 = vpop.f32.mrb[207].mxu1 }
 0xbf1   :  { %6669 = vmax.xlane.f32.xlu1 %v6668_v16  ;;  %v6577_v16 = vpop.xlane.xlu0 %6576  ;;  %v14122_v53 = vpop.eup %10529 }
 0xbf2   :  { %v6860_v5 = vsel %vm3507_vm1, %v14122_v53, 0.0 }
 0xbf5   :  { %6672 = vmax.xlane.f32.xlu1 %v6671_v14  ;;  %v6695_v14 = vsub.f32 %v13891_v59, %v6577_v16  ;;  %v6595_v16 = vpop.xlane.xlu0 %6594 }
 0xbf7   :  { %v6755_v58 = vmul.f32 1.442695, %v6695_v14  ;;  %v6696_v14 = vsub.f32 %v13901_v51, %v6580_v27 }
 0xbf9   :  { %6675 = vmax.xlane.f32.xlu1 %v6674_v28  ;;  %v14118_v28 = vpop.f32.mrb[208].mxu1  ;;  %10535 = vpow2.f32 %v6755_v58  ;;  %v6589_v22 = vpop.xlane.xlu0 %6588 }
 0xbfa   :  { %v5114_v44 = vpop.f32.mrb[209].mxu1  ;;  %10537 = vpow2.f32 %v6761_v4 }
 0xbfb   :  { %v14124_v59 = vpop.f32.mrb[210].mxu1  ;;  %v14134_v44 = vpop.eup %10531 }
 0xbfc   :  { %v5117_v30 = vpop.f32.mrb[211].mxu1  ;;  %v6854_v51 = vsel %vm3507_vm1, %v14134_v44, 0.0 }
 0xbfd   :  { %6678 = vmax.xlane.f32.xlu1 %v6677_v26  ;;  %v15021_v26 = vpack.i.bf16 %v13969_v20, %v13953_v63  ;;  %v6757_v63 = vmul.f32 1.442695, %v6696_v14  ;;  %v6701_v20 = vsub.f32 %v13905_v18, %v6595_v16  ;;  %v14146_v30 = vpop.eup %10533  ;;  %v6699_v14 = vsub.f32 %v13907_v13, %v6589_v22  ;;  %v6607_v13 = vpop.xlane.xlu0 %6606 }
 0xbff   :  { %10539 = vpow2.f32 %v6757_v63  ;;  %v6767_v4 = vmul.f32 1.442695, %v6701_v20 }
 0xc01   :  { %6681 = vmax.xlane.f32.xlu1 %v6680_v8  ;;  %v15022_v8 = vpack.i.bf16 %v13981_v49, %v13955_v25  ;;  %v6598_v25 = vpop.xlane.xlu1 %6597  ;;  %v15023_v49 = vpack.i.bf16 %v13985_v62, %v13957_v35  ;;  %10541 = vpow2.f32 %v6767_v4  ;;  %v6763_v62 = vmul.f32 1.442695, %v6699_v14  ;;  %v6601_v4 = vpop.xlane.xlu0 %6600 }
 0xc02   :  { %10058 = vxpose.xlu0.b32.start [1/4] (short) (narrow) %v15021_v26, 64  ;;  %v14140_v26 = vpop.f32.mrb[212].mxu1  ;;  %v6702_v35 = vsub.f32 %v13911_v50, %v6598_v25  ;;  %v6705_v25 = vsub.f32 %v13921_v21, %v6607_v13 }
 0xc03   :  { %v5122_v58 = vpop.f32.mrb[213].mxu1  ;;  %10543 = vpow2.f32 %v6763_v62 }
 0xc04   :  { %v14158_v58 = vpop.eup %10535  ;;  %v6769_v22 = vmul.f32 1.442695, %v6702_v35  ;;  %v6703_v35 = vsub.f32 %v13923_v29, %v6601_v4 }
 0xc05   :  { %6861 = vadd.xlane.f32.xlu1 %v6860_v5  ;;  %v14148_v5 = vpop.f32.mrb[214].mxu1  ;;  %v6863_v63 = vsel %vm3507_vm1, %v14158_v58, 0.0  ;;  %v14166_v20 = vpop.eup %10537 }
 0xc06   :  { %10060 = vxpose.xlu0.b32.cont [2/4] (short) (narrow) %v15022_v8, 64  ;;  %v5125_v16 = vpop.f32.mrb[215].mxu1  ;;  %v6869_v8 = vsel %vm3507_vm1, %v14146_v30, 0.0  ;;  %10545 = vpow2.f32 %v6769_v22 }
 0xc09   :  { %6855 = vadd.xlane.f32.xlu1 %v6854_v51  ;;  %v15024_v51 = vpack.i.bf16 %v13989_v55, %v13961_v1  ;;  %v6872_v1 = vsel %vm3507_vm1, %v14166_v20, 0.0  ;;  %v14171_v55 = vpop.eup %10539 }
 0xc0a   :  { %10062 = vxpose.xlu0.b32.cont [3/4] (short) (narrow) %v15023_v49, 64  ;;  %v6592_v49 = vpop.xlane.xlu1 %6591  ;;  %v6866_v14 = vsel %vm3507_vm1, %v14171_v55, 0.0 }
 0xc0b   :  { %v6700_v16 = vsub.f32 %v13917_v3, %v6592_v49  ;;  %v6775_v3 = vmul.f32 1.442695, %v6705_v25 }
 0xc0d   :  { %6870 = vadd.xlane.f32.xlu1 %v6869_v8  ;;  %v6765_v50 = vmul.f32 1.442695, %v6700_v16  ;;  %v14176_v8 = vpop.eup %10541 }
 0xc0e   :  { %10064 = vxpose.xlu0.b32.end [4/4] (short) (narrow) %v15024_v51, 64  ;;  %v6610_v51 = vpop.xlane.xlu1 %6609  ;;  %v6881_v62 = vsel %vm3507_vm1, %v14176_v8, 0.0  ;;  %v14181_v49 = vpop.eup %10543 }
 0xc0f   :  { %10547 = vpow2.f32 %v6765_v50  ;;  %v6706_v21 = vsub.f32 %v13927_v17, %v6610_v51  ;;  %v6875_v22 = vsel %vm3507_vm1, %v14181_v49, 0.0  ;;  %v14194_v51 = vpop.f32.mrb[216].mxu1 }
 0xc10   :  { %10549 = vpow2.f32 %v6775_v3  ;;  %v14186_v16 = vpop.eup %10545 }
 0xc11   :  { %6864 = vadd.xlane.f32.xlu1 %v6863_v63  ;;  %v6771_v63 = vmul.f32 1.442695, %v6703_v35  ;;  %v6777_v50 = vmul.f32 1.442695, %v6706_v21  ;;  %v6884_v25 = vsel %vm3507_vm1, %v14186_v16, 0.0 }
 0xc12   :  { %v6604_v13 = vpop.xlane.xlu1 %6603 }
 0xc13   :  { %10551 = vpow2.f32 %v6771_v63  ;;  %v6704_v29 = vsub.f32 %v13933_v41, %v6604_v13 }
 0xc14   :  { %10553 = vpow2.f32 %v6777_v50 }
 0xc15   :  { %6873 = vadd.xlane.f32.xlu1 %v6872_v1  ;;  %v6619_v1 = vpop.xlane.xlu0 %6618  ;;  %v6773_v17 = vmul.f32 1.442695, %v6704_v29 }
 0xc16   :  { %v6622_v63 = vpop.xlane.xlu1 %6621 }
 0xc17   :  { %10555 = vpow2.f32 %v6773_v17 }
 0xc19   :  { %6867 = vadd.xlane.f32.xlu1 %v6866_v14  ;;  %v14191_v4 = vpop.eup %10547  ;;  %v6709_v14 = vsub.f32 %v13937_v9, %v6619_v1  ;;  %v6613_v3 = vpop.xlane.xlu0 %6612 }
 0xc1a   :  { %v6878_v35 = vsel %vm3507_vm1, %v14191_v4, 0.0  ;;  %v14198_v21 = vpop.eup %10549  ;;  %v6707_v50 = vsub.f32 %v13939_v45, %v6613_v3  ;;  %v6616_v18 = vpop.xlane.xlu1 %6615 }
 0xc1b   :  { %15025 = vst [vmem:[#allocation28_spill] sm:$0xff] %v14198_v21  ;;  %v6893_v9 = vsel %vm3507_vm1, %v14198_v21, 0.0 }
 0xc1d   :  { %6882 = vadd.xlane.f32.xlu1 %v6881_v62  ;;  %v5130_v62 = vpop.f32.mrb[217].mxu1  ;;  %v14205_v1 = vpop.eup %10551 }
 0xc1e   :  { %v14200_v41 = vpop.f32.mrb[218].mxu1  ;;  %v6887_v17 = vsel %vm3507_vm1, %v14205_v1, 0.0  ;;  %v14214_v45 = vpop.eup %10553 }
 0xc1f   :  { %v5133_v13 = vpop.f32.mrb[219].mxu1 }
 0xc20   :  { %v14207_v29 = vpop.f32.mrb[220].mxu1  ;;  %v6631_v13 = vpop.xlane.xlu0 %6630 }
 0xc21   :  { %6876 = vadd.xlane.f32.xlu1 %v6875_v22  ;;  %v6783_v22 = vmul.f32 1.442695, %v6709_v14  ;;  %v5138_v62 = vpop.f32.mrb[221].mxu1 }
 0xc22   :  { %v14212_v14 = vpop.f32.mrb[222].mxu1 }
 0xc23   :  { %10557 = vpow2.f32 %v6783_v22  ;;  %v5141_v3 = vpop.f32.mrb[223].mxu1 }
 0xc24   :  { %v6625_v62 = vpop.xlane.xlu0 %6624 }
 0xc25   :  { %6885 = vadd.xlane.f32.xlu1 %v6884_v25  ;;  %v6710_v25 = vsub.f32 %v13943_v19, %v6622_v63  ;;  %v6896_v19 = vsel %vm3507_vm1, %v14214_v45, 0.0  ;;  %v14219_v63 = vpop.eup %10555 }
 0xc26   :  { %v6890_v12 = vsel %vm3507_vm1, %v14219_v63, 0.0 }
 0xc27   :  { %v6785_v27 = vmul.f32 1.442695, %v6710_v25  ;;  %v6713_v25 = vsub.f32 %v13959_v48, %v6631_v13 }
 0xc29   :  { %6879 = vadd.xlane.f32.xlu1 %v6878_v35  ;;  %v6779_v35 = vmul.f32 1.442695, %v6707_v50  ;;  %v6634_v50 = vpop.xlane.xlu1 %6633 }
 0xc2b   :  { %10559 = vpow2.f32 %v6779_v35 }
 0xc2c   :  { %10561 = vpow2.f32 %v6785_v27  ;;  %v6791_v27 = vmul.f32 1.442695, %v6713_v25 }
 0xc2d   :  { %6894 = vadd.xlane.f32.xlu1 %v6893_v9  ;;  %v6708_v9 = vsub.f32 %v13949_v56, %v6616_v18  ;;  %v6711_v56 = vsub.f32 %v13963_v61, %v6625_v62  ;;  %v6637_v18 = vpop.xlane.xlu0 %6636 }
 0xc2f   :  { %v6781_v22 = vmul.f32 1.442695, %v6708_v9  ;;  %v6628_v9 = vpop.xlane.xlu1 %6627  ;;  %v6787_v11 = vmul.f32 1.442695, %v6711_v56 }
 0xc30   :  { %v6712_v25 = vsub.f32 %v13975_v42, %v6628_v9 }
 0xc31   :  { %6888 = vadd.xlane.f32.xlu1 %v6887_v17  ;;  %v14223_v17 = vpop.eup %10557  ;;  %10563 = vpow2.f32 %v6781_v22 }
 0xc32   :  { %v6905_v35 = vsel %vm3507_vm1, %v14223_v17, 0.0  ;;  %10565 = vpow2.f32 %v6791_v27  ;;  %v6662_v27 = vsel %vm3507_vm1, %v14032_v60, -inf }
 0xc33   :  { %v6640_v61 = vpop.xlane.xlu1 %6639  ;;  %10567 = vpow2.f32 %v6787_v11 }
 0xc35   :  { %6897 = vadd.xlane.f32.xlu1 %v6896_v19  ;;  %v14229_v3 = vpop.eup %10559  ;;  %v6714_v19 = vsub.f32 %v13967_v33, %v6634_v50 }
 0xc36   :  { %v6899_v48 = vsel %vm3507_vm1, %v14229_v3, 0.0 }
 0xc37   :  { %v6793_v13 = vmul.f32 1.442695, %v6714_v19 }
 0xc39   :  { %6891 = vadd.xlane.f32.xlu1 %v6890_v12  ;;  %v14234_v12 = vpop.eup %10561 }
 0xc3a   :  { %v6908_v22 = vsel %vm3507_vm1, %v14234_v12, 0.0 }
 0xc3b   :  { %v14238_v62 = vpop.eup %10563 }
 0xc3c   :  { %v6902_v56 = vsel %vm3507_vm1, %v14238_v62, 0.0  ;;  %v14245_v19 = vpop.eup %10565 }
 0xc3d   :  { %6906 = vadd.xlane.f32.xlu1 %v6905_v35  ;;  %v6789_v35 = vmul.f32 1.442695, %v6712_v25  ;;  %15026 = vst [vmem:[#allocation30_spill] sm:$0xff] %v14245_v19  ;;  %v14247_v42 = vpop.eup %10567 }
 0xc3e   :  { %v6835_v21 = vpop.xlane.xlu0 %6834  ;;  %15027 = vst [vmem:[#allocation37_spill] sm:$0xff] %v14247_v42 }
 0xc3f   :  { %10569 = vrcp.f32 %v6835_v21  ;;  %v6917_v21 = vsel %vm3507_vm1, %v14245_v19, 0.0 }
 0xc41   :  { %6900 = vadd.xlane.f32.xlu1 %v6899_v48 }
 0xc42   :  { %v6829_v33 = vpop.xlane.xlu0 %6828 }
 0xc45   :  { %6909 = vadd.xlane.f32.xlu1 %v6908_v22 }
 0xc46   :  { %v6838_v50 = vpop.xlane.xlu1 %6837 }
 0xc47   :  { %10571 = vrcp.f32 %v6838_v50 }
 0xc48   :  { %10573 = vpow2.f32 %v6793_v13 }
 0xc49   :  { %10575 = vrcp.f32 %v6829_v33  ;;  %6903 = vadd.xlane.f32.xlu1 %v6902_v56  ;;  %v10570_v9 = vpop.eup %10569  ;;  %v6911_v33 = vsel %vm3507_vm1, %v14247_v42, 0.0  ;;  %v6715_v56 = vsub.f32 %v13995_v10, %v6637_v18 }
 0xc4a   :  { %v6832_v11 = vpop.xlane.xlu1 %6831  ;;  %v14254_v22 = vmul.f32 %v10570_v9, %v14017_v57 }
 0xc4b   :  { %10577 = vrcp.f32 %v6832_v11  ;;  %6663 = vmax.xlane.f32.xlu0 %v6662_v27 }
 0xc4c   :  { %10579 = vpow2.f32 %v6789_v35 }
 0xc4f   :  { %6918 = vadd.xlane.f32.xlu0 %v6917_v21 }
 0xc51   :  { %v10572_v48 = vpop.eup %10571 }
 0xc52   :  { %v14251_v13 = vpop.eup %10573  ;;  %v14257_v25 = vmul.f32 %v10572_v48, %v14035_v2 }
 0xc53   :  { %15028 = vst [vmem:[#allocation38_spill] sm:$0xff] %v14251_v13  ;;  %v10576_v50 = vpop.eup %10575  ;;  %6912 = vadd.xlane.f32.xlu0 %v6911_v33  ;;  %v6920_v27 = vsel %vm3507_vm1, %v14251_v13, 0.0 }
 0xc54   :  { %v7019_v57 = vmul.f32 %v10576_v50, %v14026_v24  ;;  %v6795_v24 = vmul.f32 1.442695, %v6715_v56 }
 0xc55   :  { %v10578_v35 = vpop.eup %10577 }
 0xc56   :  { %v14263_v11 = vpop.xlane.xlu1 %6849  ;;  %v7020_v21 = vmul.f32 %v10578_v35, %v14039_v31  ;;  %v14269_v2 = vpop.eup %10579 }
 0xc57   :  { %6921 = vadd.xlane.f32.xlu0 %v6920_v27  ;;  %v6914_v33 = vsel %vm3507_vm1, %v14269_v2, 0.0  ;;  %v6716_v27 = vsub.f32 %v14001_v6, %v6640_v61 }
 0xc58   :  { %v7067_v9 = vpack.c.bf16 %v7020_v21, %v7019_v57 }
 0xc5a   :  { %9307 = vmatprep.mubr.msk.bf16.mxu0 %vm3507_vm1, %v7067_v9  ;;  %v14272_v48 = vpop.xlane.xlu1 %6843  ;;  %v6797_v9 = vmul.f32 1.442695, %v6716_v27 }
 0xc5b   :  { %6915 = vadd.xlane.f32.xlu0 %v6914_v33 }
 0xc5e   :  { %v6643_v19 = vpop.xlane.xlu1 %6642 }
 0xc5f   :  { %v6717_v13 = vsub.f32 %v13993_v43, %v6643_v19  ;;  %v14283_v43 = vpop.xlane.xlu0 %6846 }
 0xc61   :  { %v6799_v50 = vmul.f32 1.442695, %v6717_v13 }
 0xc62   :  { %v6646_v31 = vpop.xlane.xlu1 %6645 }
 0xc63   :  { %10581 = vpow2.f32 %v6799_v50  ;;  %v6718_v35 = vsub.f32 %v13997_v46, %v6646_v31  ;;  %v6841_v31 = vpop.xlane.xlu0 %6840 }
 0xc64   :  { %10583 = vpow2.f32 %v6795_v24 }
 0xc65   :  { %v6801_v57 = vmul.f32 1.442695, %v6718_v35 }
 0xc66   :  { %v6649_v21 = vpop.xlane.xlu1 %6648 }
 0xc67   :  { %10585 = vpow2.f32 %v6801_v57  ;;  %v6719_v10 = vsub.f32 %v14008_v37, %v6649_v21 }
 0xc68   :  { %10587 = vpow2.f32 %v6797_v9  ;;  %v14300_v9 = vpop.xlane.xlu0 %6858 }
 0xc69   :  { %v6803_v61 = vmul.f32 1.442695, %v6719_v10 }
 0xc6a   :  { %v6652_v42 = vpop.xlane.xlu1 %6651 }
 0xc6b   :  { %v6720_v35 = vsub.f32 %v14012_v23, %v6652_v42  ;;  %v15029_v23 = vpack.i.bf16 %v14118_v28, %v14101_v47 }
 0xc6d   :  { %v14280_v33 = vpop.eup %10581  ;;  %v6805_v10 = vmul.f32 1.442695, %v6720_v35 }
 0xc6e   :  { %v6655_v18 = vpop.xlane.xlu1 %6654  ;;  %v6929_v19 = vsel %vm3507_vm1, %v14280_v33, 0.0  ;;  %v14287_v46 = vpop.eup %10583 }
 0xc6f   :  { %v6721_v6 = vsub.f32 %v14006_v40, %v6655_v18  ;;  %6930 = vadd.xlane.f32.xlu0 %v6929_v19  ;;  %v6923_v24 = vsel %vm3507_vm1, %v14287_v46, 0.0 }
 0xc71   :  { %v6807_v13 = vmul.f32 1.442695, %v6721_v6  ;;  %v14292_v50 = vpop.eup %10585 }
 0xc72   :  { %v6658_v56 = vpop.xlane.xlu1 %6657  ;;  %v6932_v40 = vsel %vm3507_vm1, %v14292_v50, 0.0  ;;  %v14298_v21 = vpop.eup %10587 }
 0xc73   :  { %10589 = vpow2.f32 %v6807_v13  ;;  %v6722_v37 = vsub.f32 %v14010_v38, %v6658_v56  ;;  %6924 = vadd.xlane.f32.xlu0 %v6923_v24  ;;  %v6926_v38 = vsel %vm3507_vm1, %v14298_v21, 0.0  ;;  %v14311_v13 = vpop.xlane.xlu0 %6852 }
 0xc74   :  { %10591 = vpow2.f32 %v6803_v61 }
 0xc75   :  { %v6809_v27 = vmul.f32 1.442695, %v6722_v37 }
 0xc76   :  { %v6661_v57 = vpop.xlane.xlu1 %6660 }
 0xc77   :  { %6933 = vadd.xlane.f32.xlu0 %v6932_v40  ;;  %10593 = vpow2.f32 %v6809_v27  ;;  %v6723_v6 = vsub.f32 %v14024_v39, %v6661_v57 }
 0xc78   :  { %10595 = vpow2.f32 %v6805_v10 }
 0xc79   :  { %v6811_v47 = vmul.f32 1.442695, %v6723_v6 }
 0xc7a   :  { %v6667_v18 = vpop.xlane.xlu1 %6666 }
 0xc7b   :  { %v6725_v19 = vsub.f32 %v14022_v54, %v6667_v18  ;;  %6927 = vadd.xlane.f32.xlu0 %v6926_v38  ;;  %v15030_v54 = vpack.i.bf16 %v14124_v59, %v14106_v15  ;;  %v15031_v59 = vpack.i.bf16 %v14140_v26, %v14108_v0  ;;  %v15032_v0 = vld [vmem:[#allocation14_spill] sm:$0xff] }
 0xc7c   :  { %10106 = vxpose.xlu1.b32.start [1/4] (short) (narrow) %v15029_v23, 64  ;;  %v15033_v23 = vpack.i.bf16 %v14148_v5, %v14113_v7  ;;  %v15036_v26 = vld [vmem:[#allocation22_spill] sm:$0xff] }
 0xc7d   :  { %v14308_v42 = vpop.eup %10589  ;;  %v6815_v61 = vmul.f32 1.442695, %v6725_v19 }
 0xc7e   :  { %v6670_v56 = vpop.xlane.xlu1 %6669  ;;  %v6941_v24 = vsel %vm3507_vm1, %v14308_v42, 0.0  ;;  %v14315_v37 = vpop.eup %10591 }
 0xc7f   :  { %6942 = vadd.xlane.f32.xlu0 %v6941_v24  ;;  %10597 = vpow2.f32 %v6815_v61  ;;  %v6726_v28 = vsub.f32 %v14028_v34, %v6670_v56  ;;  %v6935_v27 = vsel %vm3507_vm1, %v14315_v37, 0.0 }
 0xc80   :  { %10108 = vxpose.xlu1.b32.cont [2/4] (short) (narrow) %v15030_v54, 64  ;;  %10599 = vrcp.f32 %v14272_v48 }
 0xc81   :  { %v14327_v57 = vpop.eup %10593  ;;  %10601 = vpow2.f32 %v6811_v47  ;;  %v6817_v34 = vmul.f32 1.442695, %v6726_v28 }
 0xc82   :  { %v14321_v35 = vpop.trf.xlu0  ;;  %v14323_v39 = vpop.xlane.xlu1 %6672  ;;  %v6944_v38 = vsel %vm3507_vm1, %v14327_v57, 0.0  ;;  %10603 = vrcp.f32 %v6841_v31 }
 0xc83   :  { %6936 = vadd.xlane.f32.xlu0 %v6935_v27  ;;  %v10066_v40 = vunpack.i.l.bf16 %v14321_v35  ;;  %v14342_v19 = vpop.eup %10595  ;;  %10605 = vpow2.f32 %v6817_v34 }
 0xc84   :  { %10110 = vxpose.xlu1.b32.cont [3/4] (short) (narrow) %v15031_v59, 64  ;;  %v6938_v24 = vsel %vm3507_vm1, %v14342_v19, 0.0  ;;  %10607 = vrcp.f32 %v14263_v11 }
 0xc85   :  { %10609 = vrcp.f32 %v14283_v43 }
 0xc86   :  { %v14336_v10 = vpop.trf.xlu0  ;;  %v14338_v18 = vpop.xlane.xlu1 %6675  ;;  %10611 = vrcp.f32 %v14311_v13 }
 0xc87   :  { %v10071_v48 = vunpack.i.l.bf16 %v14336_v10  ;;  %6945 = vadd.xlane.f32.xlu0 %v6944_v38 }
 0xc88   :  { %10112 = vxpose.xlu1.b32.end [4/4] (short) (narrow) %v15033_v23, 64 }
 0xc89   :  { %v7091_v6 = vpack.c.bf16 %v10071_v48, %v10066_v40  ;;  %v14356_v31 = vpop.eup %10597 }
 0xc8a   :  { %v14350_v61 = vpop.trf.xlu0  ;;  %v14352_v56 = vpop.xlane.xlu1 %6678  ;;  %15034 = vst [vmem:[#allocation14_spill] sm:$0xff] %v14356_v31  ;;  %v6953_v27 = vsel %vm3507_vm1, %v14356_v31, 0.0 }
 0xc8b   :  { %6939 = vadd.xlane.f32.xlu0 %v6938_v24  ;;  %9303 = vmatprep.subr.bf16.mxu0 %v7091_v6  ;;  %v10076_v7 = vunpack.i.l.bf16 %v14350_v61  ;;  %v10600_v5 = vpop.eup %10599 }
 0xc8c   :  { %9304 = vmatpush3.bf16.msra.mxu0 %v7091_v6  ;;  %v14367_v59 = vpop.eup %10601  ;;  %v7024_v15 = vmul.f32 %v10600_v5, %v15036_v26  ;;  %v15039_v5 = vpack.c.bf16 %v14257_v25, %v14254_v22 }
 0xc8d   :  { %15035 = vst [vmem:[#allocation39_spill] sm:$0xff] %v14367_v59  ;;  %v10604_v38 = vpop.eup %10603  ;;  %v6947_v24 = vsel %vm3507_vm1, %v14367_v59, 0.0 }
 0xc8e   :  { %v14361_v47 = vpop.trf.xlu0  ;;  %v14363_v28 = vpop.xlane.xlu1 %6681 }
 0xc8f   :  { %v10081_v34 = vunpack.i.l.bf16 %v14361_v47  ;;  %6954 = vadd.xlane.f32.xlu0 %v6953_v27  ;;  %v14377_v54 = vpop.eup %10605  ;;  %v15038_v27 = vld [vmem:[#allocation12_spill] sm:$0xff] }
 0xc90   :  { %15037 = vst [vmem:[#allocation22_spill] sm:$0xff] %v14377_v54  ;;  %v7023_v31 = vmul.f32 %v10604_v38, %v15038_v27  ;;  %v6956_v59 = vsel %vm3507_vm1, %v14377_v54, 0.0  ;;  %v10608_v13 = vpop.eup %10607 }
 0xc91   :  { %v7092_v48 = vpack.c.bf16 %v10081_v34, %v10076_v7 }
 0xc92   :  { %v14372_v23 = vpop.trf.xlu0  ;;  %v6862_v6 = vpop.xlane.xlu1 %6861  ;;  %v7069_v26 = vpack.c.bf16 %v7024_v15, %v7023_v31  ;;  %v10069_v15 = vunpack.i.h.bf16 %v14321_v35  ;;  %v10074_v31 = vunpack.i.h.bf16 %v14336_v10 }
 0xc93   :  { %9305 = vmatprep.subr.bf16.mxu0 %v7092_v48  ;;  %6948 = vadd.xlane.f32.xlu0 %v6947_v24  ;;  %v10086_v7 = vunpack.i.l.bf16 %v14372_v23  ;;  %v15040_v24 = vld [vmem:[#allocation18_spill] sm:$0xff] }
 0xc94   :  { %9306 = vmatpush3.bf16.msra.mxu0 %v7092_v48  ;;  %v7026_v27 = vmul.f32 %v10608_v13, %v15040_v24  ;;  %v7095_v35 = vpack.c.bf16 %v10074_v31, %v10069_v15  ;;  %v15042_v13 = vld [vmem:[#allocation26_spill] sm:$0xff] }
 0xc96   :  { %v14383_v34 = vpop.trf.xlu0  ;;  %v6856_v40 = vpop.xlane.xlu1 %6855 }
 0xc97   :  { %v10091_v11 = vunpack.i.l.bf16 %v14383_v34  ;;  %9308 = vmatmul.mubr.msk.bf16.vlgmr.msra.gmra.mrb[72].mxu0 %vm3507_vm1, %v15039_v5  ;;  %6957 = vadd.xlane.f32.xlu0 %v6956_v59  ;;  %10613 = vrcp.f32 %v6856_v40  ;;  %v10610_v40 = vpop.eup %10609  ;;  %v15041_v5 = vld [vmem:[#allocation31_spill] sm:$0xff] }
 0xc98   :  { %9315 = vmatprep.mubr.msk.bf16.mxu0 %vm3507_vm1, %v7069_v26  ;;  %10615 = vrcp.f32 %v6862_v6  ;;  %v10079_v6 = vunpack.i.h.bf16 %v14350_v61  ;;  %v10084_v26 = vunpack.i.h.bf16 %v14361_v47  ;;  %v10089_v61 = vunpack.i.h.bf16 %v14372_v23 }
 0xc99   :  { %5695 = vxpose.xlu1.b32.start [1/4] (short) (narrow) %v14194_v51, 64  ;;  %v7093_v43 = vpack.c.bf16 %v10091_v11, %v10086_v7  ;;  %10617 = vrcp.f32 %v14300_v9  ;;  %v10612_v7 = vpop.eup %10611  ;;  %v10094_v47 = vunpack.i.h.bf16 %v14383_v34 }
 0xc9a   :  { %v10095_v38 = vpop.trf.xlu0  ;;  %v6871_v48 = vpop.xlane.xlu1 %6870  ;;  %v7027_v24 = vmul.f32 %v10612_v7, %v15042_v13 }
 0xc9b   :  { %9311 = vmatprep.subr.bf16.mxu0 %v7093_v43  ;;  %v10096_v22 = vunpack.i.l.bf16 %v10095_v38 }
 0xc9c   :  { %9312 = vmatpush3.bf16.msra.mxu0 %v7093_v43 }
 0xc9d   :  { %5696 = vxpose.xlu1.b32.cont [2/4] (short) (narrow) %v14200_v41, 64  ;;  %v7025_v41 = vmul.f32 %v10610_v40, %v15041_v5  ;;  %v10099_v40 = vunpack.i.h.bf16 %v10095_v38 }
 0xc9e   :  { %v10100_v25 = vpop.trf.xlu0  ;;  %v6865_v59 = vpop.xlane.xlu1 %6864 }
 0xc9f   :  { %v10101_v51 = vunpack.i.l.bf16 %v10100_v25  ;;  %v7070_v54 = vpack.c.bf16 %v7026_v27, %v7025_v41  ;;  %v10104_v34 = vunpack.i.h.bf16 %v10100_v25 }
 0xca1   :  { %v7094_v11 = vpack.c.bf16 %v10101_v51, %v10096_v22  ;;  %5697 = vxpose.xlu1.b32.cont [3/4] (short) (narrow) %v14207_v29, 64  ;;  %v10614_v10 = vpop.eup %10613  ;;  %v7096_v29 = vpack.c.bf16 %v10084_v26, %v10079_v6  ;;  %v7098_v7 = vpack.c.bf16 %v10104_v34, %v10099_v40 }
 0xca2   :  { %v6874_v43 = vpop.xlane.xlu1 %6873  ;;  %v7028_v9 = vmul.f32 %v10614_v10, %v14134_v44  ;;  %v10616_v15 = vpop.eup %10615 }
 0xca3   :  { %9313 = vmatprep.subr.bf16.mxu0 %v7094_v11  ;;  %10619 = vrcp.f32 %v6874_v43  ;;  %v10618_v44 = vpop.eup %10617  ;;  %v7030_v23 = vmul.f32 %v10616_v15, %v14122_v53 }
 0xca4   :  { %9314 = vmatpush3.bf16.msra.mxu0 %v7094_v11  ;;  %10621 = vrcp.f32 %v6865_v59  ;;  %v7071_v22 = vpack.c.bf16 %v7028_v9, %v7027_v24  ;;  %v7097_v59 = vpack.c.bf16 %v10094_v47, %v10089_v61 }
 0xca5   :  { %9319 = vmatprep.subr.bf16.mxu0 %v7095_v35  ;;  %5698 = vxpose.xlu1.b32.end [4/4] (short) (narrow) %v14212_v14, 64  ;;  %10623 = vrcp.f32 %v6871_v48  ;;  %v15043_v14 = vld [vmem:[#allocation24_spill] sm:$0xff] }
 0xca6   :  { %v6868_v31 = vpop.xlane.xlu1 %6867  ;;  %v7029_v27 = vmul.f32 %v10618_v44, %v15043_v14 }
 0xca7   :  { %10625 = vrcp.f32 %v6868_v31  ;;  %9316 = vmatmul.mubr.msk.bf16.vlgmr.msra.gmra.mrb[76].mxu0 %vm3507_vm1, %v7070_v54 }
 0xca8   :  { %9320 = vmatpush3.bf16.msra.mxu0 %v7095_v35  ;;  %9323 = vmatprep.mubr.msk.bf16.mxu0 %vm3507_vm1, %v7071_v22  ;;  %v7072_v48 = vpack.c.bf16 %v7030_v23, %v7029_v27  ;;  %v14414_v35 = vpop.f32.mrb[224].mxu1 }
 0xca9   :  { %9321 = vmatprep.subr.bf16.mxu0 %v7096_v29  ;;  %v5146_v25 = vpop.f32.mrb[225].mxu1 }
 0xcaa   :  { %v6883_v51 = vpop.xlane.xlu1 %6882  ;;  %v14419_v43 = vpop.f32.mrb[226].mxu1 }
 0xcab   :  { %10627 = vrcp.f32 %v6883_v51  ;;  %v5149_v13 = vpop.f32.mrb[227].mxu1 }
 0xcac   :  { %9322 = vmatpush3.bf16.msra.mxu0 %v7096_v29 }
 0xcad   :  { %9327 = vmatprep.subr.bf16.mxu0 %v7097_v59  ;;  %v10620_v6 = vpop.eup %10619  ;;  %v14424_v47 = vpop.f32.mrb[228].mxu1 }
 0xcae   :  { %v6877_v26 = vpop.xlane.xlu1 %6876  ;;  %v10622_v54 = vpop.eup %10621  ;;  %v7034_v38 = vmul.f32 %v10620_v6, %v14166_v20 }
 0xcaf   :  { %9324 = vmatmul.mubr.msk.bf16.vlgmr.msra.gmra.mrb[80].mxu0 %vm3507_vm1, %v7072_v48  ;;  %v10624_v11 = vpop.eup %10623  ;;  %v7031_v5 = vmul.f32 %v10622_v54, %v14158_v58  ;;  %v5154_v58 = vpop.f32.mrb[229].mxu1 }
 0xcb0   :  { %9328 = vmatpush3.bf16.msra.mxu0 %v7097_v59  ;;  %v7033_v9 = vmul.f32 %v10624_v11, %v14146_v30  ;;  %v15046_v11 = vsub.f32 %v14056_v36, %v14363_v28 }
 0xcb1   :  { %v10626_v53 = vpop.eup %10625  ;;  %9329 = vmatprep.subr.bf16.mxu0 %v7098_v7 }
 0xcb2   :  { %v6886_v10 = vpop.xlane.xlu1 %6885  ;;  %v7032_v41 = vmul.f32 %v10626_v53, %v14171_v55  ;;  %v7074_v61 = vpack.c.bf16 %v7034_v38, %v7033_v9  ;;  %v14426_v55 = vpop.f32.mrb[230].mxu1  ;;  %v6825_v53 = vmul.f32 1.442695, %v15046_v11 }
 0xcb3   :  { %10629 = vrcp.f32 %v6886_v10  ;;  %v5157_v15 = vpop.f32.mrb[231].mxu1 }
 0xcb4   :  { %9330 = vmatpush3.bf16.msra.mxu0 %v7098_v7  ;;  %v7073_v24 = vpack.c.bf16 %v7032_v41, %v7031_v5  ;;  %10631 = vrcp.f32 %v6877_v26 }
 0xcb5   :  { %v10628_v29 = vpop.eup %10627 }
 0xcb6   :  { %9331 = vmatprep.mubr.msk.bf16.mxu0 %vm3507_vm1, %v7073_v24  ;;  %v6880_v20 = vpop.xlane.xlu1 %6879  ;;  %v14429_v31 = vmul.f32 %v10628_v29, %v14176_v8 }
 0xcb7   :  { %10633 = vrcp.f32 %v6880_v20  ;;  %9332 = vmatmul.mubr.msk.bf16.vlgmr.msra.gmra.mrb[84].mxu0 %vm3507_vm1, %v7074_v61 }
 0xcba   :  { %v6895_v14 = vpop.xlane.xlu1 %6894 }
 0xcbd   :  { %v10630_v30 = vpop.eup %10629 }
 0xcbe   :  { %v14432_v22 = vmul.f32 %v10630_v30, %v14186_v16  ;;  %v10632_v44 = vpop.eup %10631  ;;  %v6889_v27 = vpop.xlane.xlu1 %6888  ;;  %v15044_v16 = vsub.f32 %v14050_v32, %v14352_v56  ;;  %v15047_v32 = vsub.f32 %v15032_v0, %v14338_v18 }
 0xcbf   :  { %v7035_v34 = vmul.f32 %v10632_v44, %v14181_v49  ;;  %v15045_v49 = vsub.f32 %v14052_v52, %v14323_v39 }
 0xcc0   :  { %v7076_v23 = vpack.c.bf16 %v14432_v22, %v14429_v31  ;;  %v6823_v6 = vmul.f32 1.442695, %v15044_v16  ;;  %v6821_v56 = vmul.f32 1.442695, %v15047_v32 }
 0xcc1   :  { %v10634_v40 = vpop.eup %10633  ;;  %v6819_v54 = vmul.f32 1.442695, %v15045_v49 }
 0xcc2   :  { %v7036_v59 = vmul.f32 %v10634_v40, %v14191_v4  ;;  %v6898_v7 = vpop.xlane.xlu1 %6897 }
 0xcc4   :  { %v7075_v51 = vpack.c.bf16 %v7036_v59, %v7035_v34 }
 0xcc6   :  { %9339 = vmatprep.mubr.msk.bf16.mxu0 %vm3507_vm1, %v7075_v51  ;;  %v6892_v4 = vpop.xlane.xlu1 %6891 }
 0xcca   :  { %v14449_v38 = vpop.xlane.xlu1 %6906 }
 0xcce   :  { %v6901_v36 = vpop.xlane.xlu1 %6900 }
 0xcd2   :  { %v6910_v41 = vpop.xlane.xlu1 %6909 }
 0xcd6   :  { %v6904_v61 = vpop.xlane.xlu1 %6903 }
 0xcd8   :  { %v6664_v48 = vpop.xlane.xlu0 %6663 }
 0xcd9   :  { %v6724_v8 = vsub.f32 %v14032_v60, %v6664_v48 }
 0xcdb   :  { %v6813_v26 = vmul.f32 1.442695, %v6724_v8 }
 0xcdc   :  { %v14451_v60 = vpop.xlane.xlu0 %6918 }
 0xcdd   :  { %10635 = vpow2.f32 %v6813_v26 }
 0xcde   :  { %10637 = vpow2.f32 %v6823_v6 }
 0xcdf   :  { %10639 = vpow2.f32 %v6819_v54 }
 0xce0   :  { %10641 = vpow2.f32 %v6825_v53  ;;  %v14462_v28 = vpop.xlane.xlu0 %6912 }
 0xce1   :  { %10643 = vpow2.f32 %v6821_v56 }
 0xce2   :  { %10645 = vrcp.f32 %v6892_v4 }
 0xce3   :  { %10647 = vrcp.f32 %v6889_v27 }
 0xce4   :  { %v14472_v9 = vpop.xlane.xlu0 %6921  ;;  %10649 = vrcp.f32 %v6898_v7 }
 0xce5   :  { %10651 = vrcp.f32 %v6895_v14 }
 0xce6   :  { %10653 = vrcp.f32 %v6904_v61 }
 0xce7   :  { %v14453_v25 = vpop.eup %10635  ;;  %10655 = vrcp.f32 %v6901_v36 }
 0xce8   :  { %v6950_v52 = vsel %vm3507_vm1, %v14453_v25, 0.0  ;;  %v14460_v39 = vpop.eup %10637  ;;  %v6916_v20 = vpop.xlane.xlu0 %6915  ;;  %10657 = vrcp.f32 %v6910_v41 }
 0xce9   :  { %6951 = vadd.xlane.f32.xlu0 %v6950_v52  ;;  %v6965_v10 = vsel %vm3507_vm1, %v14460_v39, 0.0  ;;  %v14466_v5 = vpop.eup %10639  ;;  %10659 = vrcp.f32 %v6916_v20 }
 0xcea   :  { %v6959_v18 = vsel %vm3507_vm1, %v14466_v5, 0.0  ;;  %v14470_v0 = vpop.eup %10641  ;;  %10661 = vrcp.f32 %v14449_v38 }
 0xceb   :  { %v6968_v13 = vsel %vm3507_vm1, %v14470_v0, 0.0  ;;  %v14476_v24 = vpop.eup %10643  ;;  %10663 = vrcp.f32 %v14462_v28 }
 0xcec   :  { %v6962_v58 = vsel %vm3507_vm1, %v14476_v24, 0.0  ;;  %v10646_v6 = vpop.eup %10645  ;;  %10665 = vrcp.f32 %v14472_v9 }
 0xced   :  { %6966 = vadd.xlane.f32.xlu0 %v6965_v10  ;;  %v10648_v49 = vpop.eup %10647  ;;  %v7040_v27 = vmul.f32 %v10646_v6, %v14219_v63 }
 0xcee   :  { %v7039_v53 = vmul.f32 %v10648_v49, %v14205_v1  ;;  %v10650_v1 = vpop.eup %10649 }
 0xcef   :  { %v10652_v31 = vpop.eup %10651 }
 0xcf0   :  { %v7077_v52 = vpack.c.bf16 %v7040_v27, %v7039_v53 }
 0xcf1   :  { %6960 = vadd.xlane.f32.xlu0 %v6959_v18 }
 0xcf5   :  { %6969 = vadd.xlane.f32.xlu0 %v6968_v13 }
 0xcf9   :  { %6963 = vadd.xlane.f32.xlu0 %v6962_v58 }
 0xcfc   :  { %v14480_v29 = vpop.xlane.xlu0 %6930  ;;  %v10113_v15 = vpop.trf.xlu1 }
 0xcfd   :  { %v10114_v30 = vunpack.i.l.bf16 %v10113_v15  ;;  %v10117_v7 = vunpack.i.h.bf16 %v10113_v15 }
 0xd00   :  { %v10118_v44 = vpop.trf.xlu1  ;;  %v14482_v40 = vpop.xlane.xlu0 %6924 }
 0xd01   :  { %v10119_v34 = vunpack.i.l.bf16 %v10118_v44  ;;  %v10122_v36 = vunpack.i.h.bf16 %v10118_v44 }
 0xd03   :  { %v7099_v51 = vpack.c.bf16 %v10119_v34, %v10114_v30  ;;  %v7042_v30 = vmul.f32 %v10650_v1, %v14214_v45  ;;  %v7103_v44 = vpack.c.bf16 %v10122_v36, %v10117_v7 }
 0xd04   :  { %v14484_v59 = vpop.trf.xlu1  ;;  %v14486_v48 = vpop.xlane.xlu0 %6933 }
 0xd05   :  { %9335 = vmatprep.subr.bf16.mxu0 %v7099_v51  ;;  %v10124_v8 = vunpack.i.l.bf16 %v14484_v59  ;;  %v10127_v41 = vunpack.i.h.bf16 %v14484_v59 }
 0xd06   :  { %9336 = vmatpush3.bf16.msra.mxu0 %v7099_v51 }
 0xd08   :  { %v10128_v16 = vpop.trf.xlu1  ;;  %v6928_v11 = vpop.xlane.xlu0 %6927 }
 0xd09   :  { %v10129_v26 = vunpack.i.l.bf16 %v10128_v16  ;;  %v10132_v51 = vunpack.i.h.bf16 %v10128_v16  ;;  %10667 = vrcp.f32 %v6928_v11 }
 0xd0a   :  { %10669 = vrcp.f32 %v14451_v60 }
 0xd0b   :  { %v7100_v4 = vpack.c.bf16 %v10129_v26, %v10124_v8  ;;  %v15048_v8 = vld [vmem:[#allocation28_spill] sm:$0xff]  ;;  %10671 = vrcp.f32 %v14482_v40 }
 0xd0c   :  { %v14489_v54 = vpop.trf.xlu1  ;;  %v14498_v18 = vpop.xlane.xlu0 %6942  ;;  %v7041_v6 = vmul.f32 %v10652_v31, %v15048_v8  ;;  %10673 = vrcp.f32 %v14486_v48 }
 0xd0d   :  { %9337 = vmatprep.subr.bf16.mxu0 %v7100_v4  ;;  %v10134_v32 = vunpack.i.l.bf16 %v14489_v54  ;;  %v10137_v45 = vunpack.i.h.bf16 %v14489_v54 }
 0xd0e   :  { %9338 = vmatpush3.bf16.msra.mxu0 %v7100_v4  ;;  %v7078_v28 = vpack.c.bf16 %v7042_v30, %v7041_v6  ;;  %v7104_v4 = vpack.c.bf16 %v10132_v51, %v10127_v41 }
 0xd10   :  { %v10138_v56 = vpop.trf.xlu1  ;;  %v6937_v22 = vpop.xlane.xlu0 %6936 }
 0xd11   :  { %v10139_v10 = vunpack.i.l.bf16 %v10138_v56  ;;  %9340 = vmatmul.mubr.msk.bf16.vlgmr.msra.gmra.mrb[88].mxu0 %vm3507_vm1, %v7076_v23  ;;  %v10654_v23 = vpop.eup %10653  ;;  %v10142_v59 = vunpack.i.h.bf16 %v10138_v56 }
 0xd12   :  { %9347 = vmatprep.mubr.msk.bf16.mxu0 %vm3507_vm1, %v7077_v52  ;;  %v10656_v34 = vpop.eup %10655  ;;  %v7044_v26 = vmul.f32 %v10654_v23, %v14238_v62 }
 0xd13   :  { %v7101_v14 = vpack.c.bf16 %v10139_v10, %v10134_v32  ;;  %v7043_v49 = vmul.f32 %v10656_v34, %v14229_v3  ;;  %v10658_v27 = vpop.eup %10657  ;;  %v7105_v52 = vpack.c.bf16 %v10142_v59, %v10137_v45 }
 0xd14   :  { %v14501_v63 = vpop.trf.xlu1  ;;  %v6946_v38 = vpop.xlane.xlu0 %6945  ;;  %v7046_v54 = vmul.f32 %v10658_v27, %v14234_v12 }
 0xd15   :  { %9343 = vmatprep.subr.bf16.mxu0 %v7101_v14  ;;  %v10144_v13 = vunpack.i.l.bf16 %v14501_v63  ;;  %v7079_v53 = vpack.c.bf16 %v7044_v26, %v7043_v49  ;;  %v10660_v62 = vpop.eup %10659  ;;  %v10147_v11 = vunpack.i.h.bf16 %v14501_v63 }
 0xd16   :  { %9344 = vmatpush3.bf16.msra.mxu0 %v7101_v14  ;;  %v10662_v9 = vpop.eup %10661  ;;  %v7048_v10 = vmul.f32 %v10660_v62, %v14269_v2  ;;  %v15049_v14 = vld [vmem:[#allocation37_spill] sm:$0xff] }
 0xd17   :  { %v10664_v3 = vpop.eup %10663  ;;  %v7045_v40 = vmul.f32 %v10662_v9, %v14223_v17 }
 0xd18   :  { %v10148_v61 = vpop.trf.xlu1  ;;  %v6940_v60 = vpop.xlane.xlu0 %6939  ;;  %v7047_v1 = vmul.f32 %v10664_v3, %v15049_v14 }
 0xd19   :  { %v10149_v58 = vunpack.i.l.bf16 %v10148_v61  ;;  %v10152_v32 = vunpack.i.h.bf16 %v10148_v61  ;;  %10675 = vrcp.f32 %v6940_v60  ;;  %v7080_v12 = vpack.c.bf16 %v7046_v54, %v7045_v40  ;;  %v10666_v36 = vpop.eup %10665 }
 0xd1a   :  { %10677 = vrcp.f32 %v14480_v29  ;;  %v10668_v61 = vpop.eup %10667  ;;  %v15051_v29 = vld [vmem:[#allocation30_spill] sm:$0xff] }
 0xd1b   :  { %v7102_v20 = vpack.c.bf16 %v10149_v58, %v10144_v13  ;;  %v7106_v7 = vpack.c.bf16 %v10152_v32, %v10147_v11  ;;  %v7081_v13 = vpack.c.bf16 %v7048_v10, %v7047_v1  ;;  %10679 = vrcp.f32 %v6937_v22  ;;  %v10670_v17 = vpop.eup %10669  ;;  %v15052_v1 = vld [vmem:[#allocation39_spill] sm:$0xff] }
 0xd1c   :  { %v5711_v15 = vpop.trf.xlu1  ;;  %v10672_v2 = vpop.eup %10671  ;;  %v7052_v58 = vmul.f32 %v10668_v61, %v14298_v21  ;;  %v7049_v30 = vmul.f32 %v10670_v17, %v15051_v29  ;;  %10681 = vrcp.f32 %v6946_v38 }
 0xd1d   :  { %9345 = vmatprep.subr.bf16.mxu0 %v7102_v20  ;;  %v10674_v51 = vpop.eup %10673  ;;  %10683 = vrcp.f32 %v14498_v18 }
 0xd1e   :  { %9346 = vmatpush3.bf16.msra.mxu0 %v7102_v20 }
 0xd1f   :  { %9351 = vmatprep.subr.bf16.mxu0 %v7103_v44 }
 0xd20   :  { %v5712_v16 = vpop.trf.xlu1 }
 0xd21   :  { %9348 = vmatmul.mubr.msk.bf16.vlgmr.msra.gmra.mrb[92].mxu0 %vm3507_vm1, %v7078_v28  ;;  %v7107_v31 = vpack.c.bf16 %v5712_v16, %v5711_v15 }
 0xd22   :  { %9352 = vmatpush3.bf16.msra.mxu0 %v7103_v44  ;;  %9355 = vmatprep.mubr.msk.bf16.mxu0 %vm3507_vm1, %v7079_v53 }
 0xd23   :  { %9353 = vmatprep.subr.bf16.mxu0 %v7104_v4  ;;  %v10676_v15 = vpop.eup %10675 }
 0xd24   :  { %v5713_v56 = vpop.trf.xlu1  ;;  %v10678_v21 = vpop.eup %10677  ;;  %v7056_v6 = vmul.f32 %v10676_v15, %v14342_v19 }
 0xd25   :  { %v7053_v18 = vmul.f32 %v10678_v21, %v14280_v33 }
 0xd26   :  { %5727 = vxpose.xlu0.b32.start [1/4] (short) (narrow) %v14414_v35, 64  ;;  %9354 = vmatpush3.bf16.msra.mxu0 %v7104_v4  ;;  %v15050_v35 = vld [vmem:[#allocation38_spill] sm:$0xff] }
 0xd27   :  { %9359 = vmatprep.subr.bf16.mxu0 %v7105_v52  ;;  %v7050_v48 = vmul.f32 %v10666_v36, %v15050_v35 }
 0xd28   :  { %v5714_v63 = vpop.trf.xlu1 }
 0xd29   :  { %9356 = vmatmul.mubr.msk.bf16.vlgmr.msra.gmra.mrb[96].mxu0 %vm3507_vm1, %v7080_v12  ;;  %v7108_v22 = vpack.c.bf16 %v5714_v63, %v5713_v56  ;;  %v7082_v34 = vpack.c.bf16 %v7050_v48, %v7049_v30 }
 0xd2a   :  { %5728 = vxpose.xlu0.b32.cont [2/4] (short) (narrow) %v14419_v43, 64  ;;  %9360 = vmatpush3.bf16.msra.mxu0 %v7105_v52  ;;  %v7051_v43 = vmul.f32 %v10672_v2, %v14287_v46  ;;  %v7054_v46 = vmul.f32 %v10674_v51, %v14292_v50 }
 0xd2b   :  { %9363 = vmatprep.mubr.msk.bf16.mxu0 %vm3507_vm1, %v7081_v13  ;;  %9361 = vmatprep.subr.bf16.mxu0 %v7106_v7 }
 0xd2c   :  { %v5715_v23 = vpop.trf.xlu1  ;;  %v7083_v20 = vpack.c.bf16 %v7052_v58, %v7051_v43  ;;  %v7084_v38 = vpack.c.bf16 %v7054_v46, %v7053_v18 }
 0xd2e   :  { %5729 = vxpose.xlu0.b32.cont [3/4] (short) (narrow) %v14424_v47, 64  ;;  %9362 = vmatpush3.bf16.msra.mxu0 %v7106_v7  ;;  %v10680_v47 = vpop.eup %10679 }
 0xd2f   :  { %9367 = vmatprep.subr.bf16.mxu0 %v7107_v31  ;;  %v7055_v26 = vmul.f32 %v10680_v47, %v14315_v37  ;;  %v10682_v28 = vpop.eup %10681  ;;  %v6955_v37 = vpop.xlane.xlu0 %6954 }
 0xd30   :  { %v5716_v41 = vpop.trf.xlu1  ;;  %v10684_v59 = vpop.eup %10683  ;;  %v7058_v50 = vmul.f32 %v10682_v28, %v14327_v57 }
 0xd31   :  { %9364 = vmatmul.mubr.msk.bf16.vlgmr.msra.gmra.mrb[100].mxu0 %vm3507_vm1, %v7082_v34  ;;  %v7109_v44 = vpack.c.bf16 %v5716_v41, %v5715_v23  ;;  %v7085_v45 = vpack.c.bf16 %v7056_v6, %v7055_v26  ;;  %v7057_v33 = vmul.f32 %v10684_v59, %v14308_v42 }
 0xd32   :  { %5730 = vxpose.xlu0.b32.end [4/4] (short) (narrow) %v14426_v55, 64  ;;  %9368 = vmatpush3.bf16.msra.mxu0 %v7107_v31 }
 0xd33   :  { %9371 = vmatprep.mubr.msk.bf16.mxu0 %vm3507_vm1, %v7083_v20  ;;  %9369 = vmatprep.subr.bf16.mxu0 %v7108_v22  ;;  %v7086_v19 = vpack.c.bf16 %v7058_v50, %v7057_v33  ;;  %v6949_v27 = vpop.xlane.xlu0 %6948 }
 0xd34   :  { %v5717_v8 = vpop.trf.xlu1  ;;  %10685 = vrcp.f32 %v6949_v27 }
 0xd36   :  { %9370 = vmatpush3.bf16.msra.mxu0 %v7108_v22 }
 0xd37   :  { %9375 = vmatprep.subr.bf16.mxu0 %v7109_v44  ;;  %v6958_v57 = vpop.xlane.xlu0 %6957 }
 0xd38   :  { %v5718_v55 = vpop.trf.xlu1 }
 0xd39   :  { %v7110_v49 = vpack.c.bf16 %v5718_v55, %v5717_v8  ;;  %9372 = vmatmul.mubr.msk.bf16.vlgmr.msra.gmra.mrb[104].mxu0 %vm3507_vm1, %v7084_v38  ;;  %v15053_v8 = vld [vmem:[#allocation22_spill] sm:$0xff] }
 0xd3a   :  { %9376 = vmatpush3.bf16.msra.mxu0 %v7109_v44  ;;  %9379 = vmatprep.mubr.msk.bf16.mxu0 %vm3507_vm1, %v7085_v45  ;;  %v15054_v38 = vld [vmem:[#allocation14_spill] sm:$0xff] }
 0xd3b   :  { %9377 = vmatprep.subr.bf16.mxu0 %v7110_v49 }
 0xd3e   :  { %9378 = vmatpush3.bf16.msra.mxu0 %v7110_v49  ;;  %v10686_v10 = vpop.eup %10685 }
 0xd3f   :  { %v7059_v12 = vmul.f32 %v10686_v10, %v15052_v1 }
 0xd41   :  { %9380 = vmatmul.mubr.msk.bf16.vlgmr.msra.gmra.mrb[108].mxu0 %vm3507_vm1, %v7086_v19 }
 0xd6a   :  { %v14546_v16 = vpop.f32.mrb[72].mxu0 }
 0xd6b   :  { %v14548_v4 = vpop.f32.mrb[73].mxu0 }
 0xd6c   :  { %v14550_v53 = vpop.f32.mrb[74].mxu0 }
 0xd6d   :  { %v7776_v62 = vpack.c.bf16 %v14550_v53, %v14546_v16  ;;  %v14554_v9 = vpop.f32.mrb[75].mxu0 }
 0xd6e   :  { %v7775_v42 = vpack.c.bf16 %v14554_v9, %v14548_v4 }
 0xd76   :  { %v6952_v3 = vpop.xlane.xlu0 %6951 }
 0xd77   :  { %10687 = vrcp.f32 %v6952_v3 }
 0xd78   :  { %10689 = vrcp.f32 %v6958_v57 }
 0xd7a   :  { %v14558_v54 = vpop.f32.mrb[76].mxu0  ;;  %v6967_v29 = vpop.xlane.xlu0 %6966 }
 0xd7b   :  { %v14560_v11 = vpop.f32.mrb[77].mxu0 }
 0xd7c   :  { %v14562_v32 = vpop.f32.mrb[78].mxu0 }
 0xd7d   :  { %v7778_v56 = vpack.c.bf16 %v14562_v32, %v14558_v54  ;;  %v14566_v52 = vpop.f32.mrb[79].mxu0  ;;  %v10312_v54 = vld [vmem:[%s14796_s9 + $0x90] ss:$8 sps:$4 sm:$0xff]   ;;  %v10317_v32 = vld [vmem:[%s14796_s9 + $0xa4] ss:$8 sps:$4 sm:$0xff]  }
 0xd7e   :  { %v7777_v60 = vpack.c.bf16 %v14566_v52, %v14560_v11  ;;  %v6961_v30 = vpop.xlane.xlu0 %6960  ;;  %v10314_v11 = vld [vmem:[%s14796_s9 + $0x94] ss:$8 sps:$4 sm:$0xff]  }
 0xd81   :  { %v10688_v40 = vpop.eup %10687 }
 0xd82   :  { %v14570_v14 = vpop.f32.mrb[80].mxu0  ;;  %v7060_v63 = vmul.f32 %v10688_v40, %v14453_v25  ;;  %v6970_v43 = vpop.xlane.xlu0 %6969  ;;  %v10297_v40 = vld [vmem:[%s14796_s9 + $0x40] ss:$8 sps:$4 sm:$0xff]  }
 0xd83   :  { %v14574_v7 = vpop.f32.mrb[81].mxu0  ;;  %v10690_v15 = vpop.eup %10689 }
 0xd84   :  { %v14576_v36 = vpop.f32.mrb[82].mxu0  ;;  %v7087_v13 = vpack.c.bf16 %v7060_v63, %v7059_v12  ;;  %v7062_v6 = vmul.f32 %v10690_v15, %v15053_v8  ;;  %v10302_v12 = vld [vmem:[%s14796_s9 + $0x54] ss:$8 sps:$4 sm:$0xff]   ;;  %v10305_v63 = vld [vmem:[%s14796_s9 + $0x64] ss:$8 sps:$4 sm:$0xff]  }
 0xd85   :  { %v7780_v61 = vpack.c.bf16 %v14576_v36, %v14570_v14  ;;  %v14580_v17 = vpop.f32.mrb[83].mxu0 }
 0xd86   :  { %v7779_v2 = vpack.c.bf16 %v14580_v17, %v14574_v7  ;;  %9387 = vmatprep.mubr.msk.bf16.mxu0 %vm3507_vm1, %v7087_v13  ;;  %v6964_v22 = vpop.xlane.xlu0 %6963  ;;  %v10303_v13 = vld [vmem:[%s14796_s9 + $0x60] ss:$8 sps:$4 sm:$0xff]  }
 0xd87   :  { %10691 = vrcp.f32 %v6964_v22 }
 0xd88   :  { %10693 = vrcp.f32 %v6955_v37 }
 0xd89   :  { %10695 = vrcp.f32 %v6961_v30  ;;  %v10306_v30 = vld [vmem:[%s14796_s9 + $0x70] ss:$8 sps:$4 sm:$0xff]  }
 0xd8a   :  { %v14585_v35 = vpop.f32.mrb[84].mxu0  ;;  %10697 = vrcp.f32 %v6970_v43  ;;  %v10311_v43 = vld [vmem:[%s14796_s9 + $0x84] ss:$8 sps:$4 sm:$0xff]  }
 0xd8b   :  { %v14587_v48 = vpop.f32.mrb[85].mxu0  ;;  %10699 = vrcp.f32 %v6967_v29  ;;  %v10308_v29 = vld [vmem:[%s14796_s9 + $0x74] ss:$8 sps:$4 sm:$0xff]  }
 0xd8c   :  { %v14589_v25 = vpop.f32.mrb[86].mxu0 }
 0xd8d   :  { %v7782_v31 = vpack.c.bf16 %v14589_v25, %v14585_v35  ;;  %v14593_v23 = vpop.f32.mrb[87].mxu0  ;;  %v10318_v35 = vld [vmem:[%s14796_s9 + $0xb0] ss:$8 sps:$4 sm:$0xff]   ;;  %v10323_v25 = vld [vmem:[%s14796_s9 + $0xc4] ss:$8 sps:$4 sm:$0xff]  }
 0xd8e   :  { %v7781_v58 = vpack.c.bf16 %v14593_v23, %v14587_v48  ;;  %v10315_v48 = vld [vmem:[%s14796_s9 + $0xa0] ss:$8 sps:$4 sm:$0xff]  }
 0xd91   :  { %v10692_v21 = vpop.eup %10691 }
 0xd92   :  { %v10694_v47 = vpop.eup %10693  ;;  %v7064_v26 = vmul.f32 %v10692_v21, %v14476_v24 }
 0xd93   :  { %v10696_v44 = vpop.eup %10695  ;;  %v7061_v55 = vmul.f32 %v10694_v47, %v15054_v38 }
 0xd94   :  { %v7063_v49 = vmul.f32 %v10696_v44, %v14466_v5  ;;  %v10698_v24 = vpop.eup %10697  ;;  %v10299_v5 = vld [vmem:[%s14796_s9 + $0x44] ss:$8 sps:$4 sm:$0xff]  }
 0xd95   :  { %v7088_v45 = vpack.c.bf16 %v7062_v6, %v7061_v55  ;;  %v10700_v37 = vpop.eup %10699  ;;  %v7066_v57 = vmul.f32 %v10698_v24, %v14470_v0  ;;  %v10300_v0 = vld [vmem:[%s14796_s9 + $0x50] ss:$8 sps:$4 sm:$0xff]   ;;  %v10329_v24 = vld [vmem:[%s14796_s9 + $0xe4] ss:$8 sps:$4 sm:$0xff]  }
 0xd96   :  { %v7089_v59 = vpack.c.bf16 %v7064_v26, %v7063_v49  ;;  %v7065_v10 = vmul.f32 %v10700_v37, %v14460_v39  ;;  %v15055_v39 = vmov 0   ;;  %v10327_v37 = vld [vmem:[%s14796_s9 + $0xe0] ss:$8 sps:$4 sm:$0xff]  }
 0xd98   :  { %v7090_v1 = vpack.c.bf16 %v7066_v57, %v7065_v10  ;;  %v10330_v57 = vld [vmem:[%s14796_s9 + $0xf0] ss:$8 sps:$4 sm:$0xff]  }
 0xda6   :  { %v5743_v34 = vpop.trf.xlu0 }
 0xdaa   :  { %v5744_v41 = vpop.trf.xlu0 }
 0xdab   :  { %v7111_v51 = vpack.c.bf16 %v5744_v41, %v5743_v34 }
 0xdad   :  { %9383 = vmatprep.subr.bf16.mxu0 %v7111_v51 }
 0xdae   :  { %v5745_v20 = vpop.trf.xlu0  ;;  %9384 = vmatpush3.bf16.msra.mxu0 %v7111_v51 }
 0xdb2   :  { %v5746_v46 = vpop.trf.xlu0 }
 0xdb3   :  { %v7112_v18 = vpack.c.bf16 %v5746_v46, %v5745_v20 }
 0xdb5   :  { %9385 = vmatprep.subr.bf16.mxu0 %v7112_v18 }
 0xdb6   :  { %v5747_v28 = vpop.trf.xlu0  ;;  %9386 = vmatpush3.bf16.msra.mxu0 %v7112_v18 }
 0xdb9   :  { %9388 = vmatmul.mubr.msk.bf16.vlgmr.msra.gmra.mrb[112].mxu0 %vm3507_vm1, %v7088_v45 }
 0xdba   :  { %v5748_v50 = vpop.trf.xlu0  ;;  %9395 = vmatprep.mubr.msk.bf16.mxu0 %vm3507_vm1, %v7089_v59 }
 0xdbb   :  { %v7113_v33 = vpack.c.bf16 %v5748_v50, %v5747_v28  ;;  %v10321_v50 = vld [vmem:[%s14796_s9 + $0xc0] ss:$8 sps:$4 sm:$0xff]  }
 0xdbd   :  { %9391 = vmatprep.subr.bf16.mxu0 %v7113_v33 }
 0xdbe   :  { %v5749_v19 = vpop.trf.xlu0  ;;  %9392 = vmatpush3.bf16.msra.mxu0 %v7113_v33  ;;  %v10326_v33 = vld [vmem:[%s14796_s9 + $0xd4] ss:$8 sps:$4 sm:$0xff]  }
 0xdc2   :  { %v5750_v27 = vpop.trf.xlu0 }
 0xdc3   :  { %v7114_v3 = vpack.c.bf16 %v5750_v27, %v5749_v19  ;;  %v10324_v19 = vld [vmem:[%s14796_s9 + $0xd0] ss:$8 sps:$4 sm:$0xff]   ;;  %v10332_v27 = vld [vmem:[%s14796_s9 + $0xf4] ss:$8 sps:$4 sm:$0xff]  }
 0xdc5   :  { %9393 = vmatprep.subr.bf16.mxu0 %v7114_v3 }
 0xdc6   :  { %9394 = vmatpush3.bf16.msra.mxu0 %v7114_v3 }
 0xdc7   :  { %7831 = vmatprep.subr.bf16.mxu0 %v10299_v5 }
 0xdc9   :  { %9396 = vmatmul.mubr.msk.bf16.vlgmr.msra.gmra.mrb[116].mxu0 %vm3507_vm1, %v7090_v1 }
 0xdca   :  { %7832 = vmatpush1.bf16.msra.mxu0 %v10297_v40  ;;  %7863 = vmatprep.mubr.bf16.mxu0 %v15055_v39 }
 0xdcb   :  { %7833 = vmatprep.subr.bf16.mxu0 %v10302_v12 }
 0xdce   :  { %7834 = vmatpush1.bf16.msra.mxu0 %v10300_v0 }
 0xdcf   :  { %7936 = vmatprep.subr.bf16.mxu0 %v10305_v63 }
 0xdd1   :  { %8819 = vmatmul.mubr.msk.bf16.vlgmr.msra.gmra.mrb[8].mxu0 %vm3507_vm1, %v7775_v42 }
 0xdd2   :  { %7873 = vmatprep.mubr.bf16.mxu0 %v15055_v39  ;;  %7937 = vmatpush1.bf16.msra.mxu0 %v10303_v13 }
 0xdd3   :  { %7938 = vmatprep.subr.bf16.mxu0 %v10308_v29 }
 0xdd6   :  { %7939 = vmatpush1.bf16.msra.mxu0 %v10306_v30 }
 0xdd7   :  { %8041 = vmatprep.subr.bf16.mxu0 %v10311_v43 }
 0xdd9   :  { %8820 = vmatmul.mubr.msk.bf16.gmra.mrb[12].mxu0 %vm3507_vm1, %v7776_v62  ;;  %v10309_v62 = vld [vmem:[%s14796_s9 + $0x80] ss:$8 sps:$4 sm:$0xff]  }
 0xdda   :  { %7883 = vmatprep.mubr.bf16.mxu0 %v15055_v39 }
 0xde1   :  { %8821 = vmatmul.mubr.msk.bf16.gmra.mrb[16].mxu0 %vm3507_vm1, %v7777_v60 }
 0xde2   :  { %7893 = vmatprep.mubr.bf16.mxu0 %v15055_v39 }
 0xde4   :  { %v14649_v4 = vpop.f32.mrb[88].mxu0 }
 0xde5   :  { %v7375_v9 = vpop.f32.mrb[89].mxu0 }
 0xde6   :  { %v14651_v42 = vpop.f32.mrb[90].mxu0 }
 0xde7   :  { %v7784_v22 = vpack.c.bf16 %v14651_v42, %v14649_v4  ;;  %v7378_v16 = vpop.f32.mrb[91].mxu0  ;;  %v211_v4 = vlaneseq }
 0xde8   :  { %v7783_v53 = vpack.c.bf16 %v7378_v16, %v7375_v9 }
 0xde9   :  { %8822 = vmatmul.mubr.msk.bf16.gmra.mrb[20].mxu0 %vm3507_vm1, %v7778_v56  ;;  %v212_v9 = vshrl.u32 %v211_v4, 7  ;;  %v15071_v4 = vld [vmem:[#allocation29_spill] sm:$0xff] }
 0xdea   :  { %7968 = vmatprep.mubr.bf16.mxu0 %v15055_v39 }
 0xdeb   :  { %v213_v42 = vsub.s32 0, %v212_v9  ;;  %v217_v16 = vsub.s32 1, %v212_v9 }
 0xdf1   :  { %8827 = vmatmul.mubr.msk.bf16.vlgmr.msra.gmra.mrb[8].mxu0 %vm3507_vm1, %v7779_v2 }
 0xdf2   :  { %7978 = vmatprep.mubr.bf16.mxu0 %v15055_v39  ;;  %8042 = vmatpush1.bf16.msra.mxu0 %v10309_v62 }
 0xdf3   :  { %8043 = vmatprep.subr.bf16.mxu0 %v10314_v11  ;;  %v15056_v11 = vld [vmem:[#allocation32_spill] sm:$0xff] }
 0xdf4   :  { %v9349_v56 = vpop.f32.mrb[92].mxu0 }
 0xdf5   :  { %v7430_v52 = vpop.f32.mrb[93].mxu0 }
 0xdf6   :  { %8044 = vmatpush1.bf16.msra.mxu0 %v10312_v54  ;;  %v9350_v60 = vpop.f32.mrb[94].mxu0 }
 0xdf7   :  { %8146 = vmatprep.subr.bf16.mxu0 %v10317_v32  ;;  %v7786_v7 = vpack.c.bf16 %v9350_v60, %v9349_v56  ;;  %v7433_v17 = vpop.f32.mrb[95].mxu0  ;;  %v15057_v32 = vld [vmem:[#allocation16_spill] sm:$0xff]  ;;  %v15058_v60 = vld [vmem:[#allocation17_spill] sm:$0xff] }
 0xdf8   :  { %v7785_v2 = vpack.c.bf16 %v7433_v17, %v7430_v52 }
 0xdf9   :  { %8828 = vmatmul.mubr.msk.bf16.gmra.mrb[12].mxu0 %vm3507_vm1, %v7780_v61 }
 0xdfa   :  { %7988 = vmatprep.mubr.bf16.mxu0 %v15055_v39 }
 0xdfc   :  { %v9357_v34 = vpop.f32.mrb[96].mxu0 }
 0xdfd   :  { %v7485_v41 = vpop.f32.mrb[97].mxu0 }
 0xdfe   :  { %v9358_v51 = vpop.f32.mrb[98].mxu0 }
 0xdff   :  { %v7788_v20 = vpack.c.bf16 %v9358_v51, %v9357_v34  ;;  %v7488_v15 = vpop.f32.mrb[99].mxu0 }
 0xe00   :  { %v7787_v21 = vpack.c.bf16 %v7488_v15, %v7485_v41 }
 0xe01   :  { %8829 = vmatmul.mubr.msk.bf16.gmra.mrb[16].mxu0 %vm3507_vm1, %v7781_v58  ;;  %v10320_v58 = vld [vmem:[%s14796_s9 + $0xb4] ss:$8 sps:$4 sm:$0xff]  }
 0xe02   :  { %7998 = vmatprep.mubr.bf16.mxu0 %v15055_v39 }
 0xe04   :  { %v9365_v47 = vpop.f32.mrb[100].mxu0 }
 0xe05   :  { %v7540_v46 = vpop.f32.mrb[101].mxu0 }
 0xe06   :  { %v9366_v14 = vpop.f32.mrb[102].mxu0 }
 0xe07   :  { %v7790_v36 = vpack.c.bf16 %v9366_v14, %v9365_v47  ;;  %v7543_v61 = vpop.f32.mrb[103].mxu0  ;;  %v15060_v47 = vld [vmem:[#allocation21_spill] sm:$0xff]  ;;  %v15061_v14 = vld [vmem:[#allocation34_spill] sm:$0xff] }
 0xe08   :  { %v7789_v44 = vpack.c.bf16 %v7543_v61, %v7540_v46 }
 0xe09   :  { %8830 = vmatmul.mubr.msk.bf16.gmra.mrb[20].mxu0 %vm3507_vm1, %v7782_v31 }
 0xe0a   :  { %8073 = vmatprep.mubr.bf16.mxu0 %v15055_v39 }
 0xe0c   :  { %v9373_v8 = vpop.f32.mrb[104].mxu0 }
 0xe0d   :  { %v7595_v6 = vpop.f32.mrb[105].mxu0 }
 0xe0e   :  { %v9374_v23 = vpop.f32.mrb[106].mxu0 }
 0xe0f   :  { %v7792_v18 = vpack.c.bf16 %v9374_v23, %v9373_v8  ;;  %v7598_v26 = vpop.f32.mrb[107].mxu0  ;;  %v15063_v23 = vld [vmem:[#allocation33_spill] sm:$0xff] }
 0xe10   :  { %v7791_v38 = vpack.c.bf16 %v7598_v26, %v7595_v6 }
 0xe11   :  { %8835 = vmatmul.mubr.msk.bf16.vlgmr.msra.gmra.mrb[8].mxu0 %vm3507_vm1, %v7783_v53 }
 0xe12   :  { %8083 = vmatprep.mubr.bf16.mxu0 %v15055_v39  ;;  %8147 = vmatpush1.bf16.msra.mxu0 %v10315_v48 }
 0xe13   :  { %8148 = vmatprep.subr.bf16.mxu0 %v10320_v58 }
 0xe14   :  { %v9381_v31 = vpop.f32.mrb[108].mxu0 }
 0xe15   :  { %v7650_v55 = vpop.f32.mrb[109].mxu0 }
 0xe16   :  { %8149 = vmatpush1.bf16.msra.mxu0 %v10318_v35  ;;  %v9382_v28 = vpop.f32.mrb[110].mxu0 }
 0xe17   :  { %8251 = vmatprep.subr.bf16.mxu0 %v10323_v25  ;;  %v7794_v49 = vpack.c.bf16 %v9382_v28, %v9381_v31  ;;  %v7653_v45 = vpop.f32.mrb[111].mxu0  ;;  %v15064_v31 = vld [vmem:[#allocation35_spill] sm:$0xff]  ;;  %v15065_v28 = vld [vmem:[#allocation13_spill] sm:$0xff] }
 0xe18   :  { %v7793_v59 = vpack.c.bf16 %v7653_v45, %v7650_v55 }
 0xe19   :  { %8836 = vmatmul.mubr.msk.bf16.gmra.mrb[12].mxu0 %vm3507_vm1, %v7784_v22  ;;  %v209_v22 = vld [vmem:[%s14797_s10] sm:$0x3]  ;;  %s10807_s10 = smov [#allocation8]  }
 0xe1a   :  { %8093 = vmatprep.mubr.bf16.mxu0 %v15055_v39  ;;  %v214_v53 = vrot.slane %v209_v22, %v213_v42  ;;  %v218_v62 = vrot.slane %v209_v22, %v217_v16  ;;  %s8546_s29 = sshll.u32 %s10807_s10, 4  ;;  %s8547_s29 = int_to_ptr.vmem [resolvable:$true] %s8546_s29 }
 0xe1b   :  { %s10767_s30 = scalar_lea.vmem %s8547_s29, 2048  ;;  %p10772_p11 = scmp.lt.s32.totalorder %s8547_s29, %s8547_s29 }
 0xe1c   :  { %v9431_v54 = vadd.f32 %v15056_v11, %v214_v53  ;;  %v9433_v56 = vadd.f32 %v15057_v32, %v218_v62  ;;  %v9439_v46 = vadd.f32 %v15060_v47, %v214_v53  ;;  %v9445_v58 = vadd.f32 %v15063_v23, %v218_v62  ;;  %p10768_p10 = scmp.ne.s32.totalorder %s8547_s29, %s10767_s30  ;;  %p10773_p12 = scmp.lt.s32.totalorder %s10767_s30, %s10767_s30 }
 0xe1d   :  { %v9447_v55 = vadd.f32 %v15064_v31, %v214_v53  ;;  %v9461_v9 = vadd.f32 %v15071_v4, %v218_v62 }
 0xe1e   :  { %p10774_p13 = por %p10773_p12, %p10772_p11 }
 0xe20   :  { %p10775_p0 = pnand %p10774_p13, %p10768_p10 }
 0xe21   :  { %8837 = vmatmul.mubr.msk.bf16.gmra.mrb[16].mxu0 %vm3507_vm1, %v7785_v2  ;;  %v15059_v2 = vld [vmem:[#allocation20_spill] sm:$0xff] }
 0xe22   :  { %8103 = vmatprep.mubr.bf16.mxu0 %v15055_v39  ;;  %v9437_v34 = vadd.f32 %v15059_v2, %v218_v62 }
 0xe29   :  { %8838 = vmatmul.mubr.msk.bf16.gmra.mrb[20].mxu0 %vm3507_vm1, %v7786_v7  ;;  %v9435_v7 = vadd.f32 %v15058_v60, %v214_v53 }
 0xe2a   :  { %8178 = vmatprep.mubr.bf16.mxu0 %v15055_v39 }
 0xe31   :  { %8843 = vmatmul.mubr.msk.bf16.vlgmr.msra.gmra.mrb[8].mxu0 %vm3507_vm1, %v7787_v21 }
 0xe32   :  { %8188 = vmatprep.mubr.bf16.mxu0 %v15055_v39  ;;  %8252 = vmatpush1.bf16.msra.mxu0 %v10321_v50 }
 0xe33   :  { %8253 = vmatprep.subr.bf16.mxu0 %v10326_v33 }
 0xe36   :  { %8254 = vmatpush1.bf16.msra.mxu0 %v10324_v19 }
 0xe37   :  { %8356 = vmatprep.subr.bf16.mxu0 %v10329_v24  ;;  %v15067_v24 = vld [vmem:[#allocation19_spill] sm:$0xff] }
 0xe39   :  { %8844 = vmatmul.mubr.msk.bf16.gmra.mrb[12].mxu0 %vm3507_vm1, %v7788_v20 }
 0xe3a   :  { %8198 = vmatprep.mubr.bf16.mxu0 %v15055_v39 }
 0xe41   :  { %8845 = vmatmul.mubr.msk.bf16.gmra.mrb[16].mxu0 %vm3507_vm1, %v7789_v44  ;;  %v15062_v44 = vld [vmem:[#allocation36_spill] sm:$0xff] }
 0xe42   :  { %8208 = vmatprep.mubr.bf16.mxu0 %v15055_v39  ;;  %v9443_v8 = vadd.f32 %v15062_v44, %v214_v53 }
 0xe49   :  { %8846 = vmatmul.mubr.msk.bf16.gmra.mrb[20].mxu0 %vm3507_vm1, %v7790_v36  ;;  %v9441_v36 = vadd.f32 %v15061_v14, %v218_v62 }
 0xe4a   :  { %8283 = vmatprep.mubr.bf16.mxu0 %v15055_v39 }
 0xe51   :  { %8851 = vmatmul.mubr.msk.bf16.vlgmr.msra.gmra.mrb[8].mxu0 %vm3507_vm1, %v7791_v38 }
 0xe52   :  { %8293 = vmatprep.mubr.bf16.mxu0 %v15055_v39  ;;  %8357 = vmatpush1.bf16.msra.mxu0 %v10327_v37  ;;  %v9453_v37 = vadd.f32 %v15067_v24, %v218_v62 }
 0xe53   :  { %8358 = vmatprep.subr.bf16.mxu0 %v10332_v27 }
 0xe56   :  { %8359 = vmatpush1.bf16.msra.mxu0 %v10330_v57 }
 0xe59   :  { %8852 = vmatmul.mubr.msk.bf16.gmra.mrb[12].mxu0 %vm3507_vm1, %v7792_v18 }
 0xe5a   :  { %8303 = vmatprep.mubr.bf16.mxu0 %v15055_v39 }
 0xe61   :  { %8853 = vmatmul.mubr.msk.bf16.gmra.mrb[16].mxu0 %vm3507_vm1, %v7793_v59  ;;  %v15066_v59 = vld [vmem:[#allocation15_spill] sm:$0xff] }
 0xe62   :  { %8313 = vmatprep.mubr.bf16.mxu0 %v15055_v39  ;;  %v9451_v50 = vadd.f32 %v15066_v59, %v214_v53 }
 0xe69   :  { %8854 = vmatmul.mubr.msk.bf16.gmra.mrb[20].mxu0 %vm3507_vm1, %v7794_v49  ;;  %v9449_v49 = vadd.f32 %v15065_v28, %v218_v62 }
 0xe6a   :  { %8388 = vmatprep.mubr.bf16.mxu0 %v15055_v39 }
 0xe8c   :  { %v9389_v3 = vpop.f32.mrb[112].mxu0 }
 0xe8d   :  { %v7705_v5 = vpop.f32.mrb[113].mxu0 }
 0xe8e   :  { %v9390_v10 = vpop.f32.mrb[114].mxu0 }
 0xe8f   :  { %v7796_v40 = vpack.c.bf16 %v9390_v10, %v9389_v3  ;;  %v7708_v1 = vpop.f32.mrb[115].mxu0 }
 0xe90   :  { %v7795_v12 = vpack.c.bf16 %v7708_v1, %v7705_v5 }
 0xe92   :  { %8859 = vmatmul.mubr.msk.bf16.vlgmr.msra.gmra.mrb[8].mxu0 %vm3507_vm1, %v7795_v12  ;;  %v15069_v12 = vld [vmem:[#allocation25_spill] sm:$0xff] }
 0xe93   :  { %8398 = vmatprep.mubr.bf16.mxu0 %v15055_v39 }
 0xe9a   :  { %8860 = vmatmul.mubr.msk.bf16.gmra.mrb[12].mxu0 %vm3507_vm1, %v7796_v40  ;;  %v15068_v40 = vld [vmem:[#allocation23_spill] sm:$0xff] }
 0xe9b   :  { %8408 = vmatprep.mubr.bf16.mxu0 %v15055_v39  ;;  %v9455_v1 = vadd.f32 %v15068_v40, %v214_v53 }
 0xe9c   :  { %v9397_v0 = vpop.f32.mrb[116].mxu0 }
 0xe9d   :  { %v7760_v63 = vpop.f32.mrb[117].mxu0 }
 0xe9e   :  { %v9398_v13 = vpop.f32.mrb[118].mxu0 }
 0xe9f   :  { %v7798_v29 = vpack.c.bf16 %v9398_v13, %v9397_v0  ;;  %v7763_v30 = vpop.f32.mrb[119].mxu0  ;;  %v9457_v0 = vadd.f32 %v15069_v12, %v218_v62  ;;  %v15070_v13 = vld [vmem:[#allocation27_spill] sm:$0xff] }
 0xea0   :  { %v7797_v43 = vpack.c.bf16 %v7763_v30, %v7760_v63 }
 0xea2   :  { %8861 = vmatmul.mubr.msk.bf16.gmra.mrb[16].mxu0 %vm3507_vm1, %v7797_v43 }
 0xea3   :  { %8418 = vmatprep.mubr.bf16.mxu0 %v15055_v39 }
 0xeaa   :  { %8862 = vmatmul.mubr.msk.bf16.gmra.mrb[20].mxu0 %vm3507_vm1, %v7798_v29  ;;  %v9459_v29 = vadd.f32 %v15070_v13, %v214_v53 }
 0xf65   :  { %v8390_v52 = vpop.f32.mrb[8].mxu0 }
 0xf66   :  { %v9432_v39 = vadd.f32 %v9431_v54, %v8390_v52  ;;  %v8392_v17 = vpop.f32.mrb[9].mxu0 }
 0xf67   :  { %v9434_v41 = vadd.f32 %v9433_v56, %v8392_v17  ;;  %v8394_v51 = vpop.f32.mrb[10].mxu0 }
 0xf68   :  { %8525 = vst [vmem:[#allocation8] sm:$0xff] %v9432_v39  ;;  %v9436_v20 = vadd.f32 %v9435_v7, %v8394_v51  ;;  %v8396_v15 = vpop.f32.mrb[11].mxu0 }
 0xf69   :  { %8526 = vst [vmem:[#allocation8 + $0x8] sm:$0xff] %v9434_v41  ;;  %v9438_v21 = vadd.f32 %v9437_v34, %v8396_v15 }
 0xf6a   :  { %8527 = vst [vmem:[#allocation8 + $0x10] sm:$0xff] %v9436_v20 }
 0xf6b   :  { %8528 = vst [vmem:[#allocation8 + $0x18] sm:$0xff] %v9438_v21 }
 0xf6d   :  { %v8400_v61 = vpop.f32.mrb[12].mxu0 }
 0xf6e   :  { %v9440_v6 = vadd.f32 %v9439_v46, %v8400_v61  ;;  %v8402_v48 = vpop.f32.mrb[13].mxu0 }
 0xf6f   :  { %v9442_v18 = vadd.f32 %v9441_v36, %v8402_v48  ;;  %v8404_v26 = vpop.f32.mrb[14].mxu0 }
 0xf70   :  { %8529 = vst [vmem:[#allocation8 + $0x20] sm:$0xff] %v9440_v6  ;;  %v9444_v38 = vadd.f32 %v9443_v8, %v8404_v26  ;;  %v8406_v35 = vpop.f32.mrb[15].mxu0 }
 0xf71   :  { %8530 = vst [vmem:[#allocation8 + $0x28] sm:$0xff] %v9442_v18  ;;  %v9446_v25 = vadd.f32 %v9445_v58, %v8406_v35 }
 0xf72   :  { %8531 = vst [vmem:[#allocation8 + $0x30] sm:$0xff] %v9444_v38 }
 0xf73   :  { %8532 = vst [vmem:[#allocation8 + $0x38] sm:$0xff] %v9446_v25 }
 0xf75   :  { %v8410_v45 = vpop.f32.mrb[16].mxu0 }
 0xf76   :  { %v9448_v33 = vadd.f32 %v9447_v55, %v8410_v45  ;;  %v8412_v19 = vpop.f32.mrb[17].mxu0 }
 0xf77   :  { %v9450_v27 = vadd.f32 %v9449_v49, %v8412_v19  ;;  %v8414_v57 = vpop.f32.mrb[18].mxu0 }
 0xf78   :  { %8533 = vst [vmem:[#allocation8 + $0x40] sm:$0xff] %v9448_v33  ;;  %v9452_v3 = vadd.f32 %v9451_v50, %v8414_v57  ;;  %v8416_v5 = vpop.f32.mrb[19].mxu0 }
 0xf79   :  { %8534 = vst [vmem:[#allocation8 + $0x48] sm:$0xff] %v9450_v27  ;;  %v9454_v10 = vadd.f32 %v9453_v37, %v8416_v5 }
 0xf7a   :  { %8535 = vst [vmem:[#allocation8 + $0x50] sm:$0xff] %v9452_v3 }
 0xf7b   :  { %8536 = vst [vmem:[#allocation8 + $0x58] sm:$0xff] %v9454_v10 }
 0xf7d   :  { %v8420_v63 = vpop.f32.mrb[20].mxu0 }
 0xf7e   :  { %v9456_v30 = vadd.f32 %v9455_v1, %v8420_v63  ;;  %v8422_v43 = vpop.f32.mrb[21].mxu0 }
 0xf7f   :  { %v9458_v42 = vadd.f32 %v9457_v0, %v8422_v43  ;;  %v8424_v22 = vpop.f32.mrb[22].mxu0 }
 0xf80   :  { %8537 = vst [vmem:[#allocation8 + $0x60] sm:$0xff] %v9456_v30  ;;  %v9460_v16 = vadd.f32 %v9459_v29, %v8424_v22  ;;  %v8426_v11 = vpop.f32.mrb[23].mxu0 }
 0xf81   :  { %8538 = vst [vmem:[#allocation8 + $0x68] sm:$0xff] %v9458_v42  ;;  %v9462_v54 = vadd.f32 %v9461_v9, %v8426_v11 }
 0xf82   :  { %8539 = vst [vmem:[#allocation8 + $0x70] sm:$0xff] %v9460_v16 }
 0xf83   :  { %8540 = vst [vmem:[#allocation8 + $0x78] sm:$0xff] %v9462_v54 }
 0xf84   :  { %10778 = shalt.err (!%p10775_p0)
}
 0xf85   :  { %s10779_s27 = scalar_lea.hbm %s14798_s11, 2048 }
 0xf86   :  { %p10780_p1 = scmp.ne.s32.totalorder %s14798_s11, %s10779_s27  ;;  %p10783_p2 = scmp.lt.u32.totalorder %s10779_s27, %s14798_s11 }
 0xf88   :  { %p10785_p3 = pnand %p10783_p2, %p10780_p1 }
 0xf8a   :  { %10788 = shalt.err (!%p10785_p3)
}
 0xf8b   :  { %s10808_s14 = smov 256   ;;  %s10809_s15 = smov 16  }
 0xf8c   :  { %8552 = dma.vmem_to_hbm [thread:$0]  %s8547_s29, 2048, %s14798_s11, [#allocation4], %s10808_s14, %s10808_s14, %s10809_s15  }
 0xf8d   :  { %10793 = dma.done.wait [#allocation4], 2048  }
 0xf8e   :  { %10794 = vsyncadd [#allocation4], 4294965248 }
 0xf8f   :  { %8556 = vsyncpa [#allocation3], 1 }
 0xf90   :  { %8557 = vsyncpa [#allocation6], 1 }
 0xf91   :  { %8558 = vsyncpa [#allocation4], 1 }

</bundles_post_ra>
